<compile_context>
chip_gen: v5e
topology: v5e:2x2
jax: 0.10.0
libtpu: 0.0.40
codegen_flags: <defaults>
</compile_context>

<pallas_src>
from functools import partial

import jax
import jax.numpy as jnp
from jax import lax
from jax.experimental import pallas as pl
from jax.experimental.pallas import tpu as pltpu

# small compatibility shims (name changed across jax versions)
_MEMSPACE = getattr(pltpu, "MemorySpace", None) or getattr(pltpu, "TPUMemorySpace", None)
_COMPILER_PARAMS = getattr(pltpu, "CompilerParams", None) or getattr(pltpu, "TPUCompilerParams", None)


# ----------------------------- fused kernel -----------------------------
def _tripartite_kernel(ha_ref, hb_ref, hc_ref, wq_ref, wkv_ref, wr_ref, b_ref,
                       out_ref,
                       hq_ref, hkb_ref, hkc_ref, hvb_ref, hvc_ref,
                       *, num_heads, hidden_dim):
    nh, hd = num_heads, hidden_dim
    F = nh * hd
    inv_scale = 1.0 / (float(hd) ** 0.5)

    # ---- projections: 3 MXU matmuls (W_k|W_v fused into one operand) ----
    q2 = jnp.dot(ha_ref[...], wq_ref[...], preferred_element_type=jnp.float32)    # (ta, F)
    pb = jnp.dot(hb_ref[...], wkv_ref[...], preferred_element_type=jnp.float32)   # (Nb, 2F)
    pc = jnp.dot(hc_ref[...], wkv_ref[...], preferred_element_type=jnp.float32)   # (Nc, 2F)

    # ---- head split into head-major scratch (static lane slices only) ----
    for h in range(nh):
        lo, hi = h * hd, (h + 1) * hd
        hq_ref[h] = q2[:, lo:hi]              # Q[:, h, :]
        hkb_ref[h] = pb[:, lo:hi]             # K_b[:, h, :]
        hvb_ref[h] = pb[:, F + lo:F + hi]     # V_b[:, h, :]
        hkc_ref[h] = pc[:, lo:hi]             # K_c[:, h, :]
        hvc_ref[h] = pc[:, F + lo:F + hi]     # V_c[:, h, :]

    hq = hq_ref[...]    # (nh, ta, hd)
    hkb = hkb_ref[...]  # (nh, Nb, hd)
    hkc = hkc_ref[...]  # (nh, Nc, hd)
    hvb = hvb_ref[...]  # (nh, Nb, hd)
    hvc = hvc_ref[...]  # (nh, Nc, hd)
    wr = wr_ref[...]    # (Nc, hd): wr[c, d] = fc_w[c*hd + d]

    # row-major (row, head, d) views via a one-hot contraction over the head axis
    # (cheap VPU layout fix-up; avoids reshapes/transposes inside the kernel).
    rr = lax.broadcasted_iota(jnp.int32, (nh, nh), 0)
    cc = lax.broadcasted_iota(jnp.int32, (nh, nh), 1)
    sel = (rr == cc).astype(jnp.float32)[:, None, :, None]        # [head, 1, head', 1]
    rkb = jnp.sum(hkb[:, :, None, :] * sel, axis=0)               # (Nb, nh, hd)
    rvb = jnp.sum(hvb[:, :, None, :] * sel, axis=0)               # (Nb, nh, hd)
    rvc = jnp.sum(hvc[:, :, None, :] * sel, axis=0)               # (Nc, nh, hd)

    # ---- tripartite scores, layout [head, a, b, c]; Q.K terms on the MXU ----
    ab = jnp.einsum('nad,nbd->nab', hq, hkb, preferred_element_type=jnp.float32)
    ac = jnp.einsum('nad,ncd->nac', hq, hkc, preferred_element_type=jnp.float32)
    # torch's scores_bc.unsqueeze(0) broadcast (index-swapped; valid since Nb==Nc==nh):
    #   scores[a, n, b, c] += <K_b[n, b, :], K_c[c, b, :]>
    bc = jnp.sum(rkb[:, :, None, :] * hkc[None, :, :, :], axis=-1)        # [n, b, c]
    scores = (ab[:, :, :, None] + ac[:, :, None, :] + bc[:, None, :, :]) * inv_scale

    # ---- joint softmax over the flattened (b, c) pair ----
    m = jnp.max(jnp.max(scores, axis=-1, keepdims=True), axis=-2, keepdims=True)
    e = jnp.exp(scores - m)
    denom = jnp.sum(jnp.sum(e, axis=-1, keepdims=True), axis=-2, keepdims=True)
    alpha = e * pl.reciprocal(denom, approx=True)

    # ---- context weighting with the fc weight folded in ----
    # logit[a,n,b] = sum_{c,d} alpha[a,n,b,c] * (V_b[n,b,d] + V_c[n,c,d]) * wr[c,d] + bias
    a_ctx = jnp.sum(rvb[:, :, None, :] * wr[None, None, :, :], axis=-1)   # [n, b, c]
    b_ctx = jnp.sum(rvc * wr[None, :, :], axis=-1)                        # [n, c]
    ctx = a_ctx + b_ctx[:, None, :]                                       # [n, b, c]

    bias = b_ref[0]                                                       # scalar from SMEM
    logit = jnp.sum(alpha * ctx[:, None, :, :], axis=-1) + bias           # [n, a, b]
    prob = pl.reciprocal(1.0 + jnp.exp(-logit), approx=True)              # sigmoid (EUP)

    # lane-dense output (ta, nh*Nb): column block h carries head h
    nb = prob.shape[-1]
    for h in range(nh):
        out_ref[:, h * nb:(h + 1) * nb] = prob[h]


# ----------------------------- wrapper -----------------------------
def tripartite_attention(Ha, Hb, Hc, params, num_heads, hidden_dim, block_na=None):
    Wq, Wk, Wv, fc_w, fc_b = params
    Na, input_dim = Ha.shape
    Nb, Nc = Hb.shape[0], Hc.shape[0]
    nh, hd = num_heads, hidden_dim
    F = nh * hd
    assert Nb == nh and Nc == nh, \
        "torch module's broadcasting requires N_b == N_c == num_heads"
    assert Wq.shape == (input_dim, F) and Wk.shape == (input_dim, F) and Wv.shape == (input_dim, F)

    if block_na is None:  # tile N_a when it is large (keeps scores block in VMEM)
        block_na = 256 if (Na > 256 and Na % 256 == 0) else Na
    assert Na % block_na == 0
    grid = (Na // block_na,)

    wkv = jnp.concatenate([Wk, Wv], axis=1)              # (input_dim, 2F): [W_k | W_v]
    wr = fc_w.reshape(nh, hd).astype(jnp.float32)        # wr[c, d] = fc_w[c*hd + d]
    b1 = jnp.reshape(fc_b, (1,)).astype(jnp.float32)     # scalar bias -> SMEM

    kernel = partial(_tripartite_kernel, num_heads=nh, hidden_dim=hd)
    compiler_params = (_COMPILER_PARAMS(dimension_semantics=("parallel",))
                       if _COMPILER_PARAMS is not None else None)

    out2 = pl.pallas_call(
        kernel,
        out_shape=jax.ShapeDtypeStruct((Na, nh * Nb), jnp.float32),
        grid=grid,
        in_specs=[
            pl.BlockSpec((block_na, input_dim), lambda i: (i, 0)),   # H_a tile
            pl.BlockSpec((Nb, input_dim), lambda i: (0, 0)),         # H_b
            pl.BlockSpec((Nc, input_dim), lambda i: (0, 0)),         # H_c
            pl.BlockSpec((input_dim, F), lambda i: (0, 0)),          # W_q
            pl.BlockSpec((input_dim, 2 * F), lambda i: (0, 0)),      # [W_k | W_v]
            pl.BlockSpec((nh, hd), lambda i: (0, 0)),                # fc weight (c, d)
            pl.BlockSpec(memory_space=_MEMSPACE.SMEM),               # fc bias scalar
        ],
        out_specs=pl.BlockSpec((block_na, nh * Nb), lambda i: (i, 0)),
        scratch_shapes=[
            pltpu.VMEM((nh, block_na, hd), jnp.float32),  # head-major Q
            pltpu.VMEM((nh, Nb, hd), jnp.float32),        # head-major K_b
            pltpu.VMEM((nh, Nc, hd), jnp.float32),        # head-major K_c
            pltpu.VMEM((nh, Nb, hd), jnp.float32),        # head-major V_b
            pltpu.VMEM((nh, Nc, hd), jnp.float32),        # head-major V_c
        ],
        compiler_params=compiler_params,
    )(Ha, Hb, Hc, Wq, wkv, wr, b1)

    # (Na, nh*Nb) -> (Na, N_b, N_c); this matches torch's context.view(...) +
    # fc reinterpretation (out[a, b', c'] with b' = head, c' = b).
    return out2.reshape(Na, Nb, Nc)


# ------------------ pure-JAX reference (literal torch port) ------------------
def reference(Ha, Hb, Hc, params, num_heads, hidden_dim):
    Wq, Wk, Wv, fc_w, fc_b = params
    Na, Nb, Nc = Ha.shape[0], Hb.shape[0], Hc.shape[0]
    Q = (Ha @ Wq).reshape(Na, num_heads, hidden_dim)
    Kb = (Hb @ Wk).reshape(Nb, num_heads, hidden_dim)
    Kc = (Hc @ Wk).reshape(Nc, num_heads, hidden_dim)
    Vb = (Hb @ Wv).reshape(Nb, num_heads, hidden_dim)
    Vc = (Hc @ Wv).reshape(Nc, num_heads, hidden_dim)
    scale = hidden_dim ** 0.5
    sab = jnp.einsum('and,bnd->anb', Q, Kb) / scale
    sac = jnp.einsum('and,cnd->anc', Q, Kc) / scale
    sbc = jnp.einsum('bnd,cnd->bnc', Kb, Kc) / scale
    scores = sab[:, :, :, None] + sac[:, :, None, :] + sbc[None, :, :, :]
    alpha = jax.nn.softmax(scores.reshape(Na, num_heads, -1), axis=-1)
    alpha = alpha.reshape(Na, num_heads, Nb, Nc)
    Vb_e = jnp.broadcast_to(Vb[None, :, :, None, :], (Na, num_heads, Nb, Nc, hidden_dim))
    Vc_e = jnp.broadcast_to(Vc[None, :, None, :, :], (Na, num_heads, Nb, Nc, hidden_dim))
    context = alpha[..., None] * (Vb_e + Vc_e)
    context = context.reshape(Na, Nb, Nc, -1)
    return jax.nn.sigmoid(context @ fc_w + fc_b)


if __name__ == "__main__":
    input_dim, hidden_dim, num_heads = 16, 8, 8
    # torch module's broadcast/expand only type-checks when N_b == N_c == num_heads
    Na, Nb, Nc = 8, num_heads, num_heads

    key = jax.random.PRNGKey(0)
    ks = jax.random.split(key, 8)
    Ha = jax.random.normal(ks[0], (Na, input_dim), jnp.float32)
    Hb = jax.random.normal(ks[1], (Nb, input_dim), jnp.float32)
    Hc = jax.random.normal(ks[2], (Nc, input_dim), jnp.float32)
    # nn.Linear weights stored transposed as (in, out); fc as a (F,) vector + scalar bias
    Wq = jax.random.normal(ks[3], (input_dim, hidden_dim * num_heads), jnp.float32) * 0.1
    Wk = jax.random.normal(ks[4], (input_dim, hidden_dim * num_heads), jnp.float32) * 0.1
    Wv = jax.random.normal(ks[5], (input_dim, hidden_dim * num_heads), jnp.float32) * 0.1
    fc_w = jax.random.normal(ks[6], (hidden_dim * num_heads,), jnp.float32) * 0.1
    fc_b = (jax.random.normal(ks[7], (), jnp.float32) * 0.1).astype(jnp.float32)
    params = (Wq, Wk, Wv, fc_w, fc_b)

    fwd = jax.jit(lambda a, b, c, p: tripartite_attention(a, b, c, p, num_heads, hidden_dim))
    out = jax.block_until_ready(fwd(Ha, Hb, Hc, params))

    ref = reference(Ha, Hb, Hc, params, num_heads, hidden_dim)
    assert out.shape == (Na, Nb, Nc), out.shape
    # tolerance covers the two approximate EUP reciprocals (softmax + sigmoid);
    # the exact-math variant of the kernel agrees with the reference to ~1e-5.
    if not bool(jnp.allclose(out, ref, atol=5e-3, rtol=5e-3)):
        raise AssertionError("Pallas kernel output does not match reference")
    print("KERNEL_OK")
</pallas_src>

<mosaic_0001>
module attributes {stable_mosaic.version = 11 : i64} {
  func.func @_tripartite_kernel(%arg0: i32, %arg1: memref<8x16xf32, #tpu.memory_space<vmem>>, %arg2: memref<8x16xf32, #tpu.memory_space<vmem>>, %arg3: memref<8x16xf32, #tpu.memory_space<vmem>>, %arg4: memref<16x64xf32, #tpu.memory_space<vmem>>, %arg5: memref<16x128xf32, #tpu.memory_space<vmem>>, %arg6: memref<8x8xf32, #tpu.memory_space<vmem>>, %arg7: memref<1xf32, #tpu.memory_space<smem>>, %arg8: memref<8x64xf32, #tpu.memory_space<vmem>>, %arg9: memref<8x8x8xf32, #tpu.memory_space<vmem>>, %arg10: memref<8x8x8xf32, #tpu.memory_space<vmem>>, %arg11: memref<8x8x8xf32, #tpu.memory_space<vmem>>, %arg12: memref<8x8x8xf32, #tpu.memory_space<vmem>>, %arg13: memref<8x8x8xf32, #tpu.memory_space<vmem>>) attributes {dimension_semantics = [#tpu.dimension_semantics<parallel>], iteration_bounds = array<i64: 1>, scalar_prefetch = 0 : i64, scratch_operands = 5 : i64, tpu.core_type = #tpu.core_type<tc>, window_params = [{transform_indices = @transform_0, window_bounds = array<i64: 8, 16>}, {pipeline_mode = #tpu.pipeline_mode<synchronous>, transform_indices = @transform_1, window_bounds = array<i64: 8, 16>}, {pipeline_mode = #tpu.pipeline_mode<synchronous>, transform_indices = @transform_2, window_bounds = array<i64: 8, 16>}, {pipeline_mode = #tpu.pipeline_mode<synchronous>, transform_indices = @transform_3, window_bounds = array<i64: 16, 64>}, {pipeline_mode = #tpu.pipeline_mode<synchronous>, transform_indices = @transform_4, window_bounds = array<i64: 16, 128>}, {pipeline_mode = #tpu.pipeline_mode<synchronous>, transform_indices = @transform_5, window_bounds = array<i64: 8, 8>}, {transform_indices = @transform_6, window_bounds = array<i64: 1>}, {transform_indices = @transform_7, window_bounds = array<i64: 8, 64>}]} {
    %c0 = arith.constant 0 : index
    %c0_0 = arith.constant 0 : index
    %0 = vector.load %arg1[%c0, %c0_0] : memref<8x16xf32, #tpu.memory_space<vmem>>, vector<8x16xf32>
    %c0_1 = arith.constant 0 : index
    %c0_2 = arith.constant 0 : index
    %1 = vector.load %arg4[%c0_1, %c0_2] : memref<16x64xf32, #tpu.memory_space<vmem>>, vector<16x64xf32>
    %cst = arith.constant dense<0.000000e+00> : vector<8x64xf32>
    %2 = tpu.matmul %0, %1, %cst {dimension_numbers = #tpu.dot_dimension_numbers<[1], [0], [0], [1], [0, 0, 1, 1], [], []>} : vector<8x16xf32>, vector<16x64xf32>, vector<8x64xf32> -> vector<8x64xf32>
    %c0_3 = arith.constant 0 : index
    %c0_4 = arith.constant 0 : index
    %3 = vector.load %arg2[%c0_3, %c0_4] : memref<8x16xf32, #tpu.memory_space<vmem>>, vector<8x16xf32>
    %c0_5 = arith.constant 0 : index
    %c0_6 = arith.constant 0 : index
    %4 = vector.load %arg5[%c0_5, %c0_6] : memref<16x128xf32, #tpu.memory_space<vmem>>, vector<16x128xf32>
    %cst_7 = arith.constant dense<0.000000e+00> : vector<8x128xf32>
    %5 = tpu.matmul %3, %4, %cst_7 {dimension_numbers = #tpu.dot_dimension_numbers<[1], [0], [0], [1], [0, 0, 1, 1], [], []>} : vector<8x16xf32>, vector<16x128xf32>, vector<8x128xf32> -> vector<8x128xf32>
    %c0_8 = arith.constant 0 : index
    %c0_9 = arith.constant 0 : index
    %6 = vector.load %arg3[%c0_8, %c0_9] : memref<8x16xf32, #tpu.memory_space<vmem>>, vector<8x16xf32>
    %c0_10 = arith.constant 0 : index
    %c0_11 = arith.constant 0 : index
    %7 = vector.load %arg5[%c0_10, %c0_11] : memref<16x128xf32, #tpu.memory_space<vmem>>, vector<16x128xf32>
    %cst_12 = arith.constant dense<0.000000e+00> : vector<8x128xf32>
    %8 = tpu.matmul %6, %7, %cst_12 {dimension_numbers = #tpu.dot_dimension_numbers<[1], [0], [0], [1], [0, 0, 1, 1], [], []>} : vector<8x16xf32>, vector<16x128xf32>, vector<8x128xf32> -> vector<8x128xf32>
    %9 = vector.extract_strided_slice %2 {offsets = [0, 0], sizes = [8, 8], strides = [1, 1]} : vector<8x64xf32> to vector<8x8xf32>
    %c0_13 = arith.constant 0 : index
    %c0_14 = arith.constant 0 : index
    %c0_15 = arith.constant 0 : index
    %10 = vector.load %arg9[%c0_13, %c0_14, %c0_15] : memref<8x8x8xf32, #tpu.memory_space<vmem>>, vector<1x8x8xf32>
    %11 = vector.shape_cast %10 : vector<1x8x8xf32> to vector<8x8xf32>
    %12 = vector.shape_cast %9 : vector<8x8xf32> to vector<1x8x8xf32>
    tpu.vector_store %arg9[%c0_13, %c0_14, %c0_15], %12 {strides = array<i32>} : memref<8x8x8xf32, #tpu.memory_space<vmem>>, vector<1x8x8xf32>,
    %13 = vector.extract_strided_slice %5 {offsets = [0, 0], sizes = [8, 8], strides = [1, 1]} : vector<8x128xf32> to vector<8x8xf32>
    %c0_16 = arith.constant 0 : index
    %c0_17 = arith.constant 0 : index
    %c0_18 = arith.constant 0 : index
    %14 = vector.load %arg10[%c0_16, %c0_17, %c0_18] : memref<8x8x8xf32, #tpu.memory_space<vmem>>, vector<1x8x8xf32>
    %15 = vector.shape_cast %14 : vector<1x8x8xf32> to vector<8x8xf32>
    %16 = vector.shape_cast %13 : vector<8x8xf32> to vector<1x8x8xf32>
    tpu.vector_store %arg10[%c0_16, %c0_17, %c0_18], %16 {strides = array<i32>} : memref<8x8x8xf32, #tpu.memory_space<vmem>>, vector<1x8x8xf32>,
    %17 = vector.extract_strided_slice %5 {offsets = [0, 64], sizes = [8, 8], strides = [1, 1]} : vector<8x128xf32> to vector<8x8xf32>
    %c0_19 = arith.constant 0 : index
    %c0_20 = arith.constant 0 : index
    %c0_21 = arith.constant 0 : index
    %18 = vector.load %arg12[%c0_19, %c0_20, %c0_21] : memref<8x8x8xf32, #tpu.memory_space<vmem>>, vector<1x8x8xf32>
    %19 = vector.shape_cast %18 : vector<1x8x8xf32> to vector<8x8xf32>
    %20 = vector.shape_cast %17 : vector<8x8xf32> to vector<1x8x8xf32>
    tpu.vector_store %arg12[%c0_19, %c0_20, %c0_21], %20 {strides = array<i32>} : memref<8x8x8xf32, #tpu.memory_space<vmem>>, vector<1x8x8xf32>,
    %21 = vector.extract_strided_slice %8 {offsets = [0, 0], sizes = [8, 8], strides = [1, 1]} : vector<8x128xf32> to vector<8x8xf32>
    %c0_22 = arith.constant 0 : index
    %c0_23 = arith.constant 0 : index
    %c0_24 = arith.constant 0 : index
    %22 = vector.load %arg11[%c0_22, %c0_23, %c0_24] : memref<8x8x8xf32, #tpu.memory_space<vmem>>, vector<1x8x8xf32>
    %23 = vector.shape_cast %22 : vector<1x8x8xf32> to vector<8x8xf32>
    %24 = vector.shape_cast %21 : vector<8x8xf32> to vector<1x8x8xf32>
    tpu.vector_store %arg11[%c0_22, %c0_23, %c0_24], %24 {strides = array<i32>} : memref<8x8x8xf32, #tpu.memory_space<vmem>>, vector<1x8x8xf32>,
    %25 = vector.extract_strided_slice %8 {offsets = [0, 64], sizes = [8, 8], strides = [1, 1]} : vector<8x128xf32> to vector<8x8xf32>
    %c0_25 = arith.constant 0 : index
    %c0_26 = arith.constant 0 : index
    %c0_27 = arith.constant 0 : index
    %26 = vector.load %arg13[%c0_25, %c0_26, %c0_27] : memref<8x8x8xf32, #tpu.memory_space<vmem>>, vector<1x8x8xf32>
    %27 = vector.shape_cast %26 : vector<1x8x8xf32> to vector<8x8xf32>
    %28 = vector.shape_cast %25 : vector<8x8xf32> to vector<1x8x8xf32>
    tpu.vector_store %arg13[%c0_25, %c0_26, %c0_27], %28 {strides = array<i32>} : memref<8x8x8xf32, #tpu.memory_space<vmem>>, vector<1x8x8xf32>,
    %29 = vector.extract_strided_slice %2 {offsets = [0, 8], sizes = [8, 8], strides = [1, 1]} : vector<8x64xf32> to vector<8x8xf32>
    %c1 = arith.constant 1 : index
    %c0_28 = arith.constant 0 : index
    %c0_29 = arith.constant 0 : index
    %30 = vector.load %arg9[%c1, %c0_28, %c0_29] : memref<8x8x8xf32, #tpu.memory_space<vmem>>, vector<1x8x8xf32>
    %31 = vector.shape_cast %30 : vector<1x8x8xf32> to vector<8x8xf32>
    %32 = vector.shape_cast %29 : vector<8x8xf32> to vector<1x8x8xf32>
    tpu.vector_store %arg9[%c1, %c0_28, %c0_29], %32 {strides = array<i32>} : memref<8x8x8xf32, #tpu.memory_space<vmem>>, vector<1x8x8xf32>,
    %33 = vector.extract_strided_slice %5 {offsets = [0, 8], sizes = [8, 8], strides = [1, 1]} : vector<8x128xf32> to vector<8x8xf32>
    %c1_30 = arith.constant 1 : index
    %c0_31 = arith.constant 0 : index
    %c0_32 = arith.constant 0 : index
    %34 = vector.load %arg10[%c1_30, %c0_31, %c0_32] : memref<8x8x8xf32, #tpu.memory_space<vmem>>, vector<1x8x8xf32>
    %35 = vector.shape_cast %34 : vector<1x8x8xf32> to vector<8x8xf32>
    %36 = vector.shape_cast %33 : vector<8x8xf32> to vector<1x8x8xf32>
    tpu.vector_store %arg10[%c1_30, %c0_31, %c0_32], %36 {strides = array<i32>} : memref<8x8x8xf32, #tpu.memory_space<vmem>>, vector<1x8x8xf32>,
    %37 = vector.extract_strided_slice %5 {offsets = [0, 72], sizes = [8, 8], strides = [1, 1]} : vector<8x128xf32> to vector<8x8xf32>
    %c1_33 = arith.constant 1 : index
    %c0_34 = arith.constant 0 : index
    %c0_35 = arith.constant 0 : index
    %38 = vector.load %arg12[%c1_33, %c0_34, %c0_35] : memref<8x8x8xf32, #tpu.memory_space<vmem>>, vector<1x8x8xf32>
    %39 = vector.shape_cast %38 : vector<1x8x8xf32> to vector<8x8xf32>
    %40 = vector.shape_cast %37 : vector<8x8xf32> to vector<1x8x8xf32>
    tpu.vector_store %arg12[%c1_33, %c0_34, %c0_35], %40 {strides = array<i32>} : memref<8x8x8xf32, #tpu.memory_space<vmem>>, vector<1x8x8xf32>,
    %41 = vector.extract_strided_slice %8 {offsets = [0, 8], sizes = [8, 8], strides = [1, 1]} : vector<8x128xf32> to vector<8x8xf32>
    %c1_36 = arith.constant 1 : index
    %c0_37 = arith.constant 0 : index
    %c0_38 = arith.constant 0 : index
    %42 = vector.load %arg11[%c1_36, %c0_37, %c0_38] : memref<8x8x8xf32, #tpu.memory_space<vmem>>, vector<1x8x8xf32>
    %43 = vector.shape_cast %42 : vector<1x8x8xf32> to vector<8x8xf32>
    %44 = vector.shape_cast %41 : vector<8x8xf32> to vector<1x8x8xf32>
    tpu.vector_store %arg11[%c1_36, %c0_37, %c0_38], %44 {strides = array<i32>} : memref<8x8x8xf32, #tpu.memory_space<vmem>>, vector<1x8x8xf32>,
    %45 = vector.extract_strided_slice %8 {offsets = [0, 72], sizes = [8, 8], strides = [1, 1]} : vector<8x128xf32> to vector<8x8xf32>
    %c1_39 = arith.constant 1 : index
    %c0_40 = arith.constant 0 : index
    %c0_41 = arith.constant 0 : index
    %46 = vector.load %arg13[%c1_39, %c0_40, %c0_41] : memref<8x8x8xf32, #tpu.memory_space<vmem>>, vector<1x8x8xf32>
    %47 = vector.shape_cast %46 : vector<1x8x8xf32> to vector<8x8xf32>
    %48 = vector.shape_cast %45 : vector<8x8xf32> to vector<1x8x8xf32>
    tpu.vector_store %arg13[%c1_39, %c0_40, %c0_41], %48 {strides = array<i32>} : memref<8x8x8xf32, #tpu.memory_space<vmem>>, vector<1x8x8xf32>,
    %49 = vector.extract_strided_slice %2 {offsets = [0, 16], sizes = [8, 8], strides = [1, 1]} : vector<8x64xf32> to vector<8x8xf32>
    %c2 = arith.constant 2 : index
    %c0_42 = arith.constant 0 : index
    %c0_43 = arith.constant 0 : index
    %50 = vector.load %arg9[%c2, %c0_42, %c0_43] : memref<8x8x8xf32, #tpu.memory_space<vmem>>, vector<1x8x8xf32>
    %51 = vector.shape_cast %50 : vector<1x8x8xf32> to vector<8x8xf32>
    %52 = vector.shape_cast %49 : vector<8x8xf32> to vector<1x8x8xf32>
    tpu.vector_store %arg9[%c2, %c0_42, %c0_43], %52 {strides = array<i32>} : memref<8x8x8xf32, #tpu.memory_space<vmem>>, vector<1x8x8xf32>,
    %53 = vector.extract_strided_slice %5 {offsets = [0, 16], sizes = [8, 8], strides = [1, 1]} : vector<8x128xf32> to vector<8x8xf32>
    %c2_44 = arith.constant 2 : index
    %c0_45 = arith.constant 0 : index
    %c0_46 = arith.constant 0 : index
    %54 = vector.load %arg10[%c2_44, %c0_45, %c0_46] : memref<8x8x8xf32, #tpu.memory_space<vmem>>, vector<1x8x8xf32>
    %55 = vector.shape_cast %54 : vector<1x8x8xf32> to vector<8x8xf32>
    %56 = vector.shape_cast %53 : vector<8x8xf32> to vector<1x8x8xf32>
    tpu.vector_store %arg10[%c2_44, %c0_45, %c0_46], %56 {strides = array<i32>} : memref<8x8x8xf32, #tpu.memory_space<vmem>>, vector<1x8x8xf32>,
    %57 = vector.extract_strided_slice %5 {offsets = [0, 80], sizes = [8, 8], strides = [1, 1]} : vector<8x128xf32> to vector<8x8xf32>
    %c2_47 = arith.constant 2 : index
    %c0_48 = arith.constant 0 : index
    %c0_49 = arith.constant 0 : index
    %58 = vector.load %arg12[%c2_47, %c0_48, %c0_49] : memref<8x8x8xf32, #tpu.memory_space<vmem>>, vector<1x8x8xf32>
    %59 = vector.shape_cast %58 : vector<1x8x8xf32> to vector<8x8xf32>
    %60 = vector.shape_cast %57 : vector<8x8xf32> to vector<1x8x8xf32>
    tpu.vector_store %arg12[%c2_47, %c0_48, %c0_49], %60 {strides = array<i32>} : memref<8x8x8xf32, #tpu.memory_space<vmem>>, vector<1x8x8xf32>,
    %61 = vector.extract_strided_slice %8 {offsets = [0, 16], sizes = [8, 8], strides = [1, 1]} : vector<8x128xf32> to vector<8x8xf32>
    %c2_50 = arith.constant 2 : index
    %c0_51 = arith.constant 0 : index
    %c0_52 = arith.constant 0 : index
    %62 = vector.load %arg11[%c2_50, %c0_51, %c0_52] : memref<8x8x8xf32, #tpu.memory_space<vmem>>, vector<1x8x8xf32>
    %63 = vector.shape_cast %62 : vector<1x8x8xf32> to vector<8x8xf32>
    %64 = vector.shape_cast %61 : vector<8x8xf32> to vector<1x8x8xf32>
    tpu.vector_store %arg11[%c2_50, %c0_51, %c0_52], %64 {strides = array<i32>} : memref<8x8x8xf32, #tpu.memory_space<vmem>>, vector<1x8x8xf32>,
    %65 = vector.extract_strided_slice %8 {offsets = [0, 80], sizes = [8, 8], strides = [1, 1]} : vector<8x128xf32> to vector<8x8xf32>
    %c2_53 = arith.constant 2 : index
    %c0_54 = arith.constant 0 : index
    %c0_55 = arith.constant 0 : index
    %66 = vector.load %arg13[%c2_53, %c0_54, %c0_55] : memref<8x8x8xf32, #tpu.memory_space<vmem>>, vector<1x8x8xf32>
    %67 = vector.shape_cast %66 : vector<1x8x8xf32> to vector<8x8xf32>
    %68 = vector.shape_cast %65 : vector<8x8xf32> to vector<1x8x8xf32>
    tpu.vector_store %arg13[%c2_53, %c0_54, %c0_55], %68 {strides = array<i32>} : memref<8x8x8xf32, #tpu.memory_space<vmem>>, vector<1x8x8xf32>,
    %69 = vector.extract_strided_slice %2 {offsets = [0, 24], sizes = [8, 8], strides = [1, 1]} : vector<8x64xf32> to vector<8x8xf32>
    %c3 = arith.constant 3 : index
    %c0_56 = arith.constant 0 : index
    %c0_57 = arith.constant 0 : index
    %70 = vector.load %arg9[%c3, %c0_56, %c0_57] : memref<8x8x8xf32, #tpu.memory_space<vmem>>, vector<1x8x8xf32>
    %71 = vector.shape_cast %70 : vector<1x8x8xf32> to vector<8x8xf32>
    %72 = vector.shape_cast %69 : vector<8x8xf32> to vector<1x8x8xf32>
    tpu.vector_store %arg9[%c3, %c0_56, %c0_57], %72 {strides = array<i32>} : memref<8x8x8xf32, #tpu.memory_space<vmem>>, vector<1x8x8xf32>,
    %73 = vector.extract_strided_slice %5 {offsets = [0, 24], sizes = [8, 8], strides = [1, 1]} : vector<8x128xf32> to vector<8x8xf32>
    %c3_58 = arith.constant 3 : index
    %c0_59 = arith.constant 0 : index
    %c0_60 = arith.constant 0 : index
    %74 = vector.load %arg10[%c3_58, %c0_59, %c0_60] : memref<8x8x8xf32, #tpu.memory_space<vmem>>, vector<1x8x8xf32>
    %75 = vector.shape_cast %74 : vector<1x8x8xf32> to vector<8x8xf32>
    %76 = vector.shape_cast %73 : vector<8x8xf32> to vector<1x8x8xf32>
    tpu.vector_store %arg10[%c3_58, %c0_59, %c0_60], %76 {strides = array<i32>} : memref<8x8x8xf32, #tpu.memory_space<vmem>>, vector<1x8x8xf32>,
    %77 = vector.extract_strided_slice %5 {offsets = [0, 88], sizes = [8, 8], strides = [1, 1]} : vector<8x128xf32> to vector<8x8xf32>
    %c3_61 = arith.constant 3 : index
    %c0_62 = arith.constant 0 : index
    %c0_63 = arith.constant 0 : index
    %78 = vector.load %arg12[%c3_61, %c0_62, %c0_63] : memref<8x8x8xf32, #tpu.memory_space<vmem>>, vector<1x8x8xf32>
    %79 = vector.shape_cast %78 : vector<1x8x8xf32> to vector<8x8xf32>
    %80 = vector.shape_cast %77 : vector<8x8xf32> to vector<1x8x8xf32>
    tpu.vector_store %arg12[%c3_61, %c0_62, %c0_63], %80 {strides = array<i32>} : memref<8x8x8xf32, #tpu.memory_space<vmem>>, vector<1x8x8xf32>,
    %81 = vector.extract_strided_slice %8 {offsets = [0, 24], sizes = [8, 8], strides = [1, 1]} : vector<8x128xf32> to vector<8x8xf32>
    %c3_64 = arith.constant 3 : index
    %c0_65 = arith.constant 0 : index
    %c0_66 = arith.constant 0 : index
    %82 = vector.load %arg11[%c3_64, %c0_65, %c0_66] : memref<8x8x8xf32, #tpu.memory_space<vmem>>, vector<1x8x8xf32>
    %83 = vector.shape_cast %82 : vector<1x8x8xf32> to vector<8x8xf32>
    %84 = vector.shape_cast %81 : vector<8x8xf32> to vector<1x8x8xf32>
    tpu.vector_store %arg11[%c3_64, %c0_65, %c0_66], %84 {strides = array<i32>} : memref<8x8x8xf32, #tpu.memory_space<vmem>>, vector<1x8x8xf32>,
    %85 = vector.extract_strided_slice %8 {offsets = [0, 88], sizes = [8, 8], strides = [1, 1]} : vector<8x128xf32> to vector<8x8xf32>
    %c3_67 = arith.constant 3 : index
    %c0_68 = arith.constant 0 : index
    %c0_69 = arith.constant 0 : index
    %86 = vector.load %arg13[%c3_67, %c0_68, %c0_69] : memref<8x8x8xf32, #tpu.memory_space<vmem>>, vector<1x8x8xf32>
    %87 = vector.shape_cast %86 : vector<1x8x8xf32> to vector<8x8xf32>
    %88 = vector.shape_cast %85 : vector<8x8xf32> to vector<1x8x8xf32>
    tpu.vector_store %arg13[%c3_67, %c0_68, %c0_69], %88 {strides = array<i32>} : memref<8x8x8xf32, #tpu.memory_space<vmem>>, vector<1x8x8xf32>,
    %89 = vector.extract_strided_slice %2 {offsets = [0, 32], sizes = [8, 8], strides = [1, 1]} : vector<8x64xf32> to vector<8x8xf32>
    %c4 = arith.constant 4 : index
    %c0_70 = arith.constant 0 : index
    %c0_71 = arith.constant 0 : index
    %90 = vector.load %arg9[%c4, %c0_70, %c0_71] : memref<8x8x8xf32, #tpu.memory_space<vmem>>, vector<1x8x8xf32>
    %91 = vector.shape_cast %90 : vector<1x8x8xf32> to vector<8x8xf32>
    %92 = vector.shape_cast %89 : vector<8x8xf32> to vector<1x8x8xf32>
    tpu.vector_store %arg9[%c4, %c0_70, %c0_71], %92 {strides = array<i32>} : memref<8x8x8xf32, #tpu.memory_space<vmem>>, vector<1x8x8xf32>,
    %93 = vector.extract_strided_slice %5 {offsets = [0, 32], sizes = [8, 8], strides = [1, 1]} : vector<8x128xf32> to vector<8x8xf32>
    %c4_72 = arith.constant 4 : index
    %c0_73 = arith.constant 0 : index
    %c0_74 = arith.constant 0 : index
    %94 = vector.load %arg10[%c4_72, %c0_73, %c0_74] : memref<8x8x8xf32, #tpu.memory_space<vmem>>, vector<1x8x8xf32>
    %95 = vector.shape_cast %94 : vector<1x8x8xf32> to vector<8x8xf32>
    %96 = vector.shape_cast %93 : vector<8x8xf32> to vector<1x8x8xf32>
    tpu.vector_store %arg10[%c4_72, %c0_73, %c0_74], %96 {strides = array<i32>} : memref<8x8x8xf32, #tpu.memory_space<vmem>>, vector<1x8x8xf32>,
    %97 = vector.extract_strided_slice %5 {offsets = [0, 96], sizes = [8, 8], strides = [1, 1]} : vector<8x128xf32> to vector<8x8xf32>
    %c4_75 = arith.constant 4 : index
    %c0_76 = arith.constant 0 : index
    %c0_77 = arith.constant 0 : index
    %98 = vector.load %arg12[%c4_75, %c0_76, %c0_77] : memref<8x8x8xf32, #tpu.memory_space<vmem>>, vector<1x8x8xf32>
    %99 = vector.shape_cast %98 : vector<1x8x8xf32> to vector<8x8xf32>
    %100 = vector.shape_cast %97 : vector<8x8xf32> to vector<1x8x8xf32>
    tpu.vector_store %arg12[%c4_75, %c0_76, %c0_77], %100 {strides = array<i32>} : memref<8x8x8xf32, #tpu.memory_space<vmem>>, vector<1x8x8xf32>,
    %101 = vector.extract_strided_slice %8 {offsets = [0, 32], sizes = [8, 8], strides = [1, 1]} : vector<8x128xf32> to vector<8x8xf32>
    %c4_78 = arith.constant 4 : index
    %c0_79 = arith.constant 0 : index
    %c0_80 = arith.constant 0 : index
    %102 = vector.load %arg11[%c4_78, %c0_79, %c0_80] : memref<8x8x8xf32, #tpu.memory_space<vmem>>, vector<1x8x8xf32>
    %103 = vector.shape_cast %102 : vector<1x8x8xf32> to vector<8x8xf32>
    %104 = vector.shape_cast %101 : vector<8x8xf32> to vector<1x8x8xf32>
    tpu.vector_store %arg11[%c4_78, %c0_79, %c0_80], %104 {strides = array<i32>} : memref<8x8x8xf32, #tpu.memory_space<vmem>>, vector<1x8x8xf32>,
    %105 = vector.extract_strided_slice %8 {offsets = [0, 96], sizes = [8, 8], strides = [1, 1]} : vector<8x128xf32> to vector<8x8xf32>
    %c4_81 = arith.constant 4 : index
    %c0_82 = arith.constant 0 : index
    %c0_83 = arith.constant 0 : index
    %106 = vector.load %arg13[%c4_81, %c0_82, %c0_83] : memref<8x8x8xf32, #tpu.memory_space<vmem>>, vector<1x8x8xf32>
    %107 = vector.shape_cast %106 : vector<1x8x8xf32> to vector<8x8xf32>
    %108 = vector.shape_cast %105 : vector<8x8xf32> to vector<1x8x8xf32>
    tpu.vector_store %arg13[%c4_81, %c0_82, %c0_83], %108 {strides = array<i32>} : memref<8x8x8xf32, #tpu.memory_space<vmem>>, vector<1x8x8xf32>,
    %109 = vector.extract_strided_slice %2 {offsets = [0, 40], sizes = [8, 8], strides = [1, 1]} : vector<8x64xf32> to vector<8x8xf32>
    %c5 = arith.constant 5 : index
    %c0_84 = arith.constant 0 : index
    %c0_85 = arith.constant 0 : index
    %110 = vector.load %arg9[%c5, %c0_84, %c0_85] : memref<8x8x8xf32, #tpu.memory_space<vmem>>, vector<1x8x8xf32>
    %111 = vector.shape_cast %110 : vector<1x8x8xf32> to vector<8x8xf32>
    %112 = vector.shape_cast %109 : vector<8x8xf32> to vector<1x8x8xf32>
    tpu.vector_store %arg9[%c5, %c0_84, %c0_85], %112 {strides = array<i32>} : memref<8x8x8xf32, #tpu.memory_space<vmem>>, vector<1x8x8xf32>,
    %113 = vector.extract_strided_slice %5 {offsets = [0, 40], sizes = [8, 8], strides = [1, 1]} : vector<8x128xf32> to vector<8x8xf32>
    %c5_86 = arith.constant 5 : index
    %c0_87 = arith.constant 0 : index
    %c0_88 = arith.constant 0 : index
    %114 = vector.load %arg10[%c5_86, %c0_87, %c0_88] : memref<8x8x8xf32, #tpu.memory_space<vmem>>, vector<1x8x8xf32>
    %115 = vector.shape_cast %114 : vector<1x8x8xf32> to vector<8x8xf32>
    %116 = vector.shape_cast %113 : vector<8x8xf32> to vector<1x8x8xf32>
    tpu.vector_store %arg10[%c5_86, %c0_87, %c0_88], %116 {strides = array<i32>} : memref<8x8x8xf32, #tpu.memory_space<vmem>>, vector<1x8x8xf32>,
    %117 = vector.extract_strided_slice %5 {offsets = [0, 104], sizes = [8, 8], strides = [1, 1]} : vector<8x128xf32> to vector<8x8xf32>
    %c5_89 = arith.constant 5 : index
    %c0_90 = arith.constant 0 : index
    %c0_91 = arith.constant 0 : index
    %118 = vector.load %arg12[%c5_89, %c0_90, %c0_91] : memref<8x8x8xf32, #tpu.memory_space<vmem>>, vector<1x8x8xf32>
    %119 = vector.shape_cast %118 : vector<1x8x8xf32> to vector<8x8xf32>
    %120 = vector.shape_cast %117 : vector<8x8xf32> to vector<1x8x8xf32>
    tpu.vector_store %arg12[%c5_89, %c0_90, %c0_91], %120 {strides = array<i32>} : memref<8x8x8xf32, #tpu.memory_space<vmem>>, vector<1x8x8xf32>,
    %121 = vector.extract_strided_slice %8 {offsets = [0, 40], sizes = [8, 8], strides = [1, 1]} : vector<8x128xf32> to vector<8x8xf32>
    %c5_92 = arith.constant 5 : index
    %c0_93 = arith.constant 0 : index
    %c0_94 = arith.constant 0 : index
    %122 = vector.load %arg11[%c5_92, %c0_93, %c0_94] : memref<8x8x8xf32, #tpu.memory_space<vmem>>, vector<1x8x8xf32>
    %123 = vector.shape_cast %122 : vector<1x8x8xf32> to vector<8x8xf32>
    %124 = vector.shape_cast %121 : vector<8x8xf32> to vector<1x8x8xf32>
    tpu.vector_store %arg11[%c5_92, %c0_93, %c0_94], %124 {strides = array<i32>} : memref<8x8x8xf32, #tpu.memory_space<vmem>>, vector<1x8x8xf32>,
    %125 = vector.extract_strided_slice %8 {offsets = [0, 104], sizes = [8, 8], strides = [1, 1]} : vector<8x128xf32> to vector<8x8xf32>
    %c5_95 = arith.constant 5 : index
    %c0_96 = arith.constant 0 : index
    %c0_97 = arith.constant 0 : index
    %126 = vector.load %arg13[%c5_95, %c0_96, %c0_97] : memref<8x8x8xf32, #tpu.memory_space<vmem>>, vector<1x8x8xf32>
    %127 = vector.shape_cast %126 : vector<1x8x8xf32> to vector<8x8xf32>
    %128 = vector.shape_cast %125 : vector<8x8xf32> to vector<1x8x8xf32>
    tpu.vector_store %arg13[%c5_95, %c0_96, %c0_97], %128 {strides = array<i32>} : memref<8x8x8xf32, #tpu.memory_space<vmem>>, vector<1x8x8xf32>,
    %129 = vector.extract_strided_slice %2 {offsets = [0, 48], sizes = [8, 8], strides = [1, 1]} : vector<8x64xf32> to vector<8x8xf32>
    %c6 = arith.constant 6 : index
    %c0_98 = arith.constant 0 : index
    %c0_99 = arith.constant 0 : index
    %130 = vector.load %arg9[%c6, %c0_98, %c0_99] : memref<8x8x8xf32, #tpu.memory_space<vmem>>, vector<1x8x8xf32>
    %131 = vector.shape_cast %130 : vector<1x8x8xf32> to vector<8x8xf32>
    %132 = vector.shape_cast %129 : vector<8x8xf32> to vector<1x8x8xf32>
    tpu.vector_store %arg9[%c6, %c0_98, %c0_99], %132 {strides = array<i32>} : memref<8x8x8xf32, #tpu.memory_space<vmem>>, vector<1x8x8xf32>,
    %133 = vector.extract_strided_slice %5 {offsets = [0, 48], sizes = [8, 8], strides = [1, 1]} : vector<8x128xf32> to vector<8x8xf32>
    %c6_100 = arith.constant 6 : index
    %c0_101 = arith.constant 0 : index
    %c0_102 = arith.constant 0 : index
    %134 = vector.load %arg10[%c6_100, %c0_101, %c0_102] : memref<8x8x8xf32, #tpu.memory_space<vmem>>, vector<1x8x8xf32>
    %135 = vector.shape_cast %134 : vector<1x8x8xf32> to vector<8x8xf32>
    %136 = vector.shape_cast %133 : vector<8x8xf32> to vector<1x8x8xf32>
    tpu.vector_store %arg10[%c6_100, %c0_101, %c0_102], %136 {strides = array<i32>} : memref<8x8x8xf32, #tpu.memory_space<vmem>>, vector<1x8x8xf32>,
    %137 = vector.extract_strided_slice %5 {offsets = [0, 112], sizes = [8, 8], strides = [1, 1]} : vector<8x128xf32> to vector<8x8xf32>
    %c6_103 = arith.constant 6 : index
    %c0_104 = arith.constant 0 : index
    %c0_105 = arith.constant 0 : index
    %138 = vector.load %arg12[%c6_103, %c0_104, %c0_105] : memref<8x8x8xf32, #tpu.memory_space<vmem>>, vector<1x8x8xf32>
    %139 = vector.shape_cast %138 : vector<1x8x8xf32> to vector<8x8xf32>
    %140 = vector.shape_cast %137 : vector<8x8xf32> to vector<1x8x8xf32>
    tpu.vector_store %arg12[%c6_103, %c0_104, %c0_105], %140 {strides = array<i32>} : memref<8x8x8xf32, #tpu.memory_space<vmem>>, vector<1x8x8xf32>,
    %141 = vector.extract_strided_slice %8 {offsets = [0, 48], sizes = [8, 8], strides = [1, 1]} : vector<8x128xf32> to vector<8x8xf32>
    %c6_106 = arith.constant 6 : index
    %c0_107 = arith.constant 0 : index
    %c0_108 = arith.constant 0 : index
    %142 = vector.load %arg11[%c6_106, %c0_107, %c0_108] : memref<8x8x8xf32, #tpu.memory_space<vmem>>, vector<1x8x8xf32>
    %143 = vector.shape_cast %142 : vector<1x8x8xf32> to vector<8x8xf32>
    %144 = vector.shape_cast %141 : vector<8x8xf32> to vector<1x8x8xf32>
    tpu.vector_store %arg11[%c6_106, %c0_107, %c0_108], %144 {strides = array<i32>} : memref<8x8x8xf32, #tpu.memory_space<vmem>>, vector<1x8x8xf32>,
    %145 = vector.extract_strided_slice %8 {offsets = [0, 112], sizes = [8, 8], strides = [1, 1]} : vector<8x128xf32> to vector<8x8xf32>
    %c6_109 = arith.constant 6 : index
    %c0_110 = arith.constant 0 : index
    %c0_111 = arith.constant 0 : index
    %146 = vector.load %arg13[%c6_109, %c0_110, %c0_111] : memref<8x8x8xf32, #tpu.memory_space<vmem>>, vector<1x8x8xf32>
    %147 = vector.shape_cast %146 : vector<1x8x8xf32> to vector<8x8xf32>
    %148 = vector.shape_cast %145 : vector<8x8xf32> to vector<1x8x8xf32>
    tpu.vector_store %arg13[%c6_109, %c0_110, %c0_111], %148 {strides = array<i32>} : memref<8x8x8xf32, #tpu.memory_space<vmem>>, vector<1x8x8xf32>,
    %149 = vector.extract_strided_slice %2 {offsets = [0, 56], sizes = [8, 8], strides = [1, 1]} : vector<8x64xf32> to vector<8x8xf32>
    %c7 = arith.constant 7 : index
    %c0_112 = arith.constant 0 : index
    %c0_113 = arith.constant 0 : index
    %150 = vector.load %arg9[%c7, %c0_112, %c0_113] : memref<8x8x8xf32, #tpu.memory_space<vmem>>, vector<1x8x8xf32>
    %151 = vector.shape_cast %150 : vector<1x8x8xf32> to vector<8x8xf32>
    %152 = vector.shape_cast %149 : vector<8x8xf32> to vector<1x8x8xf32>
    tpu.vector_store %arg9[%c7, %c0_112, %c0_113], %152 {strides = array<i32>} : memref<8x8x8xf32, #tpu.memory_space<vmem>>, vector<1x8x8xf32>,
    %153 = vector.extract_strided_slice %5 {offsets = [0, 56], sizes = [8, 8], strides = [1, 1]} : vector<8x128xf32> to vector<8x8xf32>
    %c7_114 = arith.constant 7 : index
    %c0_115 = arith.constant 0 : index
    %c0_116 = arith.constant 0 : index
    %154 = vector.load %arg10[%c7_114, %c0_115, %c0_116] : memref<8x8x8xf32, #tpu.memory_space<vmem>>, vector<1x8x8xf32>
    %155 = vector.shape_cast %154 : vector<1x8x8xf32> to vector<8x8xf32>
    %156 = vector.shape_cast %153 : vector<8x8xf32> to vector<1x8x8xf32>
    tpu.vector_store %arg10[%c7_114, %c0_115, %c0_116], %156 {strides = array<i32>} : memref<8x8x8xf32, #tpu.memory_space<vmem>>, vector<1x8x8xf32>,
    %157 = vector.extract_strided_slice %5 {offsets = [0, 120], sizes = [8, 8], strides = [1, 1]} : vector<8x128xf32> to vector<8x8xf32>
    %c7_117 = arith.constant 7 : index
    %c0_118 = arith.constant 0 : index
    %c0_119 = arith.constant 0 : index
    %158 = vector.load %arg12[%c7_117, %c0_118, %c0_119] : memref<8x8x8xf32, #tpu.memory_space<vmem>>, vector<1x8x8xf32>
    %159 = vector.shape_cast %158 : vector<1x8x8xf32> to vector<8x8xf32>
    %160 = vector.shape_cast %157 : vector<8x8xf32> to vector<1x8x8xf32>
    tpu.vector_store %arg12[%c7_117, %c0_118, %c0_119], %160 {strides = array<i32>} : memref<8x8x8xf32, #tpu.memory_space<vmem>>, vector<1x8x8xf32>,
    %161 = vector.extract_strided_slice %8 {offsets = [0, 56], sizes = [8, 8], strides = [1, 1]} : vector<8x128xf32> to vector<8x8xf32>
    %c7_120 = arith.constant 7 : index
    %c0_121 = arith.constant 0 : index
    %c0_122 = arith.constant 0 : index
    %162 = vector.load %arg11[%c7_120, %c0_121, %c0_122] : memref<8x8x8xf32, #tpu.memory_space<vmem>>, vector<1x8x8xf32>
    %163 = vector.shape_cast %162 : vector<1x8x8xf32> to vector<8x8xf32>
    %164 = vector.shape_cast %161 : vector<8x8xf32> to vector<1x8x8xf32>
    tpu.vector_store %arg11[%c7_120, %c0_121, %c0_122], %164 {strides = array<i32>} : memref<8x8x8xf32, #tpu.memory_space<vmem>>, vector<1x8x8xf32>,
    %165 = vector.extract_strided_slice %8 {offsets = [0, 120], sizes = [8, 8], strides = [1, 1]} : vector<8x128xf32> to vector<8x8xf32>
    %c7_123 = arith.constant 7 : index
    %c0_124 = arith.constant 0 : index
    %c0_125 = arith.constant 0 : index
    %166 = vector.load %arg13[%c7_123, %c0_124, %c0_125] : memref<8x8x8xf32, #tpu.memory_space<vmem>>, vector<1x8x8xf32>
    %167 = vector.shape_cast %166 : vector<1x8x8xf32> to vector<8x8xf32>
    %168 = vector.shape_cast %165 : vector<8x8xf32> to vector<1x8x8xf32>
    tpu.vector_store %arg13[%c7_123, %c0_124, %c0_125], %168 {strides = array<i32>} : memref<8x8x8xf32, #tpu.memory_space<vmem>>, vector<1x8x8xf32>,
    %c0_126 = arith.constant 0 : index
    %c0_127 = arith.constant 0 : index
    %c0_128 = arith.constant 0 : index
    %169 = vector.load %arg9[%c0_126, %c0_127, %c0_128] : memref<8x8x8xf32, #tpu.memory_space<vmem>>, vector<8x8x8xf32>
    %c0_129 = arith.constant 0 : index
    %c0_130 = arith.constant 0 : index
    %c0_131 = arith.constant 0 : index
    %170 = vector.load %arg10[%c0_129, %c0_130, %c0_131] : memref<8x8x8xf32, #tpu.memory_space<vmem>>, vector<8x8x8xf32>
    %c0_132 = arith.constant 0 : index
    %c0_133 = arith.constant 0 : index
    %c0_134 = arith.constant 0 : index
    %171 = vector.load %arg11[%c0_132, %c0_133, %c0_134] : memref<8x8x8xf32, #tpu.memory_space<vmem>>, vector<8x8x8xf32>
    %c0_135 = arith.constant 0 : index
    %c0_136 = arith.constant 0 : index
    %c0_137 = arith.constant 0 : index
    %172 = vector.load %arg12[%c0_135, %c0_136, %c0_137] : memref<8x8x8xf32, #tpu.memory_space<vmem>>, vector<8x8x8xf32>
    %c0_138 = arith.constant 0 : index
    %c0_139 = arith.constant 0 : index
    %c0_140 = arith.constant 0 : index
    %173 = vector.load %arg13[%c0_138, %c0_139, %c0_140] : memref<8x8x8xf32, #tpu.memory_space<vmem>>, vector<8x8x8xf32>
    %c0_141 = arith.constant 0 : index
    %c0_142 = arith.constant 0 : index
    %174 = vector.load %arg6[%c0_141, %c0_142] : memref<8x8xf32, #tpu.memory_space<vmem>>, vector<8x8xf32>
    %175 = tpu.iota {dimensions = array<i32: 0>} : vector<8x8xi32>
    %176 = tpu.iota {dimensions = array<i32: 1>} : vector<8x8xi32>
    %177 = arith.cmpi eq, %175, %176 : vector<8x8xi32>
    %178 = arith.extui %177 : vector<8x8xi1> to vector<8x8xi32>
    %179 = arith.sitofp %178 : vector<8x8xi32> to vector<8x8xf32>
    %180 = vector.shape_cast %179 : vector<8x8xf32> to vector<8x1x8x1xf32>
    %181 = vector.shape_cast %170 : vector<8x8x8xf32> to vector<8x8x1x8xf32>
    %182 = vector.broadcast %181 : vector<8x8x1x8xf32> to vector<8x8x8x8xf32>
    %183 = vector.broadcast %180 : vector<8x1x8x1xf32> to vector<8x8x8x8xf32>
    %184 = arith.mulf %182, %183 : vector<8x8x8x8xf32>
    %cst_143 = arith.constant dense<0.000000e+00> : vector<8x8x8xf32>
    %185 = vector.multi_reduction <add>, %184, %cst_143 [0] : vector<8x8x8x8xf32> to vector<8x8x8xf32>
    %186 = vector.shape_cast %172 : vector<8x8x8xf32> to vector<8x8x1x8xf32>
    %187 = vector.broadcast %186 : vector<8x8x1x8xf32> to vector<8x8x8x8xf32>
    %188 = vector.broadcast %180 : vector<8x1x8x1xf32> to vector<8x8x8x8xf32>
    %189 = arith.mulf %187, %188 : vector<8x8x8x8xf32>
    %cst_144 = arith.constant dense<0.000000e+00> : vector<8x8x8xf32>
    %190 = vector.multi_reduction <add>, %189, %cst_144 [0] : vector<8x8x8x8xf32> to vector<8x8x8xf32>
    %191 = vector.shape_cast %173 : vector<8x8x8xf32> to vector<8x8x1x8xf32>
    %192 = vector.broadcast %191 : vector<8x8x1x8xf32> to vector<8x8x8x8xf32>
    %193 = vector.broadcast %180 : vector<8x1x8x1xf32> to vector<8x8x8x8xf32>
    %194 = arith.mulf %192, %193 : vector<8x8x8x8xf32>
    %cst_145 = arith.constant dense<0.000000e+00> : vector<8x8x8xf32>
    %195 = vector.multi_reduction <add>, %194, %cst_145 [0] : vector<8x8x8x8xf32> to vector<8x8x8xf32>
    "tpu.trace_start"() <{level = 10 : i32, message = "nad,nbd->nab"}> : () -> ()
    %cst_146 = arith.constant dense<0.000000e+00> : vector<8x8x8xf32>
    %196 = tpu.matmul %169, %170, %cst_146 {dimension_numbers = #tpu.dot_dimension_numbers<[2], [2], [1], [1], [0, 0, 0, 1, 1, 1], [0], [0]>} : vector<8x8x8xf32>, vector<8x8x8xf32>, vector<8x8x8xf32> -> vector<8x8x8xf32>
    "tpu.trace_stop"() : () -> ()
    "tpu.trace_start"() <{level = 10 : i32, message = "nad,ncd->nac"}> : () -> ()
    %cst_147 = arith.constant dense<0.000000e+00> : vector<8x8x8xf32>
    %197 = tpu.matmul %169, %171, %cst_147 {dimension_numbers = #tpu.dot_dimension_numbers<[2], [2], [1], [1], [0, 0, 0, 1, 1, 1], [0], [0]>} : vector<8x8x8xf32>, vector<8x8x8xf32>, vector<8x8x8xf32> -> vector<8x8x8xf32>
    "tpu.trace_stop"() : () -> ()
    %198 = vector.shape_cast %185 : vector<8x8x8xf32> to vector<8x8x1x8xf32>
    %199 = vector.shape_cast %171 : vector<8x8x8xf32> to vector<1x8x8x8xf32>
    %200 = vector.broadcast %198 : vector<8x8x1x8xf32> to vector<8x8x8x8xf32>
    %201 = vector.broadcast %199 : vector<1x8x8x8xf32> to vector<8x8x8x8xf32>
    %202 = arith.mulf %200, %201 : vector<8x8x8x8xf32>
    %cst_148 = arith.constant dense<0.000000e+00> : vector<8x8x8xf32>
    %203 = vector.multi_reduction <add>, %202, %cst_148 [3] : vector<8x8x8x8xf32> to vector<8x8x8xf32>
    %204 = vector.shape_cast %196 : vector<8x8x8xf32> to vector<8x8x8x1xf32>
    %205 = vector.shape_cast %197 : vector<8x8x8xf32> to vector<8x8x1x8xf32>
    %206 = vector.broadcast %204 : vector<8x8x8x1xf32> to vector<8x8x8x8xf32>
    %207 = vector.broadcast %205 : vector<8x8x1x8xf32> to vector<8x8x8x8xf32>
    %208 = arith.addf %206, %207 : vector<8x8x8x8xf32>
    %209 = vector.shape_cast %203 : vector<8x8x8xf32> to vector<8x1x8x8xf32>
    %210 = vector.broadcast %209 : vector<8x1x8x8xf32> to vector<8x8x8x8xf32>
    %211 = arith.addf %208, %210 : vector<8x8x8x8xf32>
    %cst_149 = arith.constant 0.353553385 : f32
    %212 = vector.broadcast %cst_149 : f32 to vector<8x8x8x8xf32>
    %213 = arith.mulf %211, %212 : vector<8x8x8x8xf32>
    %cst_150 = arith.constant dense<0xFF800000> : vector<8x8x8xf32>
    %214 = vector.multi_reduction <maximumf>, %213, %cst_150 [3] : vector<8x8x8x8xf32> to vector<8x8x8xf32>
    %215 = vector.shape_cast %214 : vector<8x8x8xf32> to vector<8x8x8x1xf32>
    %cst_151 = arith.constant dense<0xFF800000> : vector<8x8x1xf32>
    %216 = vector.multi_reduction <maximumf>, %215, %cst_151 [2] : vector<8x8x8x1xf32> to vector<8x8x1xf32>
    %217 = vector.shape_cast %216 : vector<8x8x1xf32> to vector<8x8x1x1xf32>
    %218 = vector.broadcast %217 : vector<8x8x1x1xf32> to vector<8x8x8x8xf32>
    %219 = arith.subf %213, %218 : vector<8x8x8x8xf32>
    %220 = math.exp %219 : vector<8x8x8x8xf32>
    %cst_152 = arith.constant dense<0.000000e+00> : vector<8x8x8xf32>
    %221 = vector.multi_reduction <add>, %220, %cst_152 [3] : vector<8x8x8x8xf32> to vector<8x8x8xf32>
    %222 = vector.shape_cast %221 : vector<8x8x8xf32> to vector<8x8x8x1xf32>
    %cst_153 = arith.constant dense<0.000000e+00> : vector<8x8x1xf32>
    %223 = vector.multi_reduction <add>, %222, %cst_153 [2] : vector<8x8x8x1xf32> to vector<8x8x1xf32>
    %224 = vector.shape_cast %223 : vector<8x8x1xf32> to vector<8x8x1x1xf32>
    %225 = tpu.reciprocal %224 {approx = true} : vector<8x8x1x1xf32> -> vector<8x8x1x1xf32>
    %226 = vector.broadcast %225 : vector<8x8x1x1xf32> to vector<8x8x8x8xf32>
    %227 = arith.mulf %220, %226 : vector<8x8x8x8xf32>
    %228 = vector.shape_cast %190 : vector<8x8x8xf32> to vector<8x8x1x8xf32>
    %229 = vector.shape_cast %174 : vector<8x8xf32> to vector<1x1x8x8xf32>
    %230 = vector.broadcast %228 : vector<8x8x1x8xf32> to vector<8x8x8x8xf32>
    %231 = vector.broadcast %229 : vector<1x1x8x8xf32> to vector<8x8x8x8xf32>
    %232 = arith.mulf %230, %231 : vector<8x8x8x8xf32>
    %cst_154 = arith.constant dense<0.000000e+00> : vector<8x8x8xf32>
    %233 = vector.multi_reduction <add>, %232, %cst_154 [3] : vector<8x8x8x8xf32> to vector<8x8x8xf32>
    %234 = vector.shape_cast %174 : vector<8x8xf32> to vector<1x8x8xf32>
    %235 = vector.broadcast %234 : vector<1x8x8xf32> to vector<8x8x8xf32>
    %236 = arith.mulf %195, %235 : vector<8x8x8xf32>
    %cst_155 = arith.constant dense<0.000000e+00> : vector<8x8xf32>
    %237 = vector.multi_reduction <add>, %236, %cst_155 [2] : vector<8x8x8xf32> to vector<8x8xf32>
    %238 = vector.shape_cast %237 : vector<8x8xf32> to vector<8x1x8xf32>
    %239 = vector.broadcast %238 : vector<8x1x8xf32> to vector<8x8x8xf32>
    %240 = arith.addf %233, %239 : vector<8x8x8xf32>
    %c0_156 = arith.constant 0 : index
    %241 = memref.load %arg7[%c0_156] : memref<1xf32, #tpu.memory_space<smem>>
    %242 = vector.shape_cast %240 : vector<8x8x8xf32> to vector<8x1x8x8xf32>
    %243 = vector.broadcast %242 : vector<8x1x8x8xf32> to vector<8x8x8x8xf32>
    %244 = arith.mulf %227, %243 : vector<8x8x8x8xf32>
    %cst_157 = arith.constant dense<0.000000e+00> : vector<8x8x8xf32>
    %245 = vector.multi_reduction <add>, %244, %cst_157 [3] : vector<8x8x8x8xf32> to vector<8x8x8xf32>
    %246 = vector.broadcast %241 : f32 to vector<8x8x8xf32>
    %247 = arith.addf %245, %246 : vector<8x8x8xf32>
    %cst_158 = arith.constant 0.000000e+00 : f32
    %248 = vector.broadcast %cst_158 : f32 to vector<8x8x8xf32>
    %249 = arith.subf %248, %247 : vector<8x8x8xf32>
    %250 = math.exp %249 : vector<8x8x8xf32>
    %cst_159 = arith.constant 1.000000e+00 : f32
    %251 = vector.broadcast %cst_159 : f32 to vector<8x8x8xf32>
    %252 = arith.addf %251, %250 : vector<8x8x8xf32>
    %253 = tpu.reciprocal %252 {approx = true} : vector<8x8x8xf32> -> vector<8x8x8xf32>
    %254 = vector.extract_strided_slice %253 {offsets = [0, 0, 0], sizes = [1, 8, 8], strides = [1, 1, 1]} : vector<8x8x8xf32> to vector<1x8x8xf32>
    %255 = vector.shape_cast %254 : vector<1x8x8xf32> to vector<8x8xf32>
    %c0_160 = arith.constant 0 : index
    %c0_161 = arith.constant 0 : index
    %256 = vector.load %arg8[%c0_160, %c0_161] : memref<8x64xf32, #tpu.memory_space<vmem>>, vector<8x8xf32>
    tpu.vector_store %arg8[%c0_160, %c0_161], %255 {strides = array<i32>} : memref<8x64xf32, #tpu.memory_space<vmem>>, vector<8x8xf32>,
    %257 = vector.extract_strided_slice %253 {offsets = [1, 0, 0], sizes = [1, 8, 8], strides = [1, 1, 1]} : vector<8x8x8xf32> to vector<1x8x8xf32>
    %258 = vector.shape_cast %257 : vector<1x8x8xf32> to vector<8x8xf32>
    %c0_162 = arith.constant 0 : index
    %c8 = arith.constant 8 : index
    %259 = vector.load %arg8[%c0_162, %c8] : memref<8x64xf32, #tpu.memory_space<vmem>>, vector<8x8xf32>
    tpu.vector_store %arg8[%c0_162, %c8], %258 {strides = array<i32>} : memref<8x64xf32, #tpu.memory_space<vmem>>, vector<8x8xf32>,
    %260 = vector.extract_strided_slice %253 {offsets = [2, 0, 0], sizes = [1, 8, 8], strides = [1, 1, 1]} : vector<8x8x8xf32> to vector<1x8x8xf32>
    %261 = vector.shape_cast %260 : vector<1x8x8xf32> to vector<8x8xf32>
    %c0_163 = arith.constant 0 : index
    %c16 = arith.constant 16 : index
    %262 = vector.load %arg8[%c0_163, %c16] : memref<8x64xf32, #tpu.memory_space<vmem>>, vector<8x8xf32>
    tpu.vector_store %arg8[%c0_163, %c16], %261 {strides = array<i32>} : memref<8x64xf32, #tpu.memory_space<vmem>>, vector<8x8xf32>,
    %263 = vector.extract_strided_slice %253 {offsets = [3, 0, 0], sizes = [1, 8, 8], strides = [1, 1, 1]} : vector<8x8x8xf32> to vector<1x8x8xf32>
    %264 = vector.shape_cast %263 : vector<1x8x8xf32> to vector<8x8xf32>
    %c0_164 = arith.constant 0 : index
    %c24 = arith.constant 24 : index
    %265 = vector.load %arg8[%c0_164, %c24] : memref<8x64xf32, #tpu.memory_space<vmem>>, vector<8x8xf32>
    tpu.vector_store %arg8[%c0_164, %c24], %264 {strides = array<i32>} : memref<8x64xf32, #tpu.memory_space<vmem>>, vector<8x8xf32>,
    %266 = vector.extract_strided_slice %253 {offsets = [4, 0, 0], sizes = [1, 8, 8], strides = [1, 1, 1]} : vector<8x8x8xf32> to vector<1x8x8xf32>
    %267 = vector.shape_cast %266 : vector<1x8x8xf32> to vector<8x8xf32>
    %c0_165 = arith.constant 0 : index
    %c32 = arith.constant 32 : index
    %268 = vector.load %arg8[%c0_165, %c32] : memref<8x64xf32, #tpu.memory_space<vmem>>, vector<8x8xf32>
    tpu.vector_store %arg8[%c0_165, %c32], %267 {strides = array<i32>} : memref<8x64xf32, #tpu.memory_space<vmem>>, vector<8x8xf32>,
    %269 = vector.extract_strided_slice %253 {offsets = [5, 0, 0], sizes = [1, 8, 8], strides = [1, 1, 1]} : vector<8x8x8xf32> to vector<1x8x8xf32>
    %270 = vector.shape_cast %269 : vector<1x8x8xf32> to vector<8x8xf32>
    %c0_166 = arith.constant 0 : index
    %c40 = arith.constant 40 : index
    %271 = vector.load %arg8[%c0_166, %c40] : memref<8x64xf32, #tpu.memory_space<vmem>>, vector<8x8xf32>
    tpu.vector_store %arg8[%c0_166, %c40], %270 {strides = array<i32>} : memref<8x64xf32, #tpu.memory_space<vmem>>, vector<8x8xf32>,
    %272 = vector.extract_strided_slice %253 {offsets = [6, 0, 0], sizes = [1, 8, 8], strides = [1, 1, 1]} : vector<8x8x8xf32> to vector<1x8x8xf32>
    %273 = vector.shape_cast %272 : vector<1x8x8xf32> to vector<8x8xf32>
    %c0_167 = arith.constant 0 : index
    %c48 = arith.constant 48 : index
    %274 = vector.load %arg8[%c0_167, %c48] : memref<8x64xf32, #tpu.memory_space<vmem>>, vector<8x8xf32>
    tpu.vector_store %arg8[%c0_167, %c48], %273 {strides = array<i32>} : memref<8x64xf32, #tpu.memory_space<vmem>>, vector<8x8xf32>,
    %275 = vector.extract_strided_slice %253 {offsets = [7, 0, 0], sizes = [1, 8, 8], strides = [1, 1, 1]} : vector<8x8x8xf32> to vector<1x8x8xf32>
    %276 = vector.shape_cast %275 : vector<1x8x8xf32> to vector<8x8xf32>
    %c0_168 = arith.constant 0 : index
    %c56 = arith.constant 56 : index
    %277 = vector.load %arg8[%c0_168, %c56] : memref<8x64xf32, #tpu.memory_space<vmem>>, vector<8x8xf32>
    tpu.vector_store %arg8[%c0_168, %c56], %276 {strides = array<i32>} : memref<8x64xf32, #tpu.memory_space<vmem>>, vector<8x8xf32>,
    return
  }
  func.func @transform_0(%arg0: i32) -> (i32, i32) {
    %c0_i32 = arith.constant 0 : i32
    %c0_i32_0 = arith.constant 0 : i32
    return %arg0, %c0_i32 : i32, i32
  }
  func.func @transform_1(%arg0: i32) -> (i32, i32) {
    %c0_i32 = arith.constant 0 : i32
    %c0_i32_0 = arith.constant 0 : i32
    %c0_i32_1 = arith.constant 0 : i32
    return %c0_i32, %c0_i32_0 : i32, i32
  }
  func.func @transform_2(%arg0: i32) -> (i32, i32) {
    %c0_i32 = arith.constant 0 : i32
    %c0_i32_0 = arith.constant 0 : i32
    %c0_i32_1 = arith.constant 0 : i32
    return %c0_i32, %c0_i32_0 : i32, i32
  }
  func.func @transform_3(%arg0: i32) -> (i32, i32) {
    %c0_i32 = arith.constant 0 : i32
    %c0_i32_0 = arith.constant 0 : i32
    %c0_i32_1 = arith.constant 0 : i32
    return %c0_i32, %c0_i32_0 : i32, i32
  }
  func.func @transform_4(%arg0: i32) -> (i32, i32) {
    %c0_i32 = arith.constant 0 : i32
    %c0_i32_0 = arith.constant 0 : i32
    %c0_i32_1 = arith.constant 0 : i32
    return %c0_i32, %c0_i32_0 : i32, i32
  }
  func.func @transform_5(%arg0: i32) -> (i32, i32) {
    %c0_i32 = arith.constant 0 : i32
    %c0_i32_0 = arith.constant 0 : i32
    %c0_i32_1 = arith.constant 0 : i32
    return %c0_i32, %c0_i32_0 : i32, i32
  }
  func.func @transform_6(%arg0: i32) -> i32 {
    %c0_i32 = arith.constant 0 : i32
    %c0_i32_0 = arith.constant 0 : i32
    return %c0_i32 : i32
  }
  func.func @transform_7(%arg0: i32) -> (i32, i32) {
    %c0_i32 = arith.constant 0 : i32
    %c0_i32_0 = arith.constant 0 : i32
    return %arg0, %c0_i32 : i32, i32
  }
}

</mosaic_0001>

<bundles_post_ra>
// kernel: _lambda_.1
= control target key start
LH: loop header
LB: loop body
LE: loop exit
PB: predicated region body
PF: predicated region fallthrough
CT: control target
= control target key end

     0   :  { %v335_v0 = vlaneseq  ;;  %vm30_vm0 = vcmask 130048   ;;  %v7052_v10 = vmov 0.0   ;;  %vm104_vm2 = vcmask 64512   ;;  %s7057_s14 = smov 48   ;;  %s7058_s15 = smov 40   ;;  %s11527_s3 = inlined_call_operand.vmem [shape: f32[16,64], index: 3, kind: input, shape index: {}]   ;;  %s11528_s4 = inlined_call_operand.vmem [shape: f32[16,128], index: 4, kind: input, shape index: {}]   ;;  %s11529_s0 = inlined_call_operand.vmem [shape: f32[8,16], index: 0, kind: input, shape index: {}]   ;;  %s11530_s1 = inlined_call_operand.vmem [shape: f32[8,16], index: 1, kind: input, shape index: {}]   ;;  %s11531_s2 = inlined_call_operand.vmem [shape: f32[8,16], index: 2, kind: input, shape index: {}]   ;;  %s11532_s5 = inlined_call_operand.vmem [shape: f32[8,8], index: 5, kind: input, shape index: {}]   ;;  %s11533_s6 = inlined_call_operand.<no memory space> [shape: f32[1], index: 6, kind: input, shape index: {}]   ;;  %s11534_s7 = inlined_call_operand.vmem [shape: f32[8,64], index: 7, kind: output, shape index: {}]  }
   0x1   :  { %v29_v1 = vld [vmem:[%s11527_s3 + $0x8] sm:$0xff]  ;;  %v28_v3 = vld [vmem:[%s11527_s3] sm:$0xff]  ;;  %s7059_s16 = smov 104   ;;  %s7060_s17 = smov 96   ;;  %vm3190_vm3 = vcmask 1041409   ;;  %vm3192_vm4 = vcmask 1042434  }
   0x2   :  { %v56_v2 = vld [vmem:[%s11528_s4 + $0x8] sm:$0xff]  ;;  %48 = vmatpush.msra.mxu0 %v29_v1  ;;  %v55_v4 = vld [vmem:[%s11528_s4] sm:$0xff]  ;;  %v336_v7 = vshrl.u32 %v335_v0, 7  ;;  %v7126_v8 = vand.u32 127, %v335_v0  ;;  %s7056_s4 = smov 112   ;;  %s7061_s18 = smov 88  }
   0x3   :  { %74 = vmatpush.msra.mxu1 %v56_v2  ;;  %v27_v5 = vld [vmem:[%s11529_s0] sm:$0xff]  ;;  %98 = vmatpush.msra.mxu2 %v56_v2  ;;  %s7053_s0 = smov 56   ;;  %s7062_s19 = smov 24   ;;  %vm3194_vm5 = vcmask 1043459   ;;  %vm3196_vm6 = vcmask 1044484   ;;  %vm3198_vm7 = vcmask 1045509  }
   0x4   :  { %v54_v6 = vld [vmem:[%s11530_s1] sm:$0xff]  ;;  %11721 = vst [vmem:[#allocation8_spill] sm:$0xff] %v7126_v8  ;;  %49 = vmatpush.msra.mxu0 %v28_v3  ;;  %vm339_vm1 = vcmp.eq.s32.totalorder %v336_v7, %v7126_v8  ;;  %6509 = vset.pattern.permute.xlu1 %v336_v7  ;;  %s7054_s1 = smov 64   ;;  %s7063_s20 = smov 32   ;;  %vm3200_vm8 = vcmask 1046534   ;;  %vm3202_vm9 = vcmask 1047559  }
   0x5   :  { %75 = vmatpush.msra.mxu1 %v55_v4  ;;  %v80_v9 = vld [vmem:[%s11531_s2] sm:$0xff]  ;;  %6457 = vmatmul.msk.f32.vlgmr.msra.gmra.mxu0 %vm30_vm0, %v27_v5  ;;  %v6460_v11 = vsel %vm339_vm1, 1.0, %v7052_v10  ;;  %s7055_s2 = smov 120   ;;  %s7064_s21 = smov 16   ;;  %vm6289_vm10 = vcmask 130112   ;;  %vm6316_vm11 = vcmask 195712  }
   0x6   :  { %6458 = vmatmul.msk.f32.vlgmr.msra.gmra.mxu1 %vm30_vm0, %v54_v6  ;;  %v342_v12 = vperm.slane %v6460_v11, 0  ;;  %v349_v13 = vperm.slane %v6460_v11, 1  ;;  %99 = vmatpush.msra.mxu2 %v55_v4  ;;  %v370_v14 = vperm.slane %v6460_v11, 4  ;;  %v377_v15 = vperm.slane %v6460_v11, 5  ;;  %s7065_s22 = smov 80   ;;  %s7066_s23 = smov 72  }
   0x7   :  { %6459 = vmatmul.msk.f32.vlgmr.msra.gmra.mxu2 %vm30_vm0, %v80_v9  ;;  %6521 = vset.pattern.permute.xlu0 %v336_v7  ;;  %v356_v16 = vperm.slane %v6460_v11, 2  ;;  %v363_v17 = vperm.slane %v6460_v11, 3  ;;  %v384_v21 = vperm.slane %v6460_v11, 6  ;;  %v391_v22 = vperm.slane %v6460_v11, 7  ;;  %s7067_s24 = smov 8  }
   0x8   :  { %6515 = vset.pattern.permute.xlu2 %v336_v7  ;;  %v6510_v18 = vpack.i.bf16 %v349_v13, %v342_v12  ;;  %v6522_v19 = vpack.i.bf16 %v377_v15, %v370_v14  ;;  %vm6343_vm12 = vcmask 261312   ;;  %vm6370_vm13 = vcmask 326912  }
   0x9   :  { %v6516_v20 = vpack.i.bf16 %v363_v17, %v356_v16  ;;  %v6527_v23 = vpack.i.bf16 %v391_v22, %v384_v21  ;;  %vm6397_vm14 = vcmask 392512   ;;  %vm6424_vm15 = vcmask 458112  }
   0xa   :  { %vm6451_vm0 = vcmask 523712  }
   0xc   :  { %6511 = vperm.xlu1 %6509, %v6510_v18  }
   0xf   :  { %6523 = vperm.xlu0 %6521, %v6522_v19  }
  0x10   :  { %6517 = vperm.xlu2 %6515, %v6516_v20  }
  0x14   :  { %6528 = vperm.xlu1 %6509, %v6527_v23  }
  0x6a   :  { %v7163_v29 = vpop.permute.xlu2 %6517 }
  0x6b   :  { %v7232_v23 = vunpack.i.l.bf16 %v7163_v29 }
  0x6d   :  { %11724 = vst [vmem:[#allocation11_spill] sm:$0xff] %v7232_v23 }
  0x7e   :  { %v6512_v32 = vpop.permute.xlu1 %6511 }
  0x7f   :  { %v7190_v52 = vunpack.i.l.bf16 %v6512_v32  ;;  %v7207_v6 = vunpack.i.h.bf16 %v6512_v32 }
  0x81   :  { %v7167_v33 = vpop.permute.xlu0 %6523  ;;  %11722 = vst [vmem:[#allocation9_spill] sm:$0xff] %v7190_v52 }
  0x82   :  { %v51_v24 = vpop.f32.mrf.mxu0  ;;  %11723 = vst [vmem:[#allocation10_spill] sm:$0xff] %v7207_v6 }
  0x83   :  { %v77_v25 = vpop.f32.mrf.mxu1  ;;  %105 = vst.msk [vmem:[#allocation2] sm:$0xff] %vm104_vm2, %v51_v24  ;;  %119 = vrot.lane.b32.xlu1 %v51_v24, %s7055_s2 }
  0x84   :  { %129 = vrot.lane.b32.xlu2 %v77_v25, %s7053_s0  ;;  %108 = vrot.lane.b32.xlu0 %v77_v25, %s7054_s1  ;;  %106 = vst.msk [vmem:[#allocation3] sm:$0xff] %vm104_vm2, %v77_v25 }
  0x86   :  { %v7171_v36 = vpop.permute.xlu1 %6528 }
  0x8a   :  { %v7147_v27 = vld [vmem:[#allocation2] sm:$0xff]  ;;  %v101_v28 = vpop.f32.mrf.mxu2 }
  0x8b   :  { %v7142_v26 = vld [vmem:[#allocation3] sm:$0xff]  ;;  %124 = vrot.lane.b32.xlu1 %v77_v25, %s7055_s2  ;;  %112 = vst.msk [vmem:[#allocation4] sm:$0xff] %vm104_vm2, %v101_v28 }
  0x8c   :  { %149 = vrot.lane.b32.xlu2 %v77_v25, %s7056_s4  ;;  %154 = vrot.lane.b32.xlu0 %v77_v25, %s7057_s14  ;;  %v406_v42 = vrot.slane %v7142_v26, 1  ;;  %v408_v44 = vrot.slane %v7142_v26, 3  ;;  %v409_v45 = vrot.slane %v7142_v26, 4  ;;  %v411_v46 = vrot.slane %v7142_v26, 6 }
  0x8d   :  { %6461 = vmatpush.xpose.msk.msra.mxu3 %vm104_vm2, %v7142_v26  ;;  %v412_v47 = vrot.slane %v7142_v26, 7  ;;  %v407_v48 = vrot.slane %v7142_v26, 2  ;;  %v410_v49 = vrot.slane %v7142_v26, 5  ;;  %v462_v50 = vperm.slane %v7142_v26, 0 }
  0x8e   :  { %v463_v51 = vperm.slane %v406_v42, 0  ;;  %v465_v53 = vperm.slane %v408_v44, 0  ;;  %v466_v54 = vperm.slane %v409_v45, 0  ;;  %v468_v55 = vperm.slane %v411_v46, 0 }
  0x8f   :  { %v469_v56 = vperm.slane %v412_v47, 0  ;;  %v464_v57 = vperm.slane %v407_v48, 0  ;;  %v467_v58 = vperm.slane %v410_v49, 0  ;;  %v590_v62 = vmul.f32 %v7190_v52, %v462_v50 }
  0x90   :  { %6462 = vmatmul.msk.f32.vlgmr.msra.gmra.mxu3 %vm104_vm2, %v7147_v27  ;;  %v591_v63 = vmul.f32 %v7190_v52, %v463_v51  ;;  %v593_v2 = vmul.f32 %v7190_v52, %v465_v53  ;;  %v594_v3 = vmul.f32 %v7190_v52, %v466_v54  ;;  %v596_v4 = vmul.f32 %v7190_v52, %v468_v55 }
  0x91   :  { %v597_v5 = vmul.f32 %v7190_v52, %v469_v56  ;;  %v592_v7 = vmul.f32 %v7190_v52, %v464_v57  ;;  %v595_v9 = vmul.f32 %v7190_v52, %v467_v58  ;;  %v7216_v12 = vsel %vm104_vm2, %v590_v62, 0.0 }
  0x92   :  { %v7219_v13 = vsel %vm104_vm2, %v591_v63, 0.0  ;;  %v699_v17 = vsel %vm104_vm2, %v593_v2, 0.0  ;;  %v714_v18 = vsel %vm104_vm2, %v594_v3, 0.0  ;;  %v744_v21 = vsel %vm104_vm2, %v596_v4, 0.0 }
  0x93   :  { %144 = vrot.lane.b32.xlu1 %v51_v24, %s7056_s4  ;;  %v759_v22 = vsel %vm104_vm2, %v597_v5, 0.0  ;;  %v7269_v63 = vsel %vm104_vm2, %v592_v7, 0.0  ;;  %v7272_v2 = vunpack.i.h.bf16 %v7163_v29  ;;  %v7276_v5 = vsel %vm104_vm2, %v595_v9, 0.0 }
  0x94   :  { %179 = vrot.lane.b32.xlu2 %v77_v25, %s7058_s15  ;;  %169 = vrot.lane.b32.xlu0 %v51_v24, %s7059_s16  ;;  %v7282_v29 = vunpack.i.h.bf16 %v7171_v36 }
  0x95   :  { %11725 = vst [vmem:[#allocation12_spill] sm:$0xff] %v7272_v2 }
  0x96   :  { %11726 = vst [vmem:[#allocation13_spill] sm:$0xff] %v7282_v29 }
  0x9b   :  { %174 = vrot.lane.b32.xlu1 %v77_v25, %s7059_s16 }
  0x9c   :  { %194 = vrot.lane.b32.xlu2 %v51_v24, %s7060_s17  ;;  %199 = vrot.lane.b32.xlu0 %v77_v25, %s7060_s17 }
  0xa3   :  { %204 = vrot.lane.b32.xlu1 %v77_v25, %s7063_s20 }
  0xa4   :  { %224 = vrot.lane.b32.xlu2 %v77_v25, %s7061_s18  ;;  %229 = vrot.lane.b32.xlu0 %v77_v25, %s7062_s19 }
  0xab   :  { %219 = vrot.lane.b32.xlu1 %v51_v24, %s7061_s18 }
  0xac   :  { %254 = vrot.lane.b32.xlu2 %v77_v25, %s7064_s21  ;;  %244 = vrot.lane.b32.xlu0 %v51_v24, %s7065_s22 }
  0xb3   :  { %249 = vrot.lane.b32.xlu1 %v77_v25, %s7065_s22 }
  0xb4   :  { %269 = vrot.lane.b32.xlu2 %v51_v24, %s7066_s23  ;;  %274 = vrot.lane.b32.xlu0 %v77_v25, %s7066_s23 }
  0xbb   :  { %279 = vrot.lane.b32.xlu1 %v77_v25, %s7067_s24 }
  0xbc   :  { %134 = vrot.lane.b32.xlu2 %v101_v28, %s7055_s2  ;;  %114 = vrot.lane.b32.xlu0 %v101_v28, %s7054_s1 }
  0xc3   :  { %159 = vrot.lane.b32.xlu1 %v101_v28, %s7056_s4 }
  0xc4   :  { %164 = vrot.lane.b32.xlu2 %v101_v28, %s7057_s14  ;;  %139 = vrot.lane.b32.xlu0 %v101_v28, %s7053_s0 }
  0xcb   :  { %189 = vrot.lane.b32.xlu1 %v101_v28, %s7058_s15 }
  0xcc   :  { %209 = vrot.lane.b32.xlu2 %v101_v28, %s7060_s17  ;;  %184 = vrot.lane.b32.xlu0 %v101_v28, %s7059_s16 }
  0xd3   :  { %234 = vrot.lane.b32.xlu1 %v101_v28, %s7061_s18 }
  0xd4   :  { %239 = vrot.lane.b32.xlu2 %v101_v28, %s7062_s19  ;;  %214 = vrot.lane.b32.xlu0 %v101_v28, %s7063_s20 }
  0xdb   :  { %264 = vrot.lane.b32.xlu1 %v101_v28, %s7064_s21 }
  0xdc   :  { %284 = vrot.lane.b32.xlu2 %v101_v28, %s7066_s23  ;;  %259 = vrot.lane.b32.xlu0 %v101_v28, %s7065_s22 }
  0xde   :  { %v130_v30 = vpop.permute.xlu2 %129 }
  0xdf   :  { %133 = vst.msk [vmem:[#allocation5 + $0x8] sm:$0xff] %vm104_vm2, %v130_v30 }
  0xe4   :  { %289 = vrot.lane.b32.xlu0 %v101_v28, %s7067_s24 }
  0xe6   :  { %v150_v31 = vpop.permute.xlu2 %149 }
  0xe7   :  { %153 = vst.msk [vmem:[#allocation3 + $0x10] sm:$0xff] %vm104_vm2, %v150_v31 }
  0xee   :  { %v180_v34 = vpop.permute.xlu2 %179  ;;  %v7169_v35 = vld [vmem:[#allocation3 + $0x10] sm:$0xff] }
  0xef   :  { %183 = vst.msk [vmem:[#allocation5 + $0x18] sm:$0xff] %vm104_vm2, %v180_v34  ;;  %6465 = vmatpush.xpose.msk.msrb.mxu1 %vm104_vm2, %v7169_v35  ;;  %v420_v24 = vrot.slane %v7169_v35, 1  ;;  %v421_v31 = vrot.slane %v7169_v35, 2  ;;  %v422_v32 = vrot.slane %v7169_v35, 3  ;;  %v425_v44 = vrot.slane %v7169_v35, 6 }
  0xf0   :  { %v426_v45 = vrot.slane %v7169_v35, 7  ;;  %v478_v46 = vperm.slane %v7169_v35, 0 }
  0xf1   :  { %v479_v56 = vperm.slane %v420_v24, 0  ;;  %v480_v57 = vperm.slane %v421_v31, 0  ;;  %v7305_v31 = vunpack.i.l.bf16 %v7167_v33 }
  0xf3   :  { %v608_v9 = vmul.f32 %v7232_v23, %v480_v57  ;;  %11729 = vst [vmem:[#allocation16_spill] sm:$0xff] %v7305_v31 }
  0xf5   :  { %v120_v39 = vpop.permute.xlu1 %119 }
  0xf6   :  { %v109_v37 = vpop.permute.xlu0 %108  ;;  %v195_v38 = vpop.permute.xlu2 %194  ;;  %123 = vst.msk [vmem:[#allocation2 + $0x8] sm:$0xff] %vm104_vm2, %v120_v39  ;;  %v423_v39 = vrot.slane %v7169_v35, 4 }
  0xf7   :  { %111 = vst.msk [vmem:[#allocation5] sm:$0xff] %vm104_vm2, %v109_v37 }
  0xf8   :  { %198 = vst.msk [vmem:[#allocation2 + $0x20] sm:$0xff] %vm104_vm2, %v195_v38 }
  0xfd   :  { %v125_v43 = vpop.permute.xlu1 %124  ;;  %v7221_v14 = vld [vmem:[#allocation2 + $0x8] sm:$0xff] }
  0xfe   :  { %v155_v40 = vpop.permute.xlu0 %154  ;;  %v225_v41 = vpop.permute.xlu2 %224  ;;  %128 = vst.msk [vmem:[#allocation3 + $0x8] sm:$0xff] %vm104_vm2, %v125_v43 }
  0xff   :  { %158 = vst.msk [vmem:[#allocation5 + $0x10] sm:$0xff] %vm104_vm2, %v155_v40  ;;  %v424_v40 = vrot.slane %v7169_v35, 5 }
 0x100   :  { %228 = vst.msk [vmem:[#allocation3 + $0x28] sm:$0xff] %vm104_vm2, %v225_v41 }
 0x101   :  { %v483_v62 = vperm.slane %v424_v40, 0 }
 0x105   :  { %v145_v61 = vpop.permute.xlu1 %144  ;;  %v7198_v1 = vld [vmem:[#allocation3 + $0x8] sm:$0xff] }
 0x106   :  { %v255_v59 = vpop.permute.xlu2 %254  ;;  %v170_v60 = vpop.permute.xlu0 %169  ;;  %148 = vst.msk [vmem:[#allocation2 + $0x10] sm:$0xff] %vm104_vm2, %v145_v61  ;;  %6463 = vmatpush.xpose.msk.msrb.mxu0 %vm104_vm2, %v7198_v1  ;;  %v415_v10 = vrot.slane %v7198_v1, 3  ;;  %v416_v11 = vrot.slane %v7198_v1, 4  ;;  %v418_v15 = vrot.slane %v7198_v1, 6  ;;  %v419_v16 = vrot.slane %v7198_v1, 7 }
 0x107   :  { %258 = vst.msk [vmem:[#allocation5 + $0x30] sm:$0xff] %vm104_vm2, %v255_v59  ;;  %v7195_v0 = vld [vmem:[#allocation3 + $0x28] sm:$0xff]  ;;  %v413_v48 = vrot.slane %v7198_v1, 1  ;;  %v414_v49 = vrot.slane %v7198_v1, 2  ;;  %v417_v53 = vrot.slane %v7198_v1, 5  ;;  %v482_v61 = vperm.slane %v423_v39, 0 }
 0x108   :  { %173 = vst.msk [vmem:[#allocation2 + $0x18] sm:$0xff] %vm104_vm2, %v170_v60  ;;  %v473_v19 = vperm.slane %v415_v10, 0  ;;  %v474_v20 = vperm.slane %v416_v11, 0  ;;  %v476_v25 = vperm.slane %v418_v15, 0  ;;  %v477_v26 = vperm.slane %v419_v16, 0 }
 0x109   :  { %6464 = vmatmul.msk.f32.vlgmr.msrb.gmra.mxu0 %vm104_vm2, %v7221_v14  ;;  %v481_v60 = vperm.slane %v422_v32, 0  ;;  %v470_v3 = vperm.slane %v7198_v1, 0  ;;  %v471_v4 = vperm.slane %v413_v48, 0  ;;  %v484_v15 = vperm.slane %v425_v44, 0 }
 0x10a   :  { %6471 = vmatpush.xpose.msk.msra.mxu0 %vm104_vm2, %v7195_v0  ;;  %v601_v34 = vmul.f32 %v7207_v6, %v473_v19  ;;  %v602_v37 = vmul.f32 %v7207_v6, %v474_v20  ;;  %v604_v41 = vmul.f32 %v7207_v6, %v476_v25  ;;  %v605_v42 = vmul.f32 %v7207_v6, %v477_v26 }
 0x10b   :  { %v485_v16 = vperm.slane %v426_v45, 0  ;;  %v606_v1 = vmul.f32 %v7232_v23, %v478_v46  ;;  %v607_v20 = vmul.f32 %v7232_v23, %v479_v56  ;;  %v609_v24 = vmul.f32 %v7232_v23, %v481_v60 }
 0x10c   :  { %v700_v47 = vsel %vm104_vm2, %v601_v34, 0.0  ;;  %v715_v51 = vsel %vm104_vm2, %v602_v37, 0.0  ;;  %v745_v35 = vsel %vm104_vm2, %v604_v41, 0.0  ;;  %v760_v55 = vsel %vm104_vm2, %v605_v42, 0.0  ;;  %v7313_v34 = vld [vmem:[#allocation2 + $0x20] sm:$0xff] }
 0x10d   :  { %v175_v38 = vpop.permute.xlu1 %174  ;;  %v7245_v43 = vld [vmem:[#allocation2 + $0x10] sm:$0xff]  ;;  %v7256_v50 = vadd.f32 %v700_v47, %v699_v17  ;;  %v7260_v54 = vadd.f32 %v715_v51, %v714_v18  ;;  %v7264_v58 = vadd.f32 %v745_v35, %v744_v21  ;;  %v7266_v59 = vadd.f32 %v760_v55, %v759_v22 }
 0x10e   :  { %v270_v28 = vpop.permute.xlu2 %269  ;;  %v200_v30 = vpop.permute.xlu0 %199  ;;  %178 = vst.msk [vmem:[#allocation3 + $0x18] sm:$0xff] %vm104_vm2, %v175_v38  ;;  %6466 = vmatmul.msk.f32.vlgmr.msrb.gmra.mxu1 %vm104_vm2, %v7245_v43  ;;  %v472_v17 = vperm.slane %v414_v49, 0  ;;  %v475_v18 = vperm.slane %v417_v53, 0  ;;  %v7293_v22 = vunpack.i.l.bf16 %v7171_v36  ;;  %v610_v25 = vmul.f32 %v7232_v23, %v482_v61 }
 0x10f   :  { %273 = vst.msk [vmem:[#allocation2 + $0x38] sm:$0xff] %vm104_vm2, %v270_v28  ;;  %v611_v26 = vmul.f32 %v7232_v23, %v483_v62  ;;  %v7299_v28 = vld [vmem:[#allocation4] sm:$0xff]  ;;  %v598_v32 = vmul.f32 %v7207_v6, %v470_v3  ;;  %v599_v36 = vmul.f32 %v7207_v6, %v471_v4  ;;  %v612_v37 = vmul.f32 %v7232_v23, %v484_v15  ;;  %v7331_v45 = vld [vmem:[#allocation2 + $0x18] sm:$0xff] }
 0x110   :  { %203 = vst.msk [vmem:[#allocation3 + $0x20] sm:$0xff] %vm104_vm2, %v200_v30  ;;  %v7302_v30 = vunpack.i.h.bf16 %v7167_v33  ;;  %v613_v38 = vmul.f32 %v7232_v23, %v485_v16  ;;  %v600_v39 = vmul.f32 %v7207_v6, %v472_v17  ;;  %v603_v33 = vmul.f32 %v7207_v6, %v475_v18 }
 0x111   :  { %11727 = vst [vmem:[#allocation14_spill] sm:$0xff] %v7293_v22  ;;  %v7322_v40 = vsel %vm104_vm2, %v606_v1, 0.0  ;;  %v7325_v41 = vsel %vm104_vm2, %v607_v20, 0.0  ;;  %v7328_v42 = vsel %vm104_vm2, %v608_v9, 0.0  ;;  %v7334_v46 = vsel %vm104_vm2, %v609_v24, 0.0 }
 0x112   :  { %11728 = vst [vmem:[#allocation15_spill] sm:$0xff] %v7302_v30  ;;  %v7337_v47 = vsel %vm104_vm2, %v610_v25, 0.0  ;;  %v7340_v48 = vsel %vm104_vm2, %v611_v26, 0.0  ;;  %v441_v49 = vrot.slane %v7195_v0, 1  ;;  %v655_v51 = vsel %vm104_vm2, %v598_v32, 0.0 }
 0x113   :  { %v670_v53 = vsel %vm104_vm2, %v599_v36, 0.0  ;;  %v442_v35 = vrot.slane %v7195_v0, 2  ;;  %v443_v55 = vrot.slane %v7195_v0, 3  ;;  %v7352_v61 = vsel %vm104_vm2, %v612_v37, 0.0 }
 0x114   :  { %v685_v62 = vsel %vm104_vm2, %v600_v39, 0.0  ;;  %v730_v3 = vsel %vm104_vm2, %v603_v33, 0.0  ;;  %v444_v4 = vrot.slane %v7195_v0, 4  ;;  %v445_v15 = vrot.slane %v7195_v0, 5 }
 0x115   :  { %v205_v19 = vpop.permute.xlu1 %204  ;;  %v7288_v21 = vld [vmem:[#allocation3 + $0x18] sm:$0xff]  ;;  %v446_v16 = vrot.slane %v7195_v0, 6  ;;  %v7367_v18 = vadd.f32 %v655_v51, %v7216_v12  ;;  %v502_v1 = vperm.slane %v7195_v0, 0  ;;  %v503_v20 = vperm.slane %v441_v49, 0 }
 0x116   :  { %v135_v10 = vpop.permute.xlu2 %134  ;;  %v230_v11 = vpop.permute.xlu0 %229  ;;  %208 = vst.msk [vmem:[#allocation5 + $0x20] sm:$0xff] %vm104_vm2, %v205_v19  ;;  %6467 = vmatpush.xpose.msk.msrb.mxu2 %vm104_vm2, %v7288_v21  ;;  %v431_v44 = vrot.slane %v7288_v21, 5  ;;  %v671_v19 = vadd.f32 %v670_v53, %v7219_v13  ;;  %v686_v9 = vadd.f32 %v685_v62, %v7269_v63  ;;  %v731_v24 = vadd.f32 %v730_v3, %v7276_v5 }
 0x117   :  { %138 = vst.msk [vmem:[#allocation4 + $0x8] sm:$0xff] %vm104_vm2, %v135_v10  ;;  %v7279_v7 = vld [vmem:[#allocation3 + $0x20] sm:$0xff]  ;;  %v504_v25 = vperm.slane %v442_v35, 0  ;;  %v505_v26 = vperm.slane %v443_v55, 0  ;;  %v506_v32 = vperm.slane %v444_v4, 0  ;;  %v427_v36 = vrot.slane %v7288_v21, 1 }
 0x118   :  { %233 = vst.msk [vmem:[#allocation5 + $0x28] sm:$0xff] %vm104_vm2, %v230_v11  ;;  %6469 = vmatpush.xpose.msk.msrb.mxu3 %vm104_vm2, %v7279_v7  ;;  %v7359_v11 = vsel %vm104_vm2, %v613_v38, 0.0  ;;  %v491_v17 = vperm.slane %v431_v44, 0  ;;  %v428_v37 = vrot.slane %v7288_v21, 2  ;;  %v438_v12 = vrot.slane %v7279_v7, 5 }
 0x119   :  { %6468 = vmatmul.msk.f32.vlgmr.msrb.gmra.mxu2 %vm104_vm2, %v7331_v45  ;;  %v507_v13 = vperm.slane %v445_v15, 0  ;;  %v7379_v38 = vperm.slane %v446_v16, 0  ;;  %v486_v39 = vperm.slane %v7288_v21, 0  ;;  %v7384_v5 = vmul.f32 %v7302_v30, %v502_v1 }
 0x11a   :  { %v619_v63 = vmul.f32 %v7272_v2, %v491_v17  ;;  %v7387_v33 = vmul.f32 %v7302_v30, %v503_v20  ;;  %v429_v44 = vrot.slane %v7288_v21, 3  ;;  %v499_v49 = vperm.slane %v438_v12, 0 }
 0x11b   :  { %6470 = vmatmul.msk.f32.vlgmr.msrb.gmra.mxu3 %vm104_vm2, %v7313_v34  ;;  %v7391_v51 = vmul.f32 %v7302_v30, %v504_v25  ;;  %v432_v53 = vrot.slane %v7288_v21, 6  ;;  %v433_v35 = vrot.slane %v7288_v21, 7  ;;  %v7400_v62 = vmul.f32 %v7302_v30, %v506_v32 }
 0x11c   :  { %6477 = vmatpush.xpose.msk.msra.mxu3 %vm104_vm2, %v7299_v28  ;;  %v487_v3 = vperm.slane %v427_v36, 0  ;;  %v488_v4 = vperm.slane %v428_v37, 0  ;;  %v614_v15 = vmul.f32 %v7272_v2, %v486_v39  ;;  %v734_v16 = vsel %vm104_vm2, %v619_v63, 0.0 }
 0x11d   :  { %v220_v10 = vpop.permute.xlu1 %219  ;;  %v627_v17 = vmul.f32 %v7305_v31, %v499_v49  ;;  %v688_v1 = vadd.f32 %v7328_v42, %v686_v9  ;;  %v635_v20 = vmul.f32 %v7302_v30, %v507_v13  ;;  %v489_v25 = vperm.slane %v429_v44, 0 }
 0x11e   :  { %v165_v56 = vpop.permute.xlu2 %164  ;;  %v245_v57 = vpop.permute.xlu0 %244  ;;  %v7349_v60 = vld [vmem:[#allocation4 + $0x8] sm:$0xff]  ;;  %223 = vst.msk [vmem:[#allocation2 + $0x28] sm:$0xff] %vm104_vm2, %v220_v10  ;;  %v733_v32 = vadd.f32 %v7340_v48, %v731_v24  ;;  %v492_v37 = vperm.slane %v432_v53, 0  ;;  %v493_v12 = vperm.slane %v433_v35, 0  ;;  %v7417_v39 = vadd.f32 %v7325_v41, %v671_v19 }
 0x11f   :  { %168 = vst.msk [vmem:[#allocation6 + $0x10] sm:$0xff] %vm104_vm2, %v165_v56  ;;  %6479 = vmatpush.xpose.msk.msrb.mxu0 %vm104_vm2, %v7349_v60  ;;  %v616_v42 = vmul.f32 %v7272_v2, %v488_v4  ;;  %v494_v9 = vperm.slane %v7279_v7, 0  ;;  %v7423_v63 = vadd.f32 %v7334_v46, %v7256_v50  ;;  %v615_v44 = vmul.f32 %v7272_v2, %v487_v3 }
 0x120   :  { %248 = vst.msk [vmem:[#allocation2 + $0x30] sm:$0xff] %vm104_vm2, %v245_v57  ;;  %v7397_v57 = vmul.f32 %v7302_v30, %v505_v26  ;;  %v435_v26 = vrot.slane %v7279_v7, 2  ;;  %v735_v13 = vadd.f32 %v734_v16, %v733_v32  ;;  %v659_v49 = vsel %vm104_vm2, %v614_v15, 0.0 }
 0x121   :  { %v434_v48 = vrot.slane %v7279_v7, 1  ;;  %v736_v24 = vsel %vm104_vm2, %v627_v17, 0.0  ;;  %v436_v41 = vrot.slane %v7279_v7, 3  ;;  %v7432_v53 = vadd.f32 %v7337_v47, %v7260_v54 }
 0x122   :  { %v496_v19 = vperm.slane %v435_v26, 0  ;;  %v437_v35 = vrot.slane %v7279_v7, 4  ;;  %v439_v50 = vrot.slane %v7279_v7, 6  ;;  %v658_v3 = vadd.f32 %v7322_v40, %v7367_v18 }
 0x123   :  { %6478 = vmatmul.msk.f32.vlgmr.msra.gmra.mxu3 %vm104_vm2, %v7147_v27  ;;  %v430_v27 = vrot.slane %v7288_v21, 4  ;;  %v738_v4 = vsel %vm104_vm2, %v635_v20, 0.0  ;;  %v689_v15 = vsel %vm104_vm2, %v616_v42, 0.0  ;;  %v622_v54 = vmul.f32 %v7305_v31, %v494_v9 }
 0x124   :  { %v620_v18 = vmul.f32 %v7272_v2, %v492_v37  ;;  %v495_v20 = vperm.slane %v434_v48, 0  ;;  %v660_v26 = vadd.f32 %v659_v49, %v658_v3  ;;  %v7460_v32 = vmul.f32 %v7302_v30, %v7379_v38  ;;  %v7469_v49 = vld [vmem:[#allocation2 + $0x38] sm:$0xff] }
 0x125   :  { %v250_v10 = vpop.permute.xlu1 %249  ;;  %v7407_v21 = vld [vmem:[#allocation2 + $0x28] sm:$0xff]  ;;  %v490_v36 = vperm.slane %v430_v27, 0  ;;  %v737_v27 = vadd.f32 %v736_v24, %v735_v13  ;;  %v621_v42 = vmul.f32 %v7272_v2, %v493_v12  ;;  %v624_v9 = vmul.f32 %v7305_v31, %v496_v19 }
 0x126   :  { %v210_v55 = vpop.permute.xlu2 %209  ;;  %v275_v56 = vpop.permute.xlu0 %274  ;;  %253 = vst.msk [vmem:[#allocation3 + $0x30] sm:$0xff] %vm104_vm2, %v250_v10  ;;  %6472 = vmatmul.msk.f32.vlgmr.msra.gmra.mxu0 %vm104_vm2, %v7407_v21  ;;  %v617_v10 = vmul.f32 %v7272_v2, %v489_v25  ;;  %v498_v37 = vperm.slane %v437_v35, 0  ;;  %v500_v13 = vperm.slane %v439_v50, 0  ;;  %v690_v38 = vadd.f32 %v689_v15, %v688_v1 }
 0x127   :  { %213 = vst.msk [vmem:[#allocation4 + $0x20] sm:$0xff] %vm104_vm2, %v210_v55  ;;  %v7449_v17 = vadd.f32 %v738_v4, %v737_v27  ;;  %v618_v40 = vmul.f32 %v7272_v2, %v490_v36  ;;  %v497_v36 = vperm.slane %v436_v41, 0  ;;  %v674_v12 = vsel %vm104_vm2, %v615_v44, 0.0  ;;  %v7476_v19 = vld [vmem:[#allocation2 + $0x30] sm:$0xff] }
 0x128   :  { %278 = vst.msk [vmem:[#allocation3 + $0x38] sm:$0xff] %vm104_vm2, %v275_v56  ;;  %v704_v48 = vsel %vm104_vm2, %v617_v10, 0.0  ;;  %v7483_v27 = vsel %vm104_vm2, %v620_v18, 0.0  ;;  %v7489_v44 = vsel %vm104_vm2, %v621_v42, 0.0  ;;  %v626_v3 = vmul.f32 %v7305_v31, %v498_v37 }
 0x129   :  { %v719_v41 = vsel %vm104_vm2, %v618_v40, 0.0  ;;  %v7497_v4 = vmul.f32 %v7305_v31, %v500_v13  ;;  %v705_v37 = vadd.f32 %v704_v48, %v7423_v63 }
 0x12d   :  { %v280_v47 = vpop.permute.xlu1 %279  ;;  %v7454_v25 = vld [vmem:[#allocation3 + $0x30] sm:$0xff] }
 0x12e   :  { %v240_v46 = vpop.permute.xlu2 %239  ;;  %v115_v55 = vpop.permute.xlu0 %114  ;;  %v7436_v56 = vld [vmem:[#allocation4 + $0x20] sm:$0xff]  ;;  %283 = vst.msk [vmem:[#allocation5 + $0x38] sm:$0xff] %vm104_vm2, %v280_v47  ;;  %6473 = vmatpush.xpose.msk.msra.mxu1 %vm104_vm2, %v7454_v25  ;;  %6480 = vmatmul.msk.f32.vlgmr.msrb.gmra.mxu0 %vm104_vm2, %v7221_v14  ;;  %v510_v24 = vperm.slane %v7454_v25, 0  ;;  %v661_v14 = vsel %vm104_vm2, %v622_v54, 0.0  ;;  %v449_v35 = vrot.slane %v7454_v25, 2  ;;  %v448_v13 = vrot.slane %v7454_v25, 1 }
 0x12f   :  { %243 = vst.msk [vmem:[#allocation6 + $0x28] sm:$0xff] %vm104_vm2, %v240_v46  ;;  %v7445_v16 = vld [vmem:[#allocation3 + $0x38] sm:$0xff]  ;;  %6485 = vmatpush.xpose.msk.msrb.mxu3 %vm104_vm2, %v7436_v56  ;;  %v662_v1 = vadd.f32 %v661_v14, %v660_v26  ;;  %v691_v46 = vsel %vm104_vm2, %v624_v9, 0.0  ;;  %v675_v26 = vadd.f32 %v674_v12, %v7417_v39  ;;  %v693_v9 = vsel %vm104_vm2, %v7391_v51, 0.0 }
 0x130   :  { %117 = vst.msk [vmem:[#allocation6] sm:$0xff] %vm104_vm2, %v115_v55  ;;  %6475 = vmatpush.xpose.msk.msra.mxu2 %vm104_vm2, %v7445_v16  ;;  %v518_v50 = vperm.slane %v7445_v16, 0  ;;  %v625_v55 = vmul.f32 %v7305_v31, %v497_v36  ;;  %v692_v54 = vadd.f32 %v691_v46, %v690_v38  ;;  %v638_v40 = vmul.f32 %v7293_v22, %v510_v24 }
 0x131   :  { %6474 = vmatmul.msk.f32.vlgmr.msra.gmra.mxu1 %vm104_vm2, %v7476_v19  ;;  %v512_v38 = vperm.slane %v449_v35, 0  ;;  %v708_v51 = vsel %vm104_vm2, %v7397_v57, 0.0  ;;  %v456_v63 = vrot.slane %v7445_v16, 2  ;;  %v452_v35 = vrot.slane %v7454_v25, 5 }
 0x132   :  { %6486 = vmatmul.msk.f32.vlgmr.msrb.gmra.mxu3 %vm104_vm2, %v7313_v34  ;;  %v623_v34 = vmul.f32 %v7305_v31, %v495_v20  ;;  %v646_v18 = vmul.f32 %v7282_v29, %v518_v50  ;;  %v663_v20 = vsel %vm104_vm2, %v7384_v5, 0.0  ;;  %v665_v24 = vsel %vm104_vm2, %v638_v40, 0.0 }
 0x133   :  { %6476 = vmatmul.msk.f32.vlgmr.msra.gmra.mxu2 %vm104_vm2, %v7469_v49  ;;  %v664_v42 = vadd.f32 %v663_v20, %v662_v1  ;;  %v7515_v5 = vsel %vm104_vm2, %v7387_v33, 0.0  ;;  %v694_v12 = vadd.f32 %v693_v9, %v692_v54  ;;  %v706_v14 = vsel %vm104_vm2, %v625_v55, 0.0 }
 0x134   :  { %v676_v36 = vsel %vm104_vm2, %v623_v34, 0.0  ;;  %v667_v48 = vsel %vm104_vm2, %v646_v18, 0.0  ;;  %v7525_v1 = vsel %vm104_vm2, %v626_v3, 0.0  ;;  %v707_v50 = vadd.f32 %v706_v14, %v705_v37 }
 0x135   :  { %v160_v47 = vpop.permute.xlu1 %159  ;;  %v666_v39 = vadd.f32 %v665_v24, %v664_v42  ;;  %v7522_v34 = vadd.f32 %v676_v36, %v675_v26  ;;  %v7532_v46 = vsel %vm104_vm2, %v7400_v62, 0.0  ;;  %v511_v55 = vperm.slane %v448_v13, 0 }
 0x136   :  { %v285_v10 = vpop.permute.xlu2 %284  ;;  %v140_v15 = vpop.permute.xlu0 %139  ;;  %163 = vst.msk [vmem:[#allocation4 + $0x10] sm:$0xff] %vm104_vm2, %v160_v47  ;;  %v640_v57 = vmul.f32 %v7293_v22, %v512_v38  ;;  %v455_v3 = vrot.slane %v7445_v16, 1  ;;  %v450_v18 = vrot.slane %v7454_v25, 3  ;;  %v451_v20 = vrot.slane %v7454_v25, 4 }
 0x137   :  { %288 = vst.msk [vmem:[#allocation4 + $0x38] sm:$0xff] %vm104_vm2, %v285_v10  ;;  %v7528_v33 = vadd.f32 %v667_v48, %v666_v39  ;;  %v7536_v10 = vadd.f32 %v719_v41, %v7432_v53  ;;  %v520_v41 = vperm.slane %v456_v63, 0  ;;  %v515_v26 = vperm.slane %v452_v35, 0 }
 0x138   :  { %143 = vst.msk [vmem:[#allocation6 + $0x8] sm:$0xff] %vm104_vm2, %v140_v15  ;;  %v7540_v15 = vsel %vm104_vm2, %v7460_v32, 0.0  ;;  %v459_v13 = vrot.slane %v7445_v16, 5  ;;  %v695_v24 = vsel %vm104_vm2, %v640_v57, 0.0  ;;  %v639_v39 = vmul.f32 %v7293_v22, %v511_v55 }
 0x139   :  { %v1974_v54 = vperm.slane %v7528_v33, 0  ;;  %v1918_v40 = vrot.slane %v7528_v33, 1  ;;  %v1919_v62 = vrot.slane %v7528_v33, 2  ;;  %v1920_v38 = vrot.slane %v7528_v33, 3 }
 0x13a   :  { %v1924_v35 = vrot.slane %v7528_v33, 7 }
 0x13b   :  { %v2102_v42 = vmul.f32 %v1974_v54, %v7299_v28  ;;  %v1975_v9 = vperm.slane %v1918_v40, 0  ;;  %v1976_v37 = vperm.slane %v1919_v62, 0  ;;  %v453_v54 = vrot.slane %v7454_v25, 6 }
 0x13c   :  { %v519_v40 = vperm.slane %v455_v3, 0  ;;  %v648_v62 = vmul.f32 %v7282_v29, %v520_v41  ;;  %v1977_v53 = vperm.slane %v1920_v38, 0  ;;  %v1921_v3 = vrot.slane %v7528_v33, 4 }
 0x13d   :  { %v190_v32 = vpop.permute.xlu1 %189  ;;  %v7552_v36 = vld [vmem:[#allocation4 + $0x10] sm:$0xff]  ;;  %v2166_v14 = vsel %vm104_vm2, %v2102_v42, 0.0  ;;  %v2103_v63 = vmul.f32 %v1975_v9, %v7349_v60  ;;  %v643_v42 = vmul.f32 %v7293_v22, %v515_v26  ;;  %v513_v9 = vperm.slane %v450_v18, 0 }
 0x13e   :  { %v185_v47 = vpop.permute.xlu0 %184  ;;  %193 = vst.msk [vmem:[#allocation6 + $0x18] sm:$0xff] %vm104_vm2, %v190_v32  ;;  %6481 = vmatpush.xpose.msk.msrb.mxu1 %vm104_vm2, %v7552_v36  ;;  %v2104_v48 = vmul.f32 %v1976_v37, %v7552_v36  ;;  %2167 = vadd.xlane.f32.xlu2 %v2166_v14  ;;  %v696_v32 = vadd.f32 %v695_v24, %v694_v12  ;;  %v7572_v37 = vld [vmem:[#allocation4 + $0x38] sm:$0xff]  ;;  %v514_v41 = vperm.slane %v451_v20, 0  ;;  %v1981_v2 = vperm.slane %v1924_v35, 0 }
 0x13f   :  { %188 = vst.msk [vmem:[#allocation4 + $0x18] sm:$0xff] %vm104_vm2, %v185_v47  ;;  %v458_v47 = vrot.slane %v7445_v16, 4  ;;  %v2169_v57 = vsel %vm104_vm2, %v2103_v63, 0.0  ;;  %v7575_v14 = vadd.f32 %v708_v51, %v707_v50  ;;  %v523_v63 = vperm.slane %v459_v13, 0 }
 0x140   :  { %v2172_v55 = vsel %vm104_vm2, %v2104_v48, 0.0  ;;  %2170 = vadd.xlane.f32.xlu1 %v2169_v57  ;;  %v697_v26 = vsel %vm104_vm2, %v648_v62, 0.0  ;;  %v647_v51 = vmul.f32 %v7282_v29, %v519_v40  ;;  %v679_v50 = vadd.f32 %v7515_v5, %v7522_v34 }
 0x141   :  { %6482 = vmatmul.msk.f32.vlgmr.msrb.gmra.mxu1 %vm104_vm2, %v7245_v43  ;;  %2173 = vadd.xlane.f32.xlu0 %v2172_v55  ;;  %v680_v43 = vsel %vm104_vm2, %v639_v39, 0.0  ;;  %v7592_v20 = vadd.f32 %v697_v26, %v696_v32  ;;  %v740_v13 = vsel %vm104_vm2, %v643_v42, 0.0  ;;  %v516_v38 = vperm.slane %v453_v54, 0 }
 0x142   :  { %v1978_v39 = vperm.slane %v1921_v3, 0  ;;  %v681_v35 = vadd.f32 %v680_v43, %v679_v50  ;;  %v460_v5 = vrot.slane %v7445_v16, 6  ;;  %v1922_v34 = vrot.slane %v7528_v33, 5 }
 0x143   :  { %v741_v62 = vadd.f32 %v740_v13, %v7449_v17  ;;  %v748_v54 = vadd.f32 %v7352_v61, %v7264_v58  ;;  %v11730_v57 = vrot.slane %v7445_v16, 3  ;;  %v1990_v32 = vperm.slane %v7592_v20, 0 }
 0x144   :  { %v682_v42 = vsel %vm104_vm2, %v647_v51, 0.0  ;;  %v2106_v17 = vmul.f32 %v1978_v39, %v7436_v56  ;;  %v751_v61 = vsel %vm104_vm2, %v7497_v4, 0.0  ;;  %v763_v43 = vadd.f32 %v7359_v11, %v7266_v59 }
 0x145   :  { %v235_v12 = vpop.permute.xlu1 %234  ;;  %v521_v55 = vperm.slane %v11730_v57, 0  ;;  %v7615_v3 = vadd.f32 %v682_v42, %v681_v35  ;;  %v2118_v4 = vmul.f32 %v1990_v32, %v7299_v28  ;;  %v1923_v11 = vrot.slane %v7528_v33, 6 }
 0x146   :  { %v215_v8 = vpop.permute.xlu0 %214  ;;  %v7577_v48 = vld [vmem:[#allocation4 + $0x18] sm:$0xff]  ;;  %238 = vst.msk [vmem:[#allocation4 + $0x28] sm:$0xff] %vm104_vm2, %v235_v12  ;;  %v644_v33 = vmul.f32 %v7293_v22, %v516_v38 }
 0x147   :  { %218 = vst.msk [vmem:[#allocation6 + $0x20] sm:$0xff] %vm104_vm2, %v215_v8  ;;  %6483 = vmatpush.xpose.msk.msrb.mxu2 %vm104_vm2, %v7577_v48  ;;  %v2105_v18 = vmul.f32 %v1977_v53, %v7577_v48  ;;  %v2109_v8 = vmul.f32 %v1981_v2, %v7572_v37  ;;  %v722_v53 = vadd.f32 %v7525_v1, %v7536_v10  ;;  %v1982_v13 = vperm.slane %v7615_v3, 0 }
 0x148   :  { %v651_v2 = vmul.f32 %v7282_v29, %v523_v63  ;;  %v641_v1 = vmul.f32 %v7293_v22, %v513_v9  ;;  %v642_v10 = vmul.f32 %v7293_v22, %v514_v41  ;;  %v750_v9 = vadd.f32 %v7483_v27, %v748_v54 }
 0x149   :  { %v2175_v24 = vsel %vm104_vm2, %v2105_v18, 0.0  ;;  %v724_v40 = vadd.f32 %v7532_v46, %v722_v53  ;;  %v522_v46 = vperm.slane %v458_v47, 0  ;;  %v1979_v63 = vperm.slane %v1922_v34, 0 }
 0x14a   :  { %6484 = vmatmul.msk.f32.vlgmr.msrb.gmra.mxu2 %vm104_vm2, %v7331_v45  ;;  %2176 = vadd.xlane.f32.xlu2 %v2175_v24  ;;  %v2187_v45 = vsel %vm104_vm2, %v2109_v8, 0.0  ;;  %v742_v58 = vsel %vm104_vm2, %v651_v2, 0.0  ;;  %v710_v26 = vsel %vm104_vm2, %v641_v1, 0.0  ;;  %v725_v27 = vsel %vm104_vm2, %v642_v10, 0.0 }
 0x14b   :  { %6491 = vmatpush.xpose.msk.msra.mxu2 %vm104_vm2, %v7572_v37  ;;  %2188 = vadd.xlane.f32.xlu0 %v2187_v45  ;;  %v7626_v18 = vadd.f32 %v742_v58, %v741_v62  ;;  %v752_v51 = vadd.f32 %v751_v61, %v750_v9  ;;  %v649_v50 = vmul.f32 %v7282_v29, %v521_v55  ;;  %v2178_v8 = vsel %vm104_vm2, %v2106_v17, 0.0 }
 0x14c   :  { %v650_v53 = vmul.f32 %v7282_v29, %v522_v46  ;;  %v711_v35 = vadd.f32 %v710_v26, %v7575_v14  ;;  %v726_v34 = vadd.f32 %v725_v27, %v724_v40  ;;  %v7647_v2 = vadd.f32 %v7489_v44, %v763_v43 }
 0x14d   :  { %v265_v47 = vpop.permute.xlu1 %264  ;;  %v7624_v12 = vld [vmem:[#allocation4 + $0x28] sm:$0xff]  ;;  %v754_v24 = vadd.f32 %v7540_v15, %v752_v51  ;;  %v524_v62 = vperm.slane %v460_v5, 0  ;;  %v2214_v1 = vsel %vm104_vm2, %v2118_v4, 0.0  ;;  %v1980_v15 = vperm.slane %v1923_v11, 0 }
 0x14e   :  { %v260_v41 = vpop.permute.xlu0 %259  ;;  %268 = vst.msk [vmem:[#allocation6 + $0x30] sm:$0xff] %vm104_vm2, %v265_v47  ;;  %6487 = vmatpush.xpose.msk.msra.mxu0 %vm104_vm2, %v7624_v12  ;;  %v2107_v59 = vmul.f32 %v1979_v63, %v7624_v12  ;;  %v712_v14 = vsel %vm104_vm2, %v649_v50, 0.0  ;;  %v727_v40 = vsel %vm104_vm2, %v650_v53, 0.0  ;;  %v2110_v44 = vmul.f32 %v1982_v13, %v7299_v28 }
 0x14f   :  { %263 = vst.msk [vmem:[#allocation4 + $0x30] sm:$0xff] %vm104_vm2, %v260_v41  ;;  %v7658_v54 = vadd.f32 %v712_v14, %v711_v35  ;;  %v7660_v5 = vadd.f32 %v727_v40, %v726_v34  ;;  %v755_v57 = vsel %vm104_vm2, %v644_v33, 0.0  ;;  %v1926_v45 = vrot.slane %v7615_v3, 2 }
 0x150   :  { %v2181_v39 = vsel %vm104_vm2, %v2107_v59, 0.0  ;;  %v652_v32 = vmul.f32 %v7282_v29, %v524_v62  ;;  %v756_v46 = vadd.f32 %v755_v57, %v754_v24  ;;  %v2190_v17 = vsel %vm104_vm2, %v2110_v44, 0.0 }
 0x151   :  { %2182 = vadd.xlane.f32.xlu1 %v2181_v39  ;;  %6488 = vmatmul.msk.f32.vlgmr.msra.gmra.mxu0 %vm104_vm2, %v7407_v21  ;;  %v1998_v9 = vperm.slane %v7658_v54, 0  ;;  %v2006_v41 = vperm.slane %v7660_v5, 0  ;;  %v1984_v58 = vperm.slane %v1926_v45, 0  ;;  %v1927_v26 = vrot.slane %v7615_v3, 3 }
 0x152   :  { %6492 = vmatmul.msk.f32.vlgmr.msra.gmra.mxu2 %vm104_vm2, %v7469_v49  ;;  %2179 = vadd.xlane.f32.xlu2 %v2178_v8  ;;  %v2014_v49 = vperm.slane %v7626_v18, 0  ;;  %v757_v61 = vsel %vm104_vm2, %v652_v32, 0.0  ;;  %v1941_v51 = vrot.slane %v7658_v54, 3  ;;  %v1929_v59 = vrot.slane %v7615_v3, 5 }
 0x153   :  { %2215 = vadd.xlane.f32.xlu0 %v2214_v1  ;;  %v7678_v43 = vadd.f32 %v757_v61, %v756_v46  ;;  %v2126_v47 = vmul.f32 %v1998_v9, %v7299_v28  ;;  %v2112_v27 = vmul.f32 %v1984_v58, %v7552_v36  ;;  %v440_v11 = vrot.slane %v7279_v7, 7 }
 0x154   :  { %v2142_v55 = vmul.f32 %v2014_v49, %v7299_v28  ;;  %v2001_v13 = vperm.slane %v1941_v51, 0  ;;  %v1985_v53 = vperm.slane %v1927_v26, 0  ;;  %v1925_v24 = vrot.slane %v7615_v3, 1 }
 0x155   :  { %v2022_v4 = vperm.slane %v7678_v43, 0  ;;  %v2238_v50 = vsel %vm104_vm2, %v2126_v47, 0.0  ;;  %v2196_v39 = vsel %vm104_vm2, %v2112_v27, 0.0  ;;  %v1936_v35 = vrot.slane %v7592_v20, 5 }
 0x156   :  { %v290_v38 = vpop.permute.xlu0 %289  ;;  %v7655_v10 = vld [vmem:[#allocation4 + $0x30] sm:$0xff]  ;;  %v2286_v63 = vsel %vm104_vm2, %v2142_v55, 0.0  ;;  %v7694_v34 = vmul.f32 %v2001_v13, %v7577_v48  ;;  %v1943_v33 = vrot.slane %v7658_v54, 5  ;;  %v1987_v62 = vperm.slane %v1929_v59, 0 }
 0x157   :  { %293 = vst.msk [vmem:[#allocation6 + $0x38] sm:$0xff] %vm104_vm2, %v290_v38  ;;  %6489 = vmatpush.xpose.msk.msra.mxu1 %vm104_vm2, %v7655_v10  ;;  %v2108_v21 = vmul.f32 %v1980_v15, %v7655_v10  ;;  %v2150_v7 = vmul.f32 %v2022_v4, %v7299_v28  ;;  %v2113_v1 = vmul.f32 %v1985_v53, %v7577_v48  ;;  %v1950_v49 = vrot.slane %v7660_v5, 5 }
 0x158   :  { %v447_v15 = vrot.slane %v7195_v0, 7  ;;  %v501_v14 = vperm.slane %v440_v11, 0  ;;  %v1948_v40 = vrot.slane %v7660_v5, 3  ;;  %v2115_v38 = vmul.f32 %v1987_v62, %v7624_v12 }
 0x159   :  { %v2184_v42 = vsel %vm104_vm2, %v2108_v21, 0.0  ;;  %2191 = vadd.xlane.f32.xlu1 %v2190_v17  ;;  %v1983_v44 = vperm.slane %v1925_v24, 0  ;;  %v1930_v57 = vrot.slane %v7615_v3, 6  ;;  %v1955_v21 = vrot.slane %v7626_v18, 3 }
 0x15a   :  { %6490 = vmatmul.msk.f32.vlgmr.msra.gmra.mxu1 %vm104_vm2, %v7476_v19  ;;  %2185 = vadd.xlane.f32.xlu2 %v2184_v42  ;;  %v2134_v19 = vmul.f32 %v2006_v41, %v7299_v28  ;;  %v1995_v55 = vperm.slane %v1936_v35, 0  ;;  %v2003_v45 = vperm.slane %v1943_v33, 0  ;;  %v2011_v28 = vperm.slane %v1950_v49, 0 }
 0x15b   :  { %2287 = vadd.xlane.f32.xlu0 %v2286_v63  ;;  %v2009_v32 = vperm.slane %v1948_v40, 0  ;;  %v2310_v42 = vsel %vm104_vm2, %v2150_v7, 0.0  ;;  %v2199_v46 = vsel %vm104_vm2, %v2113_v1, 0.0  ;;  %v1934_v0 = vrot.slane %v7592_v20, 3 }
 0x15c   :  { %v2262_v8 = vsel %vm104_vm2, %v2134_v19, 0.0  ;;  %v2017_v17 = vperm.slane %v1955_v21, 0  ;;  %v7709_v9 = vmul.f32 %v1995_v55, %v7624_v12  ;;  %v7712_v41 = vmul.f32 %v2003_v45, %v7624_v12 }
 0x15d   :  { %v7715_v63 = vmul.f32 %v2011_v28, %v7624_v12  ;;  %v7718_v58 = vmul.f32 %v2009_v32, %v7577_v48  ;;  %v454_v61 = vrot.slane %v7454_v25, 7  ;;  %v2205_v47 = vsel %vm104_vm2, %v2115_v38, 0.0 }
 0x15e   :  { %v2111_v19 = vmul.f32 %v1983_v44, %v7349_v60  ;;  %v7724_v26 = vmul.f32 %v2017_v17, %v7577_v48  ;;  %v1988_v27 = vperm.slane %v1930_v57, 0  ;;  %v1944_v51 = vrot.slane %v7658_v54, 6 }
 0x15f   :  { %v1951_v4 = vrot.slane %v7660_v5, 6  ;;  %v1958_v59 = vrot.slane %v7626_v18, 6  ;;  %v1928_v11 = vrot.slane %v7615_v3, 4  ;;  %v1932_v25 = vrot.slane %v7592_v20, 1 }
 0x160   :  { %v2116_v13 = vmul.f32 %v1988_v27, %v7655_v10  ;;  %v629_v53 = vmul.f32 %v7305_v31, %v501_v14  ;;  %v517_v24 = vperm.slane %v454_v61, 0  ;;  %v2193_v35 = vsel %vm104_vm2, %v2111_v19, 0.0 }
 0x161   :  { %2263 = vadd.xlane.f32.xlu1 %v2262_v8  ;;  %v1993_v8 = vperm.slane %v1934_v0, 0  ;;  %v2004_v7 = vperm.slane %v1944_v51, 0  ;;  %v2012_v62 = vperm.slane %v1951_v4, 0  ;;  %v2020_v1 = vperm.slane %v1958_v59, 0 }
 0x162   :  { %2239 = vadd.xlane.f32.xlu2 %v2238_v50  ;;  %v509_v50 = vperm.slane %v447_v15, 0  ;;  %v1986_v49 = vperm.slane %v1928_v11, 0  ;;  %v1937_v40 = vrot.slane %v7592_v20, 6  ;;  %v1991_v38 = vperm.slane %v1932_v25, 0 }
 0x163   :  { %2197 = vadd.xlane.f32.xlu0 %v2196_v39  ;;  %v461_v39 = vrot.slane %v7445_v16, 7  ;;  %v2121_v33 = vmul.f32 %v1993_v8, %v7577_v48  ;;  %v1957_v15 = vrot.slane %v7626_v18, 5  ;;  %v2208_v44 = vsel %vm104_vm2, %v2116_v13, 0.0 }
 0x164   :  { %v7740_v14 = vmul.f32 %v2004_v7, %v7655_v10  ;;  %v7743_v16 = vmul.f32 %v2012_v62, %v7655_v10  ;;  %v7746_v57 = vmul.f32 %v2020_v1, %v7655_v10  ;;  %v637_v21 = vmul.f32 %v7302_v30, %v509_v50 }
 0x165   :  { %v525_v55 = vperm.slane %v461_v39, 0  ;;  %v2223_v45 = vsel %vm104_vm2, %v2121_v33, 0.0  ;;  %v2019_v28 = vperm.slane %v1957_v15, 0  ;;  %v645_v32 = vmul.f32 %v7293_v22, %v517_v24 }
 0x166   :  { %v766_v0 = vsel %vm104_vm2, %v629_v53, 0.0  ;;  %v2114_v17 = vmul.f32 %v1986_v49, %v7436_v56  ;;  %v2119_v61 = vmul.f32 %v1991_v38, %v7349_v60  ;;  %v1939_v27 = vrot.slane %v7658_v54, 1 }
 0x167   :  { %v7757_v19 = vmul.f32 %v2019_v28, %v7624_v12  ;;  %v1962_v51 = vrot.slane %v7678_v43, 3  ;;  %v767_v4 = vadd.f32 %v766_v0, %v7647_v2  ;;  %v768_v11 = vsel %vm104_vm2, %v637_v21, 0.0 }
 0x168   :  { %v770_v25 = vsel %vm104_vm2, %v645_v32, 0.0  ;;  %v2202_v53 = vsel %vm104_vm2, %v2114_v17, 0.0  ;;  %v2217_v24 = vsel %vm104_vm2, %v2119_v61, 0.0  ;;  %v1933_v38 = vrot.slane %v7592_v20, 2 }
 0x169   :  { %2200 = vadd.xlane.f32.xlu1 %v2199_v46  ;;  %v1931_v46 = vrot.slane %v7615_v3, 7  ;;  %v653_v3 = vmul.f32 %v7282_v29, %v525_v55  ;;  %v2025_v8 = vperm.slane %v1962_v51, 0  ;;  %v769_v13 = vadd.f32 %v768_v11, %v767_v4 }
 0x16a   :  { %2311 = vadd.xlane.f32.xlu2 %v2310_v42  ;;  %v1996_v42 = vperm.slane %v1937_v40, 0  ;;  %v1938_v15 = vrot.slane %v7592_v20, 7  ;;  %v1942_v21 = vrot.slane %v7658_v54, 4  ;;  %v1964_v55 = vrot.slane %v7678_v43, 5 }
 0x16b   :  { %2206 = vadd.xlane.f32.xlu0 %v2205_v47  ;;  %v1935_v47 = vrot.slane %v7592_v20, 4  ;;  %v1989_v50 = vperm.slane %v1931_v46, 0  ;;  %v7769_v2 = vmul.f32 %v2025_v8, %v7577_v48  ;;  %v771_v33 = vadd.f32 %v770_v25, %v769_v13  ;;  %v7804_v13 = vld [vmem:[#allocation5 + $0x10] sm:$0xff] }
 0x16c   :  { %v2124_v59 = vmul.f32 %v1996_v42, %v7655_v10  ;;  %v772_v62 = vsel %vm104_vm2, %v653_v3, 0.0  ;;  %v1992_v46 = vperm.slane %v1933_v38, 0  ;;  %v1997_v0 = vperm.slane %v1938_v15, 0 }
 0x16d   :  { %v1994_v39 = vperm.slane %v1935_v47, 0  ;;  %v2117_v1 = vmul.f32 %v1989_v50, %v7572_v37  ;;  %v7774_v49 = vadd.f32 %v772_v62, %v771_v33  ;;  %v2002_v61 = vperm.slane %v1942_v21, 0  ;;  %v7811_v33 = vld [vmem:[#allocation5 + $0x18] sm:$0xff] }
 0x16e   :  { %v2232_v7 = vsel %vm104_vm2, %v2124_v59, 0.0  ;;  %v2027_v47 = vperm.slane %v1964_v55, 0  ;;  %v1940_v4 = vrot.slane %v7658_v54, 2  ;;  %v7793_v59 = vld [vmem:[#allocation5 + $0x8] sm:$0xff]  ;;  %v2120_v3 = vmul.f32 %v1992_v46, %v7552_v36 }
 0x16f   :  { %v2122_v40 = vmul.f32 %v1994_v39, %v7436_v56  ;;  %v1969_v28 = vrot.slane %v7774_v49, 3  ;;  %v2211_v32 = vsel %vm104_vm2, %v2117_v1, 0.0  ;;  %v2125_v11 = vmul.f32 %v1997_v0, %v7572_v37 }
 0x170   :  { %v7798_v25 = vmul.f32 %v2027_v47, %v7624_v12  ;;  %v1972_v39 = vrot.slane %v7774_v49, 6  ;;  %v2000_v1 = vperm.slane %v1940_v4, 0  ;;  %v806_v55 = vrot.slane %v7811_v33, 4 }
 0x171   :  { %2209 = vadd.xlane.f32.xlu1 %v2208_v44  ;;  %v2226_v42 = vsel %vm104_vm2, %v2122_v40, 0.0  ;;  %v2033_v17 = vperm.slane %v1969_v28, 0  ;;  %v2235_v62 = vsel %vm104_vm2, %v2125_v11, 0.0  ;;  %v2229_v47 = vsel %vm104_vm2, %v7709_v9, 0.0 }
 0x172   :  { %2194 = vadd.xlane.f32.xlu2 %v2193_v35  ;;  %v1999_v35 = vperm.slane %v1939_v27, 0  ;;  %v2128_v28 = vmul.f32 %v2000_v1, %v7552_v36 }
 0x173   :  { %2224 = vadd.xlane.f32.xlu0 %v2223_v45  ;;  %v1971_v45 = vrot.slane %v7774_v49, 5  ;;  %v7790_v51 = vmul.f32 %v2033_v17, %v7577_v48  ;;  %v2130_v48 = vmul.f32 %v2002_v61, %v7436_v56  ;;  %v1947_v17 = vrot.slane %v7660_v5, 2 }
 0x174   :  { %v2127_v44 = vmul.f32 %v1999_v35, %v7349_v60  ;;  %v7787_v60 = vld [vmem:[#allocation5] sm:$0xff]  ;;  %v792_v35 = vrot.slane %v7793_v59, 4  ;;  %v866_v61 = vperm.slane %v806_v55, 0  ;;  %v1949_v55 = vrot.slane %v7660_v5, 4 }
 0x175   :  { %v2035_v27 = vperm.slane %v1971_v45, 0  ;;  %v785_v8 = vrot.slane %v7787_v60, 4 }
 0x176   :  { %v2241_v20 = vsel %vm104_vm2, %v2127_v44, 0.0  ;;  %v2036_v44 = vperm.slane %v1972_v39, 0  ;;  %v850_v21 = vperm.slane %v792_v35, 0 }
 0x177   :  { %v7801_v50 = vmul.f32 %v2035_v27, %v7624_v12  ;;  %v2220_v12 = vsel %vm104_vm2, %v2120_v3, 0.0  ;;  %v842_v40 = vperm.slane %v785_v8, 0  ;;  %v2244_v27 = vsel %vm104_vm2, %v2128_v28, 0.0  ;;  %v11731_v8 = vld [vmem:[#allocation12_spill] sm:$0xff] }
 0x178   :  { %v2008_v3 = vperm.slane %v1947_v17, 0  ;;  %v2010_v28 = vperm.slane %v1949_v55, 0 }
 0x179   :  { %2218 = vadd.xlane.f32.xlu1 %v2217_v24  ;;  %v1965_v24 = vrot.slane %v7678_v43, 6  ;;  %v970_v46 = vmul.f32 %v7190_v52, %v842_v40 }
 0x17a   :  { %2203 = vadd.xlane.f32.xlu2 %v2202_v53  ;;  %v1945_v53 = vrot.slane %v7658_v54, 7  ;;  %v2250_v54 = vsel %vm104_vm2, %v2130_v48, 0.0  ;;  %v994_v48 = vmul.f32 %v11731_v8, %v866_v61  ;;  %v2136_v9 = vmul.f32 %v2008_v3, %v7552_v36 }
 0x17b   :  { %2233 = vadd.xlane.f32.xlu0 %v2232_v7  ;;  %v799_v7 = vrot.slane %v7804_v13, 4  ;;  %v2028_v15 = vperm.slane %v1965_v24, 0  ;;  %v1090_v11 = vsel %vm104_vm2, %v970_v46, 0.0  ;;  %v1956_v61 = vrot.slane %v7626_v18, 4 }
 0x17c   :  { %v2005_v38 = vperm.slane %v1945_v53, 0  ;;  %v2268_v40 = vsel %vm104_vm2, %v2136_v9, 0.0 }
 0x17d   :  { %v858_v45 = vperm.slane %v799_v7, 0  ;;  %v1095_v7 = vsel %vm104_vm2, %v994_v48, 0.0 }
 0x17e   :  { %v2133_v0 = vmul.f32 %v2005_v38, %v7572_v37  ;;  %v2256_v38 = vsel %vm104_vm2, %v7740_v14, 0.0 }
 0x17f   :  { %v986_v4 = vmul.f32 %v7232_v23, %v858_v45  ;;  %v1953_v45 = vrot.slane %v7626_v18, 1 }
 0x181   :  { %2227 = vadd.xlane.f32.xlu1 %v2226_v42  ;;  %v7823_v42 = vmul.f32 %v2036_v44, %v7655_v10  ;;  %v1093_v39 = vsel %vm104_vm2, %v986_v4, 0.0  ;;  %v2015_v46 = vperm.slane %v1953_v45, 0  ;;  %v1966_v45 = vrot.slane %v7678_v43, 7 }
 0x182   :  { %2212 = vadd.xlane.f32.xlu2 %v2211_v32  ;;  %v7820_v32 = vmul.f32 %v2028_v15, %v7655_v10  ;;  %v2259_v10 = vsel %vm104_vm2, %v2133_v0, 0.0  ;;  %v2271_v15 = vsel %vm104_vm2, %v7718_v58, 0.0  ;;  %v2280_v58 = vsel %vm104_vm2, %v7743_v16, 0.0 }
 0x183   :  { %2242 = vadd.xlane.f32.xlu0 %v2241_v20  ;;  %v978_v20 = vmul.f32 %v7207_v6, %v850_v21  ;;  %v2138_v0 = vmul.f32 %v2010_v28, %v7436_v56 }
 0x185   :  { %v1091_v53 = vsel %vm104_vm2, %v978_v20, 0.0  ;;  %v1952_v20 = vrot.slane %v7660_v5, 7  ;;  %v2274_v16 = vsel %vm104_vm2, %v2138_v0, 0.0 }
 0x186   :  { %v1092_v24 = vadd.f32 %v1091_v53, %v1090_v11  ;;  %v1954_v53 = vrot.slane %v7626_v18, 2 }
 0x187   :  { %v2013_v4 = vperm.slane %v1952_v20, 0 }
 0x188   :  { %v1094_v35 = vadd.f32 %v1093_v39, %v1092_v24  ;;  %v1959_v24 = vrot.slane %v7626_v18, 7 }
 0x189   :  { %2236 = vadd.xlane.f32.xlu1 %v2235_v62  ;;  %v2253_v62 = vsel %vm104_vm2, %v7712_v41, 0.0  ;;  %v7854_v41 = vld [vmem:[#allocation4 + $0x8] sm:$0xff] }
 0x18a   :  { %2221 = vadd.xlane.f32.xlu2 %v2220_v12  ;;  %v2247_v12 = vsel %vm104_vm2, %v7694_v34, 0.0  ;;  %v7844_v1 = vadd.f32 %v1095_v7, %v1094_v35  ;;  %v2277_v34 = vsel %vm104_vm2, %v7715_v63, 0.0  ;;  %v2295_v63 = vsel %vm104_vm2, %v7724_v26, 0.0 }
 0x18b   :  { %2251 = vadd.xlane.f32.xlu0 %v2250_v54  ;;  %v1946_v54 = vrot.slane %v7660_v5, 1  ;;  %v2143_v17 = vmul.f32 %v7854_v41, %v2015_v46  ;;  %v2304_v26 = vsel %vm104_vm2, %v7746_v57, 0.0  ;;  %v2141_v5 = vmul.f32 %v2013_v4, %v7572_v37 }
 0x18c   :  { %11732 = vst [vmem:[#allocation17_spill] sm:$0xff] %v7844_v1  ;;  %v1963_v35 = vrot.slane %v7678_v43, 4 }
 0x18d   :  { %v2007_v44 = vperm.slane %v1946_v54, 0  ;;  %v2283_v57 = vsel %vm104_vm2, %v2141_v5, 0.0 }
 0x18e   :  { %v2026_v54 = vperm.slane %v1963_v35, 0 }
 0x18f   :  { %v2135_v21 = vmul.f32 %v7854_v41, %v2007_v44 }
 0x190   :  { %v2154_v55 = vmul.f32 %v2026_v54, %v7436_v56 }
 0x191   :  { %2245 = vadd.xlane.f32.xlu1 %v2244_v27  ;;  %v2265_v14 = vsel %vm104_vm2, %v2135_v21, 0.0  ;;  %v2289_v27 = vsel %vm104_vm2, %v2143_v17, 0.0 }
 0x192   :  { %2230 = vadd.xlane.f32.xlu2 %v2229_v47  ;;  %v1960_v47 = vrot.slane %v7678_v43, 1  ;;  %v2322_v46 = vsel %vm104_vm2, %v2154_v55, 0.0 }
 0x193   :  { %2260 = vadd.xlane.f32.xlu0 %v2259_v10  ;;  %v2018_v10 = vperm.slane %v1956_v61, 0  ;;  %v1968_v61 = vrot.slane %v7774_v49, 2 }
 0x194   :  { %v2023_v3 = vperm.slane %v1960_v47, 0  ;;  %v2301_v47 = vsel %vm104_vm2, %v7757_v19, 0.0  ;;  %v2325_v19 = vsel %vm104_vm2, %v7798_v25, 0.0 }
 0x195   :  { %v2146_v48 = vmul.f32 %v2018_v10, %v7436_v56  ;;  %v2032_v4 = vperm.slane %v1968_v61, 0 }
 0x196   :  { %v2151_v9 = vmul.f32 %v7854_v41, %v2023_v3 }
 0x197   :  { %v2298_v7 = vsel %vm104_vm2, %v2146_v48, 0.0  ;;  %v2160_v5 = vmul.f32 %v2032_v4, %v7552_v36  ;;  %v2319_v48 = vsel %vm104_vm2, %v7769_v2, 0.0  ;;  %v2328_v2 = vsel %vm104_vm2, %v7820_v32, 0.0 }
 0x199   :  { %2254 = vadd.xlane.f32.xlu1 %v2253_v62  ;;  %v2021_v62 = vperm.slane %v1959_v24, 0  ;;  %v2340_v24 = vsel %vm104_vm2, %v2160_v5, 0.0 }
 0x19a   :  { %2248 = vadd.xlane.f32.xlu2 %v2247_v12  ;;  %v2016_v12 = vperm.slane %v1954_v53, 0  ;;  %v2030_v53 = vperm.slane %v7774_v49, 0 }
 0x19b   :  { %2269 = vadd.xlane.f32.xlu0 %v2268_v40  ;;  %v2313_v40 = vsel %vm104_vm2, %v2151_v9, 0.0  ;;  %v2149_v44 = vmul.f32 %v2021_v62, %v7572_v37 }
 0x1a1   :  { %2272 = vadd.xlane.f32.xlu1 %v2271_v15  ;;  %v2144_v15 = vmul.f32 %v2016_v12, %v7552_v36 }
 0x1a2   :  { %2257 = vadd.xlane.f32.xlu2 %v2256_v38 }
 0x1a3   :  { %2278 = vadd.xlane.f32.xlu0 %v2277_v34  ;;  %v1961_v34 = vrot.slane %v7678_v43, 2 }
 0x1a5   :  { %v2024_v28 = vperm.slane %v1961_v34, 0  ;;  %v1970_v34 = vrot.slane %v7774_v49, 4 }
 0x1a7   :  { %v2152_v20 = vmul.f32 %v2024_v28, %v7552_v36  ;;  %v1967_v36 = vrot.slane %v7774_v49, 1  ;;  %v7046_v28 = vld [vmem:[#allocation4 + $0x20] sm:$0xff] }
 0x1a9   :  { %2281 = vadd.xlane.f32.xlu1 %v2280_v58  ;;  %v2307_v58 = vsel %vm104_vm2, %v2149_v44, 0.0  ;;  %v2031_v62 = vperm.slane %v1967_v36, 0 }
 0x1aa   :  { %2266 = vadd.xlane.f32.xlu2 %v2265_v14  ;;  %v2292_v14 = vsel %vm104_vm2, %v2144_v15, 0.0 }
 0x1ab   :  { %2296 = vadd.xlane.f32.xlu0 %v2295_v63  ;;  %v2029_v63 = vperm.slane %v1966_v45, 0  ;;  %v2159_v44 = vmul.f32 %v7854_v41, %v2031_v62  ;;  %v2343_v45 = vsel %vm104_vm2, %v7790_v51, 0.0  ;;  %v1973_v41 = vrot.slane %v7774_v49, 7  ;;  %v7959_v51 = vpop.f32.mrf.mxu3 }
 0x1ac   :  { %v2358_v49 = vperm.slane %v7959_v51, 0  ;;  %v2386_v29 = vperm.slane %v7959_v51, 4 }
 0x1ad   :  { %v2157_v43 = vmul.f32 %v2029_v63, %v7572_v37  ;;  %v2337_v32 = vsel %vm104_vm2, %v2159_v44, 0.0  ;;  %v2037_v61 = vperm.slane %v1973_v41, 0  ;;  %v794_v41 = vrot.slane %v7793_v59, 6 }
 0x1b1   :  { %2290 = vadd.xlane.f32.xlu1 %v2289_v27  ;;  %v7873_v11 = vpop.xlane.xlu2 %2167  ;;  %v2331_v27 = vsel %vm104_vm2, %v2157_v43, 0.0  ;;  %v2352_v43 = vsel %vm104_vm2, %v7823_v42, 0.0 }
 0x1b2   :  { %2275 = vadd.xlane.f32.xlu2 %v2274_v16  ;;  %v2316_v16 = vsel %vm104_vm2, %v2152_v20, 0.0 }
 0x1b3   :  { %2305 = vadd.xlane.f32.xlu0 %v2304_v26  ;;  %v7886_v38 = vpop.xlane.xlu1 %2170 }
 0x1b4   :  { %v7879_v39 = vpop.xlane.xlu0 %2173 }
 0x1b9   :  { %2299 = vadd.xlane.f32.xlu1 %v2298_v7 }
 0x1ba   :  { %2284 = vadd.xlane.f32.xlu2 %v2283_v57  ;;  %v7045_v57 = vld [vmem:[#allocation4] sm:$0xff] }
 0x1bb   :  { %2314 = vadd.xlane.f32.xlu0 %v2313_v40  ;;  %v2158_v7 = vmul.f32 %v7045_v57, %v2030_v53  ;;  %v2349_v40 = vsel %vm104_vm2, %v7801_v50, 0.0 }
 0x1bd   :  { %v7888_v18 = vpop.xlane.xlu2 %2176  ;;  %v2334_v25 = vsel %vm104_vm2, %v2158_v7, 0.0 }
 0x1be   :  { %v7893_v21 = vpop.xlane.xlu0 %2188 }
 0x1c1   :  { %2308 = vadd.xlane.f32.xlu1 %v2307_v58 }
 0x1c2   :  { %2293 = vadd.xlane.f32.xlu2 %v2292_v14  ;;  %v2034_v14 = vperm.slane %v1970_v34, 0  ;;  %v2365_v34 = vperm.slane %v7959_v51, 1 }
 0x1c3   :  { %2323 = vadd.xlane.f32.xlu0 %v2322_v46 }
 0x1c4   :  { %v7902_v17 = vpop.xlane.xlu1 %2182  ;;  %v2162_v46 = vmul.f32 %v7046_v28, %v2034_v14  ;;  %v787_v28 = vrot.slane %v7787_v60, 6 }
 0x1c5   :  { %v7900_v0 = vpop.xlane.xlu2 %2179 }
 0x1c6   :  { %v7905_v56 = vpop.xlane.xlu0 %2215  ;;  %v2346_v20 = vsel %vm104_vm2, %v2162_v46, 0.0  ;;  %v7992_v46 = vpop.f32.mrf.mxu0 }
 0x1c9   :  { %2317 = vadd.xlane.f32.xlu1 %v2316_v16 }
 0x1ca   :  { %2302 = vadd.xlane.f32.xlu2 %v2301_v47 }
 0x1cb   :  { %2332 = vadd.xlane.f32.xlu0 %v2331_v27  ;;  %v2165_v27 = vmul.f32 %v2037_v61, %v7572_v37  ;;  %v793_v37 = vrot.slane %v7793_v59, 5 }
 0x1cc   :  { %v7915_v26 = vpop.xlane.xlu1 %2191 }
 0x1cd   :  { %v7913_v10 = vpop.xlane.xlu2 %2185  ;;  %v2355_v5 = vsel %vm104_vm2, %v2165_v27, 0.0  ;;  %v851_v62 = vperm.slane %v793_v37, 0  ;;  %v788_v37 = vrot.slane %v7787_v60, 7 }
 0x1ce   :  { %v7917_v3 = vpop.xlane.xlu0 %2287 }
 0x1cf   :  { %11733 = vst [vmem:[#allocation18_spill] sm:$0xff] %v7917_v3  ;;  %v979_v14 = vmul.f32 %v7207_v6, %v851_v62  ;;  %v852_v62 = vperm.slane %v794_v41, 0  ;;  %v845_v22 = vperm.slane %v788_v37, 0 }
 0x1d1   :  { %2326 = vadd.xlane.f32.xlu1 %v2325_v19  ;;  %v2379_v19 = vperm.slane %v7959_v51, 3  ;;  %v980_v41 = vmul.f32 %v7207_v6, %v852_v62  ;;  %v973_v37 = vmul.f32 %v7190_v52, %v845_v22 }
 0x1d2   :  { %2320 = vadd.xlane.f32.xlu2 %v2319_v48 }
 0x1d3   :  { %2341 = vadd.xlane.f32.xlu0 %v2340_v24  ;;  %v786_v24 = vrot.slane %v7787_v60, 5 }
 0x1d4   :  { %v7928_v35 = vpop.xlane.xlu1 %2263 }
 0x1d5   :  { %v7926_v9 = vpop.xlane.xlu2 %2239  ;;  %11734 = vst [vmem:[#allocation19_spill] sm:$0xff] %v7928_v35  ;;  %v843_v57 = vperm.slane %v786_v24, 0  ;;  %v795_v24 = vrot.slane %v7793_v59, 7 }
 0x1d6   :  { %v7931_v12 = vpop.xlane.xlu0 %2197 }
 0x1d7   :  { %v971_v44 = vmul.f32 %v7190_v52, %v843_v57  ;;  %v844_v57 = vperm.slane %v787_v28, 0  ;;  %v853_v28 = vperm.slane %v795_v24, 0 }
 0x1d9   :  { %2335 = vadd.xlane.f32.xlu1 %v2334_v25  ;;  %v2393_v25 = vperm.slane %v7959_v51, 5  ;;  %v1105_v27 = vsel %vm104_vm2, %v971_v44, 0.0  ;;  %v2372_v44 = vperm.slane %v7959_v51, 2  ;;  %v981_v24 = vmul.f32 %v7207_v6, %v853_v28 }
 0x1da   :  { %2329 = vadd.xlane.f32.xlu2 %v2328_v2  ;;  %v800_v2 = vrot.slane %v7804_v13, 5  ;;  %v1135_v28 = vsel %vm104_vm2, %v973_v37, 0.0  ;;  %v2421_v37 = vperm.slane %v7992_v46, 1 }
 0x1db   :  { %2350 = vadd.xlane.f32.xlu0 %v2349_v40 }
 0x1dc   :  { %v7940_v15 = vpop.xlane.xlu1 %2200 }
 0x1dd   :  { %v7938_v54 = vpop.xlane.xlu2 %2311 }
 0x1de   :  { %11735 = vst [vmem:[#allocation20_spill] sm:$0xff] %v7938_v54  ;;  %v7944_v55 = vpop.xlane.xlu0 %2206 }
 0x1e1   :  { %2344 = vadd.xlane.f32.xlu1 %v2343_v45  ;;  %v859_v45 = vperm.slane %v800_v2, 0 }
 0x1e2   :  { %2338 = vadd.xlane.f32.xlu2 %v2337_v32  ;;  %v807_v32 = vrot.slane %v7811_v33, 5 }
 0x1e4   :  { %v7951_v58 = vpop.xlane.xlu1 %2209 }
 0x1e5   :  { %v7949_v50 = vpop.xlane.xlu2 %2194 }
 0x1e6   :  { %v7954_v63 = vpop.xlane.xlu0 %2224 }
 0x1e9   :  { %2353 = vadd.xlane.f32.xlu1 %v2352_v43 }
 0x1ea   :  { %2347 = vadd.xlane.f32.xlu2 %v2346_v20  ;;  %v801_v20 = vrot.slane %v7804_v13, 6 }
 0x1ec   :  { %v7963_v16 = vpop.xlane.xlu1 %2218  ;;  %v860_v1 = vperm.slane %v801_v20, 0 }
 0x1ed   :  { %v7961_v47 = vpop.xlane.xlu2 %2203 }
 0x1ee   :  { %v7967_v4 = vpop.xlane.xlu0 %2233 }
 0x1ef   :  { %2363 = vperm.xlu0 %6521, %v2358_v49   ;;  %v867_v49 = vperm.slane %v807_v32, 0 }
 0x1f1   :  { %v995_v60 = vmul.f32 %v11731_v8, %v867_v49  ;;  %v2435_v49 = vperm.slane %v7992_v46, 3 }
 0x1f2   :  { %2356 = vadd.xlane.f32.xlu2 %v2355_v5  ;;  %v2414_v5 = vperm.slane %v7992_v46, 0 }
 0x1f4   :  { %v7972_v48 = vpop.xlane.xlu1 %2227 }
 0x1f5   :  { %v7970_v42 = vpop.xlane.xlu2 %2212 }
 0x1f6   :  { %v7975_v53 = vpop.xlane.xlu0 %2242 }
 0x1f7   :  { %2384 = vperm.xlu0 %6521, %v2379_v19   ;;  %v987_v19 = vmul.f32 %v7232_v23, %v859_v45  ;;  %v802_v45 = vrot.slane %v7804_v13, 7  ;;  %v988_v13 = vmul.f32 %v7232_v23, %v860_v1 }
 0x1f9   :  { %v1108_v59 = vsel %vm104_vm2, %v987_v19, 0.0  ;;  %v1110_v19 = vsel %vm104_vm2, %v995_v60, 0.0  ;;  %v1123_v60 = vsel %vm104_vm2, %v988_v13, 0.0  ;;  %v2456_v13 = vperm.slane %v7992_v46, 6 }
 0x1fc   :  { %v7981_v36 = vpop.xlane.xlu1 %2236 }
 0x1fd   :  { %v7979_v7 = vpop.xlane.xlu2 %2221 }
 0x1fe   :  { %v7985_v40 = vpop.xlane.xlu0 %2251 }
 0x1ff   :  { %2398 = vperm.xlu0 %6521, %v2393_v25   ;;  %v1106_v25 = vsel %vm104_vm2, %v979_v14, 0.0  ;;  %v972_v14 = vmul.f32 %v7190_v52, %v844_v57 }
 0x200   :  { %v1107_v32 = vadd.f32 %v1106_v25, %v1105_v27  ;;  %v861_v25 = vperm.slane %v802_v45, 0 }
 0x201   :  { %v1120_v62 = vsel %vm104_vm2, %v972_v14, 0.0  ;;  %v1136_v14 = vsel %vm104_vm2, %v981_v24, 0.0  ;;  %v2428_v24 = vperm.slane %v7992_v46, 2 }
 0x202   :  { %2370 = vperm.xlu1 %6509, %v2365_v34   ;;  %v808_v34 = vrot.slane %v7811_v33, 6  ;;  %v1109_v27 = vadd.f32 %v1108_v59, %v1107_v32  ;;  %v2407_v32 = vperm.slane %v7959_v51, 7  ;;  %v989_v22 = vmul.f32 %v7232_v23, %v861_v25 }
 0x204   :  { %v7998_v61 = vpop.xlane.xlu1 %2245  ;;  %v8027_v57 = vadd.f32 %v1110_v19, %v1109_v27 }
 0x205   :  { %v7996_v43 = vpop.xlane.xlu2 %2230 }
 0x206   :  { %v8005_v2 = vpop.xlane.xlu0 %2260  ;;  %11737 = vst [vmem:[#allocation22_spill] sm:$0xff] %v8027_v57 }
 0x207   :  { %2419 = vperm.xlu0 %6521, %v2414_v5   ;;  %v868_v5 = vperm.slane %v808_v34, 0  ;;  %v2400_v34 = vperm.slane %v7959_v51, 6 }
 0x209   :  { %v996_v1 = vmul.f32 %v11731_v8, %v868_v5  ;;  %v1138_v5 = vsel %vm104_vm2, %v989_v22, 0.0  ;;  %v2442_v22 = vperm.slane %v7992_v46, 4 }
 0x20a   :  { %2377 = vperm.xlu2 %6515, %v2372_v44   ;;  %2391 = vperm.xlu1 %6509, %v2386_v29   ;;  %v1121_v44 = vsel %vm104_vm2, %v980_v41, 0.0 }
 0x20b   :  { %v1122_v45 = vadd.f32 %v1121_v44, %v1120_v62  ;;  %v1125_v27 = vsel %vm104_vm2, %v996_v1, 0.0 }
 0x20c   :  { %v8018_v20 = vpop.xlane.xlu1 %2254 }
 0x20d   :  { %v8016_v30 = vpop.xlane.xlu2 %2248  ;;  %v1124_v59 = vadd.f32 %v1123_v60, %v1122_v45  ;;  %v809_v60 = vrot.slane %v7811_v33, 7 }
 0x20e   :  { %v8025_v29 = vpop.xlane.xlu0 %2269 }
 0x20f   :  { %11736 = vst [vmem:[#allocation21_spill] sm:$0xff] %v8025_v29  ;;  %2440 = vperm.xlu0 %6521, %v2435_v49   ;;  %v1137_v49 = vadd.f32 %v1136_v14, %v1135_v28  ;;  %v8044_v19 = vadd.f32 %v1125_v27, %v1124_v59  ;;  %v2449_v59 = vperm.slane %v7992_v46, 5  ;;  %v869_v28 = vperm.slane %v809_v60, 0 }
 0x211   :  { %11739 = vst [vmem:[#allocation24_spill] sm:$0xff] %v8044_v19  ;;  %v1139_v25 = vadd.f32 %v1138_v5, %v1137_v49  ;;  %v997_v33 = vmul.f32 %v11731_v8, %v869_v28 }
 0x212   :  { %2405 = vperm.xlu2 %6515, %v2400_v34   ;;  %2412 = vperm.xlu1 %6509, %v2407_v32   ;;  %v1598_v34 = vpop.f32.mrf.mxu1 }
 0x213   :  { %v2477_v32 = vperm.slane %v1598_v34, 1  ;;  %v2498_v27 = vperm.slane %v1598_v34, 4  ;;  %v2491_v57 = vperm.slane %v1598_v34, 3 }
 0x214   :  { %v8042_v51 = vpop.xlane.xlu1 %2272 }
 0x215   :  { %v8040_v41 = vpop.xlane.xlu2 %2257  ;;  %11738 = vst [vmem:[#allocation23_spill] sm:$0xff] %v8042_v51  ;;  %v11767_v51 = vld [vmem:[#allocation8_spill] sm:$0xff] }
 0x216   :  { %v8047_v62 = vpop.xlane.xlu0 %2278  ;;  %v3126_v29 = vperm.slane %v7873_v11, %v11767_v51  ;;  %v3131_v11 = vperm.slane %v7902_v17, %v11767_v51  ;;  %v3133_v17 = vperm.slane %v7893_v21, %v11767_v51 }
 0x217   :  { %11740 = vst [vmem:[#allocation25_spill] sm:$0xff] %v8047_v62  ;;  %2461 = vperm.xlu0 %6521, %v2456_v13   ;;  %v2463_v13 = vperm.slane %v7992_v46, 7  ;;  %v1623_v46 = vpop.f32.mrf.mxu2 }
 0x218   :  { %v2526_v31 = vperm.slane %v1623_v46, 0  ;;  %v2554_v23 = vperm.slane %v1623_v46, 4 }
 0x21a   :  { %2426 = vperm.xlu2 %6515, %v2421_v37   ;;  %2433 = vperm.xlu1 %6509, %v2428_v24   ;;  %v2470_v37 = vperm.slane %v1598_v34, 0  ;;  %v1140_v24 = vsel %vm104_vm2, %v997_v33, 0.0  ;;  %v2505_v33 = vperm.slane %v1598_v34, 5 }
 0x21b   :  { %v8071_v60 = vadd.f32 %v1140_v24, %v1139_v25 }
 0x21c   :  { %v8053_v44 = vpop.xlane.xlu1 %2281 }
 0x21d   :  { %v8051_v1 = vpop.xlane.xlu2 %2266  ;;  %11741 = vst [vmem:[#allocation26_spill] sm:$0xff] %v8053_v44 }
 0x21e   :  { %v8055_v45 = vpop.xlane.xlu0 %2296  ;;  %11747 = vst [vmem:[#allocation32_spill] sm:$0xff] %v8071_v60  ;;  %v2561_v60 = vperm.slane %v1623_v46, 5 }
 0x21f   :  { %11742 = vst [vmem:[#allocation27_spill] sm:$0xff] %v8055_v45  ;;  %2482 = vperm.xlu0 %6521, %v2477_v32  }
 0x222   :  { %2447 = vperm.xlu2 %6515, %v2442_v22   ;;  %2454 = vperm.xlu1 %6509, %v2449_v59   ;;  %v2519_v22 = vperm.slane %v1598_v34, 7  ;;  %v2484_v59 = vperm.slane %v1598_v34, 2 }
 0x224   :  { %v8062_v49 = vpop.xlane.xlu1 %2290 }
 0x225   :  { %v8060_v14 = vpop.xlane.xlu2 %2275  ;;  %11744 = vst [vmem:[#allocation29_spill] sm:$0xff] %v8062_v49 }
 0x226   :  { %11743 = vst [vmem:[#allocation28_spill] sm:$0xff] %v8060_v14  ;;  %v8064_v5 = vpop.xlane.xlu0 %2305 }
 0x227   :  { %11745 = vst [vmem:[#allocation30_spill] sm:$0xff] %v8064_v5  ;;  %2503 = vperm.xlu0 %6521, %v2498_v27  }
 0x22a   :  { %2468 = vperm.xlu2 %6515, %v2463_v13   ;;  %2475 = vperm.xlu1 %6509, %v2470_v37   ;;  %v2540_v13 = vperm.slane %v1623_v46, 2  ;;  %v2512_v37 = vperm.slane %v1598_v34, 6 }
 0x22c   :  { %v8073_v19 = vpop.xlane.xlu1 %2299 }
 0x22d   :  { %v8069_v32 = vpop.xlane.xlu2 %2284  ;;  %11748 = vst [vmem:[#allocation33_spill] sm:$0xff] %v8073_v19 }
 0x22e   :  { %11746 = vst [vmem:[#allocation31_spill] sm:$0xff] %v8069_v32  ;;  %v8075_v27 = vpop.xlane.xlu0 %2314 }
 0x22f   :  { %2524 = vperm.xlu0 %6521, %v2519_v22   ;;  %11749 = vst [vmem:[#allocation34_spill] sm:$0xff] %v8075_v27 }
 0x232   :  { %2489 = vperm.xlu2 %6515, %v2484_v59   ;;  %2496 = vperm.xlu1 %6509, %v2491_v57   ;;  %v2533_v59 = vperm.slane %v1623_v46, 1  ;;  %v1648_v57 = vpop.f32.mrf.mxu3 }
 0x234   :  { %v8079_v25 = vpop.xlane.xlu1 %2308 }
 0x235   :  { %v8077_v28 = vpop.xlane.xlu2 %2293  ;;  %11751 = vst [vmem:[#allocation36_spill] sm:$0xff] %v8079_v25  ;;  %v1723_v25 = vpop.f32.mrf.mxu2 }
 0x236   :  { %11750 = vst [vmem:[#allocation35_spill] sm:$0xff] %v8077_v28  ;;  %v8081_v24 = vpop.xlane.xlu0 %2323  ;;  %v2771_v45 = vperm.slane %v1723_v25, 3  ;;  %v2792_v28 = vperm.slane %v1723_v25, 6  ;;  %v2778_v32 = vperm.slane %v1723_v25, 4  ;;  %v2799_v62 = vperm.slane %v1723_v25, 7 }
 0x237   :  { %2545 = vperm.xlu0 %6521, %v2540_v13   ;;  %11752 = vst [vmem:[#allocation37_spill] sm:$0xff] %v8081_v24  ;;  %v2575_v24 = vperm.slane %v1623_v46, 7 }
 0x23a   :  { %2510 = vperm.xlu2 %6515, %v2505_v33   ;;  %2517 = vperm.xlu1 %6509, %v2512_v37   ;;  %v2582_v33 = vperm.slane %v1648_v57, 0  ;;  %v2547_v37 = vperm.slane %v1623_v46, 3  ;;  %v8157_v14 = vpop.f32.mrf.mxu3 }
 0x23b   :  { %v2870_v21 = vperm.slane %v8157_v14, 0 }
 0x23c   :  { %v8085_v8 = vpop.xlane.xlu1 %2317 }
 0x23d   :  { %v8083_v22 = vpop.xlane.xlu2 %2302  ;;  %11754 = vst [vmem:[#allocation39_spill] sm:$0xff] %v8085_v8 }
 0x23e   :  { %11753 = vst [vmem:[#allocation38_spill] sm:$0xff] %v8083_v22  ;;  %v8089_v34 = vpop.xlane.xlu0 %2332 }
 0x23f   :  { %2566 = vperm.xlu0 %6521, %v2561_v60   ;;  %11756 = vst [vmem:[#allocation41_spill] sm:$0xff] %v8089_v34  ;;  %v2603_v60 = vperm.slane %v1648_v57, 3 }
 0x242   :  { %2531 = vperm.xlu2 %6515, %v2526_v31   ;;  %2538 = vperm.xlu1 %6509, %v2533_v59   ;;  %v2568_v59 = vperm.slane %v1623_v46, 6 }
 0x244   :  { %v8093_v6 = vpop.xlane.xlu1 %2326 }
 0x245   :  { %v8087_v13 = vpop.xlane.xlu2 %2320  ;;  %11758 = vst [vmem:[#allocation43_spill] sm:$0xff] %v8093_v6 }
 0x246   :  { %11755 = vst [vmem:[#allocation40_spill] sm:$0xff] %v8087_v13  ;;  %v8095_v31 = vpop.xlane.xlu0 %2341  ;;  %v2624_v13 = vperm.slane %v1648_v57, 6 }
 0x247   :  { %2587 = vperm.xlu0 %6521, %v2582_v33   ;;  %11759 = vst [vmem:[#allocation44_spill] sm:$0xff] %v8095_v31  ;;  %v2589_v33 = vperm.slane %v1648_v57, 1  ;;  %v2617_v31 = vperm.slane %v1648_v57, 5 }
 0x24a   :  { %2552 = vperm.xlu2 %6515, %v2547_v37   ;;  %2559 = vperm.xlu1 %6509, %v2554_v23   ;;  %v2596_v23 = vperm.slane %v1648_v57, 2 }
 0x24c   :  { %v8099_v8 = vpop.xlane.xlu1 %2335 }
 0x24d   :  { %v8091_v52 = vpop.xlane.xlu2 %2329  ;;  %11761 = vst [vmem:[#allocation46_spill] sm:$0xff] %v8099_v8  ;;  %v2631_v8 = vperm.slane %v1648_v57, 7 }
 0x24e   :  { %11757 = vst [vmem:[#allocation42_spill] sm:$0xff] %v8091_v52  ;;  %v8101_v37 = vpop.xlane.xlu0 %2350  ;;  %v1673_v52 = vpop.f32.mrf.mxu0 }
 0x24f   :  { %2608 = vperm.xlu0 %6521, %v2603_v60   ;;  %11762 = vst [vmem:[#allocation47_spill] sm:$0xff] %v8101_v37  ;;  %v2645_v6 = vperm.slane %v1673_v52, 1  ;;  %v2610_v60 = vperm.slane %v1648_v57, 4  ;;  %v2659_v54 = vperm.slane %v1673_v52, 3 }
 0x252   :  { %2573 = vperm.xlu2 %6515, %v2568_v59   ;;  %2580 = vperm.xlu1 %6509, %v2575_v24  }
 0x254   :  { %v8107_v59 = vpop.xlane.xlu1 %2344 }
 0x255   :  { %v8097_v34 = vpop.xlane.xlu2 %2338  ;;  %11764 = vst [vmem:[#allocation49_spill] sm:$0xff] %v8107_v59 }
 0x256   :  { %11760 = vst [vmem:[#allocation45_spill] sm:$0xff] %v8097_v34  ;;  %v2638_v34 = vperm.slane %v1673_v52, 0 }
 0x257   :  { %2629 = vperm.xlu0 %6521, %v2624_v13   ;;  %v2666_v13 = vperm.slane %v1673_v52, 4 }
 0x25a   :  { %2594 = vperm.xlu2 %6515, %v2589_v33   ;;  %2601 = vperm.xlu1 %6509, %v2596_v23   ;;  %v2687_v23 = vperm.slane %v1673_v52, 7 }
 0x25d   :  { %v8103_v46 = vpop.xlane.xlu2 %2347 }
 0x25e   :  { %11763 = vst [vmem:[#allocation48_spill] sm:$0xff] %v8103_v46  ;;  %v2652_v46 = vperm.slane %v1673_v52, 2 }
 0x25f   :  { %2650 = vperm.xlu0 %6521, %v2645_v6   ;;  %v8113_v6 = vpop.xlane.xlu1 %2353 }
 0x260   :  { %11766 = vst [vmem:[#allocation51_spill] sm:$0xff] %v8113_v6 }
 0x261   :  { %v8105_v24 = vpop.permute.xlu0 %2363 }
 0x262   :  { %2615 = vperm.xlu2 %6515, %v2610_v60   ;;  %2622 = vperm.xlu1 %6509, %v2617_v31   ;;  %v1698_v31 = vpop.f32.mrf.mxu1 }
 0x263   :  { %v2708_v59 = vperm.slane %v1698_v31, 2  ;;  %v2729_v6 = vperm.slane %v1698_v31, 5  ;;  %v2715_v19 = vperm.slane %v1698_v31, 3  ;;  %v2743_v3 = vperm.slane %v1698_v31, 7 }
 0x265   :  { %v8111_v33 = vpop.xlane.xlu2 %2356 }
 0x266   :  { %11765 = vst [vmem:[#allocation50_spill] sm:$0xff] %v8111_v33 }
 0x267   :  { %2671 = vperm.xlu0 %6521, %v2666_v13  }
 0x269   :  { %v8109_v37 = vpop.permute.xlu0 %2384 }
 0x26a   :  { %2636 = vperm.xlu2 %6515, %v2631_v8   ;;  %2643 = vperm.xlu1 %6509, %v2638_v34   ;;  %v2673_v8 = vperm.slane %v1673_v52, 5  ;;  %v2680_v34 = vperm.slane %v1673_v52, 6  ;;  %v2750_v52 = vperm.slane %v1723_v25, 0 }
 0x26d   :  { %v8119_v57 = vpop.permute.xlu2 %2377 }
 0x26f   :  { %2692 = vperm.xlu0 %6521, %v2687_v23  }
 0x271   :  { %v8115_v60 = vpop.permute.xlu0 %2398 }
 0x272   :  { %2657 = vperm.xlu2 %6515, %v2652_v46   ;;  %2664 = vperm.xlu1 %6509, %v2659_v54   ;;  %v2694_v46 = vperm.slane %v1698_v31, 0  ;;  %v2701_v54 = vperm.slane %v1698_v31, 1 }
 0x274   :  { %v8117_v13 = vpop.permute.xlu1 %2370 }
 0x275   :  { %v8125_v27 = vpop.permute.xlu2 %2405 }
 0x277   :  { %2713 = vperm.xlu0 %6521, %v2708_v59  }
 0x279   :  { %v8121_v33 = vpop.permute.xlu0 %2419 }
 0x27a   :  { %2678 = vperm.xlu2 %6515, %v2673_v8   ;;  %2685 = vperm.xlu1 %6509, %v2680_v34   ;;  %v2722_v8 = vperm.slane %v1698_v31, 4 }
 0x27c   :  { %v8123_v23 = vpop.permute.xlu1 %2391 }
 0x27d   :  { %v8131_v34 = vpop.permute.xlu2 %2426 }
 0x27f   :  { %2734 = vperm.xlu0 %6521, %v2729_v6  }
 0x281   :  { %v8127_v5 = vpop.permute.xlu0 %2440 }
 0x282   :  { %2699 = vperm.xlu2 %6515, %v2694_v46   ;;  %2706 = vperm.xlu1 %6509, %v2701_v54   ;;  %v2736_v46 = vperm.slane %v1698_v31, 6  ;;  %v2785_v31 = vperm.slane %v1723_v25, 5 }
 0x284   :  { %v8129_v59 = vpop.permute.xlu1 %2412 }
 0x285   :  { %v8137_v54 = vpop.permute.xlu2 %2447 }
 0x287   :  { %2755 = vperm.xlu0 %6521, %v2750_v52  }
 0x289   :  { %v8133_v22 = vpop.permute.xlu0 %2461 }
 0x28a   :  { %2720 = vperm.xlu2 %6515, %v2715_v19   ;;  %2727 = vperm.xlu1 %6509, %v2722_v8   ;;  %v2757_v19 = vperm.slane %v1723_v25, 1  ;;  %v2764_v8 = vperm.slane %v1723_v25, 2 }
 0x28c   :  { %v8135_v6 = vpop.permute.xlu1 %2433 }
 0x28d   :  { %v8143_v44 = vpop.permute.xlu2 %2468 }
 0x28f   :  { %2776 = vperm.xlu0 %6521, %v2771_v45  }
 0x291   :  { %v8139_v52 = vpop.permute.xlu0 %2482 }
 0x292   :  { %2741 = vperm.xlu2 %6515, %v2736_v46   ;;  %2748 = vperm.xlu1 %6509, %v2743_v3  }
 0x294   :  { %v8141_v49 = vpop.permute.xlu1 %2454 }
 0x295   :  { %v8149_v3 = vpop.permute.xlu2 %2489 }
 0x297   :  { %2797 = vperm.xlu0 %6521, %v2792_v28   ;;  %v3127_v28 = vperm.slane %v7886_v38, %v11767_v51  ;;  %v3130_v38 = vperm.slane %v7900_v0, %v11767_v51 }
 0x299   :  { %v8145_v45 = vpop.permute.xlu0 %2503 }
 0x29a   :  { %2762 = vperm.xlu2 %6515, %v2757_v19   ;;  %2769 = vperm.xlu1 %6509, %v2764_v8   ;;  %v3128_v19 = vperm.slane %v7879_v39, %v11767_v51 }
 0x29c   :  { %v8147_v46 = vpop.permute.xlu1 %2475 }
 0x29d   :  { %v8176_v0 = vpop.permute.xlu2 %2510 }
 0x2a1   :  { %v8155_v8 = vpop.permute.xlu0 %2524 }
 0x2a2   :  { %2783 = vperm.xlu2 %6515, %v2778_v32   ;;  %2790 = vperm.xlu1 %6509, %v2785_v31   ;;  %11768 = vst [vmem:[#allocation52_spill] sm:$0xff] %v8155_v8  ;;  %v3129_v32 = vperm.slane %v7888_v18, %v11767_v51  ;;  %v2814_v31 = vrot.slane %v8157_v14, 1  ;;  %v3132_v8 = vperm.slane %v7913_v10, %v11767_v51  ;;  %v2817_v10 = vrot.slane %v8157_v14, 4 }
 0x2a4   :  { %v8163_v25 = vpop.permute.xlu1 %2496 }
 0x2aa   :  { %2804 = vperm.xlu2 %6515, %v2799_v62   ;;  %v3191_v62 = vsel %vm3190_vm3, %v3127_v28, %v3126_v29  ;;  %v2871_v29 = vperm.slane %v2814_v31, 0  ;;  %v2874_v31 = vperm.slane %v2817_v10, 0 }
 0x2ab   :  { %v3193_v39 = vsel %vm3192_vm4, %v3128_v19, %v3191_v62  ;;  %v8181_v62 = vpop.permute.xlu0 %2545 }
 0x2ac   :  { %v3195_v35 = vsel %vm3194_vm5, %v3129_v32, %v3193_v39  ;;  %v2999_v32 = vadd.f32 %v2871_v29, %v8117_v13  ;;  %11769 = vst [vmem:[#allocation53_spill] sm:$0xff] %v8181_v62  ;;  %v3135_v13 = vperm.slane %v7949_v50, %v11767_v51  ;;  %v3134_v29 = vperm.slane %v7915_v26, %v11767_v51  ;;  %v8216_v62 = vpop.f32.mrf.mxu0 }
 0x2ad   :  { %v3197_v18 = vsel %vm3196_vm6, %v3130_v38, %v3195_v35  ;;  %v8185_v35 = vpop.permute.xlu1 %2517  ;;  %v3136_v26 = vperm.slane %v7931_v12, %v11767_v51 }
 0x2ae   :  { %v3199_v28 = vsel %vm3198_vm7, %v3131_v11, %v3197_v18  ;;  %v8192_v11 = vpop.permute.xlu2 %2531  ;;  %v3204_v50 = vsel %vm3190_vm3, %v3135_v13, %v3134_v29  ;;  %v3137_v29 = vperm.slane %v7940_v15, %v11767_v51 }
 0x2af   :  { %v3201_v19 = vsel %vm3200_vm8, %v3132_v8, %v3199_v28  ;;  %11770 = vst [vmem:[#allocation54_spill] sm:$0xff] %v8192_v11  ;;  %v3002_v8 = vadd.f32 %v2874_v31, %v8123_v23  ;;  %v2820_v28 = vrot.slane %v8157_v14, 7  ;;  %v2816_v31 = vrot.slane %v8157_v14, 3 }
 0x2b0   :  { %v8189_v38 = vsel %vm3202_vm9, %v3133_v17, %v3201_v19  ;;  %v2815_v17 = vrot.slane %v8157_v14, 2 }
 0x2b1   :  { %v3262_v39 = vadd.f32 %v8189_v38, %v2999_v32  ;;  %v2998_v32 = vadd.f32 %v2870_v21, %v8105_v24  ;;  %v3265_v23 = vadd.f32 %v8189_v38, %v3002_v8  ;;  %v3205_v24 = vsel %vm3192_vm4, %v3136_v26, %v3204_v50 }
 0x2b2   :  { %v3138_v21 = vperm.slane %v7961_v47, %v11767_v51  ;;  %v2872_v8 = vperm.slane %v2815_v17, 0  ;;  %v2873_v11 = vperm.slane %v2816_v31, 0  ;;  %v3206_v50 = vsel %vm3194_vm5, %v3137_v29, %v3205_v24 }
 0x2b3   :  { %v8197_v18 = vmul.f32 0.35355338, %v3262_v39  ;;  %v8203_v19 = vpop.permute.xlu0 %2566  ;;  %v3261_v13 = vadd.f32 %v8189_v38, %v2998_v32  ;;  %v8225_v12 = vmul.f32 0.35355338, %v3265_v23  ;;  %v2822_v26 = vrot.slane %v8216_v62, 2 }
 0x2b4   :  { %11772 = vst [vmem:[#allocation56_spill] sm:$0xff] %v8203_v19  ;;  %v2877_v19 = vperm.slane %v2820_v28, 0  ;;  %v3000_v28 = vadd.f32 %v2872_v8, %v8119_v57  ;;  %v3207_v47 = vsel %vm3196_vm6, %v3138_v21, %v3206_v50  ;;  %v3001_v32 = vadd.f32 %v2873_v11, %v8109_v37 }
 0x2b5   :  { %11771 = vst [vmem:[#allocation55_spill] sm:$0xff] %v8197_v18  ;;  %v8207_v10 = vpop.permute.xlu1 %2538  ;;  %v3392_v39 = vsel %vm104_vm2, %v8197_v18, -inf  ;;  %v2818_v17 = vrot.slane %v8157_v14, 5  ;;  %v8235_v15 = vmul.f32 0.35355338, %v3261_v13  ;;  %v3401_v23 = vsel %vm104_vm2, %v8225_v12, -inf }
 0x2b6   :  { %v3005_v18 = vadd.f32 %v2877_v19, %v8129_v59  ;;  %v3139_v59 = vperm.slane %v7944_v55, %v11767_v51  ;;  %v3263_v31 = vadd.f32 %v8189_v38, %v3000_v28  ;;  %v2819_v24 = vrot.slane %v8157_v14, 6 }
 0x2b7   :  { %v2880_v11 = vperm.slane %v2822_v26, 0  ;;  %v3141_v55 = vperm.slane %v7970_v42, %v11767_v51  ;;  %v2875_v13 = vperm.slane %v2818_v17, 0  ;;  %v3389_v8 = vsel %vm104_vm2, %v8235_v15, -inf }
 0x2b8   :  { %v3268_v19 = vadd.f32 %v8189_v38, %v3005_v18  ;;  %v3208_v37 = vsel %vm3198_vm7, %v3139_v59, %v3207_v47  ;;  %v3264_v18 = vadd.f32 %v8189_v38, %v3001_v32  ;;  %v3140_v29 = vperm.slane %v7951_v58, %v11767_v51 }
 0x2b9   :  { %v3008_v14 = vadd.f32 %v2880_v11, %v8135_v6  ;;  %v3143_v50 = vperm.slane %v7963_v16, %v11767_v51  ;;  %v3003_v26 = vadd.f32 %v2875_v13, %v8115_v60  ;;  %v2876_v42 = vperm.slane %v2819_v24, 0 }
 0x2ba   :  { %v8257_v28 = vmul.f32 0.35355338, %v3268_v19  ;;  %v8262_v47 = vmul.f32 0.35355338, %v3263_v31  ;;  %v3209_v32 = vsel %vm3200_vm8, %v3140_v29, %v3208_v37  ;;  %v3144_v17 = vperm.slane %v7979_v7, %v11767_v51 }
 0x2bb   :  { %v8240_v57 = vpop.permute.xlu0 %2587  ;;  %v2825_v58 = vrot.slane %v8216_v62, 5  ;;  %v3142_v6 = vperm.slane %v7905_v56, %v11767_v51  ;;  %v8271_v59 = vsel %vm3202_vm9, %v3141_v55, %v3209_v32  ;;  %v3004_v16 = vadd.f32 %v2876_v42, %v8125_v27 }
 0x2bc   :  { %v8276_v60 = vmul.f32 0.35355338, %v3264_v18  ;;  %v3271_v31 = vadd.f32 %v8271_v59, %v3008_v14  ;;  %v3410_v7 = vsel %vm104_vm2, %v8257_v28, -inf  ;;  %v3266_v56 = vadd.f32 %v8189_v38, %v3003_v26 }
 0x2bd   :  { %v8246_v21 = vpop.permute.xlu1 %2559  ;;  %v3211_v24 = vsel %vm3190_vm3, %v3143_v50, %v3142_v6  ;;  %v3395_v37 = vsel %vm104_vm2, %v8262_v47, -inf  ;;  %v2883_v11 = vperm.slane %v2825_v58, 0  ;;  %v3145_v18 = vperm.slane %v7954_v63, %v11767_v51  ;;  %v8308_v6 = vpop.f32.mrf.mxu1 }
 0x2be   :  { %v3212_v27 = vsel %vm3192_vm4, %v3144_v17, %v3211_v24  ;;  %v3267_v13 = vadd.f32 %v8189_v38, %v3004_v16  ;;  %v3398_v14 = vsel %vm104_vm2, %v8276_v60, -inf  ;;  %v8298_v42 = vmul.f32 0.35355338, %v3271_v31 }
 0x2bf   :  { %v3011_v26 = vadd.f32 %v2883_v11, %v8141_v49  ;;  %v3213_v32 = vsel %vm3194_vm5, %v3145_v18, %v3212_v27  ;;  %v3147_v63 = vperm.slane %v7996_v43, %v11767_v51  ;;  %v8304_v17 = vmul.f32 0.35355338, %v3266_v56 }
 0x2c0   :  { %v3146_v58 = vperm.slane %v7972_v48, %v11767_v51  ;;  %v2823_v49 = vrot.slane %v8216_v62, 3  ;;  %v3419_v43 = vsel %vm104_vm2, %v8298_v42, -inf  ;;  %v2824_v48 = vrot.slane %v8216_v62, 4 }
 0x2c1   :  { %3393 = vmax.xlane.f32.xlu0 %v3392_v39  ;;  %v8228_v39 = vpop.permute.xlu2 %2552  ;;  %v2886_v27 = vperm.slane %v8308_v6, 0 }
 0x2c2   :  { %v3214_v31 = vsel %vm3196_vm6, %v3146_v58, %v3213_v32  ;;  %v2881_v18 = vperm.slane %v2823_v49, 0 }
 0x2c3   :  { %v8287_v55 = vpop.permute.xlu0 %2608 }
 0x2c4   :  { %v3009_v32 = vadd.f32 %v2881_v18, %v8127_v5 }
 0x2c5   :  { %v8293_v29 = vpop.permute.xlu1 %2580 }
 0x2c9   :  { %3402 = vmax.xlane.f32.xlu0 %v3401_v23  ;;  %v8274_v19 = vpop.permute.xlu2 %2573  ;;  %v2821_v23 = vrot.slane %v8216_v62, 1 }
 0x2cb   :  { %v2879_v50 = vperm.slane %v2821_v23, 0  ;;  %v8312_v23 = vmul.f32 0.35355338, %v3267_v13 }
 0x2cc   :  { %3390 = vmax.xlane.f32.xlu1 %v3389_v8  ;;  %v2878_v8 = vperm.slane %v8216_v62, 0 }
 0x2cd   :  { %v3007_v16 = vadd.f32 %v2879_v50, %v8131_v34  ;;  %v3404_v34 = vsel %vm104_vm2, %v8304_v17, -inf  ;;  %v3407_v13 = vsel %vm104_vm2, %v8312_v23, -inf  ;;  %v8333_v50 = vpop.permute.xlu0 %2629 }
 0x2ce   :  { %v3006_v38 = vadd.f32 %v2878_v8, %v8121_v33  ;;  %v3215_v33 = vsel %vm3198_vm7, %v3147_v63, %v3214_v31  ;;  %v2882_v63 = vperm.slane %v2824_v48, 0  ;;  %v2826_v31 = vrot.slane %v8216_v62, 6 }
 0x2cf   :  { %v3270_v11 = vadd.f32 %v8271_v59, %v3007_v16  ;;  %v2830_v16 = vrot.slane %v8308_v6, 3 }
 0x2d0   :  { %v3269_v24 = vadd.f32 %v8271_v59, %v3006_v38  ;;  %v8340_v38 = vpop.permute.xlu1 %2601 }
 0x2d1   :  { %3411 = vmax.xlane.f32.xlu0 %v3410_v7  ;;  %v3274_v7 = vadd.f32 %v8271_v59, %v3011_v26  ;;  %v8321_v56 = vpop.permute.xlu2 %2594  ;;  %v2889_v48 = vperm.slane %v2830_v16, 0  ;;  %v2828_v16 = vrot.slane %v8308_v6, 1 }
 0x2d2   :  { %v8342_v58 = vmul.f32 0.35355338, %v3269_v24 }
 0x2d3   :  { %3396 = vmax.xlane.f32.xlu2 %v3395_v37  ;;  %v3148_v37 = vperm.slane %v7967_v4, %v11767_v51  ;;  %v8335_v26 = vmul.f32 0.35355338, %v3274_v7  ;;  %v3149_v4 = vperm.slane %v7981_v36, %v11767_v51  ;;  %v8350_v7 = vmul.f32 0.35355338, %v3270_v11 }
 0x2d4   :  { %3399 = vmax.xlane.f32.xlu1 %v3398_v14  ;;  %v3014_v14 = vadd.f32 %v2886_v27, %v8147_v46  ;;  %v3010_v46 = vadd.f32 %v2882_v63, %v8137_v54  ;;  %v3413_v24 = vsel %vm104_vm2, %v8342_v58, -inf  ;;  %v3017_v11 = vadd.f32 %v2889_v48, %v8163_v25 }
 0x2d5   :  { %v3216_v8 = vsel %vm3200_vm8, %v3148_v37, %v3215_v33  ;;  %v3428_v5 = vsel %vm104_vm2, %v8335_v26, -inf  ;;  %v2827_v33 = vrot.slane %v8216_v62, 7  ;;  %v3416_v27 = vsel %vm104_vm2, %v8350_v7, -inf }
 0x2d6   :  { %v8346_v49 = vsel %vm3202_vm9, %v3149_v4, %v3216_v8  ;;  %v3273_v54 = vadd.f32 %v8271_v59, %v3010_v46  ;;  %v8371_v4 = vpop.permute.xlu0 %2650 }
 0x2d7   :  { %v3277_v36 = vadd.f32 %v8346_v49, %v3014_v14  ;;  %v2833_v14 = vrot.slane %v8308_v6, 6 }
 0x2d8   :  { %v8377_v25 = vpop.permute.xlu1 %2622  ;;  %v8379_v46 = vmul.f32 0.35355338, %v3273_v54  ;;  %v2887_v54 = vperm.slane %v2828_v16, 0 }
 0x2d9   :  { %3420 = vmax.xlane.f32.xlu0 %v3419_v43  ;;  %v3272_v43 = vadd.f32 %v8271_v59, %v3009_v32  ;;  %v8360_v37 = vpop.permute.xlu2 %2615  ;;  %v8365_v18 = vmul.f32 0.35355338, %v3277_v36  ;;  %v3151_v32 = vperm.slane %v7975_v53, %v11767_v51  ;;  %v3280_v36 = vadd.f32 %v8346_v49, %v3017_v11 }
 0x2da   :  { %v3153_v53 = vperm.slane %v8016_v30, %v11767_v51  ;;  %v3425_v30 = vsel %vm104_vm2, %v8379_v46, -inf }
 0x2db   :  { %3405 = vmax.xlane.f32.xlu2 %v3404_v34  ;;  %v2884_v34 = vperm.slane %v2826_v31, 0  ;;  %v8368_v8 = vmul.f32 0.35355338, %v3272_v43  ;;  %v3152_v31 = vperm.slane %v7998_v61, %v11767_v51  ;;  %v2829_v43 = vrot.slane %v8308_v6, 2 }
 0x2dc   :  { %3408 = vmax.xlane.f32.xlu1 %v3407_v13  ;;  %v2885_v13 = vperm.slane %v2827_v33, 0  ;;  %v8402_v11 = vmul.f32 0.35355338, %v3280_v36 }
 0x2dd   :  { %v3012_v62 = vadd.f32 %v2884_v34, %v8133_v22  ;;  %v3150_v22 = vperm.slane %v7926_v9, %v11767_v51  ;;  %v3422_v33 = vsel %vm104_vm2, %v8368_v8, -inf  ;;  %v2892_v9 = vperm.slane %v2833_v14, 0 }
 0x2de   :  { %v3013_v63 = vadd.f32 %v2885_v13, %v8143_v44  ;;  %11773 = vst [vmem:[#allocation57_spill] sm:$0xff] %v8402_v11  ;;  %v3015_v13 = vadd.f32 %v2887_v54, %v8139_v52  ;;  %v2888_v14 = vperm.slane %v2829_v43, 0  ;;  %v3156_v52 = vperm.slane %v8040_v41, %v11767_v51 }
 0x2df   :  { %v3275_v44 = vadd.f32 %v8271_v59, %v3012_v62  ;;  %v3218_v61 = vsel %vm3190_vm3, %v3151_v32, %v3150_v22  ;;  %v2832_v43 = vrot.slane %v8308_v6, 5 }
 0x2e0   :  { %v3276_v48 = vadd.f32 %v8271_v59, %v3013_v63  ;;  %v3219_v34 = vsel %vm3192_vm4, %v3152_v31, %v3218_v61  ;;  %v3154_v59 = vperm.slane %v7985_v40, %v11767_v51  ;;  %v3016_v16 = vadd.f32 %v2888_v14, %v8149_v3 }
 0x2e1   :  { %3429 = vmax.xlane.f32.xlu0 %v3428_v5  ;;  %v3437_v5 = vsel %vm104_vm2, %v8365_v18, -inf  ;;  %v3220_v62 = vsel %vm3194_vm5, %v3153_v53, %v3219_v34  ;;  %v8408_v32 = vmul.f32 0.35355338, %v3275_v44  ;;  %v8421_v53 = vpop.permute.xlu0 %2671  ;;  %v3446_v40 = vsel %vm104_vm2, %v8402_v11, -inf }
 0x2e2   :  { %v8415_v22 = vmul.f32 0.35355338, %v3276_v48  ;;  %v3221_v31 = vsel %vm3196_vm6, %v3154_v59, %v3220_v62  ;;  %v3155_v44 = vperm.slane %v8018_v20, %v11767_v51  ;;  %v3278_v3 = vadd.f32 %v8346_v49, %v3015_v13 }
 0x2e3   :  { %3414 = vmax.xlane.f32.xlu2 %v3413_v24  ;;  %v8394_v24 = vpop.f32.mrf.mxu2  ;;  %v3431_v41 = vsel %vm104_vm2, %v8408_v32, -inf  ;;  %v3279_v48 = vadd.f32 %v8346_v49, %v3016_v16  ;;  %v3157_v62 = vperm.slane %v8005_v2, %v11767_v51  ;;  %v2891_v14 = vperm.slane %v2832_v43, 0 }
 0x2e4   :  { %3417 = vmax.xlane.f32.xlu1 %v3416_v27  ;;  %v3020_v27 = vadd.f32 %v2892_v9, %v8185_v35  ;;  %v2835_v63 = vrot.slane %v8394_v24, 1  ;;  %v2831_v35 = vrot.slane %v8308_v6, 4  ;;  %v3222_v61 = vsel %vm3198_vm7, %v3155_v44, %v3221_v31 }
 0x2e5   :  { %v3434_v20 = vsel %vm104_vm2, %v8415_v22, -inf  ;;  %v8444_v59 = vmul.f32 0.35355338, %v3278_v3 }
 0x2e6   :  { %v3283_v36 = vadd.f32 %v8346_v49, %v3020_v27  ;;  %v2895_v9 = vperm.slane %v2835_v63, 0  ;;  %v2890_v54 = vperm.slane %v2831_v35, 0  ;;  %v2838_v63 = vrot.slane %v8394_v24, 4 }
 0x2e7   :  { %11775 = vst [vmem:[#allocation59_spill] sm:$0xff] %v8444_v59  ;;  %v3019_v35 = vadd.f32 %v2891_v14, %v8176_v0 }
 0x2e8   :  { %v3023_v34 = vadd.f32 %v2895_v9, %v8207_v10  ;;  %v8439_v27 = vmul.f32 0.35355338, %v3283_v36  ;;  %v3018_v13 = vadd.f32 %v2890_v54, %v8145_v45  ;;  %v2834_v10 = vrot.slane %v8308_v6, 7  ;;  %v11777_v54 = vld [vmem:[#allocation52_spill] sm:$0xff] }
 0x2e9   :  { %3438 = vmax.xlane.f32.xlu0 %v3437_v5  ;;  %v8406_v5 = vpop.permute.xlu2 %2636  ;;  %v2898_v44 = vperm.slane %v2838_v63, 0  ;;  %v8462_v3 = vpop.permute.xlu0 %2692  ;;  %v3282_v0 = vadd.f32 %v8346_v49, %v3019_v35  ;;  %v11780_v63 = vld [vmem:[#allocation54_spill] sm:$0xff] }
 0x2ea   :  { %11774 = vst [vmem:[#allocation58_spill] sm:$0xff] %v8439_v27  ;;  %v3455_v45 = vsel %vm104_vm2, %v8439_v27, -inf  ;;  %v3281_v36 = vadd.f32 %v8346_v49, %v3018_v13  ;;  %v2893_v6 = vperm.slane %v2834_v10, 0  ;;  %v11779_v13 = vld [vmem:[#allocation19_spill] sm:$0xff] }
 0x2eb   :  { %3423 = vmax.xlane.f32.xlu2 %v3422_v33  ;;  %v8429_v33 = vpop.permute.xlu1 %2643  ;;  %v3026_v9 = vadd.f32 %v2898_v44, %v8246_v21  ;;  %v3158_v14 = vperm.slane %v11779_v13, %v11767_v51  ;;  %v2836_v21 = vrot.slane %v8394_v24, 2  ;;  %v8483_v10 = vmul.f32 0.35355338, %v3282_v0  ;;  %v11781_v0 = vld [vmem:[#allocation21_spill] sm:$0xff]  ;;  %v11782_v13 = vld [vmem:[#allocation28_spill] sm:$0xff] }
 0x2ec   :  { %3426 = vmax.xlane.f32.xlu1 %v3425_v30  ;;  %v3223_v30 = vsel %vm3200_vm8, %v3156_v52, %v3222_v61  ;;  %v8454_v52 = vmul.f32 0.35355338, %v3279_v48  ;;  %v3159_v48 = vperm.slane %v8051_v1, %v11767_v51 }
 0x2ed   :  { %v8448_v16 = vsel %vm3202_vm9, %v3157_v62, %v3223_v30  ;;  %v2894_v30 = vperm.slane %v8394_v24, 0  ;;  %v2841_v62 = vrot.slane %v8394_v24, 7 }
 0x2ee   :  { %v3286_v2 = vadd.f32 %v8448_v16, %v3023_v34  ;;  %v8476_v34 = vmul.f32 0.35355338, %v3281_v36 }
 0x2ef   :  { %v3022_v35 = vadd.f32 %v2894_v30, %v11780_v63 }
 0x2f0   :  { %v8470_v61 = vmul.f32 0.35355338, %v3286_v2  ;;  %11778 = vst [vmem:[#allocation52_spill] sm:$0xff] %v8476_v34  ;;  %v3289_v2 = vadd.f32 %v8448_v16, %v3026_v9  ;;  %v8497_v9 = vpop.f32.mrf.mxu3 }
 0x2f1   :  { %3447 = vmax.xlane.f32.xlu0 %v3446_v40  ;;  %v8452_v31 = vpop.permute.xlu2 %2657  ;;  %v3440_v40 = vsel %vm104_vm2, %v8444_v59, -inf  ;;  %v3285_v30 = vadd.f32 %v8448_v16, %v3022_v35  ;;  %v11785_v35 = vld [vmem:[#allocation53_spill] sm:$0xff] }
 0x2f2   :  { %11776 = vst [vmem:[#allocation60_spill] sm:$0xff] %v8470_v61  ;;  %v3464_v1 = vsel %vm104_vm2, %v8470_v61, -inf }
 0x2f3   :  { %3432 = vmax.xlane.f32.xlu2 %v3431_v41  ;;  %v8465_v43 = vpop.permute.xlu1 %2664  ;;  %v3443_v41 = vsel %vm104_vm2, %v8454_v52, -inf }
 0x2f4   :  { %3435 = vmax.xlane.f32.xlu1 %v3434_v20  ;;  %v3021_v20 = vadd.f32 %v2893_v6, %v11777_v54  ;;  %v3449_v6 = vsel %vm104_vm2, %v8476_v34, -inf  ;;  %v2901_v54 = vperm.slane %v2841_v62, 0  ;;  %v8508_v62 = vmul.f32 0.35355338, %v3289_v2 }
 0x2f5   :  { %v8521_v2 = vmul.f32 0.35355338, %v3285_v30 }
 0x2f6   :  { %v3284_v36 = vadd.f32 %v8346_v49, %v3021_v20  ;;  %v3452_v49 = vsel %vm104_vm2, %v8483_v10, -inf  ;;  %v3029_v63 = vadd.f32 %v2901_v54, %v8293_v29  ;;  %11783 = vst [vmem:[#allocation19_spill] sm:$0xff] %v8508_v62 }
 0x2f7   :  { %11787 = vst [vmem:[#allocation21_spill] sm:$0xff] %v8521_v2 }
 0x2f8   :  { %v8515_v34 = vmul.f32 0.35355338, %v3284_v36  ;;  %v11788_v36 = vld [vmem:[#allocation25_spill] sm:$0xff] }
 0x2f9   :  { %3456 = vmax.xlane.f32.xlu0 %v3455_v45  ;;  %v3225_v45 = vsel %vm3190_vm3, %v3159_v48, %v3158_v14  ;;  %v8491_v44 = vpop.permute.xlu2 %2678  ;;  %v2896_v48 = vperm.slane %v2836_v21, 0  ;;  %v3162_v14 = vperm.slane %v11782_v13, %v11767_v51  ;;  %v3292_v13 = vadd.f32 %v8448_v16, %v3029_v63 }
 0x2fa   :  { %11786 = vst [vmem:[#allocation54_spill] sm:$0xff] %v8515_v34 }
 0x2fb   :  { %3441 = vmax.xlane.f32.xlu2 %v3440_v40  ;;  %v2837_v40 = vrot.slane %v8394_v24, 3  ;;  %v3024_v21 = vadd.f32 %v2896_v48, %v11785_v35  ;;  %v8513_v27 = vpop.permute.xlu1 %2685  ;;  %v3163_v48 = vperm.slane %v11788_v36, %v11767_v51  ;;  %v2840_v35 = vrot.slane %v8394_v24, 6 }
 0x2fc   :  { %3444 = vmax.xlane.f32.xlu1 %v3443_v41  ;;  %v3160_v41 = vperm.slane %v11781_v0, %v11767_v51 }
 0x2fd   :  { %v2897_v61 = vperm.slane %v2837_v40, 0  ;;  %v3473_v40 = vsel %vm104_vm2, %v8508_v62, -inf }
 0x2fe   :  { %v3226_v20 = vsel %vm3192_vm4, %v3160_v41, %v3225_v45  ;;  %v2839_v45 = vrot.slane %v8394_v24, 5  ;;  %v2843_v41 = vrot.slane %v8497_v9, 2  ;;  %v11790_v24 = vld [vmem:[#allocation26_spill] sm:$0xff] }
 0x2ff   :  { %v3025_v54 = vadd.f32 %v2897_v61, %v8228_v39  ;;  %v3458_v39 = vsel %vm104_vm2, %v8515_v34, -inf  ;;  %v11795_v34 = vld [vmem:[#allocation35_spill] sm:$0xff] }
 0x300   :  { %v2899_v61 = vperm.slane %v2839_v45, 0  ;;  %v2904_v30 = vperm.slane %v2843_v41, 0  ;;  %v8544_v45 = vmul.f32 0.35355338, %v3292_v13  ;;  %v11792_v41 = vld [vmem:[#allocation29_spill] sm:$0xff] }
 0x301   :  { %3465 = vmax.xlane.f32.xlu0 %v3464_v1  ;;  %v8506_v1 = vpop.permute.xlu0 %2713 }
 0x302   :  { %v3032_v36 = vadd.f32 %v2904_v30, %v8340_v38  ;;  %11791 = vst [vmem:[#allocation28_spill] sm:$0xff] %v8544_v45  ;;  %v11796_v38 = vld [vmem:[#allocation18_spill] sm:$0xff] }
 0x303   :  { %3450 = vmax.xlane.f32.xlu2 %v3449_v6  ;;  %v11784_v6 = vld [vmem:[#allocation23_spill] sm:$0xff]  ;;  %v3166_v13 = vperm.slane %v11796_v38, %v11767_v51 }
 0x304   :  { %3453 = vmax.xlane.f32.xlu1 %v3452_v49  ;;  %v3161_v0 = vperm.slane %v11784_v6, %v11767_v51  ;;  %v3287_v6 = vadd.f32 %v8448_v16, %v3024_v21  ;;  %v3461_v21 = vsel %vm104_vm2, %v8521_v2, -inf  ;;  %v3168_v2 = vperm.slane %v11795_v34, %v11767_v51 }
 0x306   :  { %v3227_v29 = vsel %vm3194_vm5, %v3161_v0, %v3226_v20  ;;  %v3288_v0 = vadd.f32 %v8448_v16, %v3025_v54  ;;  %v8549_v54 = vmul.f32 0.35355338, %v3287_v6 }
 0x307   :  { %v3228_v49 = vsel %vm3196_vm6, %v3162_v14, %v3227_v29  ;;  %v11789_v14 = vld [vmem:[#allocation31_spill] sm:$0xff]  ;;  %v8537_v29 = vpop.permute.xlu2 %2699 }
 0x308   :  { %v3229_v20 = vsel %vm3198_vm7, %v3163_v48, %v3228_v49  ;;  %v3165_v63 = vperm.slane %v11789_v14, %v11767_v51  ;;  %v3167_v49 = vperm.slane %v11792_v41, %v11767_v51  ;;  %v11793_v48 = vld [vmem:[#allocation56_spill] sm:$0xff]  ;;  %v2900_v14 = vperm.slane %v2840_v35, 0  ;;  %11794 = vst [vmem:[#allocation23_spill] sm:$0xff] %v8549_v54  ;;  %v8563_v35 = vpop.permute.xlu1 %2706 }
 0x309   :  { %3474 = vmax.xlane.f32.xlu0 %v3473_v40  ;;  %v3164_v40 = vperm.slane %v11790_v24, %v11767_v51  ;;  %v2846_v24 = vrot.slane %v8497_v9, 5  ;;  %v8555_v11 = vpop.permute.xlu0 %2734  ;;  %v8565_v6 = vmul.f32 0.35355338, %v3288_v0  ;;  %v11798_v0 = vld [vmem:[#allocation27_spill] sm:$0xff] }
 0x30b   :  { %3459 = vmax.xlane.f32.xlu2 %v3458_v39  ;;  %v3027_v39 = vadd.f32 %v2899_v61, %v11793_v48  ;;  %v3230_v62 = vsel %vm3200_vm8, %v3164_v40, %v3229_v20  ;;  %v3028_v61 = vadd.f32 %v2900_v14, %v8274_v19  ;;  %11797 = vst [vmem:[#allocation53_spill] sm:$0xff] %v8565_v6  ;;  %v2842_v20 = vrot.slane %v8497_v9, 1 }
 0x30c   :  { %3462 = vmax.xlane.f32.xlu1 %v3461_v21  ;;  %v8560_v30 = vsel %vm3202_vm9, %v3165_v63, %v3230_v62  ;;  %v3482_v21 = vsel %vm104_vm2, %v8544_v45, -inf  ;;  %v3232_v40 = vsel %vm3190_vm3, %v3167_v49, %v3166_v13  ;;  %v3467_v62 = vsel %vm104_vm2, %v8549_v54, -inf }
 0x30d   :  { %v3295_v34 = vadd.f32 %v8560_v30, %v3032_v36  ;;  %v3290_v41 = vadd.f32 %v8448_v16, %v3027_v39  ;;  %v3233_v19 = vsel %vm3192_vm4, %v3168_v2, %v3232_v40  ;;  %v2907_v63 = vperm.slane %v2846_v24, 0  ;;  %v11800_v24 = vld [vmem:[#allocation38_spill] sm:$0xff] }
 0x30e   :  { %v3169_v48 = vperm.slane %v11798_v0, %v11767_v51  ;;  %v3291_v36 = vadd.f32 %v8448_v16, %v3028_v61  ;;  %v2902_v14 = vperm.slane %v8497_v9, 0  ;;  %v3470_v49 = vsel %vm104_vm2, %v8565_v6, -inf  ;;  %v11802_v61 = vld [vmem:[#allocation33_spill] sm:$0xff] }
 0x30f   :  { %v2903_v38 = vperm.slane %v2842_v20, 0  ;;  %v3035_v39 = vadd.f32 %v2907_v63, %v8377_v25  ;;  %v8583_v13 = vmul.f32 0.35355338, %v3295_v34  ;;  %v8591_v16 = vmul.f32 0.35355338, %v3290_v41  ;;  %v8595_v20 = vpop.f32.mrf.mxu0 }
 0x310   :  { %v3234_v2 = vsel %vm3194_vm5, %v3169_v48, %v3233_v19  ;;  %v3030_v40 = vadd.f32 %v2902_v14, %v8240_v57  ;;  %v3170_v0 = vperm.slane %v11802_v61, %v11767_v51  ;;  %v2844_v34 = vrot.slane %v8497_v9, 3 }
 0x311   :  { %3483 = vmax.xlane.f32.xlu0 %v3482_v21  ;;  %11799 = vst [vmem:[#allocation25_spill] sm:$0xff] %v8583_v13  ;;  %v3171_v21 = vperm.slane %v11800_v24, %v11767_v51  ;;  %v3031_v25 = vadd.f32 %v2903_v38, %v8321_v56  ;;  %v8599_v63 = vmul.f32 0.35355338, %v3291_v36  ;;  %v3298_v48 = vadd.f32 %v8560_v30, %v3035_v39  ;;  %v8603_v57 = vpop.permute.xlu0 %2755  ;;  %v8610_v56 = vpop.permute.xlu1 %2727  ;;  %v11804_v38 = vld [vmem:[#allocation30_spill] sm:$0xff] }
 0x312   :  { %11801 = vst [vmem:[#allocation31_spill] sm:$0xff] %v8591_v16  ;;  %v3235_v19 = vsel %vm3196_vm6, %v3170_v0, %v3234_v2  ;;  %v3491_v41 = vsel %vm104_vm2, %v8583_v13, -inf  ;;  %v2845_v24 = vrot.slane %v8497_v9, 4  ;;  %v3476_v36 = vsel %vm104_vm2, %v8591_v16, -inf  ;;  %v11806_v13 = vld [vmem:[#allocation36_spill] sm:$0xff] }
 0x313   :  { %3468 = vmax.xlane.f32.xlu2 %v3467_v62  ;;  %v8589_v62 = vpop.permute.xlu2 %2720  ;;  %11803 = vst [vmem:[#allocation26_spill] sm:$0xff] %v8599_v63  ;;  %v3236_v14 = vsel %vm3198_vm7, %v3171_v21, %v3235_v19  ;;  %v3172_v39 = vperm.slane %v11804_v38, %v11767_v51  ;;  %v2910_v2 = vperm.slane %v8595_v20, 0  ;;  %v3294_v61 = vadd.f32 %v8560_v30, %v3031_v25 }
 0x314   :  { %3471 = vmax.xlane.f32.xlu1 %v3470_v49  ;;  %v3293_v49 = vadd.f32 %v8560_v30, %v3030_v40  ;;  %v2905_v0 = vperm.slane %v2844_v34, 0  ;;  %v3479_v21 = vsel %vm104_vm2, %v8599_v63, -inf  ;;  %v3173_v45 = vperm.slane %v11806_v13, %v11767_v51 }
 0x315   :  { %v3237_v40 = vsel %vm3200_vm8, %v3172_v39, %v3236_v14  ;;  %v3038_v19 = vadd.f32 %v2910_v2, %v8429_v33  ;;  %v2906_v16 = vperm.slane %v2845_v24, 0  ;;  %v2851_v25 = vrot.slane %v8595_v20, 3 }
 0x316   :  { %v3033_v38 = vadd.f32 %v2905_v0, %v8287_v55  ;;  %v8631_v34 = vsel %vm3202_vm9, %v3173_v45, %v3237_v40  ;;  %v2847_v33 = vrot.slane %v8497_v9, 6  ;;  %v2848_v24 = vrot.slane %v8497_v9, 7 }
 0x317   :  { %v3034_v14 = vadd.f32 %v2906_v16, %v8360_v37  ;;  %v3301_v13 = vadd.f32 %v8631_v34, %v3038_v19  ;;  %v2913_v37 = vperm.slane %v2851_v25, 0 }
 0x319   :  { %3492 = vmax.xlane.f32.xlu0 %v3491_v41  ;;  %v8622_v41 = vmul.f32 0.35355338, %v3298_v48  ;;  %v8637_v48 = vmul.f32 0.35355338, %v3294_v61  ;;  %v8646_v16 = vpop.permute.xlu0 %2776  ;;  %v3297_v2 = vadd.f32 %v8560_v30, %v3034_v14  ;;  %v2908_v61 = vperm.slane %v2847_v33, 0  ;;  %v8649_v0 = vpop.permute.xlu1 %2748  ;;  %v11811_v14 = vld [vmem:[#allocation34_spill] sm:$0xff] }
 0x31a   :  { %v3041_v40 = vadd.f32 %v2913_v37, %v8465_v43  ;;  %v8654_v9 = vmul.f32 0.35355338, %v3301_v13  ;;  %v3175_v33 = vperm.slane %v11811_v14, %v11767_v51  ;;  %v11813_v43 = vld [vmem:[#allocation20_spill] sm:$0xff]  ;;  %v11814_v37 = vld [vmem:[#allocation39_spill] sm:$0xff] }
 0x31b   :  { %3477 = vmax.xlane.f32.xlu2 %v3476_v36  ;;  %11805 = vst [vmem:[#allocation29_spill] sm:$0xff] %v8622_v41  ;;  %v8627_v36 = vmul.f32 0.35355338, %v3293_v49  ;;  %v8635_v39 = vpop.permute.xlu2 %2741  ;;  %v3500_v55 = vsel %vm104_vm2, %v8622_v41, -inf  ;;  %v3296_v49 = vadd.f32 %v8560_v30, %v3033_v38  ;;  %v3036_v19 = vadd.f32 %v2908_v61, %v8333_v50  ;;  %v11815_v61 = vld [vmem:[#allocation40_spill] sm:$0xff] }
 0x31c   :  { %3480 = vmax.xlane.f32.xlu1 %v3479_v21  ;;  %11808 = vst [vmem:[#allocation35_spill] sm:$0xff] %v8637_v48  ;;  %v3488_v21 = vsel %vm104_vm2, %v8637_v48, -inf  ;;  %v2909_v38 = vperm.slane %v2848_v24, 0  ;;  %v2849_v41 = vrot.slane %v8595_v20, 1  ;;  %v3174_v13 = vperm.slane %v11813_v43, %v11767_v51 }
 0x31d   :  { %11807 = vst [vmem:[#allocation56_spill] sm:$0xff] %v8627_v36  ;;  %v3485_v45 = vsel %vm104_vm2, %v8627_v36, -inf  ;;  %v8657_v25 = vmul.f32 0.35355338, %v3296_v49  ;;  %v8664_v36 = vmul.f32 0.35355338, %v3297_v2  ;;  %v3176_v50 = vperm.slane %v11814_v37, %v11767_v51  ;;  %v8681_v37 = vpop.f32.mrf.mxu1 }
 0x31e   :  { %11809 = vst [vmem:[#allocation18_spill] sm:$0xff] %v8654_v9  ;;  %v3304_v49 = vadd.f32 %v8631_v34, %v3041_v40  ;;  %v3509_v24 = vsel %vm104_vm2, %v8654_v9, -inf  ;;  %v3239_v40 = vsel %vm3190_vm3, %v3175_v33, %v3174_v13  ;;  %v2911_v48 = vperm.slane %v2849_v41, 0  ;;  %v11818_v41 = vld [vmem:[#allocation37_spill] sm:$0xff] }
 0x31f   :  { %11810 = vst [vmem:[#allocation27_spill] sm:$0xff] %v8657_v25  ;;  %v3494_v14 = vsel %vm104_vm2, %v8657_v25, -inf }
 0x320   :  { %11812 = vst [vmem:[#allocation38_spill] sm:$0xff] %v8664_v36  ;;  %v8691_v25 = vmul.f32 0.35355338, %v3304_v49 }
 0x321   :  { %3501 = vmax.xlane.f32.xlu0 %v3500_v55  ;;  %v2854_v55 = vrot.slane %v8595_v20, 6  ;;  %v8695_v13 = vpop.permute.xlu1 %2769 }
 0x322   :  { %11816 = vst [vmem:[#allocation33_spill] sm:$0xff] %v8691_v25 }
 0x323   :  { %3486 = vmax.xlane.f32.xlu2 %v3485_v45  ;;  %v3037_v45 = vadd.f32 %v2909_v38, %v8406_v5  ;;  %v3299_v5 = vadd.f32 %v8560_v30, %v3036_v19  ;;  %v2850_v38 = vrot.slane %v8595_v20, 2  ;;  %v8677_v2 = vpop.permute.xlu2 %2762  ;;  %v2916_v43 = vperm.slane %v2854_v55, 0 }
 0x324   :  { %3489 = vmax.xlane.f32.xlu1 %v3488_v21  ;;  %v3177_v21 = vperm.slane %v11815_v61, %v11767_v51  ;;  %v3497_v19 = vsel %vm104_vm2, %v8664_v36, -inf  ;;  %v3240_v61 = vsel %vm3192_vm4, %v3176_v50, %v3239_v40  ;;  %v2856_v50 = vrot.slane %v8681_v37, 1  ;;  %v11821_v40 = vld [vmem:[#allocation43_spill] sm:$0xff] }
 0x325   :  { %v3300_v9 = vadd.f32 %v8560_v30, %v3037_v45  ;;  %v3044_v54 = vadd.f32 %v2916_v43, %v8513_v27  ;;  %v2912_v33 = vperm.slane %v2850_v38, 0  ;;  %v8697_v30 = vmul.f32 0.35355338, %v3299_v5 }
 0x326   :  { %v3241_v55 = vsel %vm3194_vm5, %v3177_v21, %v3240_v61  ;;  %v3178_v45 = vperm.slane %v11818_v41, %v11767_v51  ;;  %v2852_v43 = vrot.slane %v8595_v20, 4  ;;  %v3518_v5 = vsel %vm104_vm2, %v8691_v25, -inf }
 0x327   :  { %11817 = vst [vmem:[#allocation30_spill] sm:$0xff] %v8697_v30  ;;  %v3040_v27 = vadd.f32 %v2912_v33, %v8452_v31  ;;  %v8704_v49 = vmul.f32 0.35355338, %v3300_v9  ;;  %v3307_v38 = vadd.f32 %v8631_v34, %v3044_v54  ;;  %v2853_v31 = vrot.slane %v8595_v20, 5 }
 0x328   :  { %v3242_v21 = vsel %vm3196_vm6, %v3178_v45, %v3241_v55  ;;  %v3503_v9 = vsel %vm104_vm2, %v8697_v30, -inf  ;;  %v2919_v55 = vperm.slane %v2856_v50, 0  ;;  %v2914_v41 = vperm.slane %v2852_v43, 0  ;;  %v11823_v50 = vld [vmem:[#allocation41_spill] sm:$0xff] }
 0x329   :  { %3510 = vmax.xlane.f32.xlu0 %v3509_v24  ;;  %v8689_v24 = vpop.permute.xlu0 %2797  ;;  %11819 = vst [vmem:[#allocation36_spill] sm:$0xff] %v8704_v49  ;;  %v3303_v54 = vadd.f32 %v8631_v34, %v3040_v27  ;;  %v8728_v25 = vmul.f32 0.35355338, %v3307_v38  ;;  %v2915_v43 = vperm.slane %v2853_v31, 0 }
 0x32a   :  { %v3042_v27 = vadd.f32 %v2914_v41, %v8421_v53 }
 0x32b   :  { %3495 = vmax.xlane.f32.xlu2 %v3494_v14  ;;  %v3039_v14 = vadd.f32 %v2911_v48, %v8371_v4  ;;  %v11820_v4 = vld [vmem:[#allocation42_spill] sm:$0xff]  ;;  %v8720_v45 = vpop.permute.xlu2 %2783  ;;  %11822 = vst [vmem:[#allocation34_spill] sm:$0xff] %v8728_v25  ;;  %v8743_v38 = vmul.f32 0.35355338, %v3303_v54  ;;  %v3527_v53 = vsel %vm104_vm2, %v8728_v25, -inf }
 0x32c   :  { %3498 = vmax.xlane.f32.xlu1 %v3497_v19  ;;  %v3180_v48 = vperm.slane %v11820_v4, %v11767_v51  ;;  %v3179_v19 = vperm.slane %v11821_v40, %v11767_v51  ;;  %v3506_v4 = vsel %vm104_vm2, %v8704_v49, -inf  ;;  %v3047_v40 = vadd.f32 %v2919_v55, %v8563_v35  ;;  %v8741_v55 = vpop.permute.xlu1 %2790 }
 0x32d   :  { %v3302_v61 = vadd.f32 %v8631_v34, %v3039_v14  ;;  %v3043_v35 = vadd.f32 %v2915_v43, %v8491_v44  ;;  %11825 = vst [vmem:[#allocation39_spill] sm:$0xff] %v8743_v38  ;;  %v11826_v44 = vld [vmem:[#allocation45_spill] sm:$0xff] }
 0x32e   :  { %v3243_v33 = vsel %vm3198_vm7, %v3179_v19, %v3242_v21  ;;  %v3181_v21 = vperm.slane %v11823_v50, %v11767_v51 }
 0x32f   :  { %v3244_v14 = vsel %vm3200_vm8, %v3180_v48, %v3243_v33  ;;  %v8733_v19 = vmul.f32 0.35355338, %v3302_v61  ;;  %v2855_v48 = vrot.slane %v8595_v20, 7  ;;  %v3305_v61 = vadd.f32 %v8631_v34, %v3042_v27  ;;  %v11828_v27 = vld [vmem:[#allocation46_spill] sm:$0xff] }
 0x330   :  { %v8737_v30 = vsel %vm3202_vm9, %v3181_v21, %v3244_v14  ;;  %v3183_v20 = vperm.slane %v11826_v44, %v11767_v51  ;;  %v3515_v14 = vsel %vm104_vm2, %v8743_v38, -inf  ;;  %v3182_v43 = vperm.slane %v11828_v27, %v11767_v51  ;;  %v11831_v27 = vld [vmem:[#allocation44_spill] sm:$0xff] }
 0x331   :  { %3519 = vmax.xlane.f32.xlu0 %v3518_v5  ;;  %11824 = vst [vmem:[#allocation20_spill] sm:$0xff] %v8733_v19  ;;  %v3310_v33 = vadd.f32 %v8737_v30, %v3047_v40  ;;  %v3512_v31 = vsel %vm104_vm2, %v8733_v19, -inf  ;;  %v2917_v54 = vperm.slane %v2855_v48, 0  ;;  %v2857_v48 = vrot.slane %v8681_v37, 2  ;;  %v8780_v19 = vpop.f32.mrf.mxu2 }
 0x333   :  { %3504 = vmax.xlane.f32.xlu2 %v3503_v9  ;;  %v2859_v9 = vrot.slane %v8681_v37, 4  ;;  %v8759_v21 = vmul.f32 0.35355338, %v3310_v33 }
 0x334   :  { %v8726_v5 = vpop.xlane.xlu0 %3393  ;;  %3507 = vmax.xlane.f32.xlu1 %v3506_v4  ;;  %v3306_v4 = vadd.f32 %v8631_v34, %v3043_v35  ;;  %v8767_v35 = vmul.f32 0.35355338, %v3305_v61 }
 0x335   :  { %v2922_v41 = vperm.slane %v2859_v9, 0  ;;  %11827 = vst [vmem:[#allocation40_spill] sm:$0xff] %v8759_v21  ;;  %v3045_v9 = vadd.f32 %v2917_v54, %v8462_v3  ;;  %v3184_v3 = vperm.slane %v11831_v27, %v11767_v51  ;;  %v3536_v61 = vsel %vm104_vm2, %v8759_v21, -inf }
 0x336   :  { %11829 = vst [vmem:[#allocation37_spill] sm:$0xff] %v8767_v35 }
 0x337   :  { %v3050_v40 = vadd.f32 %v2922_v41, %v8610_v56  ;;  %v2862_v56 = vrot.slane %v8681_v37, 7  ;;  %v3246_v41 = vsel %vm3190_vm3, %v3183_v20, %v3182_v43  ;;  %v3308_v38 = vadd.f32 %v8631_v34, %v3045_v9  ;;  %v11833_v9 = vld [vmem:[#allocation49_spill] sm:$0xff] }
 0x338   :  { %v2858_v20 = vrot.slane %v8681_v37, 3  ;;  %v2920_v43 = vperm.slane %v2857_v48, 0 }
 0x339   :  { %3528 = vmax.xlane.f32.xlu0 %v3527_v53  ;;  %v2918_v53 = vperm.slane %v8681_v37, 0  ;;  %v3313_v54 = vadd.f32 %v8737_v30, %v3050_v40  ;;  %v11832_v40 = vld [vmem:[#allocation48_spill] sm:$0xff] }
 0x33a   :  { %v3186_v27 = vperm.slane %v11832_v40, %v11767_v51  ;;  %v2860_v40 = vrot.slane %v8681_v37, 5 }
 0x33b   :  { %3513 = vmax.xlane.f32.xlu2 %v3512_v31  ;;  %v8765_v31 = vpop.permute.xlu2 %2804  ;;  %v3046_v33 = vadd.f32 %v2918_v53, %v8537_v29  ;;  %v3521_v29 = vsel %vm104_vm2, %v8767_v35, -inf  ;;  %v2925_v53 = vperm.slane %v2862_v56, 0  ;;  %v8798_v48 = vmul.f32 0.35355338, %v3313_v54 }
 0x33c   :  { %v8757_v50 = vpop.xlane.xlu0 %3402  ;;  %3516 = vmax.xlane.f32.xlu1 %v3515_v14  ;;  %v8773_v14 = vmul.f32 0.35355338, %v3306_v4  ;;  %v3247_v4 = vsel %vm3192_vm4, %v3184_v3, %v3246_v41  ;;  %v3048_v56 = vadd.f32 %v2920_v43, %v8506_v1  ;;  %v2921_v3 = vperm.slane %v2858_v20, 0 }
 0x33d   :  { %v3309_v21 = vadd.f32 %v8737_v30, %v3046_v33  ;;  %v3053_v35 = vadd.f32 %v2925_v53, %v8649_v0  ;;  %11834 = vst [vmem:[#allocation43_spill] sm:$0xff] %v8798_v48  ;;  %v2861_v0 = vrot.slane %v8681_v37, 6  ;;  %v2864_v53 = vrot.slane %v8780_v19, 2 }
 0x33e   :  { %11830 = vst [vmem:[#allocation42_spill] sm:$0xff] %v8773_v14  ;;  %v3524_v34 = vsel %vm104_vm2, %v8773_v14, -inf  ;;  %v3311_v37 = vadd.f32 %v8737_v30, %v3048_v56 }
 0x33f   :  { %v3391_v44 = vpop.xlane.xlu1 %3390  ;;  %v8812_v43 = vmul.f32 0.35355338, %v3309_v21  ;;  %v3316_v36 = vadd.f32 %v8737_v30, %v3053_v35  ;;  %v2928_v35 = vperm.slane %v2864_v53, 0  ;;  %v2924_v59 = vperm.slane %v2861_v0, 0 }
 0x340   :  { %v3581_v25 = vrot.slane %v3391_v44, 4 }
 0x341   :  { %3537 = vmax.xlane.f32.xlu0 %v3536_v61  ;;  %v3185_v61 = vperm.slane %v11833_v9, %v11767_v51  ;;  %11836 = vst [vmem:[#allocation45_spill] sm:$0xff] %v8812_v43  ;;  %v11837_v9 = vld [vmem:[#allocation47_spill] sm:$0xff]  ;;  %v3533_v56 = vsel %vm104_vm2, %v8812_v43, -inf  ;;  %v3052_v0 = vadd.f32 %v2924_v59, %v8635_v39 }
 0x342   :  { %v3582_v49 = vmax.f32 %v3391_v44, %v3581_v25  ;;  %v2863_v25 = vrot.slane %v8780_v19, 1  ;;  %v8804_v44 = vmul.f32 0.35355338, %v3308_v38  ;;  %v3187_v38 = vperm.slane %v11837_v9, %v11767_v51 }
 0x343   :  { %3522 = vmax.xlane.f32.xlu2 %v3521_v29  ;;  %v3248_v29 = vsel %vm3194_vm5, %v3185_v61, %v3247_v4  ;;  %v3545_v61 = vsel %vm104_vm2, %v8798_v48, -inf  ;;  %v2923_v9 = vperm.slane %v2860_v40, 0 }
 0x344   :  { %v8796_v41 = vpop.xlane.xlu0 %3411  ;;  %3525 = vmax.xlane.f32.xlu1 %v3524_v34  ;;  %11835 = vst [vmem:[#allocation41_spill] sm:$0xff] %v8804_v44  ;;  %v3249_v54 = vsel %vm3196_vm6, %v3186_v27, %v3248_v29  ;;  %v3049_v34 = vadd.f32 %v2921_v3, %v8589_v62  ;;  %v3583_v1 = vrot.slane %v3582_v49, 2  ;;  %v2927_v14 = vperm.slane %v2863_v25, 0  ;;  %v11838_v3 = vld [vmem:[#allocation50_spill] sm:$0xff]  ;;  %v11839_v25 = vld [vmem:[#allocation51_spill] sm:$0xff] }
 0x345   :  { %v2865_v27 = vrot.slane %v8780_v19, 3  ;;  %v3530_v62 = vsel %vm104_vm2, %v8804_v44, -inf  ;;  %v3250_v21 = vsel %vm3198_vm7, %v3187_v38, %v3249_v54  ;;  %v3189_v29 = vperm.slane %v11838_v3, %v11767_v51 }
 0x346   :  { %v8802_v33 = vpop.xlane.xlu2 %3396  ;;  %v3312_v63 = vadd.f32 %v8737_v30, %v3049_v34  ;;  %v3584_v48 = vmax.f32 %v3582_v49, %v3583_v1  ;;  %v3056_v44 = vadd.f32 %v2928_v35, %v8695_v13  ;;  %v8834_v38 = vmul.f32 0.35355338, %v3316_v36 }
 0x347   :  { %v3400_v20 = vpop.xlane.xlu1 %3399  ;;  %v3051_v40 = vadd.f32 %v2923_v9, %v8555_v11  ;;  %v2929_v53 = vperm.slane %v2865_v27, 0  ;;  %v3587_v49 = vrot.slane %v8726_v5, 4  ;;  %v8840_v1 = vmul.f32 0.35355338, %v3311_v37 }
 0x348   :  { %v3599_v4 = vrot.slane %v3400_v20, 4  ;;  %11840 = vst [vmem:[#allocation46_spill] sm:$0xff] %v8834_v38  ;;  %v2866_v13 = vrot.slane %v8780_v19, 4  ;;  %v8849_v3 = vmul.f32 0.35355338, %v3312_v63  ;;  %v2868_v9 = vrot.slane %v8780_v19, 6 }
 0x349   :  { %3546 = vmax.xlane.f32.xlu0 %v3545_v61  ;;  %v3188_v61 = vperm.slane %v11839_v25, %v11767_v51  ;;  %v3554_v59 = vsel %vm104_vm2, %v8834_v38, -inf  ;;  %v3314_v39 = vadd.f32 %v8737_v30, %v3051_v40  ;;  %v3315_v63 = vadd.f32 %v8737_v30, %v3052_v0 }
 0x34a   :  { %v3600_v6 = vmax.f32 %v3400_v20, %v3599_v4  ;;  %v2867_v4 = vrot.slane %v8780_v19, 5  ;;  %v3542_v40 = vsel %vm104_vm2, %v8849_v3, -inf  ;;  %v2930_v43 = vperm.slane %v2866_v13, 0 }
 0x34b   :  { %3531 = vmax.xlane.f32.xlu2 %v3530_v62  ;;  %v3251_v20 = vsel %vm3200_vm8, %v3188_v61, %v3250_v21  ;;  %v3585_v62 = vrot.slane %v3584_v48, 1  ;;  %v2869_v21 = vrot.slane %v8780_v19, 7  ;;  %v3605_v61 = vrot.slane %v8757_v50, 4 }
 0x34c   :  { %v8832_v54 = vpop.xlane.xlu0 %3420  ;;  %3534 = vmax.xlane.f32.xlu1 %v3533_v56  ;;  %v8847_v36 = vsel %vm3202_vm9, %v3189_v29, %v3251_v20  ;;  %v3601_v11 = vrot.slane %v3600_v6, 2  ;;  %v3588_v29 = vmax.f32 %v8726_v5, %v3587_v49  ;;  %v3539_v56 = vsel %vm104_vm2, %v8840_v1, -inf }
 0x34d   :  { %v3319_v37 = vadd.f32 %v8847_v36, %v3056_v44  ;;  %v2931_v25 = vperm.slane %v2867_v4, 0  ;;  %v3593_v44 = vrot.slane %v8802_v33, 4  ;;  %v3586_v20 = vmax.f32 %v3584_v48, %v3585_v62 }
 0x34e   :  { %v8838_v34 = vpop.xlane.xlu2 %3405  ;;  %v3602_v51 = vmax.f32 %v3600_v6, %v3601_v11  ;;  %v2932_v5 = vperm.slane %v2868_v9, 0  ;;  %v11842_v0 = vperm.slane %v8780_v19, 0  ;;  %v3589_v6 = vrot.slane %v3588_v29, 2 }
 0x34f   :  { %v3409_v27 = vpop.xlane.xlu1 %3408  ;;  %v3059_v49 = vadd.f32 %v2931_v25, %v8741_v55  ;;  %v8868_v30 = vmul.f32 0.35355338, %v3319_v37  ;;  %v8877_v62 = vmul.f32 0.35355338, %v3314_v39  ;;  %v3055_v13 = vadd.f32 %v2927_v14, %v8677_v2 }
 0x350   :  { %v3617_v35 = vrot.slane %v3409_v27, 4  ;;  %v3054_v4 = vadd.f32 %v11842_v0, %v8603_v57  ;;  %v3606_v55 = vmax.f32 %v8757_v50, %v3605_v61  ;;  %v3594_v11 = vmax.f32 %v8802_v33, %v3593_v44 }
 0x351   :  { %3555 = vmax.xlane.f32.xlu0 %v3554_v59  ;;  %11841 = vst [vmem:[#allocation44_spill] sm:$0xff] %v8868_v30  ;;  %v3057_v9 = vadd.f32 %v2929_v53, %v8646_v16  ;;  %v3965_v19 = vsub.f32 %v8235_v15, %v3586_v20  ;;  %v3603_v57 = vrot.slane %v3602_v51, 1  ;;  %v3623_v39 = vrot.slane %v8796_v41, 4 }
 0x352   :  { %v3618_v38 = vmax.f32 %v3409_v27, %v3617_v35  ;;  %v8882_v27 = vmul.f32 0.35355338, %v3315_v63  ;;  %v3563_v2 = vsel %vm104_vm2, %v8868_v30, -inf  ;;  %v3317_v50 = vadd.f32 %v8847_v36, %v3054_v4 }
 0x353   :  { %3540 = vmax.xlane.f32.xlu2 %v3539_v56  ;;  %v8873_v56 = vperm.slane %v2869_v21, 0  ;;  %v3322_v21 = vadd.f32 %v8847_v36, %v3059_v49  ;;  %v3590_v14 = vmax.f32 %v3588_v29, %v3589_v6  ;;  %v3611_v33 = vrot.slane %v8838_v34, 4 }
 0x354   :  { %v8866_v59 = vpop.xlane.xlu0 %3429  ;;  %3543 = vmax.xlane.f32.xlu1 %v3542_v40  ;;  %v3619_v37 = vrot.slane %v3618_v38, 2  ;;  %v3548_v15 = vsel %vm104_vm2, %v8877_v62, -inf  ;;  %v3318_v16 = vadd.f32 %v8847_v36, %v3055_v13  ;;  %v3607_v53 = vrot.slane %v3606_v55, 2 }
 0x355   :  { %v3595_v63 = vrot.slane %v3594_v11, 2  ;;  %v3551_v61 = vsel %vm104_vm2, %v8882_v27, -inf  ;;  %v3604_v44 = vmax.f32 %v3602_v51, %v3603_v57  ;;  %v4029_v49 = vmul.f32 1.442695, %v3965_v19 }
 0x356   :  { %v8875_v48 = vpop.xlane.xlu2 %3414  ;;  %v3620_v20 = vmax.f32 %v3618_v38, %v3619_v37  ;;  %v3320_v29 = vadd.f32 %v8847_v36, %v3057_v9  ;;  %v3624_v0 = vmax.f32 %v8796_v41, %v3623_v39  ;;  %v3641_v4 = vrot.slane %v8832_v54, 4 }
 0x357   :  { %v3418_v35 = vpop.xlane.xlu1 %3417  ;;  %v8902_v13 = vmul.f32 0.35355338, %v3322_v21  ;;  %v3612_v30 = vmax.f32 %v8838_v34, %v3611_v33  ;;  %v8908_v38 = vmul.f32 0.35355338, %v3317_v50  ;;  %v3060_v9 = vadd.f32 %v2932_v5, %v8689_v24 }
 0x358   :  { %v3635_v25 = vrot.slane %v3418_v35, 4  ;;  %v3608_v19 = vmax.f32 %v3606_v55, %v3607_v53  ;;  %v3596_v41 = vmax.f32 %v3594_v11, %v3595_v63  ;;  %v8911_v57 = vmul.f32 0.35355338, %v3318_v16 }
 0x359   :  { %3564 = vmax.xlane.f32.xlu0 %v3563_v2  ;;  %11843 = vst [vmem:[#allocation48_spill] sm:$0xff] %v8902_v13  ;;  %v3058_v2 = vadd.f32 %v2930_v43, %v8720_v45  ;;  %v3968_v37 = vsub.f32 %v8276_v60, %v3604_v44  ;;  %6532 = vpow2.f32 %v4029_v49  ;;  %v3625_v45 = vrot.slane %v3624_v0, 2 }
 0x35a   :  { %v3636_v40 = vmax.f32 %v3418_v35, %v3635_v25  ;;  %v3621_v35 = vrot.slane %v3620_v20, 1  ;;  %v3642_v43 = vmax.f32 %v8832_v54, %v3641_v4  ;;  %v3572_v25 = vsel %vm104_vm2, %v8902_v13, -inf }
 0x35b   :  { %3549 = vmax.xlane.f32.xlu2 %v3548_v15  ;;  %v3591_v15 = vrot.slane %v3590_v14, 1  ;;  %v3613_v33 = vrot.slane %v3612_v30, 2  ;;  %v3629_v24 = vrot.slane %v8875_v48, 4  ;;  %v3557_v5 = vsel %vm104_vm2, %v8908_v38, -inf }
 0x35c   :  { %v8900_v6 = vpop.xlane.xlu0 %3438  ;;  %3552 = vmax.xlane.f32.xlu1 %v3551_v61  ;;  %v3637_v21 = vrot.slane %v3636_v40, 2  ;;  %v3321_v60 = vadd.f32 %v8847_v36, %v3058_v2  ;;  %v3609_v55 = vrot.slane %v3608_v19, 1  ;;  %v3597_v11 = vrot.slane %v3596_v41, 1 }
 0x35d   :  { %v3592_v50 = vmax.f32 %v3590_v14, %v3591_v15  ;;  %v3560_v54 = vsel %vm104_vm2, %v8911_v57, -inf  ;;  %v3622_v16 = vmax.f32 %v3620_v20, %v3621_v35  ;;  %v4035_v61 = vmul.f32 1.442695, %v3968_v37 }
 0x35e   :  { %v8906_v51 = vpop.xlane.xlu2 %3423  ;;  %v3638_v53 = vmax.f32 %v3636_v40, %v3637_v21  ;;  %v3323_v14 = vadd.f32 %v8847_v36, %v3060_v9  ;;  %v3061_v44 = vadd.f32 %v8873_v56, %v8765_v31  ;;  %v3626_v49 = vmax.f32 %v3624_v0, %v3625_v45 }
 0x35f   :  { %v3427_v39 = vpop.xlane.xlu1 %3426  ;;  %v3643_v4 = vrot.slane %v3642_v43, 2  ;;  %v8928_v2 = vpop.eup %6532  ;;  %v3614_v13 = vmax.f32 %v3612_v30, %v3613_v33  ;;  %v3630_v20 = vmax.f32 %v8875_v48, %v3629_v24  ;;  %v8934_v37 = vmul.f32 0.35355338, %v3320_v29 }
 0x360   :  { %v3653_v34 = vrot.slane %v3427_v39, 4  ;;  %11844 = vst [vmem:[#allocation49_spill] sm:$0xff] %v8928_v2  ;;  %v8936_v9 = vmax.f32 %v3608_v19, %v3609_v55  ;;  %v3598_v35 = vmax.f32 %v3596_v41, %v3597_v11  ;;  %v3659_v31 = vrot.slane %v8866_v59, 4 }
 0x361   :  { %3573 = vmax.xlane.f32.xlu0 %v3572_v25  ;;  %v11845_v25 = vld [vmem:[#allocation55_spill] sm:$0xff]  ;;  %v8939_v56 = vmul.f32 0.35355338, %v3321_v60  ;;  %v3971_v0 = vsub.f32 %v8312_v23, %v3622_v16  ;;  %v3639_v21 = vrot.slane %v3638_v53, 1  ;;  %6534 = vpow2.f32 %v4035_v61 }
 0x362   :  { %v3654_v63 = vmax.f32 %v3427_v39, %v3653_v34  ;;  %v3627_v30 = vrot.slane %v3626_v49, 1  ;;  %v3644_v34 = vmax.f32 %v3642_v43, %v3643_v4  ;;  %v4157_v29 = vsel %vm104_vm2, %v8928_v2, 0.0 }
 0x363   :  { %3558 = vmax.xlane.f32.xlu2 %v3557_v5  ;;  %v3966_v5 = vsub.f32 %v11845_v25, %v3592_v50  ;;  %v3615_v50 = vrot.slane %v3614_v13, 1  ;;  %v3631_v19 = vrot.slane %v3630_v20, 2  ;;  %v3647_v41 = vrot.slane %v8906_v51, 4 }
 0x364   :  { %v8926_v15 = vpop.xlane.xlu0 %3447  ;;  %3561 = vmax.xlane.f32.xlu1 %v3560_v54  ;;  %v3655_v39 = vrot.slane %v3654_v63, 2  ;;  %v3566_v33 = vsel %vm104_vm2, %v8934_v37, -inf  ;;  %v3324_v23 = vadd.f32 %v8847_v36, %v3061_v44  ;;  %v3967_v24 = vsub.f32 %v8262_v47, %v3598_v35 }
 0x365   :  { %v3660_v60 = vmax.f32 %v8866_v59, %v3659_v31  ;;  %v3569_v43 = vsel %vm104_vm2, %v8939_v56, -inf  ;;  %v3640_v55 = vmax.f32 %v3638_v53, %v3639_v21  ;;  %v4041_v16 = vmul.f32 1.442695, %v3971_v0 }
 0x366   :  { %v8932_v40 = vpop.xlane.xlu2 %3432  ;;  %v3656_v11 = vmax.f32 %v3654_v63, %v3655_v39  ;;  %v3969_v61 = vsub.f32 %v8225_v12, %v8936_v9  ;;  %v8954_v4 = vmax.f32 %v3626_v49, %v3627_v30  ;;  %v3645_v25 = vrot.slane %v3644_v34, 1 }
 0x367   :  { %v3436_v45 = vpop.xlane.xlu1 %3435  ;;  %v4031_v47 = vmul.f32 1.442695, %v3966_v5  ;;  %v8958_v36 = vpop.eup %6534  ;;  %v3616_v59 = vmax.f32 %v3614_v13, %v3615_v50  ;;  %v3632_v44 = vmax.f32 %v3630_v20, %v3631_v19  ;;  %v3648_v35 = vmax.f32 %v8906_v51, %v3647_v41 }
 0x368   :  { %v3671_v48 = vrot.slane %v3436_v45, 4  ;;  %11846 = vst [vmem:[#allocation47_spill] sm:$0xff] %v8958_v36  ;;  %v8963_v63 = vmul.f32 0.35355338, %v3323_v14  ;;  %v3661_v31 = vrot.slane %v3660_v60, 2  ;;  %v3677_v12 = vrot.slane %v8900_v6, 4 }
 0x369   :  { %4158 = vadd.xlane.f32.xlu0 %v4157_v29  ;;  %v8966_v49 = vmul.f32 0.35355338, %v3324_v23  ;;  %v4033_v9 = vmul.f32 1.442695, %v3967_v24  ;;  %v3974_v0 = vsub.f32 %v8350_v7, %v3640_v55  ;;  %v3657_v21 = vrot.slane %v3656_v11, 1 }
 0x36a   :  { %v3672_v54 = vmax.f32 %v3436_v45, %v3671_v48  ;;  %6536 = vpow2.f32 %v4041_v16  ;;  %v3665_v13 = vrot.slane %v8932_v40, 4  ;;  %v4166_v51 = vsel %vm104_vm2, %v8958_v36, 0.0 }
 0x36b   :  { %3567 = vmax.xlane.f32.xlu2 %v3566_v33  ;;  %6538 = vpow2.f32 %v4031_v47  ;;  %v3970_v14 = vsub.f32 %v8304_v17, %v3616_v59  ;;  %v3633_v45 = vrot.slane %v3632_v44, 1  ;;  %v3649_v30 = vrot.slane %v3648_v35, 2 }
 0x36c   :  { %v8956_v29 = vpop.xlane.xlu0 %3456  ;;  %3570 = vmax.xlane.f32.xlu1 %v3569_v43  ;;  %v3673_v5 = vrot.slane %v3672_v54, 2  ;;  %v3575_v48 = vsel %vm104_vm2, %v8963_v63, -inf  ;;  %v3662_v7 = vmax.f32 %v3660_v60, %v3661_v31  ;;  %v3678_v50 = vmax.f32 %v8900_v6, %v3677_v12 }
 0x36d   :  { %v3578_v19 = vsel %vm104_vm2, %v8966_v49, -inf  ;;  %6540 = vpow2.f32 %v4033_v9  ;;  %v3658_v41 = vmax.f32 %v3656_v11, %v3657_v21  ;;  %v4047_v24 = vmul.f32 1.442695, %v3974_v0 }
 0x36e   :  { %v8961_v53 = vpop.xlane.xlu2 %3441  ;;  %v3674_v33 = vmax.f32 %v3672_v54, %v3673_v5  ;;  %v3666_v17 = vmax.f32 %v8932_v40, %v3665_v13  ;;  %v4037_v55 = vmul.f32 1.442695, %v3969_v61  ;;  %v3972_v6 = vsub.f32 %v8257_v28, %v8954_v4 }
 0x36f   :  { %v3445_v39 = vpop.xlane.xlu1 %3444  ;;  %v8985_v60 = vmax.f32 %v3644_v34, %v3645_v25  ;;  %v3634_v47 = vmax.f32 %v3632_v44, %v3633_v45  ;;  %v3650_v59 = vmax.f32 %v3648_v35, %v3649_v30  ;;  %v3663_v54 = vrot.slane %v3662_v7, 1 }
 0x370   :  { %v3689_v20 = vrot.slane %v3445_v39, 4  ;;  %v8981_v16 = vpop.eup %6536  ;;  %v3679_v12 = vrot.slane %v3678_v50, 2  ;;  %v3695_v40 = vrot.slane %v8926_v15, 4  ;;  %v4039_v9 = vmul.f32 1.442695, %v3970_v14 }
 0x371   :  { %4167 = vadd.xlane.f32.xlu0 %v4166_v51  ;;  %11847 = vst [vmem:[#allocation50_spill] sm:$0xff] %v8981_v16  ;;  %v8989_v11 = vpop.eup %6538  ;;  %v3977_v61 = vsub.f32 %v8379_v46, %v3658_v41  ;;  %v3675_v0 = vrot.slane %v3674_v33, 1  ;;  %6542 = vpow2.f32 %v4047_v24  ;;  %v3667_v34 = vrot.slane %v3666_v17, 2 }
 0x372   :  { %v3690_v23 = vmax.f32 %v3445_v39, %v3689_v20  ;;  %11848 = vst [vmem:[#allocation51_spill] sm:$0xff] %v8989_v11  ;;  %v4175_v25 = vsel %vm104_vm2, %v8981_v16, 0.0  ;;  %6544 = vpow2.f32 %v4037_v55  ;;  %v3973_v44 = vsub.f32 %v8342_v58, %v3634_v47 }
 0x373   :  { %3576 = vmax.xlane.f32.xlu2 %v3575_v48  ;;  %v8993_v28 = vpop.eup %6540  ;;  %v3651_v35 = vrot.slane %v3650_v59, 1  ;;  %v3683_v39 = vrot.slane %v8961_v53, 4  ;;  %v4160_v46 = vsel %vm104_vm2, %v8989_v11, 0.0  ;;  %v3680_v13 = vmax.f32 %v3678_v50, %v3679_v12 }
 0x374   :  { %v8979_v43 = vpop.xlane.xlu0 %3465  ;;  %3579 = vmax.xlane.f32.xlu1 %v3578_v19  ;;  %v3691_v21 = vrot.slane %v3690_v23, 2  ;;  %11849 = vst [vmem:[#allocation55_spill] sm:$0xff] %v8993_v28  ;;  %v3696_v20 = vmax.f32 %v8926_v15, %v3695_v40  ;;  %6546 = vpow2.f32 %v4039_v9  ;;  %v3676_v14 = vmax.f32 %v3674_v33, %v3675_v0 }
 0x375   :  { %v4163_v30 = vsel %vm104_vm2, %v8993_v28, 0.0  ;;  %v4053_v48 = vmul.f32 1.442695, %v3977_v61  ;;  %v3668_v58 = vmax.f32 %v3666_v17, %v3667_v34  ;;  %v4043_v41 = vmul.f32 1.442695, %v3972_v6 }
 0x376   :  { %v8987_v31 = vpop.xlane.xlu2 %3450  ;;  %v3692_v45 = vmax.f32 %v3690_v23, %v3691_v21  ;;  %v3975_v50 = vsub.f32 %v8298_v42, %v8985_v60  ;;  %v9010_v15 = vmax.f32 %v3662_v7, %v3663_v54  ;;  %v3652_v55 = vmax.f32 %v3650_v59, %v3651_v35 }
 0x377   :  { %v3454_v5 = vpop.xlane.xlu1 %3453  ;;  %v9006_v24 = vpop.eup %6542  ;;  %v3684_v33 = vmax.f32 %v8961_v53, %v3683_v39  ;;  %v3697_v12 = vrot.slane %v3696_v20, 2  ;;  %v3713_v17 = vrot.slane %v8956_v29, 4  ;;  %v4045_v9 = vmul.f32 1.442695, %v3973_v44 }
 0x378   :  { %v3707_v4 = vrot.slane %v3454_v5, 4  ;;  %11850 = vst [vmem:[#allocation61_spill] sm:$0xff] %v9006_v24  ;;  %v9015_v47 = vpop.eup %6544  ;;  %v3681_v6 = vrot.slane %v3680_v13, 1  ;;  %v3980_v61 = vsub.f32 %v8415_v22, %v3676_v14  ;;  %v3693_v0 = vrot.slane %v3692_v45, 1 }
 0x379   :  { %4176 = vadd.xlane.f32.xlu0 %v4175_v25  ;;  %11851 = vst [vmem:[#allocation62_spill] sm:$0xff] %v9015_v47  ;;  %6548 = vpow2.f32 %v4053_v48  ;;  %v3669_v7 = vrot.slane %v3668_v58, 1  ;;  %v4184_v53 = vsel %vm104_vm2, %v9006_v24, 0.0  ;;  %v3976_v59 = vsub.f32 %v8368_v8, %v3652_v55  ;;  %v9355_v24 = vld [vmem:[#allocation5 + $0x18] sm:$0xff] }
 0x37a   :  { %v3708_v51 = vmax.f32 %v3454_v5, %v3707_v4  ;;  %v9019_v42 = vpop.eup %6546  ;;  %6550 = vpow2.f32 %v4043_v41  ;;  %v3685_v54 = vrot.slane %v3684_v33, 2  ;;  %v3701_v5 = vrot.slane %v8987_v31, 4 }
 0x37b   :  { %4161 = vadd.xlane.f32.xlu2 %v4160_v46  ;;  %11852 = vst [vmem:[#allocation63_spill] sm:$0xff] %v9019_v42  ;;  %v4169_v22 = vsel %vm104_vm2, %v9015_v47, 0.0  ;;  %v3698_v34 = vmax.f32 %v3696_v20, %v3697_v12  ;;  %v3714_v4 = vmax.f32 %v8956_v29, %v3713_v17  ;;  %6552 = vpow2.f32 %v4045_v9 }
 0x37c   :  { %v9004_v19 = vpop.xlane.xlu0 %3474  ;;  %4164 = vadd.xlane.f32.xlu1 %v4163_v30  ;;  %v3709_v40 = vrot.slane %v3708_v51, 2  ;;  %v3694_v44 = vmax.f32 %v3692_v45, %v3693_v0  ;;  %v4172_v39 = vsel %vm104_vm2, %v9019_v42, 0.0  ;;  %v4059_v46 = vmul.f32 1.442695, %v3980_v61 }
 0x37d   :  { %v3670_v8 = vmax.f32 %v3668_v58, %v3669_v7  ;;  %v4049_v30 = vmul.f32 1.442695, %v3975_v50  ;;  %v3978_v20 = vsub.f32 %v8335_v26, %v9010_v15  ;;  %v9036_v29 = vmax.f32 %v3680_v13, %v3681_v6 }
 0x37e   :  { %v9013_v23 = vpop.xlane.xlu2 %3459  ;;  %v3710_v25 = vmax.f32 %v3708_v51, %v3709_v40  ;;  %v3686_v51 = vmax.f32 %v3684_v33, %v3685_v54  ;;  %v3702_v45 = vmax.f32 %v8987_v31, %v3701_v5  ;;  %v3715_v12 = vrot.slane %v3714_v4, 2 }
 0x37f   :  { %v3463_v21 = vpop.xlane.xlu1 %3462  ;;  %v9032_v48 = vpop.eup %6548  ;;  %v3731_v58 = vrot.slane %v8979_v43, 4  ;;  %v4051_v40 = vmul.f32 1.442695, %v3976_v59  ;;  %v3699_v50 = vrot.slane %v3698_v34, 1  ;;  %v3983_v9 = vsub.f32 %v8454_v52, %v3694_v44 }
 0x380   :  { %v3725_v60 = vrot.slane %v3463_v21, 4  ;;  %11853 = vst [vmem:[#allocation64_spill] sm:$0xff] %v9032_v48  ;;  %v9041_v55 = vpop.eup %6550  ;;  %v3711_v17 = vrot.slane %v3710_v25, 1  ;;  %6554 = vpow2.f32 %v4059_v46  ;;  %v3979_v13 = vsub.f32 %v8408_v32, %v3670_v8 }
 0x381   :  { %4185 = vadd.xlane.f32.xlu0 %v4184_v53  ;;  %11854 = vst [vmem:[#allocation65_spill] sm:$0xff] %v9041_v55  ;;  %v9045_v26 = vpop.eup %6552  ;;  %v4193_v15 = vsel %vm104_vm2, %v9032_v48, 0.0  ;;  %6556 = vpow2.f32 %v4049_v30  ;;  %v3687_v33 = vrot.slane %v3686_v51, 1  ;;  %v3703_v6 = vrot.slane %v3702_v45, 2 }
 0x382   :  { %v3726_v35 = vmax.f32 %v3463_v21, %v3725_v60  ;;  %11855 = vst [vmem:[#allocation66_spill] sm:$0xff] %v9045_v26  ;;  %v3719_v21 = vrot.slane %v9013_v23, 4  ;;  %v4178_v52 = vsel %vm104_vm2, %v9041_v55, 0.0  ;;  %v3716_v7 = vmax.f32 %v3714_v4, %v3715_v12 }
 0x383   :  { %4170 = vadd.xlane.f32.xlu2 %v4169_v22  ;;  %v3732_v60 = vmax.f32 %v8979_v43, %v3731_v58  ;;  %v3712_v53 = vmax.f32 %v3710_v25, %v3711_v17  ;;  %6558 = vpow2.f32 %v4051_v40  ;;  %v4181_v54 = vsel %vm104_vm2, %v9045_v26, 0.0 }
 0x384   :  { %v9030_v14 = vpop.xlane.xlu0 %3483  ;;  %4173 = vadd.xlane.f32.xlu1 %v4172_v39  ;;  %v3727_v61 = vrot.slane %v3726_v35, 2  ;;  %v4065_v5 = vmul.f32 1.442695, %v3983_v9  ;;  %v3981_v22 = vsub.f32 %v8365_v18, %v9036_v29  ;;  %v4055_v39 = vmul.f32 1.442695, %v3978_v20 }
 0x385   :  { %v9062_v4 = vmax.f32 %v3698_v34, %v3699_v50  ;;  %v3688_v43 = vmax.f32 %v3686_v51, %v3687_v33  ;;  %v3704_v25 = vmax.f32 %v3702_v45, %v3703_v6  ;;  %v3717_v12 = vrot.slane %v3716_v7, 1  ;;  %v11859_v50 = vld [vmem:[#allocation59_spill] sm:$0xff] }
 0x386   :  { %v9039_v41 = vpop.xlane.xlu2 %3468  ;;  %v3728_v32 = vmax.f32 %v3726_v35, %v3727_v61  ;;  %v9060_v46 = vpop.eup %6554  ;;  %v3720_v35 = vmax.f32 %v9013_v23, %v3719_v21  ;;  %v3733_v58 = vrot.slane %v3732_v60, 2  ;;  %v3749_v18 = vrot.slane %v9004_v19, 4 }
 0x387   :  { %v3472_v0 = vpop.xlane.xlu1 %3471  ;;  %11856 = vst [vmem:[#allocation67_spill] sm:$0xff] %v9060_v46  ;;  %v9067_v30 = vpop.eup %6556  ;;  %v4057_v29 = vmul.f32 1.442695, %v3979_v13  ;;  %v3986_v17 = vsub.f32 %v8483_v10, %v3712_v53  ;;  %6560 = vpow2.f32 %v4065_v5  ;;  %v3737_v51 = vrot.slane %v9039_v41, 4 }
 0x388   :  { %v3743_v31 = vrot.slane %v3472_v0, 4  ;;  %11857 = vst [vmem:[#allocation68_spill] sm:$0xff] %v9067_v30  ;;  %v3729_v20 = vrot.slane %v3728_v32, 1  ;;  %v4202_v45 = vsel %vm104_vm2, %v9060_v46, 0.0  ;;  %6562 = vpow2.f32 %v4055_v39 }
 0x389   :  { %4194 = vadd.xlane.f32.xlu0 %v4193_v15  ;;  %v9071_v34 = vpop.eup %6558  ;;  %v3982_v61 = vsub.f32 %v11859_v50, %v3688_v43  ;;  %v4187_v10 = vsel %vm104_vm2, %v9067_v30, 0.0  ;;  %v3734_v13 = vmax.f32 %v3732_v60, %v3733_v58  ;;  %v3750_v15 = vmax.f32 %v9004_v19, %v3749_v18  ;;  %v11861_v60 = vld [vmem:[#allocation57_spill] sm:$0xff] }
 0x38a   :  { %v3744_v59 = vmax.f32 %v3472_v0, %v3743_v31  ;;  %11858 = vst [vmem:[#allocation69_spill] sm:$0xff] %v9071_v34  ;;  %v3705_v0 = vrot.slane %v3704_v25, 1  ;;  %v3721_v31 = vrot.slane %v3720_v35, 2  ;;  %6564 = vpow2.f32 %v4057_v29 }
 0x38b   :  { %4179 = vadd.xlane.f32.xlu2 %v4178_v52  ;;  %v3730_v6 = vmax.f32 %v3728_v32, %v3729_v20  ;;  %v4190_v52 = vsel %vm104_vm2, %v9071_v34, 0.0  ;;  %v4071_v53 = vmul.f32 1.442695, %v3986_v17  ;;  %v4061_v39 = vmul.f32 1.442695, %v3981_v22  ;;  %v11863_v22 = vld [vmem:[#allocation21_spill] sm:$0xff] }
 0x38c   :  { %v9058_v44 = vpop.xlane.xlu0 %3492  ;;  %4182 = vadd.xlane.f32.xlu1 %v4181_v54  ;;  %v3745_v40 = vrot.slane %v3744_v59, 2  ;;  %v3738_v54 = vmax.f32 %v9039_v41, %v3737_v51  ;;  %v3984_v19 = vsub.f32 %v11861_v60, %v9062_v4  ;;  %v9089_v58 = vmax.f32 %v3716_v7, %v3717_v12  ;;  %v11865_v12 = vld [vmem:[#allocation52_spill] sm:$0xff] }
 0x38d   :  { %v9085_v43 = vpop.eup %6560  ;;  %v3706_v18 = vmax.f32 %v3704_v25, %v3705_v0  ;;  %v3722_v32 = vmax.f32 %v3720_v35, %v3721_v31  ;;  %v3751_v17 = vrot.slane %v3750_v15, 2  ;;  %v3767_v41 = vrot.slane %v9030_v14, 4 }
 0x38e   :  { %v9065_v8 = vpop.xlane.xlu2 %3477  ;;  %v3746_v21 = vmax.f32 %v3744_v59, %v3745_v40  ;;  %11860 = vst [vmem:[#allocation59_spill] sm:$0xff] %v9085_v43  ;;  %v9093_v29 = vpop.eup %6562  ;;  %v4063_v40 = vmul.f32 1.442695, %v3982_v61  ;;  %v3989_v51 = vsub.f32 %v11863_v22, %v3730_v6  ;;  %6566 = vpow2.f32 %v4071_v53 }
 0x38f   :  { %v3481_v9 = vpop.xlane.xlu1 %3480  ;;  %11862 = vst [vmem:[#allocation57_spill] sm:$0xff] %v9093_v29  ;;  %v3739_v7 = vrot.slane %v3738_v54, 2  ;;  %v4211_v25 = vsel %vm104_vm2, %v9085_v43, 0.0  ;;  %6568 = vpow2.f32 %v4061_v39  ;;  %v3985_v50 = vsub.f32 %v11865_v12, %v3706_v18 }
 0x390   :  { %v3761_v23 = vrot.slane %v3481_v9, 4  ;;  %v9097_v4 = vpop.eup %6564  ;;  %v3723_v0 = vrot.slane %v3722_v32, 1  ;;  %v3755_v31 = vrot.slane %v9065_v8, 4  ;;  %v4196_v61 = vsel %vm104_vm2, %v9093_v29, 0.0 }
 0x391   :  { %4203 = vadd.xlane.f32.xlu0 %v4202_v45  ;;  %11864 = vst [vmem:[#allocation21_spill] sm:$0xff] %v9097_v4  ;;  %v3768_v6 = vmax.f32 %v9030_v14, %v3767_v41  ;;  %6570 = vpow2.f32 %v4063_v40  ;;  %v4199_v39 = vsel %vm104_vm2, %v9097_v4, 0.0  ;;  %v4077_v22 = vmul.f32 1.442695, %v3989_v51 }
 0x392   :  { %v3762_v33 = vmax.f32 %v3481_v9, %v3761_v23  ;;  %v3735_v9 = vrot.slane %v3734_v13, 1  ;;  %v3747_v23 = vrot.slane %v3746_v21, 1  ;;  %v3740_v18 = vmax.f32 %v3738_v54, %v3739_v7 }
 0x393   :  { %4188 = vadd.xlane.f32.xlu2 %v4187_v10  ;;  %v3752_v10 = vmax.f32 %v3750_v15, %v3751_v17  ;;  %v11867_v15 = vld [vmem:[#allocation58_spill] sm:$0xff]  ;;  %v3769_v40 = vrot.slane %v3768_v6, 2  ;;  %v3785_v54 = vrot.slane %v9058_v44, 4  ;;  %6572 = vpow2.f32 %v4077_v22 }
 0x394   :  { %v9083_v5 = vpop.xlane.xlu0 %3501  ;;  %4191 = vadd.xlane.f32.xlu1 %v4190_v52  ;;  %v3763_v20 = vrot.slane %v3762_v33, 2  ;;  %v3748_v53 = vmax.f32 %v3746_v21, %v3747_v23  ;;  %v9110_v43 = vpop.eup %6566  ;;  %v3987_v17 = vsub.f32 %v11867_v15, %v9089_v58  ;;  %v9114_v14 = vmax.f32 %v3734_v13, %v3735_v9  ;;  %v11871_v9 = vld [vmem:[#allocation54_spill] sm:$0xff] }
 0x395   :  { %11866 = vst [vmem:[#allocation52_spill] sm:$0xff] %v9110_v43  ;;  %v3756_v21 = vmax.f32 %v9065_v8, %v3755_v31  ;;  %v4069_v23 = vmul.f32 1.442695, %v3985_v50  ;;  %v3741_v58 = vrot.slane %v3740_v18, 1  ;;  %v4220_v8 = vsel %vm104_vm2, %v9110_v43, 0.0 }
 0x396   :  { %v9091_v59 = vpop.xlane.xlu2 %3486  ;;  %v3764_v52 = vmax.f32 %v3762_v33, %v3763_v20  ;;  %v3724_v33 = vmax.f32 %v3722_v32, %v3723_v0  ;;  %v9119_v20 = vpop.eup %6568  ;;  %v3786_v22 = vmax.f32 %v9058_v44, %v3785_v54 }
 0x397   :  { %v3490_v45 = vpop.xlane.xlu1 %3489  ;;  %11868 = vst [vmem:[#allocation58_spill] sm:$0xff] %v9119_v20  ;;  %v9123_v13 = vpop.eup %6570  ;;  %v3757_v31 = vrot.slane %v3756_v21, 2  ;;  %v4205_v50 = vsel %vm104_vm2, %v9119_v20, 0.0 }
 0x398   :  { %v3779_v35 = vrot.slane %v3490_v45, 4  ;;  %v3765_v51 = vrot.slane %v3764_v52, 1  ;;  %v3988_v0 = vsub.f32 %v11871_v9, %v3724_v33  ;;  %v3742_v33 = vmax.f32 %v3740_v18, %v3741_v58 }
 0x399   :  { %4212 = vadd.xlane.f32.xlu0 %v4211_v25  ;;  %v4067_v25 = vmul.f32 1.442695, %v3984_v19  ;;  %v3753_v19 = vrot.slane %v3752_v10, 1  ;;  %v9136_v48 = vpop.eup %6572  ;;  %v3787_v18 = vrot.slane %v3786_v22, 2 }
 0x39a   :  { %v3780_v60 = vmax.f32 %v3490_v45, %v3779_v35  ;;  %v11869_v45 = vld [vmem:[#allocation53_spill] sm:$0xff]  ;;  %v3766_v15 = vmax.f32 %v3764_v52, %v3765_v51  ;;  %11872 = vst [vmem:[#allocation54_spill] sm:$0xff] %v9136_v48  ;;  %v3758_v52 = vmax.f32 %v3756_v21, %v3757_v31 }
 0x39b   :  { %4197 = vadd.xlane.f32.xlu2 %v4196_v61  ;;  %v3992_v7 = vsub.f32 %v11869_v45, %v3748_v53  ;;  %11870 = vst [vmem:[#allocation53_spill] sm:$0xff] %v9123_v13  ;;  %6574 = vpow2.f32 %v4067_v25  ;;  %v3770_v53 = vmax.f32 %v3768_v6, %v3769_v40  ;;  %v4208_v25 = vsel %vm104_vm2, %v9123_v13, 0.0  ;;  %v11873_v6 = vld [vmem:[#allocation60_spill] sm:$0xff] }
 0x39c   :  { %v9108_v12 = vpop.xlane.xlu0 %3510  ;;  %4200 = vadd.xlane.f32.xlu1 %v4199_v39  ;;  %v3781_v35 = vrot.slane %v3780_v60, 2  ;;  %v3773_v39 = vrot.slane %v9091_v59, 4  ;;  %6576 = vpow2.f32 %v4069_v23  ;;  %v3990_v40 = vsub.f32 %v11873_v6, %v9114_v14  ;;  %v11877_v14 = vld [vmem:[#allocation23_spill] sm:$0xff] }
 0x39d   :  { %v4083_v43 = vmul.f32 1.442695, %v3992_v7  ;;  %v9140_v44 = vmax.f32 %v3752_v10, %v3753_v19  ;;  %v3771_v23 = vrot.slane %v3770_v53, 1  ;;  %v3803_v7 = vrot.slane %v9083_v5, 4 }
 0x39e   :  { %v9117_v41 = vpop.xlane.xlu2 %3495  ;;  %v3782_v45 = vmax.f32 %v3780_v60, %v3781_v35  ;;  %v3774_v60 = vmax.f32 %v9091_v59, %v3773_v39  ;;  %v4075_v35 = vmul.f32 1.442695, %v3988_v0  ;;  %v3991_v21 = vsub.f32 %v11877_v14, %v3742_v33 }
 0x39f   :  { %v3499_v61 = vpop.xlane.xlu1 %3498  ;;  %6578 = vpow2.f32 %v4083_v43  ;;  %v4229_v59 = vsel %vm104_vm2, %v9136_v48, 0.0  ;;  %v3759_v31 = vrot.slane %v3758_v52, 1  ;;  %v3804_v43 = vmax.f32 %v9083_v5, %v3803_v7  ;;  %v11878_v48 = vld [vmem:[#allocation19_spill] sm:$0xff] }
 0x3a0   :  { %v3797_v32 = vrot.slane %v3499_v61, 4  ;;  %v3783_v58 = vrot.slane %v3782_v45, 1  ;;  %v3775_v39 = vrot.slane %v3774_v60, 2  ;;  %v3993_v20 = vsub.f32 %v11878_v48, %v9140_v44 }
 0x3a1   :  { %4221 = vadd.xlane.f32.xlu0 %v4220_v8  ;;  %v4073_v8 = vmul.f32 1.442695, %v3987_v17  ;;  %v9145_v51 = vpop.eup %6574  ;;  %v11875_v17 = vld [vmem:[#allocation26_spill] sm:$0xff]  ;;  %v3760_v5 = vmax.f32 %v3758_v52, %v3759_v31  ;;  %v4081_v44 = vmul.f32 1.442695, %v3991_v21 }
 0x3a2   :  { %v3798_v46 = vmax.f32 %v3499_v61, %v3797_v32  ;;  %11874 = vst [vmem:[#allocation60_spill] sm:$0xff] %v9145_v51  ;;  %v3995_v61 = vsub.f32 %v11875_v17, %v3766_v15  ;;  %v9149_v10 = vpop.eup %6576  ;;  %v4214_v0 = vsel %vm104_vm2, %v9145_v51, 0.0  ;;  %v3788_v15 = vmax.f32 %v3786_v22, %v3787_v18 }
 0x3a3   :  { %4206 = vadd.xlane.f32.xlu2 %v4205_v50  ;;  %11876 = vst [vmem:[#allocation26_spill] sm:$0xff] %v9149_v10  ;;  %6580 = vpow2.f32 %v4073_v8  ;;  %v3784_v33 = vmax.f32 %v3782_v45, %v3783_v58  ;;  %v4217_v14 = vsel %vm104_vm2, %v9149_v10, 0.0  ;;  %v9166_v22 = vmax.f32 %v3770_v53, %v3771_v23  ;;  %v11883_v23 = vld [vmem:[#allocation31_spill] sm:$0xff] }
 0x3a4   :  { %v9134_v9 = vpop.xlane.xlu0 %3519  ;;  %4209 = vadd.xlane.f32.xlu1 %v4208_v25  ;;  %v3799_v32 = vrot.slane %v3798_v46, 2  ;;  %v3791_v25 = vrot.slane %v9117_v41, 4  ;;  %6582 = vpow2.f32 %v4075_v35  ;;  %v4089_v8 = vmul.f32 1.442695, %v3995_v61 }
 0x3a5   :  { %v9164_v51 = vpop.eup %6578  ;;  %v3776_v18 = vmax.f32 %v3774_v60, %v3775_v39  ;;  %v3805_v35 = vrot.slane %v3804_v43, 2  ;;  %v3821_v61 = vrot.slane %v9108_v12, 4  ;;  %v3789_v58 = vrot.slane %v3788_v15, 1 }
 0x3a6   :  { %v9143_v54 = vpop.xlane.xlu2 %3504  ;;  %v3800_v17 = vmax.f32 %v3798_v46, %v3799_v32  ;;  %11879 = vst [vmem:[#allocation23_spill] sm:$0xff] %v9164_v51  ;;  %v3792_v45 = vmax.f32 %v9117_v41, %v3791_v25  ;;  %v11881_v32 = vld [vmem:[#allocation35_spill] sm:$0xff]  ;;  %6584 = vpow2.f32 %v4089_v8  ;;  %v4238_v41 = vsel %vm104_vm2, %v9164_v51, 0.0 }
 0x3a7   :  { %v3508_v50 = vpop.xlane.xlu1 %3507  ;;  %v3809_v52 = vrot.slane %v9143_v54, 4  ;;  %v3994_v31 = vsub.f32 %v11883_v23, %v3760_v5  ;;  %v3777_v39 = vrot.slane %v3776_v18, 1 }
 0x3a8   :  { %v3815_v19 = vrot.slane %v3508_v50, 4  ;;  %v3793_v25 = vrot.slane %v3792_v45, 2 }
 0x3a9   :  { %4230 = vadd.xlane.f32.xlu0 %v4229_v59  ;;  %v4079_v59 = vmul.f32 1.442695, %v3990_v40  ;;  %v9171_v7 = vpop.eup %6580  ;;  %v3998_v40 = vsub.f32 %v11881_v32, %v3784_v33  ;;  %v3822_v33 = vmax.f32 %v9108_v12, %v3821_v61  ;;  %v3810_v5 = vmax.f32 %v9143_v54, %v3809_v52 }
 0x3aa   :  { %v3816_v6 = vmax.f32 %v3508_v50, %v3815_v19  ;;  %11880 = vst [vmem:[#allocation19_spill] sm:$0xff] %v9171_v7  ;;  %v3801_v50 = vrot.slane %v3800_v17, 1  ;;  %v9175_v53 = vpop.eup %6582  ;;  %v4223_v21 = vsel %vm104_vm2, %v9171_v7, 0.0  ;;  %v3839_v54 = vrot.slane %v9134_v9, 4 }
 0x3ab   :  { %4215 = vadd.xlane.f32.xlu2 %v4214_v0  ;;  %11882 = vst [vmem:[#allocation35_spill] sm:$0xff] %v9175_v53  ;;  %6586 = vpow2.f32 %v4079_v59  ;;  %v3806_v0 = vmax.f32 %v3804_v43, %v3805_v35  ;;  %v4226_v51 = vsel %vm104_vm2, %v9175_v53, 0.0  ;;  %v4095_v59 = vmul.f32 1.442695, %v3998_v40  ;;  %v11885_v43 = vld [vmem:[#allocation28_spill] sm:$0xff] }
 0x3ac   :  { %v9162_v13 = vpop.xlane.xlu0 %3528  ;;  %4218 = vadd.xlane.f32.xlu1 %v4217_v14  ;;  %v3817_v48 = vrot.slane %v3816_v6, 2  ;;  %6588 = vpow2.f32 %v4081_v44  ;;  %v3802_v8 = vmax.f32 %v3800_v17, %v3801_v50  ;;  %v9189_v10 = vpop.eup %6584  ;;  %v3996_v12 = vsub.f32 %v11885_v43, %v9166_v22 }
 0x3ad   :  { %11884 = vst [vmem:[#allocation31_spill] sm:$0xff] %v9189_v10  ;;  %v3778_v35 = vmax.f32 %v3776_v18, %v3777_v39  ;;  %v3794_v17 = vmax.f32 %v3792_v45, %v3793_v25  ;;  %v3823_v44 = vrot.slane %v3822_v33, 2  ;;  %v4087_v50 = vmul.f32 1.442695, %v3994_v31 }
 0x3ae   :  { %v9169_v46 = vpop.xlane.xlu2 %3513  ;;  %v3818_v14 = vmax.f32 %v3816_v6, %v3817_v48  ;;  %v9193_v6 = vmax.f32 %v3788_v15, %v3789_v58  ;;  %6590 = vpow2.f32 %v4095_v59  ;;  %v3811_v15 = vrot.slane %v3810_v5, 2  ;;  %v11889_v58 = vld [vmem:[#allocation56_spill] sm:$0xff] }
 0x3af   :  { %v3517_v19 = vpop.xlane.xlu1 %3516  ;;  %v4247_v18 = vsel %vm104_vm2, %v9189_v10, 0.0  ;;  %v3997_v39 = vsub.f32 %v11889_v58, %v3778_v35  ;;  %v3795_v25 = vrot.slane %v3794_v17, 1  ;;  %v3840_v59 = vmax.f32 %v9134_v9, %v3839_v54 }
 0x3b0   :  { %v3833_v60 = vrot.slane %v3517_v19, 4  ;;  %v3819_v40 = vrot.slane %v3818_v14, 1  ;;  %v3812_v35 = vmax.f32 %v3810_v5, %v3811_v15 }
 0x3b1   :  { %4239 = vadd.xlane.f32.xlu0 %v4238_v41  ;;  %v4085_v41 = vmul.f32 1.442695, %v3993_v20  ;;  %v9197_v48 = vpop.eup %6586  ;;  %v11887_v20 = vld [vmem:[#allocation38_spill] sm:$0xff]  ;;  %v3796_v9 = vmax.f32 %v3794_v17, %v3795_v25 }
 0x3b2   :  { %v3834_v32 = vmax.f32 %v3517_v19, %v3833_v60  ;;  %11886 = vst [vmem:[#allocation28_spill] sm:$0xff] %v9197_v48  ;;  %v4001_v19 = vsub.f32 %v11887_v20, %v3802_v8  ;;  %v9201_v22 = vpop.eup %6588  ;;  %v4232_v31 = vsel %vm104_vm2, %v9197_v48, 0.0  ;;  %v3824_v8 = vmax.f32 %v3822_v33, %v3823_v44  ;;  %v11891_v33 = vld [vmem:[#allocation25_spill] sm:$0xff] }
 0x3b3   :  { %4224 = vadd.xlane.f32.xlu2 %v4223_v21  ;;  %11888 = vst [vmem:[#allocation38_spill] sm:$0xff] %v9201_v22  ;;  %6592 = vpow2.f32 %v4085_v41  ;;  %v3827_v21 = vrot.slane %v9169_v46, 4  ;;  %v3820_v43 = vmax.f32 %v3818_v14, %v3819_v40  ;;  %v4235_v41 = vsel %vm104_vm2, %v9201_v22, 0.0 }
 0x3b4   :  { %v9187_v23 = vpop.xlane.xlu0 %3537  ;;  %4227 = vadd.xlane.f32.xlu1 %v4226_v51  ;;  %v3807_v51 = vrot.slane %v3806_v0, 1  ;;  %v3835_v52 = vrot.slane %v3834_v32, 2  ;;  %6594 = vpow2.f32 %v4087_v50  ;;  %v4101_v10 = vmul.f32 1.442695, %v4001_v19  ;;  %v9214_v53 = vpop.eup %6590 }
 0x3b5   :  { %11890 = vst [vmem:[#allocation56_spill] sm:$0xff] %v9214_v53  ;;  %v3999_v44 = vsub.f32 %v11891_v33, %v9193_v6  ;;  %v3857_v14 = vrot.slane %v9162_v13, 4  ;;  %v3825_v5 = vrot.slane %v3824_v8, 1  ;;  %v3841_v19 = vrot.slane %v3840_v59, 2 }
 0x3b6   :  { %v9195_v61 = vpop.xlane.xlu2 %3522  ;;  %v3836_v20 = vmax.f32 %v3834_v32, %v3835_v52  ;;  %v3828_v32 = vmax.f32 %v9169_v46, %v3827_v21  ;;  %v9224_v50 = vmax.f32 %v3806_v0, %v3807_v51  ;;  %v4093_v52 = vmul.f32 1.442695, %v3997_v39  ;;  %v11895_v21 = vld [vmem:[#allocation27_spill] sm:$0xff] }
 0x3b7   :  { %v3526_v60 = vpop.xlane.xlu1 %3525  ;;  %6596 = vpow2.f32 %v4101_v10  ;;  %v3813_v17 = vrot.slane %v3812_v35, 1  ;;  %v4256_v46 = vsel %vm104_vm2, %v9214_v53, 0.0  ;;  %v4000_v0 = vsub.f32 %v11895_v21, %v3796_v9 }
 0x3b8   :  { %v3851_v45 = vrot.slane %v3526_v60, 4  ;;  %v3837_v15 = vrot.slane %v3836_v20, 1  ;;  %v3858_v51 = vmax.f32 %v9162_v13, %v3857_v14  ;;  %v3845_v10 = vrot.slane %v9195_v61, 4 }
 0x3b9   :  { %4248 = vadd.xlane.f32.xlu0 %v4247_v18  ;;  %v4091_v18 = vmul.f32 1.442695, %v3996_v12  ;;  %v9222_v40 = vpop.eup %6592  ;;  %v11893_v12 = vld [vmem:[#allocation36_spill] sm:$0xff]  ;;  %v3814_v9 = vmax.f32 %v3812_v35, %v3813_v17  ;;  %v4097_v13 = vmul.f32 1.442695, %v3999_v44 }
 0x3ba   :  { %v3852_v7 = vmax.f32 %v3526_v60, %v3851_v45  ;;  %11892 = vst [vmem:[#allocation25_spill] sm:$0xff] %v9222_v40  ;;  %v4004_v60 = vsub.f32 %v11893_v12, %v3820_v43  ;;  %v9227_v6 = vpop.eup %6594  ;;  %v4241_v39 = vsel %vm104_vm2, %v9222_v40, 0.0  ;;  %v3842_v43 = vmax.f32 %v3840_v59, %v3841_v19  ;;  %v11897_v59 = vld [vmem:[#allocation29_spill] sm:$0xff] }
 0x3bb   :  { %4233 = vadd.xlane.f32.xlu2 %v4232_v31  ;;  %11894 = vst [vmem:[#allocation36_spill] sm:$0xff] %v9227_v6  ;;  %6598 = vpow2.f32 %v4091_v18  ;;  %v3838_v12 = vmax.f32 %v3836_v20, %v3837_v15  ;;  %v4244_v18 = vsel %vm104_vm2, %v9227_v6, 0.0  ;;  %v4002_v19 = vsub.f32 %v11897_v59, %v9224_v50  ;;  %v11901_v50 = vld [vmem:[#allocation30_spill] sm:$0xff] }
 0x3bc   :  { %v9212_v58 = vpop.xlane.xlu0 %3546  ;;  %4236 = vadd.xlane.f32.xlu1 %v4235_v41  ;;  %v3853_v45 = vrot.slane %v3852_v7, 2  ;;  %v3829_v41 = vrot.slane %v3828_v32, 2  ;;  %6600 = vpow2.f32 %v4093_v52  ;;  %v4107_v53 = vmul.f32 1.442695, %v4004_v60 }
 0x3bd   :  { %v9240_v14 = vpop.eup %6596  ;;  %v3846_v52 = vmax.f32 %v9195_v61, %v3845_v10  ;;  %v4099_v60 = vmul.f32 1.442695, %v4000_v0  ;;  %v3843_v15 = vrot.slane %v3842_v43, 1 }
 0x3be   :  { %v9220_v54 = vpop.xlane.xlu2 %3531  ;;  %v3854_v48 = vmax.f32 %v3852_v7, %v3853_v45  ;;  %11896 = vst [vmem:[#allocation27_spill] sm:$0xff] %v9240_v14  ;;  %v9248_v7 = vmax.f32 %v3824_v8, %v3825_v5  ;;  %v11899_v45 = vld [vmem:[#allocation39_spill] sm:$0xff]  ;;  %6602 = vpow2.f32 %v4107_v53  ;;  %v3875_v5 = vrot.slane %v9187_v23, 4 }
 0x3bf   :  { %v3535_v31 = vpop.xlane.xlu1 %3534  ;;  %v4007_v44 = vsub.f32 %v11899_v45, %v3838_v12  ;;  %6604 = vpow2.f32 %v4097_v13  ;;  %v3847_v10 = vrot.slane %v3846_v52, 2  ;;  %v3863_v53 = vrot.slane %v9220_v54, 4 }
 0x3c0   :  { %v3869_v25 = vrot.slane %v3535_v31, 4  ;;  %v3855_v17 = vrot.slane %v3854_v48, 1  ;;  %6606 = vpow2.f32 %v4099_v60  ;;  %v9271_v40 = vmax.f32 %v3842_v43, %v3843_v15 }
 0x3c1   :  { %4257 = vadd.xlane.f32.xlu0 %v4256_v46  ;;  %v3859_v46 = vrot.slane %v3858_v51, 2  ;;  %v9246_v20 = vpop.eup %6598 }
 0x3c2   :  { %v3870_v33 = vmax.f32 %v3535_v31, %v3869_v25  ;;  %v3830_v31 = vmax.f32 %v3828_v32, %v3829_v41  ;;  %11898 = vst [vmem:[#allocation29_spill] sm:$0xff] %v9246_v20  ;;  %v4003_v32 = vsub.f32 %v11901_v50, %v3814_v9  ;;  %v4265_v41 = vsel %vm104_vm2, %v9240_v14, 0.0  ;;  %v11903_v14 = vld [vmem:[#allocation18_spill] sm:$0xff] }
 0x3c3   :  { %4242 = vadd.xlane.f32.xlu2 %v4241_v39  ;;  %v9257_v8 = vmax.f32 %v3858_v51, %v3859_v46  ;;  %v4250_v0 = vsel %vm104_vm2, %v9246_v20, 0.0  ;;  %v3856_v9 = vmax.f32 %v3854_v48, %v3855_v17  ;;  %v4113_v51 = vmul.f32 1.442695, %v4007_v44 }
 0x3c4   :  { %v9238_v21 = vpop.xlane.xlu0 %3555  ;;  %4245 = vadd.xlane.f32.xlu1 %v4244_v18  ;;  %v3871_v35 = vrot.slane %v3870_v33, 2  ;;  %v9252_v18 = vpop.eup %6600  ;;  %v3831_v61 = vrot.slane %v3830_v31, 1  ;;  %v4103_v50 = vmul.f32 1.442695, %v4002_v19  ;;  %v4005_v20 = vsub.f32 %v11903_v14, %v9248_v7 }
 0x3c5   :  { %11900 = vst [vmem:[#allocation39_spill] sm:$0xff] %v9252_v18  ;;  %v4253_v13 = vsel %vm104_vm2, %v9252_v18, 0.0  ;;  %v3848_v17 = vmax.f32 %v3846_v52, %v3847_v10  ;;  %v3864_v44 = vmax.f32 %v9220_v54, %v3863_v53  ;;  %v3861_v19 = vrot.slane %v9257_v8, 1  ;;  %v11907_v52 = vld [vmem:[#allocation20_spill] sm:$0xff] }
 0x3c6   :  { %v9244_v25 = vpop.xlane.xlu2 %3540  ;;  %v3872_v12 = vmax.f32 %v3870_v33, %v3871_v35  ;;  %v3832_v33 = vmax.f32 %v3830_v31, %v3831_v61  ;;  %v3876_v35 = vmax.f32 %v9187_v23, %v3875_v5  ;;  %6608 = vpow2.f32 %v4113_v51 }
 0x3c7   :  { %v3544_v39 = vpop.xlane.xlu1 %3543  ;;  %v3893_v23 = vrot.slane %v9212_v58, 4  ;;  %6610 = vpow2.f32 %v4103_v50  ;;  %v3849_v5 = vrot.slane %v3848_v17, 1  ;;  %v3865_v10 = vrot.slane %v3864_v44, 2 }
 0x3c8   :  { %v3887_v59 = vrot.slane %v3544_v39, 4  ;;  %v4006_v54 = vsub.f32 %v11907_v52, %v3832_v33  ;;  %v3877_v15 = vrot.slane %v3876_v35, 2 }
 0x3c9   :  { %4266 = vadd.xlane.f32.xlu0 %v4265_v41  ;;  %v9267_v41 = vpop.eup %6602  ;;  %v3894_v33 = vmax.f32 %v9212_v58, %v3893_v23  ;;  %v9308_v58 = vmax.f32 %v9257_v8, %v3861_v19  ;;  %v3866_v23 = vmax.f32 %v3864_v44, %v3865_v10  ;;  %v11913_v19 = vld [vmem:[#allocation37_spill] sm:$0xff] }
 0x3ca   :  { %v3888_v45 = vmax.f32 %v3544_v39, %v3887_v59  ;;  %11902 = vst [vmem:[#allocation30_spill] sm:$0xff] %v9267_v41  ;;  %v9276_v60 = vpop.eup %6604  ;;  %v3873_v39 = vrot.slane %v3872_v12, 1  ;;  %v4105_v59 = vmul.f32 1.442695, %v4003_v32  ;;  %v4274_v31 = vsel %vm104_vm2, %v9267_v41, 0.0 }
 0x3cb   :  { %4251 = vadd.xlane.f32.xlu2 %v4250_v0  ;;  %11904 = vst [vmem:[#allocation18_spill] sm:$0xff] %v9276_v60  ;;  %v11905_v0 = vld [vmem:[#allocation42_spill] sm:$0xff]  ;;  %v9281_v43 = vpop.eup %6606  ;;  %v3881_v32 = vrot.slane %v9244_v25, 4  ;;  %v4259_v61 = vsel %vm104_vm2, %v9276_v60, 0.0  ;;  %v9297_v60 = vld [vmem:[#allocation5 + $0x8] sm:$0xff] }
 0x3cc   :  { %v9265_v46 = vpop.xlane.xlu0 %3564  ;;  %4254 = vadd.xlane.f32.xlu1 %v4253_v13  ;;  %v4010_v13 = vsub.f32 %v11905_v0, %v3856_v9  ;;  %v3889_v18 = vrot.slane %v3888_v45, 2  ;;  %11906 = vst [vmem:[#allocation42_spill] sm:$0xff] %v9281_v43  ;;  %v3874_v53 = vmax.f32 %v3872_v12, %v3873_v39  ;;  %6612 = vpow2.f32 %v4105_v59  ;;  %v9295_v41 = vpop.eup %6608  ;;  %v11909_v39 = vld [vmem:[#allocation33_spill] sm:$0xff] }
 0x3cd   :  { %v4262_v0 = vsel %vm104_vm2, %v9281_v43, 0.0  ;;  %11908 = vst [vmem:[#allocation20_spill] sm:$0xff] %v9295_v41  ;;  %v3882_v59 = vmax.f32 %v9244_v25, %v3881_v32  ;;  %v4283_v25 = vsel %vm104_vm2, %v9295_v41, 0.0  ;;  %v9322_v41 = vld [vmem:[#allocation5] sm:$0xff]  ;;  %v791_v11 = vrot.slane %v9297_v60, 3 }
 0x3ce   :  { %v9274_v48 = vpop.xlane.xlu2 %3549  ;;  %v3890_v9 = vmax.f32 %v3888_v45, %v3889_v18  ;;  %v4119_v50 = vmul.f32 1.442695, %v4010_v13  ;;  %v4008_v18 = vsub.f32 %v11909_v39, %v9271_v40  ;;  %v3878_v45 = vmax.f32 %v3876_v35, %v3877_v15  ;;  %v9305_v13 = vpop.eup %6610 }
 0x3cf   :  { %v3553_v14 = vpop.xlane.xlu1 %3552  ;;  %11910 = vst [vmem:[#allocation33_spill] sm:$0xff] %v9305_v13  ;;  %v3895_v35 = vrot.slane %v3894_v33, 2  ;;  %v3883_v8 = vrot.slane %v3882_v59, 2  ;;  %v4268_v44 = vsel %vm104_vm2, %v9305_v13, 0.0 }
 0x3d0   :  { %v3905_v7 = vrot.slane %v3553_v14, 4  ;;  %v3891_v43 = vrot.slane %v3890_v9, 1  ;;  %6614 = vpow2.f32 %v4119_v50  ;;  %v3879_v32 = vrot.slane %v3878_v45, 1 }
 0x3d1   :  { %4275 = vadd.xlane.f32.xlu0 %v4274_v31  ;;  %v4109_v31 = vmul.f32 1.442695, %v4005_v20  ;;  %v3850_v20 = vmax.f32 %v3848_v17, %v3849_v5  ;;  %v3899_v17 = vrot.slane %v9274_v48, 4  ;;  %v3867_v5 = vrot.slane %v3866_v23, 1 }
 0x3d2   :  { %v3906_v51 = vmax.f32 %v3553_v14, %v3905_v7  ;;  %v4111_v7 = vmul.f32 1.442695, %v4006_v54  ;;  %v9311_v40 = vpop.eup %6612  ;;  %v3896_v22 = vmax.f32 %v3894_v33, %v3895_v35  ;;  %v11917_v33 = vld [vmem:[#allocation34_spill] sm:$0xff] }
 0x3d3   :  { %4260 = vadd.xlane.f32.xlu2 %v4259_v61  ;;  %v11911_v61 = vld [vmem:[#allocation45_spill] sm:$0xff]  ;;  %6616 = vpow2.f32 %v4109_v31  ;;  %v4009_v54 = vsub.f32 %v11913_v19, %v3850_v20  ;;  %v4271_v39 = vsel %vm104_vm2, %v9311_v40, 0.0  ;;  %v4115_v20 = vmul.f32 1.442695, %v4008_v18 }
 0x3d4   :  { %v9293_v52 = vpop.xlane.xlu0 %3573  ;;  %4263 = vadd.xlane.f32.xlu1 %v4262_v0  ;;  %v4013_v0 = vsub.f32 %v11911_v61, %v3874_v53  ;;  %v3907_v12 = vrot.slane %v3906_v51, 2  ;;  %11912 = vst [vmem:[#allocation45_spill] sm:$0xff] %v9311_v40  ;;  %6618 = vpow2.f32 %v4111_v7  ;;  %v3892_v53 = vmax.f32 %v3890_v9, %v3891_v43  ;;  %v9329_v7 = vld [vmem:[#allocation5 + $0x10] sm:$0xff] }
 0x3d5   :  { %v846_v61 = vperm.slane %v9297_v60, 0  ;;  %v854_v43 = vperm.slane %v9329_v7, 0  ;;  %v3911_v9 = vrot.slane %v9238_v21, 4  ;;  %v4011_v35 = vsub.f32 %v11917_v33, %v9308_v58 }
 0x3d6   :  { %v9303_v14 = vpop.xlane.xlu2 %3558  ;;  %v3908_v50 = vmax.f32 %v3906_v51, %v3907_v12  ;;  %v4125_v31 = vmul.f32 1.442695, %v4013_v0  ;;  %v3884_v51 = vmax.f32 %v3882_v59, %v3883_v8  ;;  %v3900_v12 = vmax.f32 %v9274_v48, %v3899_v17 }
 0x3d7   :  { %v3562_v6 = vpop.xlane.xlu1 %3561  ;;  %v4117_v19 = vmul.f32 1.442695, %v4009_v54  ;;  %v4016_v40 = vsub.f32 %v8849_v3, %v3892_v53  ;;  %v3897_v48 = vrot.slane %v3896_v22, 1  ;;  %v3912_v58 = vmax.f32 %v9238_v21, %v3911_v9  ;;  %v11919_v3 = vld [vmem:[#allocation41_spill] sm:$0xff]  ;;  %v11920_v21 = vld [vmem:[#allocation10_spill] sm:$0xff] }
 0x3d8   :  { %v3923_v15 = vrot.slane %v3562_v6, 4  ;;  %v3909_v29 = vrot.slane %v3908_v50, 1  ;;  %6620 = vpow2.f32 %v4125_v31  ;;  %v3917_v54 = vrot.slane %v9303_v14, 4 }
 0x3d9   :  { %4284 = vadd.xlane.f32.xlu0 %v4283_v25  ;;  %v838_v25 = vperm.slane %v9322_v41, 0  ;;  %6622 = vpow2.f32 %v4115_v20  ;;  %v974_v9 = vmul.f32 %v11920_v21, %v846_v61 }
 0x3da   :  { %v3924_v10 = vmax.f32 %v3562_v6, %v3923_v15  ;;  %v9327_v6 = vpop.eup %6614  ;;  %6624 = vpow2.f32 %v4117_v19  ;;  %v3910_v31 = vmax.f32 %v3908_v50, %v3909_v29  ;;  %v3913_v29 = vrot.slane %v3912_v58, 2 }
 0x3db   :  { %4269 = vadd.xlane.f32.xlu2 %v4268_v44  ;;  %11915 = vst [vmem:[#allocation70_spill] sm:$0xff] %v9327_v6  ;;  %v9336_v15 = vpop.eup %6616  ;;  %v3868_v44 = vmax.f32 %v3866_v23, %v3867_v5  ;;  %v4292_v8 = vsel %vm104_vm2, %v9327_v6, 0.0  ;;  %v3885_v23 = vrot.slane %v3884_v51, 1  ;;  %v3901_v5 = vrot.slane %v3900_v12, 2 }
 0x3dc   :  { %v9325_v13 = vpop.xlane.xlu0 %4158  ;;  %4272 = vadd.xlane.f32.xlu1 %v4271_v39  ;;  %11916 = vst [vmem:[#allocation71_spill] sm:$0xff] %v9336_v15  ;;  %v3925_v18 = vrot.slane %v3924_v10, 2  ;;  %v9340_v39 = vmax.f32 %v3878_v45, %v3879_v32  ;;  %v9343_v59 = vpop.eup %6618  ;;  %v4277_v45 = vsel %vm104_vm2, %v9336_v15, 0.0  ;;  %v4131_v6 = vmul.f32 1.442695, %v4016_v40  ;;  %v11921_v15 = vld [vmem:[#allocation9_spill] sm:$0xff] }
 0x3dd   :  { %11914 = vst [vmem:[#allocation37_spill] sm:$0xff] %v9325_v13  ;;  %v4012_v32 = vsub.f32 %v11919_v3, %v3868_v44  ;;  %v4280_v20 = vsel %vm104_vm2, %v9343_v59, 0.0  ;;  %v966_v30 = vmul.f32 %v11921_v15, %v838_v25  ;;  %v3902_v50 = vmax.f32 %v3900_v12, %v3901_v5  ;;  %v11924_v40 = vld [vmem:[#allocation11_spill] sm:$0xff] }
 0x3de   :  { %v9334_v0 = vpop.xlane.xlu2 %3567  ;;  %11918 = vst [vmem:[#allocation34_spill] sm:$0xff] %v9343_v59  ;;  %v3926_v53 = vmax.f32 %v3924_v10, %v3925_v18  ;;  %v4121_v10 = vmul.f32 1.442695, %v4011_v35  ;;  %v9361_v18 = vpop.eup %6620  ;;  %v3918_v25 = vmax.f32 %v9303_v14, %v3917_v54  ;;  %v4019_v35 = vsub.f32 %v8882_v27, %v3910_v31 }
 0x3df   :  { %v3571_v4 = vpop.xlane.xlu1 %3570  ;;  %11923 = vst [vmem:[#allocation10_spill] sm:$0xff] %v9361_v18  ;;  %v9366_v61 = vpop.eup %6622  ;;  %v4123_v59 = vmul.f32 1.442695, %v4012_v32  ;;  %6626 = vpow2.f32 %v4131_v6  ;;  %v3914_v14 = vmax.f32 %v3912_v58, %v3913_v29  ;;  %v3935_v54 = vrot.slane %v9334_v0, 4 }
 0x3e0   :  { %v3941_v17 = vrot.slane %v3571_v4, 4  ;;  %11925 = vst [vmem:[#allocation9_spill] sm:$0xff] %v9366_v61  ;;  %v9374_v12 = vpop.eup %6624  ;;  %6628 = vpow2.f32 %v4121_v10  ;;  %v4286_v27 = vsel %vm104_vm2, %v9366_v61, 0.0  ;;  %v3919_v6 = vrot.slane %v3918_v25, 2 }
 0x3e1   :  { %4293 = vadd.xlane.f32.xlu0 %v4292_v8  ;;  %v3927_v8 = vrot.slane %v3926_v53, 1  ;;  %11927 = vst [vmem:[#allocation11_spill] sm:$0xff] %v9374_v12  ;;  %6630 = vpow2.f32 %v4123_v59  ;;  %v4289_v10 = vsel %vm104_vm2, %v9374_v12, 0.0 }
 0x3e2   :  { %v3942_v33 = vmax.f32 %v3571_v4, %v3941_v17  ;;  %v3886_v4 = vmax.f32 %v3884_v51, %v3885_v23  ;;  %v982_v17 = vmul.f32 %v11924_v40, %v854_v43  ;;  %v3929_v43 = vrot.slane %v9265_v46, 4 }
 0x3e3   :  { %4278 = vadd.xlane.f32.xlu2 %v4277_v45  ;;  %v11926_v45 = vld [vmem:[#allocation40_spill] sm:$0xff]  ;;  %v4301_v23 = vsel %vm104_vm2, %v9361_v18, 0.0  ;;  %v3928_v32 = vmax.f32 %v3926_v53, %v3927_v8  ;;  %v4137_v18 = vmul.f32 1.442695, %v4019_v35  ;;  %v1030_v53 = vsel %vm104_vm2, %v966_v30, 0.0 }
 0x3e4   :  { %v9359_v44 = vpop.xlane.xlu0 %4167  ;;  %4281 = vadd.xlane.f32.xlu1 %v4280_v20  ;;  %v4014_v3 = vsub.f32 %v11926_v45, %v9340_v39  ;;  %v9371_v20 = vmax.f32 %v3896_v22, %v3897_v48  ;;  %v3943_v34 = vrot.slane %v3942_v33, 2  ;;  %v9379_v39 = vld [vmem:[#allocation5 + $0x20] sm:$0xff]  ;;  %v4015_v22 = vsub.f32 %v8840_v1, %v3886_v4 }
 0x3e5   :  { %11922 = vst [vmem:[#allocation41_spill] sm:$0xff] %v9359_v44  ;;  %v3903_v48 = vrot.slane %v3902_v50, 1  ;;  %v3930_v58 = vmax.f32 %v9265_v46, %v3929_v43  ;;  %v870_v4 = vperm.slane %v9379_v39, 0  ;;  %v9392_v8 = vpop.eup %6626  ;;  %v1033_v35 = vsel %vm104_vm2, %v982_v17, 0.0  ;;  %v11932_v46 = vld [vmem:[#allocation43_spill] sm:$0xff] }
 0x3e6   :  { %v9363_v19 = vpop.xlane.xlu2 %3576  ;;  %v3944_v31 = vmax.f32 %v3942_v33, %v3943_v34  ;;  %v4127_v29 = vmul.f32 1.442695, %v4014_v3  ;;  %11929 = vst [vmem:[#allocation72_spill] sm:$0xff] %v9392_v8  ;;  %v1031_v33 = vsel %vm104_vm2, %v974_v9, 0.0  ;;  %v4017_v43 = vsub.f32 %v11932_v46, %v9371_v20 }
 0x3e7   :  { %v3580_v51 = vpop.xlane.xlu1 %3579  ;;  %v3904_v59 = vmax.f32 %v3902_v50, %v3903_v48  ;;  %v3920_v3 = vmax.f32 %v3918_v25, %v3919_v6  ;;  %v4022_v30 = vsub.f32 %v8911_v57, %v3928_v32  ;;  %6632 = vpow2.f32 %v4137_v18 }
 0x3e8   :  { %v3959_v5 = vrot.slane %v3580_v51, 4  ;;  %v3931_v9 = vrot.slane %v3930_v58, 2  ;;  %v3947_v17 = vrot.slane %v9293_v52, 4  ;;  %v4310_v61 = vsel %vm104_vm2, %v9392_v8, 0.0 }
 0x3e9   :  { %4302 = vadd.xlane.f32.xlu0 %v4301_v23  ;;  %v3915_v23 = vrot.slane %v3914_v14, 1  ;;  %6634 = vpow2.f32 %v4127_v29  ;;  %v1032_v20 = vadd.f32 %v1031_v33, %v1030_v53  ;;  %v3953_v18 = vrot.slane %v9363_v19, 4 }
 0x3ea   :  { %v3960_v45 = vmax.f32 %v3580_v51, %v3959_v5  ;;  %v9398_v51 = vpop.eup %6628  ;;  %v3936_v5 = vmax.f32 %v9334_v0, %v3935_v54  ;;  %v4018_v0 = vsub.f32 %v8877_v62, %v3904_v59  ;;  %v4143_v29 = vmul.f32 1.442695, %v4022_v30 }
 0x3eb   :  { %4287 = vadd.xlane.f32.xlu2 %v4286_v27  ;;  %11931 = vst [vmem:[#allocation74_spill] sm:$0xff] %v9398_v51  ;;  %v4129_v27 = vmul.f32 1.442695, %v4015_v22  ;;  %v9406_v48 = vpop.eup %6630  ;;  %v3916_v25 = vmax.f32 %v3914_v14, %v3915_v23  ;;  %v4295_v57 = vsel %vm104_vm2, %v9398_v51, 0.0  ;;  %v3921_v22 = vrot.slane %v3920_v3, 1 }
 0x3ec   :  { %v9388_v1 = vpop.xlane.xlu0 %4176  ;;  %4290 = vadd.xlane.f32.xlu1 %v4289_v10  ;;  %v3945_v10 = vrot.slane %v3944_v31, 1  ;;  %v3961_v12 = vrot.slane %v3960_v45, 2  ;;  %11934 = vst [vmem:[#allocation75_spill] sm:$0xff] %v9406_v48  ;;  %v3937_v6 = vrot.slane %v3936_v5, 2  ;;  %v4298_v46 = vsel %vm104_vm2, %v9406_v48, 0.0  ;;  %v11943_v48 = vld [vmem:[#allocation46_spill] sm:$0xff] }
 0x3ed   :  { %11928 = vst [vmem:[#allocation40_spill] sm:$0xff] %v9388_v1  ;;  %6636 = vpow2.f32 %v4129_v27  ;;  %v11935_v14 = vrot.slane %v9297_v60, 1  ;;  %v3948_v23 = vmax.f32 %v9293_v52, %v3947_v17  ;;  %v4133_v59 = vmul.f32 1.442695, %v4017_v43  ;;  %v9424_v33 = vpop.eup %6632  ;;  %v11940_v27 = vld [vmem:[#allocation12_spill] sm:$0xff]  ;;  %v9435_v52 = vld [vmem:[#allocation5 + $0x28] sm:$0xff] }
 0x3ee   :  { %v9394_v34 = vpop.xlane.xlu2 %4161  ;;  %v3946_v32 = vmax.f32 %v3944_v31, %v3945_v10  ;;  %v3962_v54 = vmax.f32 %v3960_v45, %v3961_v12  ;;  %11937 = vst [vmem:[#allocation77_spill] sm:$0xff] %v9424_v33  ;;  %v782_v31 = vrot.slane %v9322_v41, 1  ;;  %v11939_v45 = vperm.slane %v9355_v24, 0  ;;  %v11941_v10 = vld [vmem:[#allocation16_spill] sm:$0xff] }
 0x3ef   :  { %11930 = vst [vmem:[#allocation73_spill] sm:$0xff] %v9394_v34  ;;  %v9404_v50 = vpop.xlane.xlu1 %4164  ;;  %v9419_v62 = vperm.slane %v11935_v14, 0  ;;  %v1034_v14 = vadd.f32 %v1033_v35, %v1032_v20  ;;  %v3938_v17 = vmax.f32 %v3936_v5, %v3937_v6  ;;  %v3954_v43 = vmax.f32 %v9363_v19, %v3953_v18 }
 0x3f0   :  { %11933 = vst [vmem:[#allocation43_spill] sm:$0xff] %v9404_v50  ;;  %v990_v30 = vmul.f32 %v11940_v27, %v11939_v45  ;;  %v4020_v51 = vsub.f32 %v11943_v48, %v3916_v25  ;;  %v4025_v8 = vsub.f32 %v8939_v56, %v3946_v32  ;;  %v3963_v16 = vrot.slane %v3962_v54, 1  ;;  %v9451_v48 = vld [vmem:[#allocation5 + $0x30] sm:$0xff]  ;;  %v9453_v25 = vld [vmem:[#allocation5 + $0x38] sm:$0xff] }
 0x3f1   :  { %4311 = vadd.xlane.f32.xlu0 %v4310_v61  ;;  %v3932_v61 = vmax.f32 %v3930_v58, %v3931_v9  ;;  %v9433_v58 = vpop.eup %6634  ;;  %v3922_v9 = vmax.f32 %v3920_v3, %v3921_v22  ;;  %6638 = vpow2.f32 %v4143_v29  ;;  %v3949_v35 = vrot.slane %v3948_v23, 2 }
 0x3f2   :  { %11942 = vst [vmem:[#allocation12_spill] sm:$0xff] %v9433_v58  ;;  %v4319_v20 = vsel %vm104_vm2, %v9424_v33, 0.0  ;;  %6640 = vpow2.f32 %v4133_v59  ;;  %v796_v3 = vrot.slane %v9329_v7, 1  ;;  %v4304_v19 = vsel %vm104_vm2, %v9433_v58, 0.0 }
 0x3f3   :  { %4296 = vadd.xlane.f32.xlu2 %v4295_v57  ;;  %v998_v57 = vmul.f32 %v11941_v10, %v870_v4  ;;  %v9442_v45 = vpop.eup %6636  ;;  %v3933_v4 = vrot.slane %v3932_v61, 1  ;;  %v878_v56 = vperm.slane %v9435_v52, 0  ;;  %v1035_v5 = vsel %vm104_vm2, %v990_v30, 0.0 }
 0x3f4   :  { %v9422_v53 = vpop.xlane.xlu0 %4185  ;;  %4299 = vadd.xlane.f32.xlu1 %v4298_v46  ;;  %v4135_v46 = vmul.f32 1.442695, %v4018_v0  ;;  %11945 = vst [vmem:[#allocation46_spill] sm:$0xff] %v9442_v45  ;;  %v4021_v0 = vsub.f32 %v8908_v38, %v3922_v9  ;;  %v3939_v22 = vrot.slane %v3938_v17, 1  ;;  %v3955_v6 = vrot.slane %v3954_v43, 2 }
 0x3f5   :  { %11936 = vst [vmem:[#allocation76_spill] sm:$0xff] %v9422_v53  ;;  %v3964_v18 = vmax.f32 %v3962_v54, %v3963_v16  ;;  %v4307_v32 = vsel %vm104_vm2, %v9442_v45, 0.0  ;;  %v4149_v29 = vmul.f32 1.442695, %v4025_v8  ;;  %v1037_v59 = vsel %vm104_vm2, %v998_v57, 0.0  ;;  %v11949_v8 = vld [vmem:[#allocation15_spill] sm:$0xff] }
 0x3f6   :  { %v9427_v12 = vpop.xlane.xlu2 %4170  ;;  %6642 = vpow2.f32 %v4135_v46  ;;  %v3950_v33 = vmax.f32 %v3948_v23, %v3949_v35  ;;  %v4139_v58 = vmul.f32 1.442695, %v4020_v51  ;;  %v1036_v26 = vadd.f32 %v1035_v5, %v1034_v14  ;;  %v11953_v45 = vld [vmem:[#allocation44_spill] sm:$0xff] }
 0x3f7   :  { %11938 = vst [vmem:[#allocation78_spill] sm:$0xff] %v9427_v12  ;;  %v9440_v55 = vpop.xlane.xlu1 %4173  ;;  %v9461_v36 = vpop.eup %6638  ;;  %v803_v38 = vrot.slane %v9355_v24, 1  ;;  %v886_v16 = vperm.slane %v9451_v48, 0  ;;  %v894_v54 = vperm.slane %v9453_v25, 0  ;;  %v1006_v46 = vmul.f32 %v11949_v8, %v878_v56 }
 0x3f8   :  { %11944 = vst [vmem:[#allocation16_spill] sm:$0xff] %v9440_v55  ;;  %v9469_v57 = vpop.eup %6640  ;;  %v3956_v23 = vmax.f32 %v3954_v43, %v3955_v6  ;;  %v1038_v35 = vadd.f32 %v1037_v59, %v1036_v26  ;;  %v839_v51 = vperm.slane %v782_v31, 0  ;;  %v855_v14 = vperm.slane %v796_v3, 0  ;;  %v11954_v31 = vld [vmem:[#allocation14_spill] sm:$0xff]  ;;  %v11955_v43 = vld [vmem:[#allocation13_spill] sm:$0xff]  ;;  %v10031_v55 = vld [vmem:[#allocation6 + $0x38] sm:$0xff] }
 0x3f9   :  { %4320 = vadd.xlane.f32.xlu0 %v4319_v20  ;;  %v3934_v20 = vmax.f32 %v3932_v61, %v3933_v4  ;;  %11947 = vst [vmem:[#allocation80_spill] sm:$0xff] %v9461_v36  ;;  %v3940_v61 = vmax.f32 %v3938_v17, %v3939_v22  ;;  %v4141_v4 = vmul.f32 1.442695, %v4021_v0  ;;  %6644 = vpow2.f32 %v4149_v29 }
 0x3fa   :  { %11950 = vst [vmem:[#allocation15_spill] sm:$0xff] %v9469_v57  ;;  %v3951_v42 = vrot.slane %v3950_v33, 1  ;;  %v4328_v56 = vsel %vm104_vm2, %v9461_v36, 0.0  ;;  %6646 = vpow2.f32 %v4139_v58  ;;  %v4313_v26 = vsel %vm104_vm2, %v9469_v57, 0.0 }
 0x3fb   :  { %4305 = vadd.xlane.f32.xlu2 %v4304_v19  ;;  %v4028_v19 = vsub.f32 %v8966_v49, %v3964_v18  ;;  %v4023_v47 = vsub.f32 %v11953_v45, %v3934_v20  ;;  %v1014_v17 = vmul.f32 %v11954_v31, %v886_v16  ;;  %v1022_v49 = vmul.f32 %v11955_v43, %v894_v54 }
 0x3fc   :  { %v9459_v30 = vpop.xlane.xlu0 %4194  ;;  %4308 = vadd.xlane.f32.xlu1 %v4307_v32  ;;  %v9474_v32 = vpop.eup %6642  ;;  %v1039_v3 = vsel %vm104_vm2, %v1006_v46, 0.0  ;;  %v4024_v0 = vsub.f32 %v8934_v37, %v3940_v61  ;;  %v3957_v22 = vrot.slane %v3956_v23, 1  ;;  %6648 = vpow2.f32 %v4141_v4 }
 0x3fd   :  { %11946 = vst [vmem:[#allocation79_spill] sm:$0xff] %v9459_v30  ;;  %v1040_v45 = vadd.f32 %v1039_v3, %v1038_v35  ;;  %v967_v6 = vmul.f32 %v11921_v15, %v839_v51  ;;  %v4316_v58 = vsel %vm104_vm2, %v9474_v32, 0.0  ;;  %v4155_v18 = vmul.f32 1.442695, %v4028_v19 }
 0x3fe   :  { %v9464_v9 = vpop.xlane.xlu2 %4179  ;;  %11952 = vst [vmem:[#allocation83_spill] sm:$0xff] %v9474_v32  ;;  %v810_v29 = vrot.slane %v9379_v39, 1  ;;  %v3952_v59 = vmax.f32 %v3950_v33, %v3951_v42  ;;  %v4145_v16 = vmul.f32 1.442695, %v4023_v47  ;;  %v975_v37 = vmul.f32 %v11920_v21, %v9419_v62 }
 0x3ff   :  { %11948 = vst [vmem:[#allocation81_spill] sm:$0xff] %v9464_v9  ;;  %v9472_v5 = vpop.xlane.xlu1 %4182  ;;  %v9491_v54 = vpop.eup %6644  ;;  %v1041_v61 = vsel %vm104_vm2, %v1014_v17, 0.0  ;;  %v1043_v4 = vsel %vm104_vm2, %v1022_v49, 0.0  ;;  %v983_v35 = vmul.f32 %v11924_v40, %v855_v14  ;;  %v3958_v42 = vmax.f32 %v3956_v23, %v3957_v22 }
 0x400   :  { %11951 = vst [vmem:[#allocation82_spill] sm:$0xff] %v9472_v5  ;;  %v9500_v51 = vpop.eup %6646  ;;  %v4147_v33 = vmul.f32 1.442695, %v4024_v0  ;;  %v1042_v19 = vadd.f32 %v1041_v61, %v1040_v45  ;;  %6650 = vpow2.f32 %v4155_v18  ;;  %v1045_v62 = vsel %vm104_vm2, %v967_v6, 0.0 }
 0x401   :  { %4329 = vadd.xlane.f32.xlu0 %v4328_v56  ;;  %11957 = vst [vmem:[#allocation14_spill] sm:$0xff] %v9491_v54  ;;  %v863_v56 = vperm.slane %v803_v38, 0  ;;  %v4337_v49 = vsel %vm104_vm2, %v9491_v54, 0.0  ;;  %6652 = vpow2.f32 %v4145_v16  ;;  %v4322_v38 = vsel %vm104_vm2, %v9500_v51, 0.0 }
 0x402   :  { %11959 = vst [vmem:[#allocation84_spill] sm:$0xff] %v9500_v51  ;;  %v9505_v3 = vpop.eup %6648  ;;  %v9510_v14 = vadd.f32 %v1043_v4, %v1042_v19  ;;  %v817_v23 = vrot.slane %v9435_v52, 1  ;;  %v1046_v0 = vsel %vm104_vm2, %v975_v37, 0.0  ;;  %v1048_v22 = vsel %vm104_vm2, %v983_v35, 0.0 }
 0x403   :  { %4314 = vadd.xlane.f32.xlu2 %v4313_v26  ;;  %v871_v26 = vperm.slane %v810_v29, 0  ;;  %11961 = vst [vmem:[#allocation86_spill] sm:$0xff] %v9505_v3  ;;  %v4027_v45 = vsub.f32 %v8963_v63, %v3958_v42  ;;  %6654 = vpow2.f32 %v4147_v33  ;;  %v1047_v6 = vadd.f32 %v1046_v0, %v1045_v62 }
 0x404   :  { %v9489_v20 = vpop.xlane.xlu0 %4203  ;;  %4317 = vadd.xlane.f32.xlu1 %v4316_v58  ;;  %v11962_v58 = vld [vmem:[#allocation48_spill] sm:$0xff]  ;;  %v4325_v18 = vsel %vm104_vm2, %v9505_v3, 0.0  ;;  %v991_v29 = vmul.f32 %v11940_v27, %v863_v56  ;;  %v4870_v61 = vrot.slane %v9510_v14, 2  ;;  %v824_v42 = vrot.slane %v9451_v48, 1 }
 0x405   :  { %11956 = vst [vmem:[#allocation44_spill] sm:$0xff] %v9489_v20  ;;  %v4026_v17 = vsub.f32 %v11962_v58, %v3952_v59  ;;  %v999_v59 = vmul.f32 %v11941_v10, %v871_v26  ;;  %v1049_v4 = vadd.f32 %v1048_v22, %v1047_v6  ;;  %v831_v33 = vrot.slane %v9453_v25, 1 }
 0x406   :  { %v9495_v46 = vpop.xlane.xlu2 %4188  ;;  %v9525_v35 = vpop.eup %6650  ;;  %v879_v19 = vperm.slane %v817_v23, 0  ;;  %v790_v56 = vrot.slane %v9297_v60, 2  ;;  %v4153_v26 = vmul.f32 1.442695, %v4027_v45  ;;  %v783_v58 = vrot.slane %v9322_v41, 2 }
 0x407   :  { %11958 = vst [vmem:[#allocation13_spill] sm:$0xff] %v9495_v46  ;;  %v9502_v47 = vpop.xlane.xlu1 %4191  ;;  %v4151_v37 = vmul.f32 1.442695, %v4026_v17  ;;  %v9531_v62 = vpop.eup %6652  ;;  %v1052_v0 = vsel %vm104_vm2, %v999_v59, 0.0  ;;  %v4346_v23 = vsel %vm104_vm2, %v9525_v35, 0.0  ;;  %v4927_v6 = vperm.slane %v4870_v61, 0 }
 0x408   :  { %11960 = vst [vmem:[#allocation85_spill] sm:$0xff] %v9502_v47  ;;  %v4331_v45 = vsel %vm104_vm2, %v9531_v62, 0.0  ;;  %v887_v51 = vperm.slane %v824_v42, 0  ;;  %v895_v54 = vperm.slane %v831_v33, 0  ;;  %v1007_v32 = vmul.f32 %v11949_v8, %v879_v19  ;;  %v9552_v61 = vld [vmem:[%s11532_s5] sm:$0xff] }
 0x409   :  { %4338 = vadd.xlane.f32.xlu0 %v4337_v49  ;;  %11964 = vst [vmem:[#allocation87_spill] sm:$0xff] %v9525_v35  ;;  %v797_v49 = vrot.slane %v9329_v7, 2  ;;  %v9540_v22 = vpop.eup %6654  ;;  %6656 = vpow2.f32 %v4151_v37  ;;  %v840_v59 = vperm.slane %v783_v58, 0  ;;  %v848_v37 = vperm.slane %v790_v56, 0 }
 0x40a   :  { %11966 = vst [vmem:[#allocation89_spill] sm:$0xff] %v9531_v62  ;;  %6658 = vpow2.f32 %v4153_v26  ;;  %v4334_v57 = vsel %vm104_vm2, %v9540_v22, 0.0  ;;  %v5055_v42 = vmul.f32 %v4927_v6, %v9552_v61  ;;  %v4873_v33 = vrot.slane %v9510_v14, 5 }
 0x40b   :  { %4323 = vadd.xlane.f32.xlu2 %v4322_v38  ;;  %v1050_v38 = vsel %vm104_vm2, %v991_v29, 0.0  ;;  %11968 = vst [vmem:[#allocation91_spill] sm:$0xff] %v9540_v22  ;;  %v1015_v26 = vmul.f32 %v11954_v31, %v887_v51  ;;  %v1023_v58 = vmul.f32 %v11955_v43, %v895_v54  ;;  %v804_v56 = vrot.slane %v9355_v24, 2 }
 0x40c   :  { %v9522_v16 = vpop.xlane.xlu0 %4212  ;;  %4326 = vadd.xlane.f32.xlu1 %v4325_v18  ;;  %v1051_v18 = vadd.f32 %v1050_v38, %v1049_v4  ;;  %v856_v4 = vperm.slane %v797_v49, 0  ;;  %v4869_v6 = vrot.slane %v9510_v14, 1  ;;  %v976_v51 = vmul.f32 %v11920_v21, %v848_v37 }
 0x40d   :  { %11963 = vst [vmem:[#allocation48_spill] sm:$0xff] %v9522_v16  ;;  %v5123_v54 = vsel %vm104_vm2, %v5055_v42, 0.0  ;;  %v1058_v62 = vsel %vm104_vm2, %v1023_v58, 0.0  ;;  %v864_v36 = vperm.slane %v804_v56, 0 }
 0x40e   :  { %v9527_v63 = vpop.xlane.xlu2 %4197  ;;  %v1053_v29 = vadd.f32 %v1052_v0, %v1051_v18  ;;  %v1054_v0 = vsel %vm104_vm2, %v1007_v32, 0.0  ;;  %v968_v18 = vmul.f32 %v11921_v15, %v840_v59  ;;  %v4930_v32 = vperm.slane %v4873_v33, 0 }
 0x40f   :  { %11965 = vst [vmem:[#allocation88_spill] sm:$0xff] %v9527_v63  ;;  %v9536_v17 = vpop.xlane.xlu1 %4200  ;;  %v984_v22 = vmul.f32 %v11924_v40, %v856_v4  ;;  %v4925_v59 = vperm.slane %v9510_v14, 0  ;;  %v4926_v42 = vperm.slane %v4869_v6, 0  ;;  %v818_v6 = vrot.slane %v9435_v52, 2  ;;  %v9950_v63 = vld [vmem:[#allocation6 + $0x18] sm:$0xff] }
 0x410   :  { %11967 = vst [vmem:[#allocation90_spill] sm:$0xff] %v9536_v17  ;;  %v1055_v49 = vadd.f32 %v1054_v0, %v1053_v29  ;;  %v1056_v0 = vsel %vm104_vm2, %v1015_v26, 0.0  ;;  %v1060_v4 = vsel %vm104_vm2, %v968_v18, 0.0  ;;  %v1061_v26 = vsel %vm104_vm2, %v976_v51, 0.0 }
 0x411   :  { %4347 = vadd.xlane.f32.xlu0 %v4346_v23  ;;  %v9563_v23 = vpop.eup %6656  ;;  %v5053_v56 = vmul.f32 %v4925_v59, %v9552_v61  ;;  %v784_v18 = vrot.slane %v9322_v41, 3  ;;  %v992_v51 = vmul.f32 %v11940_v27, %v864_v36  ;;  %v798_v36 = vrot.slane %v9329_v7, 3 }
 0x412   :  { %11971 = vst [vmem:[#allocation94_spill] sm:$0xff] %v9563_v23  ;;  %v9571_v35 = vpop.eup %6658  ;;  %v4340_v29 = vsel %vm104_vm2, %v9563_v23, 0.0  ;;  %v1057_v3 = vadd.f32 %v1056_v0, %v1055_v49  ;;  %v5058_v23 = vmul.f32 %v4930_v32, %v9552_v61  ;;  %v4871_v49 = vrot.slane %v9510_v14, 3 }
 0x413   :  { %4332 = vadd.xlane.f32.xlu2 %v4331_v45  ;;  %v811_v45 = vrot.slane %v9379_v39, 2  ;;  %11973 = vst [vmem:[#allocation96_spill] sm:$0xff] %v9571_v35  ;;  %v4343_v37 = vsel %vm104_vm2, %v9571_v35, 0.0  ;;  %v825_v35 = vrot.slane %v9451_v48, 2  ;;  %v5117_v41 = vsel %vm104_vm2, %v5053_v56, 0.0 }
 0x414   :  { %v9554_v38 = vpop.xlane.xlu0 %4221  ;;  %4335 = vadd.xlane.f32.xlu1 %v4334_v57  ;;  %v9587_v2 = vadd.f32 %v1058_v62, %v1057_v3  ;;  %v5054_v3 = vmul.f32 %v4926_v42, %v9552_v61  ;;  %v4872_v62 = vrot.slane %v9510_v14, 4  ;;  %v5132_v59 = vsel %vm104_vm2, %v5058_v23, 0.0 }
 0x415   :  { %11969 = vst [vmem:[#allocation92_spill] sm:$0xff] %v9554_v38  ;;  %v872_v33 = vperm.slane %v811_v45, 0  ;;  %v1063_v45 = vsel %vm104_vm2, %v984_v22, 0.0  ;;  %v880_v42 = vperm.slane %v818_v6, 0  ;;  %v841_v28 = vperm.slane %v784_v18, 0 }
 0x416   :  { %v9558_v19 = vpop.xlane.xlu2 %4206  ;;  %v5120_v23 = vsel %vm104_vm2, %v5054_v3, 0.0  ;;  %v888_v6 = vperm.slane %v825_v35, 0  ;;  %v4874_v3 = vrot.slane %v9510_v14, 6 }
 0x417   :  { %11970 = vst [vmem:[#allocation93_spill] sm:$0xff] %v9558_v19  ;;  %v9567_v57 = vpop.xlane.xlu1 %4209  ;;  %v1000_v32 = vmul.f32 %v11941_v10, %v872_v33  ;;  %v4929_v33 = vperm.slane %v4872_v62, 0 }
 0x418   :  { %11972 = vst [vmem:[#allocation95_spill] sm:$0xff] %v9567_v57 }
 0x419   :  { %5124 = vadd.xlane.f32.xlu0 %v5123_v54  ;;  %v5057_v35 = vmul.f32 %v4929_v33, %v9552_v61 }
 0x41b   :  { %4341 = vadd.xlane.f32.xlu2 %v4340_v29  ;;  %v1062_v29 = vadd.f32 %v1061_v26, %v1060_v4  ;;  %v4928_v4 = vperm.slane %v4871_v49, 0  ;;  %v832_v26 = vrot.slane %v9453_v25, 2  ;;  %v4878_v49 = vrot.slane %v9587_v2, 3 }
 0x41c   :  { %v9584_v54 = vpop.xlane.xlu0 %4230  ;;  %4344 = vadd.xlane.f32.xlu1 %v4343_v37  ;;  %v4933_v37 = vperm.slane %v9587_v2, 0 }
 0x41d   :  { %11974 = vst [vmem:[#allocation97_spill] sm:$0xff] %v9584_v54  ;;  %v1064_v22 = vadd.f32 %v1063_v45, %v1062_v29  ;;  %v1067_v45 = vsel %vm104_vm2, %v1000_v32, 0.0  ;;  %v5056_v7 = vmul.f32 %v4928_v4, %v9552_v61  ;;  %v896_v62 = vperm.slane %v832_v26, 0 }
 0x41e   :  { %v9590_v58 = vpop.xlane.xlu2 %4215  ;;  %v5061_v56 = vmul.f32 %v4933_v37, %v9552_v61  ;;  %v805_v32 = vrot.slane %v9355_v24, 3  ;;  %v857_v37 = vperm.slane %v798_v36, 0  ;;  %v4936_v4 = vperm.slane %v4878_v49, 0 }
 0x41f   :  { %11975 = vst [vmem:[#allocation98_spill] sm:$0xff] %v9590_v58  ;;  %v9597_v0 = vpop.xlane.xlu1 %4218  ;;  %v1016_v26 = vmul.f32 %v11954_v31, %v888_v6  ;;  %v4931_v24 = vperm.slane %v4874_v3, 0  ;;  %v4881_v3 = vrot.slane %v9587_v2, 6 }
 0x420   :  { %11976 = vst [vmem:[#allocation99_spill] sm:$0xff] %v9597_v0  ;;  %v1065_v0 = vsel %vm104_vm2, %v992_v51, 0.0  ;;  %v1008_v51 = vmul.f32 %v11949_v8, %v880_v42  ;;  %v812_v42 = vrot.slane %v9379_v39, 3  ;;  %v985_v6 = vmul.f32 %v11924_v40, %v857_v37 }
 0x421   :  { %5133 = vadd.xlane.f32.xlu0 %v5132_v59  ;;  %v1066_v60 = vadd.f32 %v1065_v0, %v1064_v22  ;;  %v849_v59 = vperm.slane %v791_v11, 0  ;;  %v4875_v0 = vrot.slane %v9510_v14, 7  ;;  %v5141_v22 = vsel %vm104_vm2, %v5061_v56, 0.0 }
 0x422   :  { %v5126_v11 = vsel %vm104_vm2, %v5056_v7, 0.0  ;;  %v1069_v36 = vsel %vm104_vm2, %v1008_v51, 0.0  ;;  %v865_v14 = vperm.slane %v805_v32, 0  ;;  %v5129_v56 = vsel %vm104_vm2, %v5057_v35, 0.0 }
 0x423   :  { %5118 = vadd.xlane.f32.xlu2 %v5117_v41  ;;  %v1068_v41 = vadd.f32 %v1067_v45, %v1066_v60  ;;  %v977_v45 = vmul.f32 %v11920_v21, %v849_v59  ;;  %v4932_v49 = vperm.slane %v4875_v0, 0  ;;  %v5064_v7 = vmul.f32 %v4936_v4, %v9552_v61 }
 0x424   :  { %v9613_v29 = vpop.xlane.xlu0 %4239  ;;  %5121 = vadd.xlane.f32.xlu1 %v5120_v23  ;;  %v969_v23 = vmul.f32 %v11921_v15, %v841_v28  ;;  %v1024_v28 = vmul.f32 %v11955_v43, %v896_v62  ;;  %v1071_v62 = vsel %vm104_vm2, %v1016_v26, 0.0  ;;  %v5059_v32 = vmul.f32 %v4931_v24, %v9552_v61 }
 0x425   :  { %11977 = vst [vmem:[#allocation100_spill] sm:$0xff] %v9613_v29  ;;  %v1070_v33 = vadd.f32 %v1069_v36, %v1068_v41  ;;  %v4876_v41 = vrot.slane %v9587_v2, 1  ;;  %v873_v37 = vperm.slane %v812_v42, 0  ;;  %v5060_v4 = vmul.f32 %v4932_v49, %v9552_v61 }
 0x426   :  { %v9617_v18 = vpop.xlane.xlu2 %4224  ;;  %v1075_v51 = vsel %vm104_vm2, %v969_v23, 0.0  ;;  %v1073_v35 = vsel %vm104_vm2, %v1024_v28, 0.0  ;;  %v4877_v26 = vrot.slane %v9587_v2, 2  ;;  %v819_v23 = vrot.slane %v9435_v52, 3 }
 0x427   :  { %11978 = vst [vmem:[#allocation101_spill] sm:$0xff] %v9617_v18  ;;  %v9624_v29 = vpop.xlane.xlu1 %4227  ;;  %v1072_v0 = vadd.f32 %v1071_v62, %v1070_v33  ;;  %v1078_v36 = vsel %vm104_vm2, %v985_v6, 0.0  ;;  %v5150_v24 = vsel %vm104_vm2, %v5064_v7, 0.0  ;;  %v5135_v42 = vsel %vm104_vm2, %v5059_v32, 0.0 }
 0x428   :  { %11979 = vst [vmem:[#allocation102_spill] sm:$0xff] %v9624_v29  ;;  %v993_v33 = vmul.f32 %v11940_v27, %v865_v14  ;;  %v1001_v49 = vmul.f32 %v11941_v10, %v873_v37  ;;  %v826_v62 = vrot.slane %v9451_v48, 3  ;;  %v813_v6 = vrot.slane %v9379_v39, 4 }
 0x429   :  { %5142 = vadd.xlane.f32.xlu0 %v5141_v22  ;;  %v1076_v22 = vsel %vm104_vm2, %v977_v45, 0.0  ;;  %v4934_v45 = vperm.slane %v4876_v41, 0  ;;  %v5138_v7 = vsel %vm104_vm2, %v5060_v4, 0.0 }
 0x42a   :  { %v1077_v28 = vadd.f32 %v1076_v22, %v1075_v51  ;;  %v881_v51 = vperm.slane %v819_v23, 0  ;;  %v4879_v22 = vrot.slane %v9587_v2, 4  ;;  %v1082_v4 = vsel %vm104_vm2, %v1001_v49, 0.0 }
 0x42b   :  { %5127 = vadd.xlane.f32.xlu2 %v5126_v11  ;;  %v5062_v37 = vmul.f32 %v4934_v45, %v9552_v61  ;;  %v874_v23 = vperm.slane %v813_v6, 0 }
 0x42c   :  { %v9637_v60 = vpop.xlane.xlu0 %4248  ;;  %5130 = vadd.xlane.f32.xlu1 %v5129_v56  ;;  %v4939_v56 = vperm.slane %v4881_v3, 0  ;;  %v4935_v3 = vperm.slane %v4877_v26, 0  ;;  %v889_v26 = vperm.slane %v826_v62, 0  ;;  %v4937_v49 = vperm.slane %v4879_v22, 0 }
 0x42d   :  { %11980 = vst [vmem:[#allocation103_spill] sm:$0xff] %v9637_v60  ;;  %v827_v62 = vrot.slane %v9451_v48, 4 }
 0x42e   :  { %v9643_v59 = vpop.xlane.xlu2 %4233  ;;  %v5067_v32 = vmul.f32 %v4939_v56, %v9552_v61  ;;  %v4880_v56 = vrot.slane %v9587_v2, 5  ;;  %v1017_v6 = vmul.f32 %v11954_v31, %v889_v26  ;;  %v5065_v26 = vmul.f32 %v4937_v49, %v9552_v61 }
 0x42f   :  { %11981 = vst [vmem:[#allocation104_spill] sm:$0xff] %v9643_v59  ;;  %v9649_v11 = vpop.xlane.xlu1 %4236  ;;  %v9656_v59 = vadd.f32 %v1073_v35, %v1072_v0  ;;  %v833_v35 = vrot.slane %v9453_v25, 3 }
 0x430   :  { %11982 = vst [vmem:[#allocation105_spill] sm:$0xff] %v9649_v11  ;;  %v1079_v11 = vadd.f32 %v1078_v36, %v1077_v28  ;;  %v1080_v36 = vsel %vm104_vm2, %v993_v33, 0.0  ;;  %v5159_v45 = vsel %vm104_vm2, %v5067_v32, 0.0  ;;  %v5144_v33 = vsel %vm104_vm2, %v5062_v37, 0.0 }
 0x431   :  { %5151 = vadd.xlane.f32.xlu0 %v5150_v24  ;;  %v4883_v14 = vrot.slane %v9656_v59, 1  ;;  %v4886_v22 = vrot.slane %v9656_v59, 4 }
 0x432   :  { %v1081_v24 = vadd.f32 %v1080_v36, %v1079_v11  ;;  %v820_v11 = vrot.slane %v9435_v52, 4 }
 0x433   :  { %5136 = vadd.xlane.f32.xlu2 %v5135_v42  ;;  %v5063_v42 = vmul.f32 %v4935_v3, %v9552_v61  ;;  %v1002_v3 = vmul.f32 %v11941_v10, %v874_v23  ;;  %v4882_v23 = vrot.slane %v9587_v2, 7 }
 0x434   :  { %v9665_v0 = vpop.xlane.xlu0 %4257  ;;  %5139 = vadd.xlane.f32.xlu1 %v5138_v7  ;;  %v897_v7 = vperm.slane %v833_v35, 0  ;;  %v1083_v60 = vadd.f32 %v1082_v4, %v1081_v24 }
 0x435   :  { %11983 = vst [vmem:[#allocation106_spill] sm:$0xff] %v9665_v0  ;;  %v4942_v0 = vperm.slane %v4883_v14, 0  ;;  %v5147_v35 = vsel %vm104_vm2, %v5063_v42, 0.0  ;;  %v882_v42 = vperm.slane %v820_v11, 0  ;;  %v5153_v11 = vsel %vm104_vm2, %v5065_v26, 0.0 }
 0x436   :  { %v9669_v41 = vpop.xlane.xlu2 %4242  ;;  %v1025_v32 = vmul.f32 %v11955_v43, %v897_v7  ;;  %v1086_v7 = vsel %vm104_vm2, %v1017_v6, 0.0 }
 0x437   :  { %11984 = vst [vmem:[#allocation107_spill] sm:$0xff] %v9669_v41  ;;  %v9675_v28 = vpop.xlane.xlu1 %4245  ;;  %v1009_v41 = vmul.f32 %v11949_v8, %v881_v51  ;;  %v4938_v51 = vperm.slane %v4880_v56, 0  ;;  %v5070_v37 = vmul.f32 %v4942_v0, %v9552_v61  ;;  %v890_v56 = vperm.slane %v827_v62, 0 }
 0x438   :  { %11985 = vst [vmem:[#allocation108_spill] sm:$0xff] %v9675_v28  ;;  %v4889_v0 = vrot.slane %v9656_v59, 7  ;;  %v4940_v62 = vperm.slane %v4882_v23, 0  ;;  %v1010_v6 = vmul.f32 %v11949_v8, %v882_v42 }
 0x439   :  { %5160 = vadd.xlane.f32.xlu0 %v5159_v45  ;;  %v1084_v14 = vsel %vm104_vm2, %v1009_v41, 0.0  ;;  %v1097_v41 = vsel %vm104_vm2, %v1002_v3, 0.0  ;;  %v5168_v49 = vsel %vm104_vm2, %v5070_v37, 0.0  ;;  %v1018_v3 = vmul.f32 %v11954_v31, %v890_v56 }
 0x43a   :  { %v1085_v4 = vadd.f32 %v1084_v14, %v1083_v60  ;;  %v1088_v60 = vsel %vm104_vm2, %v1025_v32, 0.0  ;;  %v4945_v14 = vperm.slane %v4886_v22, 0  ;;  %v11989_v32 = vld [vmem:[#allocation17_spill] sm:$0xff]  ;;  %v4941_v22 = vperm.slane %v9656_v59, 0 }
 0x43b   :  { %5145 = vadd.xlane.f32.xlu2 %v5144_v33  ;;  %v5066_v33 = vmul.f32 %v4938_v51, %v9552_v61  ;;  %v4884_v51 = vrot.slane %v9656_v59, 2  ;;  %v4885_v56 = vrot.slane %v9656_v59, 3 }
 0x43c   :  { %v9689_v36 = vpop.xlane.xlu0 %4266  ;;  %5148 = vadd.xlane.f32.xlu1 %v5147_v35  ;;  %v834_v35 = vrot.slane %v9453_v25, 4  ;;  %v1087_v2 = vadd.f32 %v1086_v7, %v1085_v4  ;;  %v4948_v4 = vperm.slane %v4889_v0, 0  ;;  %v5073_v42 = vmul.f32 %v4945_v14, %v9552_v61 }
 0x43d   :  { %11986 = vst [vmem:[#allocation109_spill] sm:$0xff] %v9689_v36  ;;  %v828_v36 = vrot.slane %v9451_v48, 5  ;;  %v5156_v37 = vsel %vm104_vm2, %v5066_v33, 0.0  ;;  %v4887_v7 = vrot.slane %v9656_v59, 5  ;;  %v1099_v33 = vsel %vm104_vm2, %v1010_v6, 0.0 }
 0x43e   :  { %v9693_v24 = vpop.xlane.xlu2 %4251  ;;  %v898_v26 = vperm.slane %v834_v35, 0  ;;  %v814_v0 = vrot.slane %v9379_v39, 5  ;;  %v4943_v35 = vperm.slane %v4884_v51, 0  ;;  %v1101_v14 = vsel %vm104_vm2, %v1018_v3, 0.0 }
 0x43f   :  { %11987 = vst [vmem:[#allocation110_spill] sm:$0xff] %v9693_v24  ;;  %v9699_v45 = vpop.xlane.xlu1 %4254  ;;  %v1098_v24 = vadd.f32 %v1097_v41, %v11989_v32  ;;  %v4944_v6 = vperm.slane %v4885_v56, 0  ;;  %v4946_v28 = vperm.slane %v4887_v7, 0 }
 0x440   :  { %11988 = vst [vmem:[#allocation111_spill] sm:$0xff] %v9699_v45  ;;  %v9710_v45 = vadd.f32 %v1088_v60, %v1087_v2  ;;  %v4888_v60 = vrot.slane %v9656_v59, 6  ;;  %v5076_v59 = vmul.f32 %v4948_v4, %v9552_v61 }
 0x441   :  { %5169 = vadd.xlane.f32.xlu0 %v5168_v49  ;;  %v5068_v49 = vmul.f32 %v4940_v62, %v9552_v61  ;;  %v5177_v62 = vsel %vm104_vm2, %v5073_v42, 0.0 }
 0x442   :  { %v4891_v2 = vrot.slane %v9710_v45, 2  ;;  %v4947_v29 = vperm.slane %v4888_v60, 0  ;;  %v4890_v3 = vrot.slane %v9710_v45, 1  ;;  %v4892_v7 = vrot.slane %v9710_v45, 3 }
 0x443   :  { %5154 = vadd.xlane.f32.xlu2 %v5153_v11  ;;  %v1100_v11 = vadd.f32 %v1099_v33, %v1098_v24  ;;  %v5162_v51 = vsel %vm104_vm2, %v5068_v49, 0.0  ;;  %v4894_v24 = vrot.slane %v9710_v45, 5  ;;  %v875_v33 = vperm.slane %v814_v0, 0 }
 0x444   :  { %v9716_v23 = vpop.xlane.xlu0 %4275  ;;  %5157 = vadd.xlane.f32.xlu1 %v5156_v37  ;;  %v5069_v37 = vmul.f32 %v4941_v22, %v9552_v61  ;;  %v5071_v22 = vmul.f32 %v4943_v35, %v9552_v61  ;;  %v4951_v4 = vperm.slane %v4891_v2, 0  ;;  %v821_v60 = vrot.slane %v9435_v52, 5 }
 0x445   :  { %11990 = vst [vmem:[#allocation17_spill] sm:$0xff] %v9716_v23  ;;  %v891_v23 = vperm.slane %v828_v36, 0  ;;  %v1102_v36 = vadd.f32 %v1101_v14, %v1100_v11  ;;  %v5186_v0 = vsel %vm104_vm2, %v5076_v59, 0.0  ;;  %v5074_v35 = vmul.f32 %v4946_v28, %v9552_v61 }
 0x446   :  { %v9722_v41 = vpop.xlane.xlu2 %4260  ;;  %v5165_v42 = vsel %vm104_vm2, %v5069_v37, 0.0  ;;  %v5075_v2 = vmul.f32 %v4947_v29, %v9552_v61  ;;  %v4954_v14 = vperm.slane %v4894_v24, 0  ;;  %v4950_v37 = vperm.slane %v4890_v3, 0 }
 0x447   :  { %11991 = vst [vmem:[#allocation112_spill] sm:$0xff] %v9722_v41  ;;  %v9729_v32 = vpop.xlane.xlu1 %4263  ;;  %v1026_v41 = vmul.f32 %v11955_v43, %v898_v26  ;;  %v4949_v26 = vperm.slane %v9710_v45, 0  ;;  %v4952_v28 = vperm.slane %v4892_v7, 0  ;;  %v835_v29 = vrot.slane %v9453_v25, 5 }
 0x448   :  { %11992 = vst [vmem:[#allocation113_spill] sm:$0xff] %v9729_v32  ;;  %v5171_v32 = vsel %vm104_vm2, %v5071_v22, 0.0  ;;  %v1019_v24 = vmul.f32 %v11954_v31, %v891_v23  ;;  %v5183_v22 = vsel %vm104_vm2, %v5075_v2, 0.0 }
 0x449   :  { %5178 = vadd.xlane.f32.xlu0 %v5177_v62  ;;  %v1103_v56 = vsel %vm104_vm2, %v1026_v41, 0.0  ;;  %v5072_v62 = vmul.f32 %v4944_v6, %v9552_v61  ;;  %v4893_v41 = vrot.slane %v9710_v45, 4  ;;  %v5077_v59 = vmul.f32 %v4949_v26, %v9552_v61 }
 0x44a   :  { %v5082_v26 = vmul.f32 %v4954_v14, %v9552_v61  ;;  %v5080_v2 = vmul.f32 %v4952_v28, %v9552_v61  ;;  %v899_v14 = vperm.slane %v835_v29, 0 }
 0x44b   :  { %5163 = vadd.xlane.f32.xlu2 %v5162_v51  ;;  %v1003_v51 = vmul.f32 %v11941_v10, %v875_v33  ;;  %v5174_v3 = vsel %vm104_vm2, %v5072_v62, 0.0  ;;  %v5180_v33 = vsel %vm104_vm2, %v5074_v35, 0.0  ;;  %v9772_v23 = vsel %vm104_vm2, %v5077_v59, 0.0 }
 0x44c   :  { %v9744_v49 = vpop.xlane.xlu0 %4284  ;;  %5166 = vadd.xlane.f32.xlu1 %v5165_v42  ;;  %v5079_v42 = vmul.f32 %v4951_v4, %v9552_v61  ;;  %v815_v4 = vrot.slane %v9379_v39, 6  ;;  %v5204_v58 = vsel %vm104_vm2, %v5082_v26, 0.0 }
 0x44d   :  { %11993 = vst [vmem:[#allocation114_spill] sm:$0xff] %v9744_v49  ;;  %v9757_v49 = vadd.f32 %v1103_v56, %v1102_v36  ;;  %v5078_v36 = vmul.f32 %v4950_v37, %v9552_v61  ;;  %v4953_v56 = vperm.slane %v4893_v41, 0  ;;  %v1112_v7 = vsel %vm104_vm2, %v1003_v51, 0.0  ;;  %v11997_v51 = vld [vmem:[#allocation22_spill] sm:$0xff] }
 0x44e   :  { %v9750_v11 = vpop.xlane.xlu2 %4269  ;;  %v876_v59 = vperm.slane %v815_v4, 0  ;;  %v822_v4 = vrot.slane %v9435_v52, 6 }
 0x44f   :  { %11994 = vst [vmem:[#allocation115_spill] sm:$0xff] %v9750_v11  ;;  %v9759_v6 = vpop.xlane.xlu1 %4272  ;;  %v883_v11 = vperm.slane %v821_v60, 0  ;;  %v5195_v60 = vsel %vm104_vm2, %v5079_v42, 0.0  ;;  %v4957_v62 = vperm.slane %v9757_v49, 0  ;;  %v4899_v35 = vrot.slane %v9757_v49, 3 }
 0x450   :  { %11995 = vst [vmem:[#allocation116_spill] sm:$0xff] %v9759_v6  ;;  %v1113_v42 = vadd.f32 %v1112_v7, %v11997_v51  ;;  %v816_v6 = vrot.slane %v9379_v39, 7  ;;  %v9788_v28 = vsel %vm104_vm2, %v5078_v36, 0.0  ;;  %v5081_v29 = vmul.f32 %v4953_v56, %v9552_v61 }
 0x451   :  { %5187 = vadd.xlane.f32.xlu0 %v5186_v0  ;;  %v4895_v0 = vrot.slane %v9710_v45, 6  ;;  %v1011_v37 = vmul.f32 %v11949_v8, %v883_v11  ;;  %v4902_v11 = vrot.slane %v9757_v49, 6  ;;  %v9798_v39 = vsel %vm104_vm2, %v5080_v2, 0.0 }
 0x452   :  { %v1027_v36 = vmul.f32 %v11955_v43, %v899_v14  ;;  %v1004_v54 = vmul.f32 %v11941_v10, %v876_v59  ;;  %v823_v2 = vrot.slane %v9435_v52, 7 }
 0x453   :  { %5172 = vadd.xlane.f32.xlu2 %v5171_v32  ;;  %v4896_v32 = vrot.slane %v9710_v45, 7  ;;  %v4897_v45 = vrot.slane %v9757_v49, 1  ;;  %v4955_v26 = vperm.slane %v4895_v0, 0  ;;  %v1114_v51 = vsel %vm104_vm2, %v1011_v37, 0.0 }
 0x454   :  { %v9779_v41 = vpop.xlane.xlu0 %4293  ;;  %5175 = vadd.xlane.f32.xlu1 %v5174_v3  ;;  %v5085_v3 = vmul.f32 %v4957_v62, %v9552_v61  ;;  %v877_v62 = vperm.slane %v816_v6, 0  ;;  %v4963_v57 = vperm.slane %v4902_v11, 0  ;;  %v836_v37 = vrot.slane %v9453_v25, 6 }
 0x455   :  { %11996 = vst [vmem:[#allocation117_spill] sm:$0xff] %v9779_v41  ;;  %v4960_v41 = vperm.slane %v4899_v35, 0  ;;  %v4956_v56 = vperm.slane %v4896_v32, 0  ;;  %v9804_v35 = vsel %vm104_vm2, %v5081_v29, 0.0  ;;  %v4958_v14 = vperm.slane %v4897_v45, 0  ;;  %v9819_v45 = vld [vmem:[#allocation6 + $0x10] sm:$0xff] }
 0x456   :  { %v9784_v18 = vpop.xlane.xlu2 %4278  ;;  %v884_v32 = vperm.slane %v822_v4, 0  ;;  %v4898_v6 = vrot.slane %v9757_v49, 2  ;;  %v1118_v59 = vsel %vm104_vm2, %v1027_v36, 0.0  ;;  %v1005_v11 = vmul.f32 %v11941_v10, %v877_v62 }
 0x457   :  { %11998 = vst [vmem:[#allocation22_spill] sm:$0xff] %v9784_v18  ;;  %v9795_v7 = vpop.xlane.xlu1 %4281  ;;  %v1115_v18 = vadd.f32 %v1114_v51, %v1113_v42  ;;  %v5088_v0 = vmul.f32 %v4960_v41, %v9552_v61  ;;  %v5083_v42 = vmul.f32 %v4955_v26, %v9552_v61  ;;  %v5084_v52 = vmul.f32 %v4956_v56, %v9552_v61 }
 0x458   :  { %11999 = vst [vmem:[#allocation118_spill] sm:$0xff] %v9795_v7  ;;  %v829_v7 = vrot.slane %v9451_v48, 6  ;;  %v1127_v41 = vsel %vm104_vm2, %v1004_v54, 0.0  ;;  %v5091_v26 = vmul.f32 %v4963_v57, %v9552_v61  ;;  %v885_v36 = vperm.slane %v823_v2, 0  ;;  %v12003_v57 = vld [vmem:[#allocation24_spill] sm:$0xff] }
 0x459   :  { %5196 = vadd.xlane.f32.xlu0 %v5195_v60  ;;  %v1116_v60 = vsel %vm104_vm2, %v1019_v24, 0.0  ;;  %v830_v24 = vrot.slane %v9451_v48, 7  ;;  %v900_v56 = vperm.slane %v836_v37, 0  ;;  %v5213_v62 = vsel %vm104_vm2, %v5085_v3, 0.0 }
 0x45a   :  { %v892_v51 = vperm.slane %v829_v7, 0  ;;  %v1128_v7 = vadd.f32 %v1127_v41, %v12003_v57  ;;  %v9837_v48 = vsel %vm104_vm2, %v5083_v42, 0.0  ;;  %v9840_v2 = vsel %vm104_vm2, %v5084_v52, 0.0 }
 0x45b   :  { %5181 = vadd.xlane.f32.xlu2 %v5180_v33  ;;  %v1117_v33 = vadd.f32 %v1116_v60, %v1115_v18  ;;  %v1012_v18 = vmul.f32 %v11949_v8, %v884_v32  ;;  %v9833_v60 = vsel %vm104_vm2, %v5088_v0, 0.0  ;;  %v1172_v37 = vrot.slane %v9819_v45, 1 }
 0x45c   :  { %v9814_v29 = vpop.xlane.xlu0 %4302  ;;  %5184 = vadd.xlane.f32.xlu1 %v5183_v22  ;;  %v9845_v32 = vsel %vm104_vm2, %v5091_v26, 0.0  ;;  %v1020_v3 = vmul.f32 %v11954_v31, %v892_v51  ;;  %v893_v0 = vperm.slane %v830_v24, 0  ;;  %v1028_v52 = vmul.f32 %v11955_v43, %v900_v56  ;;  %v12004_v26 = vld [vmem:[#allocation32_spill] sm:$0xff] }
 0x45d   :  { %12000 = vst [vmem:[#allocation119_spill] sm:$0xff] %v9814_v29  ;;  %v5086_v29 = vmul.f32 %v4958_v14, %v9552_v61  ;;  %v9826_v22 = vadd.f32 %v1118_v59, %v1117_v33  ;;  %v1142_v14 = vsel %vm104_vm2, %v1005_v11, 0.0  ;;  %v1129_v33 = vsel %vm104_vm2, %v1012_v18, 0.0 }
 0x45e   :  { %v9821_v4 = vpop.xlane.xlu2 %4287  ;;  %v4900_v41 = vrot.slane %v9757_v49, 4  ;;  %v1130_v11 = vadd.f32 %v1129_v33, %v1128_v7  ;;  %v1143_v51 = vadd.f32 %v1142_v14, %v12004_v26  ;;  %v1175_v56 = vrot.slane %v9819_v45, 4 }
 0x45f   :  { %12001 = vst [vmem:[#allocation120_spill] sm:$0xff] %v9821_v4  ;;  %v9829_v54 = vpop.xlane.xlu1 %4290  ;;  %v4959_v4 = vperm.slane %v4898_v6, 0  ;;  %v1013_v6 = vmul.f32 %v11949_v8, %v885_v36  ;;  %v9851_v42 = vsel %vm104_vm2, %v5086_v29, 0.0  ;;  %v4904_v59 = vrot.slane %v9826_v22, 1 }
 0x460   :  { %12002 = vst [vmem:[#allocation121_spill] sm:$0xff] %v9829_v54  ;;  %v4907_v29 = vrot.slane %v9826_v22, 4  ;;  %v1231_v36 = vperm.slane %v1172_v37, 0  ;;  %v1131_v18 = vsel %vm104_vm2, %v1020_v3, 0.0  ;;  %v1021_v7 = vmul.f32 %v11954_v31, %v893_v0 }
 0x461   :  { %5205 = vadd.xlane.f32.xlu0 %v5204_v58  ;;  %v5087_v58 = vmul.f32 %v4959_v4, %v9552_v61  ;;  %v4903_v4 = vrot.slane %v9757_v49, 7  ;;  %v1144_v14 = vsel %vm104_vm2, %v1013_v6, 0.0  ;;  %v4966_v33 = vperm.slane %v4904_v59, 0 }
 0x462   :  { %v1133_v26 = vsel %vm104_vm2, %v1028_v52, 0.0  ;;  %v1145_v19 = vadd.f32 %v1144_v14, %v1143_v51  ;;  %v4969_v38 = vperm.slane %v4907_v29, 0  ;;  %v1359_v0 = vmul.f32 %v11924_v40, %v1231_v36 }
 0x463   :  { %5190 = vadd.xlane.f32.xlu2 %v9772_v23  ;;  %v4901_v23 = vrot.slane %v9757_v49, 5  ;;  %v9877_v54 = vsel %vm104_vm2, %v5087_v58, 0.0  ;;  %v1132_v49 = vadd.f32 %v1131_v18, %v1130_v11  ;;  %v1234_v6 = vperm.slane %v1175_v56, 0 }
 0x464   :  { %v9859_v24 = vpop.xlane.xlu0 %4311  ;;  %5193 = vadd.xlane.f32.xlu1 %v9788_v28  ;;  %v4965_v28 = vperm.slane %v9826_v22, 0  ;;  %v4964_v59 = vperm.slane %v4903_v4, 0  ;;  %v4910_v17 = vrot.slane %v9826_v22, 7  ;;  %v5094_v58 = vmul.f32 %v4966_v33, %v9552_v61 }
 0x465   :  { %12005 = vst [vmem:[#allocation24_spill] sm:$0xff] %v9859_v24  ;;  %v837_v24 = vrot.slane %v9453_v25, 7  ;;  %v4962_v3 = vperm.slane %v4901_v23, 0  ;;  %v9881_v52 = vadd.f32 %v1133_v26, %v1132_v49  ;;  %v1146_v25 = vsel %vm104_vm2, %v1021_v7, 0.0  ;;  %v9914_v49 = vld [vmem:[#allocation6 + $0x8] sm:$0xff] }
 0x466   :  { %v9865_v57 = vpop.xlane.xlu2 %4296  ;;  %v4905_v11 = vrot.slane %v9826_v22, 2  ;;  %v4908_v29 = vrot.slane %v9826_v22, 5  ;;  %v1147_v36 = vadd.f32 %v1146_v25, %v1145_v19  ;;  %v5097_v4 = vmul.f32 %v4969_v38, %v9552_v61 }
 0x467   :  { %12006 = vst [vmem:[#allocation32_spill] sm:$0xff] %v9865_v57  ;;  %v9874_v37 = vpop.xlane.xlu1 %4299  ;;  %v4961_v57 = vperm.slane %v4900_v41, 0  ;;  %v5093_v41 = vmul.f32 %v4965_v28, %v9552_v61  ;;  %v901_v51 = vperm.slane %v837_v24, 0  ;;  %v9897_v18 = vsel %vm104_vm2, %v1359_v0, 0.0 }
 0x468   :  { %12007 = vst [vmem:[#allocation122_spill] sm:$0xff] %v9874_v37  ;;  %v9900_v24 = vmul.f32 %v11924_v40, %v1234_v6  ;;  %v5092_v7 = vmul.f32 %v4964_v59, %v9552_v61  ;;  %v4972_v14 = vperm.slane %v4910_v17, 0  ;;  %v4912_v19 = vrot.slane %v9881_v52, 2 }
 0x469   :  { %5214 = vadd.xlane.f32.xlu0 %v5213_v62  ;;  %v5089_v23 = vmul.f32 %v4961_v57, %v9552_v61  ;;  %v4906_v62 = vrot.slane %v9826_v22, 3  ;;  %v4909_v33 = vrot.slane %v9826_v22, 6  ;;  %v9911_v38 = vsel %vm104_vm2, %v5093_v41, 0.0 }
 0x46a   :  { %v4967_v28 = vperm.slane %v4905_v11, 0  ;;  %v1029_v26 = vmul.f32 %v11955_v43, %v901_v51  ;;  %v4970_v6 = vperm.slane %v4908_v29, 0  ;;  %v4915_v22 = vrot.slane %v9881_v52, 5  ;;  %v9930_v11 = vld [vmem:[#allocation6] sm:$0xff] }
 0x46b   :  { %5199 = vadd.xlane.f32.xlu2 %v9798_v39  ;;  %v5090_v39 = vmul.f32 %v4962_v3, %v9552_v61  ;;  %v9919_v0 = vsel %vm104_vm2, %v5089_v23, 0.0  ;;  %v4968_v17 = vperm.slane %v4906_v62, 0  ;;  %v9926_v25 = vsel %vm104_vm2, %v5097_v4, 0.0 }
 0x46c   :  { %v9891_v56 = vpop.xlane.xlu0 %4320  ;;  %5202 = vadd.xlane.f32.xlu1 %v9804_v35  ;;  %v9908_v35 = vsel %vm104_vm2, %v5094_v58, 0.0  ;;  %v4911_v58 = vrot.slane %v9881_v52, 1  ;;  %v4913_v41 = vrot.slane %v9881_v52, 3  ;;  %v5100_v51 = vmul.f32 %v4972_v14, %v9552_v61 }
 0x46d   :  { %12008 = vst [vmem:[#allocation123_spill] sm:$0xff] %v9891_v56  ;;  %v9923_v59 = vsel %vm104_vm2, %v5090_v39, 0.0  ;;  %v4975_v23 = vperm.slane %v4912_v19, 0  ;;  %v4971_v62 = vperm.slane %v4909_v33, 0  ;;  %v4914_v29 = vrot.slane %v9881_v52, 4 }
 0x46e   :  { %v9902_v57 = vpop.xlane.xlu2 %4305  ;;  %v5095_v39 = vmul.f32 %v4967_v28, %v9552_v61  ;;  %v1148_v4 = vsel %vm104_vm2, %v1029_v26, 0.0  ;;  %v5096_v56 = vmul.f32 %v4968_v17, %v9552_v61  ;;  %v4978_v37 = vperm.slane %v4915_v22, 0 }
 0x46f   :  { %12009 = vst [vmem:[#allocation124_spill] sm:$0xff] %v9902_v57  ;;  %v9916_v3 = vpop.xlane.xlu1 %4308  ;;  %v1165_v57 = vrot.slane %v9914_v49, 1  ;;  %v4973_v14 = vperm.slane %v9881_v52, 0  ;;  %v4974_v33 = vperm.slane %v4911_v58, 0  ;;  %v4976_v28 = vperm.slane %v4913_v41, 0 }
 0x470   :  { %12010 = vst [vmem:[#allocation125_spill] sm:$0xff] %v9916_v3  ;;  %v4916_v3 = vrot.slane %v9881_v52, 6  ;;  %v1158_v26 = vrot.slane %v9930_v11, 1  ;;  %v5103_v17 = vmul.f32 %v4975_v23, %v9552_v61  ;;  %v9956_v22 = vadd.f32 %v1148_v4, %v1147_v36 }
 0x471   :  { %5223 = vadd.xlane.f32.xlu0 %v9833_v60  ;;  %v5098_v60 = vmul.f32 %v4970_v6, %v9552_v61  ;;  %v5099_v6 = vmul.f32 %v4971_v62, %v9552_v61  ;;  %v1223_v41 = vperm.slane %v1165_v57, 0  ;;  %v9967_v46 = vsel %vm104_vm2, %v5096_v56, 0.0 }
 0x472   :  { %v4979_v58 = vperm.slane %v4916_v3, 0  ;;  %v5106_v36 = vmul.f32 %v4978_v37, %v9552_v61  ;;  %v5101_v62 = vmul.f32 %v4973_v14, %v9552_v61  ;;  %v1179_v57 = vrot.slane %v9950_v63, 1 }
 0x473   :  { %5208 = vadd.xlane.f32.xlu2 %v9837_v48  ;;  %v9947_v48 = vsel %vm104_vm2, %v5092_v7, 0.0  ;;  %v9962_v7 = vsel %vm104_vm2, %v5095_v39, 0.0  ;;  %v9970_v23 = vsel %vm104_vm2, %v5098_v60, 0.0  ;;  %v5104_v39 = vmul.f32 %v4976_v28, %v9552_v61 }
 0x474   :  { %v9943_v19 = vpop.xlane.xlu0 %4329  ;;  %5211 = vadd.xlane.f32.xlu1 %v9840_v2  ;;  %v9959_v2 = vsel %vm104_vm2, %v5100_v51, 0.0  ;;  %v5102_v51 = vmul.f32 %v4974_v33, %v9552_v61  ;;  %v1215_v3 = vperm.slane %v1158_v26, 0  ;;  %v9981_v56 = vsel %vm104_vm2, %v5103_v17, 0.0 }
 0x475   :  { %12011 = vst [vmem:[#allocation126_spill] sm:$0xff] %v9943_v19  ;;  %v4977_v19 = vperm.slane %v4914_v29, 0  ;;  %v9974_v29 = vld [vmem:[#allocation6 + $0x20] sm:$0xff]  ;;  %v9984_v4 = vsel %vm104_vm2, %v5099_v6, 0.0  ;;  %v4920_v60 = vrot.slane %v9956_v22, 3  ;;  %v4981_v14 = vperm.slane %v9956_v22, 0 }
 0x476   :  { %v9952_v16 = vpop.xlane.xlu2 %4314  ;;  %v5107_v33 = vmul.f32 %v4979_v58, %v9552_v61  ;;  %v1186_v28 = vrot.slane %v9974_v29, 1  ;;  %v9994_v26 = vsel %vm104_vm2, %v5106_v36, 0.0  ;;  %v9997_v17 = vsel %vm104_vm2, %v5101_v62, 0.0 }
 0x477   :  { %12012 = vst [vmem:[#allocation127_spill] sm:$0xff] %v9952_v16  ;;  %v9964_v47 = vpop.xlane.xlu1 %4317  ;;  %v5105_v37 = vmul.f32 %v4977_v19, %v9552_v61  ;;  %v4917_v19 = vrot.slane %v9881_v52, 7  ;;  %v4923_v6 = vrot.slane %v9956_v22, 6  ;;  %v10008_v58 = vsel %vm104_vm2, %v5104_v39, 0.0 }
 0x478   :  { %12013 = vst [vmem:[#allocation128_spill] sm:$0xff] %v9964_v47  ;;  %v1239_v36 = vperm.slane %v1179_v57, 0  ;;  %v1343_v62 = vmul.f32 %v11921_v15, %v1215_v3  ;;  %v4984_v20 = vperm.slane %v4920_v60, 0  ;;  %v5109_v39 = vmul.f32 %v4981_v14, %v9552_v61 }
 0x479   :  { %5232 = vadd.xlane.f32.xlu0 %v9845_v32  ;;  %v1351_v32 = vmul.f32 %v11920_v21, %v1223_v41  ;;  %v10010_v41 = vld [vmem:[#allocation6 + $0x28] sm:$0xff]  ;;  %v10016_v52 = vsel %vm104_vm2, %v5105_v37, 0.0  ;;  %v10024_v5 = vsel %vm104_vm2, %v5107_v33, 0.0  ;;  %v1247_v57 = vperm.slane %v1186_v28, 0 }
 0x47a   :  { %v4987_v37 = vperm.slane %v4923_v6, 0  ;;  %v1193_v60 = vrot.slane %v10010_v41, 1  ;;  %v4921_v30 = vrot.slane %v9956_v22, 4  ;;  %v1367_v14 = vmul.f32 %v11940_v27, %v1239_v36 }
 0x47b   :  { %5217 = vadd.xlane.f32.xlu2 %v9851_v42  ;;  %v10005_v42 = vsel %vm104_vm2, %v5102_v51, 0.0  ;;  %v10020_v51 = vld [vmem:[#allocation6 + $0x30] sm:$0xff]  ;;  %v1422_v3 = vsel %vm104_vm2, %v1351_v32, 0.0  ;;  %v1421_v33 = vsel %vm104_vm2, %v1343_v62, 0.0  ;;  %v1168_v28 = vrot.slane %v9914_v49, 4 }
 0x47c   :  { %v10001_v47 = vpop.xlane.xlu0 %4338  ;;  %5220 = vadd.xlane.f32.xlu1 %v9877_v54  ;;  %v4919_v54 = vrot.slane %v9956_v22, 2  ;;  %v1200_v12 = vrot.slane %v10020_v51, 1  ;;  %v5112_v32 = vmul.f32 %v4984_v20, %v9552_v61  ;;  %v10041_v53 = vsel %vm104_vm2, %v5109_v39, 0.0 }
 0x47d   :  { %12014 = vst [vmem:[#allocation129_spill] sm:$0xff] %v10001_v47  ;;  %v4918_v47 = vrot.slane %v9956_v22, 1  ;;  %v1375_v50 = vmul.f32 %v11941_v10, %v1247_v57  ;;  %v4922_v36 = vrot.slane %v9956_v22, 5  ;;  %v1161_v62 = vrot.slane %v9930_v11, 4 }
 0x47e   :  { %v10013_v16 = vpop.xlane.xlu2 %4323  ;;  %v4983_v6 = vperm.slane %v4919_v54, 0  ;;  %v1207_v61 = vrot.slane %v10031_v55, 1  ;;  %v1263_v39 = vperm.slane %v1200_v12, 0  ;;  %v1426_v57 = vsel %vm104_vm2, %v1367_v14, 0.0 }
 0x47f   :  { %12015 = vst [vmem:[#allocation130_spill] sm:$0xff] %v10013_v16  ;;  %v10027_v9 = vpop.xlane.xlu1 %4326  ;;  %v4980_v16 = vperm.slane %v4917_v19, 0  ;;  %v4982_v19 = vperm.slane %v4918_v47, 0  ;;  %v10061_v1 = vsel %vm104_vm2, %v5112_v32, 0.0  ;;  %v4986_v44 = vperm.slane %v4922_v36, 0 }
 0x480   :  { %12016 = vst [vmem:[#allocation131_spill] sm:$0xff] %v10027_v9  ;;  %v1423_v9 = vadd.f32 %v1422_v3, %v1421_v33  ;;  %v4985_v3 = vperm.slane %v4921_v30, 0  ;;  %v1226_v33 = vperm.slane %v1168_v28, 0  ;;  %v1182_v12 = vrot.slane %v9950_v63, 4 }
 0x481   :  { %5241 = vadd.xlane.f32.xlu0 %v9908_v35  ;;  %v10049_v35 = vld [vmem:[%s11532_s5] sm:$0xff]  ;;  %v1271_v28 = vperm.slane %v1207_v61, 0  ;;  %v1189_v36 = vrot.slane %v9974_v29, 4 }
 0x482   :  { %v5108_v20 = vmul.f32 %v10049_v35, %v4980_v16  ;;  %v5115_v47 = vmul.f32 %v10049_v35, %v4987_v37  ;;  %v5110_v16 = vmul.f32 %v10049_v35, %v4982_v19  ;;  %v5111_v37 = vmul.f32 %v10049_v35, %v4983_v6 }
 0x483   :  { %5226 = vadd.xlane.f32.xlu2 %v9919_v0  ;;  %v1255_v0 = vperm.slane %v1193_v60, 0  ;;  %v1425_v60 = vadd.f32 %v9897_v18, %v1423_v9  ;;  %v1391_v9 = vmul.f32 %v11954_v31, %v1263_v39  ;;  %v1354_v18 = vmul.f32 %v11920_v21, %v1226_v33 }
 0x484   :  { %v10054_v54 = vpop.xlane.xlu0 %4347  ;;  %5229 = vadd.xlane.f32.xlu1 %v9923_v59  ;;  %v1218_v59 = vperm.slane %v1161_v62, 0  ;;  %v10071_v30 = vsel %vm104_vm2, %v5108_v20, 0.0  ;;  %v10075_v19 = vsel %vm104_vm2, %v5115_v47, 0.0  ;;  %v1196_v62 = vrot.slane %v10010_v41, 4 }
 0x485   :  { %12017 = vst [vmem:[#allocation132_spill] sm:$0xff] %v10054_v54  ;;  %v1428_v54 = vsel %vm104_vm2, %v1375_v50, 0.0  ;;  %v1383_v32 = vmul.f32 %v11949_v8, %v1255_v0  ;;  %v5113_v50 = vmul.f32 %v10049_v35, %v4985_v3  ;;  %v1203_v20 = vrot.slane %v10020_v51, 4 }
 0x486   :  { %v10058_v34 = vpop.xlane.xlu2 %4332  ;;  %v5114_v47 = vmul.f32 %v10049_v35, %v4986_v44  ;;  %v1242_v61 = vperm.slane %v1182_v12, 0  ;;  %v1346_v0 = vmul.f32 %v11921_v15, %v1218_v59  ;;  %v1222_v39 = vperm.slane %v9914_v49, 0 }
 0x487   :  { %12018 = vst [vmem:[#allocation133_spill] sm:$0xff] %v10058_v34  ;;  %v10068_v14 = vpop.xlane.xlu1 %4335  ;;  %v1427_v34 = vadd.f32 %v1426_v57, %v1425_v60  ;;  %v10089_v57 = vsel %vm104_vm2, %v5110_v16, 0.0  ;;  %v1432_v44 = vsel %vm104_vm2, %v1391_v9, 0.0  ;;  %v1467_v33 = vsel %vm104_vm2, %v1354_v18, 0.0 }
 0x488   :  { %12019 = vst [vmem:[#allocation134_spill] sm:$0xff] %v10068_v14  ;;  %v1214_v16 = vperm.slane %v9930_v11, 0  ;;  %v1250_v12 = vperm.slane %v1189_v36, 0  ;;  %v1258_v59 = vperm.slane %v1196_v62, 0  ;;  %v1466_v9 = vsel %vm104_vm2, %v1346_v0, 0.0 }
 0x489   :  { %5250 = vadd.xlane.f32.xlu0 %v9926_v25  ;;  %v1429_v6 = vadd.f32 %v1428_v54, %v1427_v34  ;;  %v10092_v34 = vsel %vm104_vm2, %v5111_v37, 0.0  ;;  %v1399_v25 = vmul.f32 %v11955_v43, %v1271_v28  ;;  %v1430_v54 = vsel %vm104_vm2, %v1383_v32, 0.0 }
 0x48a   :  { %v1266_v28 = vperm.slane %v1203_v20, 0  ;;  %v10108_v32 = vsel %vm104_vm2, %v5114_v47, 0.0  ;;  %v1468_v13 = vadd.f32 %v1467_v33, %v1466_v9  ;;  %v4924_v36 = vrot.slane %v9956_v22, 7 }
 0x48b   :  { %5235 = vadd.xlane.f32.xlu2 %v9947_v48  ;;  %v10101_v48 = vsel %vm104_vm2, %v5113_v50, 0.0  ;;  %v1431_v37 = vadd.f32 %v1430_v54, %v1429_v6  ;;  %v1350_v50 = vmul.f32 %v11920_v21, %v1222_v39  ;;  %v1171_v6 = vrot.slane %v9914_v49, 7 }
 0x48c   :  { %v10096_v3 = vpop.xlane.xlu0 %5124  ;;  %5238 = vadd.xlane.f32.xlu1 %v9911_v38  ;;  %v1370_v38 = vmul.f32 %v11940_v27, %v1242_v61  ;;  %v1230_v62 = vperm.slane %v9819_v45, 0  ;;  %v1238_v20 = vperm.slane %v9950_v63, 0  ;;  %v1342_v47 = vmul.f32 %v11921_v15, %v1214_v16 }
 0x48d   :  { %12020 = vst [vmem:[#allocation135_spill] sm:$0xff] %v10096_v3  ;;  %v1433_v18 = vadd.f32 %v1432_v44, %v1431_v37  ;;  %v1434_v3 = vsel %vm104_vm2, %v1399_v25, 0.0  ;;  %v1378_v61 = vmul.f32 %v11941_v10, %v1250_v12  ;;  %v1386_v0 = vmul.f32 %v11949_v8, %v1258_v59 }
 0x48e   :  { %v10105_v60 = vpop.xlane.xlu2 %4341  ;;  %v1394_v39 = vmul.f32 %v11954_v31, %v1266_v28  ;;  %v1164_v25 = vrot.slane %v9930_v11, 7  ;;  %v1469_v22 = vsel %vm104_vm2, %v9900_v24, 0.0  ;;  %v1246_v44 = vperm.slane %v9974_v29, 0 }
 0x48f   :  { %12021 = vst [vmem:[#allocation136_spill] sm:$0xff] %v10105_v60  ;;  %v10113_v14 = vpop.xlane.xlu1 %4344  ;;  %v1435_v54 = vadd.f32 %v1434_v3, %v1433_v18  ;;  %v1407_v33 = vsel %vm104_vm2, %v1350_v50, 0.0  ;;  %v1470_v16 = vadd.f32 %v1469_v22, %v1468_v13  ;;  %v1471_v37 = vsel %vm104_vm2, %v1370_v38, 0.0 }
 0x490   :  { %12022 = vst [vmem:[#allocation137_spill] sm:$0xff] %v10113_v14  ;;  %v1229_v12 = vperm.slane %v1171_v6, 0  ;;  %v4988_v28 = vperm.slane %v4924_v36, 0  ;;  %v1366_v3 = vmul.f32 %v11940_v27, %v1238_v20  ;;  %v1406_v24 = vsel %vm104_vm2, %v1342_v47, 0.0 }
 0x491   :  { %5259 = vadd.xlane.f32.xlu0 %v9959_v2  ;;  %v1210_v2 = vrot.slane %v10031_v55, 4  ;;  %v1408_v50 = vadd.f32 %v1407_v33, %v1406_v24  ;;  %v1178_v18 = vrot.slane %v9819_v45, 7  ;;  %v1185_v13 = vrot.slane %v9950_v63, 7 }
 0x492   :  { %v1221_v38 = vperm.slane %v1164_v25, 0  ;;  %v5310_v6 = vmul.f32 %v10049_v35, %v1435_v54  ;;  %v1475_v22 = vsel %vm104_vm2, %v1386_v0, 0.0  ;;  %v1374_v36 = vmul.f32 %v11941_v10, %v1246_v44 }
 0x493   :  { %5244 = vadd.xlane.f32.xlu2 %v9962_v7  ;;  %v1358_v7 = vmul.f32 %v11924_v40, %v1230_v62  ;;  %v1274_v20 = vperm.slane %v1210_v2, 0  ;;  %v1472_v47 = vadd.f32 %v1471_v37, %v1470_v16  ;;  %v1473_v14 = vsel %vm104_vm2, %v1378_v61, 0.0 }
 0x494   :  { %v10133_v59 = vpop.xlane.xlu0 %5133  ;;  %5247 = vadd.xlane.f32.xlu1 %v9967_v46  ;;  %v1254_v46 = vperm.slane %v10010_v41, 0  ;;  %v1357_v33 = vmul.f32 %v11920_v21, %v1229_v12  ;;  %v5116_v24 = vmul.f32 %v10049_v35, %v4988_v28  ;;  %v1411_v54 = vsel %vm104_vm2, %v1366_v3, 0.0 }
 0x495   :  { %12023 = vst [vmem:[#allocation138_spill] sm:$0xff] %v10133_v59  ;;  %v1409_v25 = vsel %vm104_vm2, %v1358_v7, 0.0  ;;  %v1199_v0 = vrot.slane %v10010_v41, 7  ;;  %v1237_v44 = vperm.slane %v1178_v18, 0  ;;  %v1245_v59 = vperm.slane %v1185_v13, 0 }
 0x496   :  { %v10139_v9 = vpop.xlane.xlu2 %5118  ;;  %v1410_v60 = vadd.f32 %v1409_v25, %v1408_v50  ;;  %v1349_v2 = vmul.f32 %v11921_v15, %v1221_v38  ;;  %v1474_v61 = vadd.f32 %v1473_v14, %v1472_v47  ;;  %v1382_v16 = vmul.f32 %v11949_v8, %v1254_v46 }
 0x497   :  { %v10147_v62 = vpop.xlane.xlu1 %5121  ;;  %v1413_v37 = vsel %vm104_vm2, %v1374_v36, 0.0  ;;  %v1166_v12 = vrot.slane %v9914_v49, 2  ;;  %v1262_v28 = vperm.slane %v10020_v51, 0  ;;  %v1192_v3 = vrot.slane %v9974_v29, 7 }
 0x498   :  { %v1412_v7 = vadd.f32 %v1411_v54, %v1410_v60  ;;  %v1477_v14 = vsel %vm104_vm2, %v1394_v39, 0.0  ;;  %v1261_v18 = vperm.slane %v1199_v0, 0  ;;  %v1159_v13 = vrot.slane %v9930_v11, 2 }
 0x499   :  { %5268 = vadd.xlane.f32.xlu0 %v9981_v56  ;;  %v1512_v56 = vsel %vm104_vm2, %v1357_v33, 0.0  ;;  %v1365_v60 = vmul.f32 %v11924_v40, %v1237_v44  ;;  %v1373_v36 = vmul.f32 %v11940_v27, %v1245_v59  ;;  %v1511_v47 = vsel %vm104_vm2, %v1349_v2, 0.0 }
 0x49a   :  { %v1414_v46 = vadd.f32 %v1413_v37, %v1412_v7  ;;  %v1402_v33 = vmul.f32 %v11955_v43, %v1274_v20  ;;  %v1513_v25 = vadd.f32 %v1512_v56, %v1511_v47  ;;  %v10181_v39 = vsel %vm104_vm2, %v5116_v24, 0.0 }
 0x49b   :  { %5253 = vadd.xlane.f32.xlu2 %v9970_v23  ;;  %v10168_v23 = vsel %vm104_vm2, %v5310_v6, 0.0  ;;  %v1224_v6 = vperm.slane %v1166_v12, 0  ;;  %v1390_v0 = vmul.f32 %v11954_v31, %v1262_v28  ;;  %v1415_v37 = vsel %vm104_vm2, %v1382_v16, 0.0 }
 0x49c   :  { %v10164_v50 = vpop.xlane.xlu0 %5142  ;;  %5256 = vadd.xlane.f32.xlu1 %v9984_v4  ;;  %v1476_v4 = vadd.f32 %v1475_v22, %v1474_v61  ;;  %v1253_v7 = vperm.slane %v1192_v3, 0  ;;  %v1173_v59 = vrot.slane %v9819_v45, 2  ;;  %v1180_v2 = vrot.slane %v9950_v63, 2 }
 0x49d   :  { %v1416_v22 = vadd.f32 %v1415_v37, %v1414_v46  ;;  %v1389_v20 = vmul.f32 %v11949_v8, %v1261_v18  ;;  %v1514_v61 = vsel %vm104_vm2, %v1365_v60, 0.0  ;;  %v1516_v24 = vsel %vm104_vm2, %v1373_v36, 0.0 }
 0x49e   :  { %v10172_v38 = vpop.xlane.xlu2 %5127  ;;  %v1478_v44 = vadd.f32 %v1477_v14, %v1476_v4  ;;  %v1479_v16 = vsel %vm104_vm2, %v1402_v33, 0.0  ;;  %v1515_v12 = vadd.f32 %v1514_v61, %v1513_v25  ;;  %v1187_v28 = vrot.slane %v9974_v29, 2 }
 0x49f   :  { %12024 = vst [vmem:[#allocation139_spill] sm:$0xff] %v10172_v38  ;;  %v10178_v54 = vpop.xlane.xlu1 %5130  ;;  %v1216_v38 = vperm.slane %v1159_v13, 0  ;;  %v1352_v3 = vmul.f32 %v11920_v21, %v1224_v6  ;;  %v1270_v56 = vperm.slane %v10031_v55, 0  ;;  %v1206_v14 = vrot.slane %v10020_v51, 7 }
 0x4a0   :  { %v1381_v18 = vmul.f32 %v11941_v10, %v1253_v7  ;;  %v1232_v46 = vperm.slane %v1173_v59, 0  ;;  %v1240_v60 = vperm.slane %v1180_v2, 0  ;;  %v1480_v33 = vadd.f32 %v1479_v16, %v1478_v44 }
 0x4a1   :  { %5277 = vadd.xlane.f32.xlu0 %v9994_v26  ;;  %v1417_v26 = vsel %vm104_vm2, %v1390_v0, 0.0  ;;  %v1344_v36 = vmul.f32 %v11921_v15, %v1216_v38  ;;  %v1517_v4 = vadd.f32 %v1516_v24, %v1515_v12  ;;  %v1520_v25 = vsel %vm104_vm2, %v1389_v20, 0.0 }
 0x4a2   :  { %v1167_v6 = vrot.slane %v9914_v49, 3  ;;  %v1418_v0 = vadd.f32 %v1417_v26, %v1416_v22  ;;  %v1213_v37 = vrot.slane %v10031_v55, 7  ;;  %v1248_v7 = vperm.slane %v1187_v28, 0 }
 0x4a3   :  { %5262 = vadd.xlane.f32.xlu2 %v9997_v17  ;;  %v1194_v17 = vrot.slane %v10010_v41, 2  ;;  %v1398_v59 = vmul.f32 %v11955_v43, %v1270_v56  ;;  %v1269_v2 = vperm.slane %v1206_v14, 0  ;;  %v1518_v38 = vsel %vm104_vm2, %v1381_v18, 0.0 }
 0x4a4   :  { %v10199_v13 = vpop.xlane.xlu0 %5151  ;;  %5265 = vadd.xlane.f32.xlu1 %v10005_v42  ;;  %v1437_v42 = vsel %vm104_vm2, %v1352_v3, 0.0  ;;  %v1160_v44 = vrot.slane %v9930_v11, 3  ;;  %v1360_v20 = vmul.f32 %v11924_v40, %v1232_v46  ;;  %v1368_v16 = vmul.f32 %v11940_v27, %v1240_v60 }
 0x4a5   :  { %v1256_v24 = vperm.slane %v1194_v17, 0  ;;  %v1436_v22 = vsel %vm104_vm2, %v1344_v36, 0.0  ;;  %v1174_v28 = vrot.slane %v9819_v45, 3  ;;  %v1181_v3 = vrot.slane %v9950_v63, 3 }
 0x4a6   :  { %v10204_v47 = vpop.xlane.xlu2 %5136  ;;  %v1438_v12 = vadd.f32 %v1437_v42, %v1436_v22  ;;  %v1225_v56 = vperm.slane %v1167_v6, 0  ;;  %v5313_v26 = vmul.f32 %v10049_v35, %v1480_v33  ;;  %v1277_v14 = vperm.slane %v1213_v37, 0 }
 0x4a7   :  { %12025 = vst [vmem:[#allocation140_spill] sm:$0xff] %v10204_v47  ;;  %v10210_v61 = vpop.xlane.xlu1 %5139  ;;  %v1201_v18 = vrot.slane %v10020_v51, 2  ;;  %v1376_v17 = vmul.f32 %v11941_v10, %v1248_v7  ;;  %v1419_v46 = vsel %vm104_vm2, %v1398_v59, 0.0  ;;  %v1397_v60 = vmul.f32 %v11954_v31, %v1269_v2 }
 0x4a8   :  { %12026 = vst [vmem:[#allocation141_spill] sm:$0xff] %v10210_v61  ;;  %v1217_v36 = vperm.slane %v1160_v44, 0  ;;  %v1519_v6 = vadd.f32 %v1518_v38, %v1517_v4  ;;  %v1439_v33 = vsel %vm104_vm2, %v1360_v20, 0.0  ;;  %v1441_v37 = vsel %vm104_vm2, %v1368_v16, 0.0 }
 0x4a9   :  { %5286 = vadd.xlane.f32.xlu0 %v10041_v53  ;;  %v1195_v53 = vrot.slane %v10010_v41, 3  ;;  %v1440_v7 = vadd.f32 %v1439_v33, %v1438_v12  ;;  %v1233_v59 = vperm.slane %v1174_v28, 0  ;;  %v1241_v61 = vperm.slane %v1181_v3, 0 }
 0x4aa   :  { %v1353_v2 = vmul.f32 %v11920_v21, %v1225_v56  ;;  %v1420_v47 = vadd.f32 %v1419_v46, %v1418_v0  ;;  %v1405_v44 = vmul.f32 %v11955_v43, %v1277_v14  ;;  %v1522_v38 = vsel %vm104_vm2, %v1397_v60, 0.0 }
 0x4ab   :  { %5271 = vadd.xlane.f32.xlu2 %v10008_v58  ;;  %v1384_v58 = vmul.f32 %v11949_v8, %v1256_v24  ;;  %v1442_v24 = vadd.f32 %v1441_v37, %v1440_v7  ;;  %v1257_v20 = vperm.slane %v1195_v53, 0  ;;  %v1345_v16 = vmul.f32 %v11921_v15, %v1217_v36 }
 0x4ac   :  { %v10228_v42 = vpop.xlane.xlu0 %5160  ;;  %5274 = vadd.xlane.f32.xlu1 %v10016_v52  ;;  %v1443_v52 = vsel %vm104_vm2, %v1376_v17, 0.0  ;;  %v10244_v12 = vsel %vm104_vm2, %v5313_v26, 0.0  ;;  %v1521_v28 = vadd.f32 %v1520_v25, %v1519_v6  ;;  %v1188_v0 = vrot.slane %v9974_v29, 3 }
 0x4ad   :  { %12027 = vst [vmem:[#allocation142_spill] sm:$0xff] %v10228_v42  ;;  %v1264_v42 = vperm.slane %v1201_v18, 0  ;;  %v1445_v3 = vsel %vm104_vm2, %v1384_v58, 0.0  ;;  %v1444_v56 = vadd.f32 %v1443_v52, %v1442_v24  ;;  %v1361_v14 = vmul.f32 %v11924_v40, %v1233_v59 }
 0x4ae   :  { %v10234_v22 = vpop.xlane.xlu2 %5145  ;;  %v1369_v18 = vmul.f32 %v11940_v27, %v1241_v61  ;;  %v1452_v17 = vsel %vm104_vm2, %v1353_v2, 0.0  ;;  %v1523_v46 = vadd.f32 %v1522_v38, %v1521_v28  ;;  %v1524_v26 = vsel %vm104_vm2, %v1405_v44, 0.0 }
 0x4af   :  { %v10239_v4 = vpop.xlane.xlu1 %5148  ;;  %v1392_v25 = vmul.f32 %v11954_v31, %v1264_v42  ;;  %v1169_v60 = vrot.slane %v9914_v49, 5  ;;  %v10257_v53 = vmul.f32 %v10049_v35, %v1420_v47  ;;  %v1451_v36 = vsel %vm104_vm2, %v1345_v16, 0.0 }
 0x4b0   :  { %v1162_v61 = vrot.slane %v9930_v11, 5  ;;  %v1249_v58 = vperm.slane %v1188_v0, 0  ;;  %v1453_v33 = vadd.f32 %v1452_v17, %v1451_v36  ;;  %v1170_v42 = vrot.slane %v9914_v49, 6 }
 0x4b1   :  { %5295 = vadd.xlane.f32.xlu0 %v10061_v1  ;;  %v1385_v1 = vmul.f32 %v11949_v8, %v1257_v20  ;;  %v10269_v47 = vadd.f32 %v1524_v26, %v1523_v46  ;;  %v1446_v7 = vadd.f32 %v1445_v3, %v1444_v56  ;;  %v1454_v59 = vsel %vm104_vm2, %v1361_v14, 0.0 }
 0x4b2   :  { %v1456_v2 = vsel %vm104_vm2, %v1369_v18, 0.0  ;;  %v1447_v44 = vsel %vm104_vm2, %v1392_v25, 0.0  ;;  %v1176_v52 = vrot.slane %v9819_v45, 5  ;;  %v1163_v38 = vrot.slane %v9930_v11, 6 }
 0x4b3   :  { %5280 = vadd.xlane.f32.xlu2 %v10024_v5  ;;  %v1208_v5 = vrot.slane %v10031_v55, 2  ;;  %v1202_v49 = vrot.slane %v10020_v51, 3  ;;  %v10280_v20 = vsel %vm104_vm2, %v1385_v1, 0.0  ;;  %v1183_v16 = vrot.slane %v9950_v63, 5 }
 0x4b4   :  { %v10262_v6 = vpop.xlane.xlu0 %5169  ;;  %5283 = vadd.xlane.f32.xlu1 %v10071_v30  ;;  %v1227_v30 = vperm.slane %v1169_v60, 0  ;;  %v1219_v28 = vperm.slane %v1162_v61, 0  ;;  %v1377_v0 = vmul.f32 %v11941_v10, %v1249_v58  ;;  %v1455_v56 = vadd.f32 %v1454_v59, %v1453_v33 }
 0x4b5   :  { %12028 = vst [vmem:[#allocation143_spill] sm:$0xff] %v10262_v6  ;;  %v1272_v3 = vperm.slane %v1208_v5, 0  ;;  %v1228_v14 = vperm.slane %v1170_v42, 0  ;;  %v10285_v18 = vadd.f32 %v1447_v44, %v1446_v7  ;;  %v1190_v11 = vrot.slane %v9974_v29, 5 }
 0x4b6   :  { %v10267_v37 = vpop.xlane.xlu2 %5154  ;;  %v1197_v17 = vrot.slane %v10010_v41, 5  ;;  %v1177_v46 = vrot.slane %v9819_v45, 6  ;;  %v1235_v26 = vperm.slane %v1176_v52, 0  ;;  %v1355_v25 = vmul.f32 %v11920_v21, %v1227_v30 }
 0x4b7   :  { %v10276_v24 = vpop.xlane.xlu1 %5157  ;;  %v1184_v60 = vrot.slane %v9950_v63, 6  ;;  %v1220_v1 = vperm.slane %v1163_v38, 0  ;;  %v1265_v36 = vperm.slane %v1202_v49, 0  ;;  %v1457_v61 = vadd.f32 %v1456_v2, %v1455_v56 }
 0x4b8   :  { %v1243_v5 = vperm.slane %v1183_v16, 0  ;;  %v1209_v33 = vrot.slane %v10031_v55, 3  ;;  %v1458_v45 = vsel %vm104_vm2, %v1377_v0, 0.0  ;;  %v1356_v42 = vmul.f32 %v11920_v21, %v1228_v14 }
 0x4b9   :  { %5304 = vadd.xlane.f32.xlu0 %v10075_v19  ;;  %v1347_v19 = vmul.f32 %v11921_v15, %v1219_v28  ;;  %v1400_v63 = vmul.f32 %v11955_v43, %v1272_v3  ;;  %v1251_v59 = vperm.slane %v1190_v11, 0  ;;  %v1259_v2 = vperm.slane %v1197_v17, 0 }
 0x4ba   :  { %v1236_v44 = vperm.slane %v1177_v46, 0  ;;  %v1363_v52 = vmul.f32 %v11924_v40, %v1235_v26  ;;  %v1482_v30 = vsel %vm104_vm2, %v1355_v25, 0.0  ;;  %v1348_v38 = vmul.f32 %v11921_v15, %v1220_v1 }
 0x4bb   :  { %5289 = vadd.xlane.f32.xlu2 %v10089_v57  ;;  %v1191_v57 = vrot.slane %v9974_v29, 6  ;;  %v1393_v29 = vmul.f32 %v11954_v31, %v1265_v36  ;;  %v1459_v16 = vadd.f32 %v1458_v45, %v1457_v61  ;;  %v1371_v21 = vmul.f32 %v11940_v27, %v1243_v5 }
 0x4bc   :  { %v10294_v58 = vpop.xlane.xlu0 %5178  ;;  %5292 = vadd.xlane.f32.xlu1 %v10092_v34  ;;  %v1244_v34 = vperm.slane %v1184_v60, 0  ;;  %v1481_v28 = vsel %vm104_vm2, %v1347_v19, 0.0  ;;  %v1273_v3 = vperm.slane %v1209_v33, 0  ;;  %v1204_v0 = vrot.slane %v10020_v51, 5 }
 0x4bd   :  { %12029 = vst [vmem:[#allocation144_spill] sm:$0xff] %v10294_v58  ;;  %v1252_v56 = vperm.slane %v1191_v57, 0  ;;  %v1497_v14 = vsel %vm104_vm2, %v1356_v42, 0.0  ;;  %v1379_v11 = vmul.f32 %v11941_v10, %v1251_v59  ;;  %v1483_v15 = vadd.f32 %v1482_v30, %v1481_v28 }
 0x4be   :  { %v10301_v7 = vpop.xlane.xlu2 %5163  ;;  %v1198_v17 = vrot.slane %v10010_v41, 6  ;;  %v1364_v46 = vmul.f32 %v11924_v40, %v1236_v44  ;;  %v1211_v26 = vrot.slane %v10031_v55, 5  ;;  %v1205_v25 = vrot.slane %v10020_v51, 6 }
 0x4bf   :  { %v10307_v49 = vpop.xlane.xlu1 %5166  ;;  %v1372_v60 = vmul.f32 %v11940_v27, %v1244_v34  ;;  %v1496_v1 = vsel %vm104_vm2, %v1348_v38, 0.0  ;;  %v1449_v36 = vsel %vm104_vm2, %v1400_v63, 0.0  ;;  %v1486_v61 = vsel %vm104_vm2, %v1371_v21, 0.0 }
 0x4c0   :  { %12030 = vst [vmem:[#allocation145_spill] sm:$0xff] %v10307_v49  ;;  %v1498_v5 = vadd.f32 %v1497_v14, %v1496_v1  ;;  %v1401_v40 = vmul.f32 %v11955_v43, %v1273_v3  ;;  %v1212_v51 = vrot.slane %v10031_v55, 6  ;;  %v1380_v27 = vmul.f32 %v11941_v10, %v1252_v56 }
 0x4c1   :  { %5321 = vadd.xlane.f32.xlu0 %v10168_v23  ;;  %v1484_v23 = vsel %vm104_vm2, %v1363_v52, 0.0  ;;  %v1462_v33 = vsel %vm104_vm2, %v1393_v29, 0.0  ;;  %v1488_v57 = vsel %vm104_vm2, %v1379_v11, 0.0  ;;  %v1260_v42 = vperm.slane %v1198_v17, 0 }
 0x4c2   :  { %v1485_v45 = vadd.f32 %v1484_v23, %v1483_v15  ;;  %v1275_v63 = vperm.slane %v1211_v26, 0  ;;  %v1268_v59 = vperm.slane %v1205_v25, 0  ;;  %v1499_v44 = vsel %vm104_vm2, %v1364_v46, 0.0 }
 0x4c3   :  { %5298 = vadd.xlane.f32.xlu2 %v10101_v48  ;;  %v1267_v48 = vperm.slane %v1204_v0, 0  ;;  %v1461_v55 = vadd.f32 %v10280_v20, %v1459_v16  ;;  %v1387_v10 = vmul.f32 %v11949_v8, %v1259_v2  ;;  %v1500_v34 = vadd.f32 %v1499_v44, %v1498_v5 }
 0x4c4   :  { %v10326_v41 = vpop.xlane.xlu0 %5187  ;;  %5301 = vadd.xlane.f32.xlu1 %v10108_v32  ;;  %v1501_v32 = vsel %vm104_vm2, %v1372_v60, 0.0  ;;  %v1487_v30 = vadd.f32 %v1486_v61, %v1485_v45  ;;  %v1464_v38 = vsel %vm104_vm2, %v1401_v40, 0.0  ;;  %v1276_v21 = vperm.slane %v1212_v51, 0 }
 0x4c5   :  { %12031 = vst [vmem:[#allocation146_spill] sm:$0xff] %v10326_v41  ;;  %v1395_v29 = vmul.f32 %v11954_v31, %v1267_v48  ;;  %v1503_v28 = vsel %vm104_vm2, %v1380_v27, 0.0  ;;  %v1450_v3 = vadd.f32 %v1449_v36, %v10285_v18  ;;  %v1463_v0 = vadd.f32 %v1462_v33, %v1461_v55 }
 0x4c6   :  { %v10332_v19 = vpop.xlane.xlu2 %5172  ;;  %v1489_v56 = vadd.f32 %v1488_v57, %v1487_v30  ;;  %v1502_v14 = vadd.f32 %v1501_v32, %v1500_v34  ;;  %v1403_v20 = vmul.f32 %v11955_v43, %v1275_v63  ;;  %v1388_v2 = vmul.f32 %v11949_v8, %v1260_v42 }
 0x4c7   :  { %12032 = vst [vmem:[#allocation147_spill] sm:$0xff] %v10332_v19  ;;  %v10338_v52 = vpop.xlane.xlu1 %5175  ;;  %v1396_v16 = vmul.f32 %v11954_v31, %v1268_v59  ;;  %v5317_v11 = vsel %vm104_vm2, %v10257_v53, 0.0  ;;  %v1465_v15 = vadd.f32 %v1464_v38, %v1463_v0  ;;  %v1490_v18 = vsel %vm104_vm2, %v1387_v10, 0.0 }
 0x4c8   :  { %12033 = vst [vmem:[#allocation148_spill] sm:$0xff] %v10338_v52  ;;  %v1504_v17 = vadd.f32 %v1503_v28, %v1502_v14  ;;  %v1404_v26 = vmul.f32 %v11955_v43, %v1276_v21  ;;  %v5311_v31 = vmul.f32 %v10049_v35, %v1450_v3  ;;  %v1491_v25 = vadd.f32 %v1490_v18, %v1489_v56 }
 0x4c9   :  { %5330 = vadd.xlane.f32.xlu0 %v10244_v12  ;;  %v5316_v12 = vmul.f32 %v10049_v35, %v10269_v47  ;;  %v1494_v53 = vsel %vm104_vm2, %v1403_v20, 0.0  ;;  %v1505_v60 = vsel %vm104_vm2, %v1388_v2, 0.0  ;;  %v1507_v1 = vsel %vm104_vm2, %v1396_v16, 0.0 }
 0x4ca   :  { %v5312_v47 = vmul.f32 %v10049_v35, %v1465_v15  ;;  %v1506_v61 = vadd.f32 %v1505_v60, %v1504_v17  ;;  %v1509_v43 = vsel %vm104_vm2, %v1404_v26, 0.0  ;;  %v5323_v40 = vsel %vm104_vm2, %v5311_v31, 0.0  ;;  %v12057_v17 = vld [vmem:[#allocation41_spill] sm:$0xff]  ;;  %v12059_v26 = vld [vmem:[#allocation40_spill] sm:$0xff] }
 0x4cb   :  { %5307 = vadd.xlane.f32.xlu2 %v10181_v39  ;;  %v1492_v39 = vsel %vm104_vm2, %v1395_v29, 0.0  ;;  %v5338_v5 = vsel %vm104_vm2, %v5316_v12, 0.0  ;;  %v4367_v12 = vrot.slane %v12057_v17, 4  ;;  %v4385_v31 = vrot.slane %v12059_v26, 4  ;;  %v12061_v60 = vld [vmem:[#allocation73_spill] sm:$0xff] }
 0x4cc   :  { %v10353_v46 = vpop.xlane.xlu0 %5196  ;;  %5318 = vadd.xlane.f32.xlu1 %v5317_v11  ;;  %v1493_v23 = vadd.f32 %v1492_v39, %v1491_v25  ;;  %v1508_v51 = vadd.f32 %v1507_v1, %v1506_v61  ;;  %v5326_v27 = vsel %vm104_vm2, %v5312_v47, 0.0  ;;  %v12056_v11 = vld [vmem:[#allocation37_spill] sm:$0xff]  ;;  %v4355_v1 = vrot.slane %v12061_v60, 4 }
 0x4cd   :  { %12034 = vst [vmem:[#allocation149_spill] sm:$0xff] %v10353_v46  ;;  %v4349_v15 = vrot.slane %v12056_v11, 4  ;;  %v4368_v25 = vadd.f32 %v4367_v12, %v12057_v17  ;;  %v12074_v46 = vld [vmem:[#allocation85_spill] sm:$0xff] }
 0x4ce   :  { %v10360_v8 = vpop.xlane.xlu2 %5181  ;;  %v1495_v48 = vadd.f32 %v1494_v53, %v1493_v23  ;;  %v1510_v33 = vadd.f32 %v1509_v43, %v1508_v51  ;;  %v12062_v23 = vld [vmem:[#allocation43_spill] sm:$0xff]  ;;  %v4386_v43 = vadd.f32 %v4385_v31, %v12059_v26 }
 0x4cf   :  { %12035 = vst [vmem:[#allocation150_spill] sm:$0xff] %v10360_v8  ;;  %v10366_v36 = vpop.xlane.xlu1 %5184  ;;  %v4350_v39 = vadd.f32 %v4349_v15, %v12056_v11  ;;  %v4361_v61 = vrot.slane %v12062_v23, 4  ;;  %v4369_v51 = vrot.slane %v4368_v25, 2  ;;  %v12067_v15 = vld [vmem:[#allocation79_spill] sm:$0xff] }
 0x4d0   :  { %12036 = vst [vmem:[#allocation151_spill] sm:$0xff] %v10366_v36  ;;  %v5314_v42 = vmul.f32 %v10049_v35, %v1495_v48  ;;  %v5315_v59 = vmul.f32 %v10049_v35, %v1510_v33  ;;  %v4421_v17 = vrot.slane %v12067_v15, 4 }
 0x4d1   :  { %5339 = vadd.xlane.f32.xlu0 %v5338_v5  ;;  %v4351_v5 = vrot.slane %v4350_v39, 2  ;;  %v4362_v11 = vadd.f32 %v4361_v61, %v12062_v23  ;;  %v4370_v26 = vadd.f32 %v4369_v51, %v4368_v25 }
 0x4d2   :  { %v5332_v44 = vsel %vm104_vm2, %v5314_v42, 0.0  ;;  %v5335_v32 = vsel %vm104_vm2, %v5315_v59, 0.0  ;;  %v4356_v59 = vadd.f32 %v4355_v1, %v12061_v60  ;;  %v4422_v23 = vadd.f32 %v4421_v17, %v12067_v15 }
 0x4d3   :  { %5324 = vadd.xlane.f32.xlu2 %v5323_v40  ;;  %v12063_v40 = vld [vmem:[#allocation76_spill] sm:$0xff]  ;;  %v4352_v12 = vadd.f32 %v4351_v5, %v4350_v39  ;;  %v4371_v25 = vrot.slane %v4370_v26, 1 }
 0x4d4   :  { %v10373_v45 = vpop.xlane.xlu0 %5205  ;;  %5327 = vadd.xlane.f32.xlu1 %v5326_v27  ;;  %v4403_v48 = vrot.slane %v12063_v40, 4  ;;  %v12064_v27 = vld [vmem:[#allocation78_spill] sm:$0xff] }
 0x4d5   :  { %12037 = vst [vmem:[#allocation152_spill] sm:$0xff] %v10373_v45  ;;  %v4373_v33 = vrot.slane %v12064_v27, 4  ;;  %v4353_v39 = vrot.slane %v4352_v12, 1 }
 0x4d6   :  { %v10375_v57 = vpop.xlane.xlu2 %5190 }
 0x4d7   :  { %12038 = vst [vmem:[#allocation153_spill] sm:$0xff] %v10375_v57  ;;  %v10378_v63 = vpop.xlane.xlu1 %5193  ;;  %v4374_v31 = vadd.f32 %v4373_v33, %v12064_v27  ;;  %v4354_v15 = vadd.f32 %v4353_v39, %v4352_v12  ;;  %v12078_v57 = vld [vmem:[#allocation92_spill] sm:$0xff] }
 0x4d8   :  { %12039 = vst [vmem:[#allocation154_spill] sm:$0xff] %v10378_v63 }
 0x4d9   :  { %6660 = vrcp.f32 %v4354_v15  ;;  %v12076_v15 = vld [vmem:[#allocation88_spill] sm:$0xff] }
 0x4db   :  { %5333 = vadd.xlane.f32.xlu2 %v5332_v44  ;;  %v12066_v44 = vld [vmem:[#allocation16_spill] sm:$0xff] }
 0x4dc   :  { %v10383_v55 = vpop.xlane.xlu0 %5214  ;;  %5336 = vadd.xlane.f32.xlu1 %v5335_v32  ;;  %v4379_v32 = vrot.slane %v12066_v44, 4 }
 0x4dd   :  { %12040 = vst [vmem:[#allocation155_spill] sm:$0xff] %v10383_v55 }
 0x4de   :  { %v10385_v10 = vpop.xlane.xlu2 %5199 }
 0x4df   :  { %12041 = vst [vmem:[#allocation156_spill] sm:$0xff] %v10385_v10  ;;  %v10387_v30 = vpop.xlane.xlu1 %5202  ;;  %v4372_v10 = vadd.f32 %v4371_v25, %v4370_v26 }
 0x4e0   :  { %12042 = vst [vmem:[#allocation157_spill] sm:$0xff] %v10387_v30  ;;  %v4423_v30 = vrot.slane %v4422_v23, 2 }
 0x4e1   :  { %6662 = vrcp.f32 %v4372_v10 }
 0x4e4   :  { %v10389_v34 = vpop.xlane.xlu0 %5223 }
 0x4e5   :  { %12043 = vst [vmem:[#allocation158_spill] sm:$0xff] %v10389_v34  ;;  %v12087_v34 = vld [vmem:[#allocation100_spill] sm:$0xff] }
 0x4e6   :  { %v10391_v38 = vpop.xlane.xlu2 %5208 }
 0x4e7   :  { %12044 = vst [vmem:[#allocation159_spill] sm:$0xff] %v10391_v38  ;;  %v10393_v29 = vpop.xlane.xlu1 %5211  ;;  %v12072_v38 = vld [vmem:[#allocation44_spill] sm:$0xff] }
 0x4e8   :  { %12045 = vst [vmem:[#allocation160_spill] sm:$0xff] %v10393_v29  ;;  %v4363_v29 = vrot.slane %v4362_v11, 2 }
 0x4ea   :  { %v4364_v45 = vadd.f32 %v4363_v29, %v4362_v11  ;;  %v4415_v29 = vrot.slane %v12074_v46, 4 }
 0x4ec   :  { %v10395_v21 = vpop.xlane.xlu0 %5232 }
 0x4ed   :  { %12046 = vst [vmem:[#allocation161_spill] sm:$0xff] %v10395_v21 }
 0x4ee   :  { %v10397_v35 = vpop.xlane.xlu2 %5217 }
 0x4ef   :  { %12047 = vst [vmem:[#allocation162_spill] sm:$0xff] %v10397_v35  ;;  %v10399_v28 = vpop.xlane.xlu1 %5220 }
 0x4f0   :  { %12048 = vst [vmem:[#allocation163_spill] sm:$0xff] %v10399_v28  ;;  %v12089_v28 = vld [vmem:[#allocation101_spill] sm:$0xff] }
 0x4f1   :  { %v4481_v36 = vrot.slane %v12089_v28, 4 }
 0x4f4   :  { %v10401_v3 = vpop.xlane.xlu0 %5241 }
 0x4f5   :  { %12049 = vst [vmem:[#allocation164_spill] sm:$0xff] %v10401_v3  ;;  %v4357_v3 = vrot.slane %v4356_v59, 2 }
 0x4f6   :  { %v10403_v0 = vpop.xlane.xlu2 %5226 }
 0x4f7   :  { %12050 = vst [vmem:[#allocation165_spill] sm:$0xff] %v10403_v0  ;;  %v10405_v56 = vpop.xlane.xlu1 %5229  ;;  %v4358_v33 = vadd.f32 %v4357_v3, %v4356_v59 }
 0x4f8   :  { %12051 = vst [vmem:[#allocation166_spill] sm:$0xff] %v10405_v56 }
 0x4f9   :  { %v4359_v56 = vrot.slane %v4358_v33, 1 }
 0x4fc   :  { %v10407_v14 = vpop.xlane.xlu0 %5250 }
 0x4fd   :  { %12052 = vst [vmem:[#allocation167_spill] sm:$0xff] %v10407_v14  ;;  %v4404_v14 = vadd.f32 %v4403_v48, %v12063_v40  ;;  %v4375_v48 = vrot.slane %v4374_v31, 2 }
 0x4fe   :  { %v10411_v2 = vpop.xlane.xlu2 %5235 }
 0x4ff   :  { %v10409_v20 = vpop.xlane.xlu1 %5238  ;;  %12054 = vst [vmem:[#allocation169_spill] sm:$0xff] %v10411_v2  ;;  %v4405_v40 = vrot.slane %v4404_v14, 2  ;;  %v12073_v2 = vld [vmem:[#allocation13_spill] sm:$0xff] }
 0x500   :  { %12053 = vst [vmem:[#allocation168_spill] sm:$0xff] %v10409_v20  ;;  %v12069_v20 = vld [vmem:[#allocation82_spill] sm:$0xff]  ;;  %v4409_v21 = vrot.slane %v12073_v2, 4 }
 0x501   :  { %v4397_v60 = vrot.slane %v12069_v20, 4 }
 0x504   :  { %v10413_v16 = vpop.xlane.xlu0 %5259 }
 0x505   :  { %12055 = vst [vmem:[#allocation170_spill] sm:$0xff] %v10413_v16  ;;  %v4387_v16 = vrot.slane %v4386_v43, 2 }
 0x506   :  { %v10422_v53 = vpop.xlane.xlu2 %5244 }
 0x507   :  { %v10417_v18 = vpop.xlane.xlu1 %5247  ;;  %12060 = vst [vmem:[#allocation41_spill] sm:$0xff] %v10422_v53  ;;  %v4388_v5 = vadd.f32 %v4387_v16, %v4386_v43  ;;  %v4376_v16 = vadd.f32 %v4375_v48, %v4374_v31 }
 0x508   :  { %12058 = vst [vmem:[#allocation37_spill] sm:$0xff] %v10417_v18  ;;  %v12068_v18 = vld [vmem:[#allocation81_spill] sm:$0xff] }
 0x509   :  { %v4391_v53 = vrot.slane %v12068_v18, 4  ;;  %v4389_v17 = vrot.slane %v4388_v5, 1  ;;  %v4377_v31 = vrot.slane %v4376_v16, 1 }
 0x50b   :  { %v4392_v51 = vadd.f32 %v4391_v53, %v12068_v18  ;;  %v4390_v11 = vadd.f32 %v4389_v17, %v4388_v5  ;;  %v4416_v5 = vadd.f32 %v4415_v29, %v12074_v46  ;;  %v4427_v17 = vrot.slane %v12076_v15, 4 }
 0x50c   :  { %v10425_v47 = vpop.xlane.xlu0 %5268 }
 0x50d   :  { %v4393_v43 = vrot.slane %v4392_v51, 2  ;;  %6664 = vrcp.f32 %v4390_v11  ;;  %v4417_v29 = vrot.slane %v4416_v5, 2  ;;  %v4428_v11 = vadd.f32 %v4427_v17, %v12076_v15 }
 0x50e   :  { %v10445_v61 = vpop.xlane.xlu2 %5253 }
 0x50f   :  { %v10431_v42 = vpop.xlane.xlu1 %5256  ;;  %12071 = vst [vmem:[#allocation43_spill] sm:$0xff] %v10445_v61  ;;  %v4406_v61 = vadd.f32 %v4405_v40, %v4404_v14  ;;  %v12075_v14 = vld [vmem:[#allocation48_spill] sm:$0xff]  ;;  %v4394_v39 = vadd.f32 %v4393_v43, %v4392_v51  ;;  %v4410_v40 = vadd.f32 %v4409_v21, %v12073_v2  ;;  %v12077_v43 = vld [vmem:[#allocation90_spill] sm:$0xff]  ;;  %v4378_v2 = vadd.f32 %v4377_v31, %v4376_v16 }
 0x510   :  { %12065 = vst [vmem:[#allocation40_spill] sm:$0xff] %v10431_v42  ;;  %v4380_v42 = vadd.f32 %v4379_v32, %v12066_v44  ;;  %v4398_v32 = vadd.f32 %v4397_v60, %v12069_v20  ;;  %v4365_v20 = vrot.slane %v4364_v45, 1  ;;  %v4424_v60 = vadd.f32 %v4423_v30, %v4422_v23 }
 0x511   :  { %v4407_v12 = vrot.slane %v4406_v61, 1  ;;  %v4457_v26 = vrot.slane %v12075_v14, 4  ;;  %v4433_v21 = vrot.slane %v12077_v43, 4  ;;  %v4395_v0 = vrot.slane %v4394_v39, 1 }
 0x512   :  { %v4381_v44 = vrot.slane %v4380_v42, 2  ;;  %v4399_v53 = vrot.slane %v4398_v32, 2  ;;  %v4366_v23 = vadd.f32 %v4365_v20, %v4364_v45  ;;  %v4411_v63 = vrot.slane %v4410_v40, 2 }
 0x513   :  { %v4408_v10 = vadd.f32 %v4407_v12, %v4406_v61  ;;  %v4458_v51 = vadd.f32 %v4457_v26, %v12075_v14  ;;  %v4434_v12 = vadd.f32 %v4433_v21, %v12077_v43  ;;  %v12079_v14 = vld [vmem:[#allocation93_spill] sm:$0xff]  ;;  %v4396_v31 = vadd.f32 %v4395_v0, %v4394_v39 }
 0x514   :  { %v10442_v1 = vpop.xlane.xlu0 %5277  ;;  %v4382_v18 = vadd.f32 %v4381_v44, %v4380_v42  ;;  %v4400_v48 = vadd.f32 %v4399_v53, %v4398_v32  ;;  %v4425_v44 = vrot.slane %v4424_v60, 1  ;;  %v4445_v26 = vrot.slane %v12079_v14, 4 }
 0x515   :  { %12070 = vst [vmem:[#allocation73_spill] sm:$0xff] %v10442_v1  ;;  %v4439_v1 = vrot.slane %v12072_v38, 4  ;;  %v4459_v16 = vrot.slane %v4458_v51, 2  ;;  %v4418_v15 = vadd.f32 %v4417_v29, %v4416_v5  ;;  %v4429_v17 = vrot.slane %v4428_v11, 2 }
 0x516   :  { %v10459_v42 = vpop.xlane.xlu2 %5262  ;;  %v4401_v32 = vrot.slane %v4400_v48, 1  ;;  %v4426_v61 = vadd.f32 %v4425_v44, %v4424_v60  ;;  %v4446_v39 = vadd.f32 %v4445_v26, %v12079_v14 }
 0x517   :  { %v10448_v27 = vpop.xlane.xlu1 %5265  ;;  %v4440_v3 = vadd.f32 %v4439_v1, %v12072_v38  ;;  %v4360_v38 = vadd.f32 %v4359_v56, %v4358_v33  ;;  %v4383_v1 = vrot.slane %v4382_v18, 1  ;;  %v4475_v56 = vrot.slane %v12078_v57, 4  ;;  %v10468_v33 = vpop.eup %6660 }
 0x518   :  { %v10472_v20 = vpop.eup %6662  ;;  %v4402_v60 = vadd.f32 %v4401_v32, %v4400_v48  ;;  %v12085_v32 = vld [vmem:[#allocation99_spill] sm:$0xff]  ;;  %v4419_v26 = vrot.slane %v4418_v15, 1  ;;  %v4430_v41 = vadd.f32 %v4429_v17, %v4428_v11 }
 0x519   :  { %v4441_v30 = vrot.slane %v4440_v3, 2  ;;  %6666 = vrcp.f32 %v4360_v38  ;;  %v4384_v45 = vadd.f32 %v4383_v1, %v4382_v18  ;;  %v4412_v18 = vadd.f32 %v4411_v63, %v4410_v40  ;;  %v10480_v1 = vpop.eup %6664  ;;  %v12084_v40 = vld [vmem:[#allocation98_spill] sm:$0xff] }
 0x51a   :  { %6668 = vrcp.f32 %v4366_v23  ;;  %12081 = vst [vmem:[#allocation78_spill] sm:$0xff] %v10480_v1  ;;  %v12082_v23 = vld [vmem:[#allocation95_spill] sm:$0xff]  ;;  %v4460_v63 = vadd.f32 %v4459_v16, %v4458_v51  ;;  %v4469_v5 = vrot.slane %v12085_v32, 4  ;;  %v4511_v51 = vrot.slane %v12087_v34, 4 }
 0x51b   :  { %v4442_v53 = vadd.f32 %v4441_v30, %v4440_v3  ;;  %6670 = vrcp.f32 %v4408_v10  ;;  %v4476_v3 = vadd.f32 %v4475_v56, %v12078_v57  ;;  %v4451_v44 = vrot.slane %v12082_v23, 4  ;;  %v12083_v10 = vld [vmem:[#allocation97_spill] sm:$0xff] }
 0x51c   :  { %v10454_v59 = vpop.xlane.xlu0 %5286  ;;  %6672 = vrcp.f32 %v4378_v2  ;;  %v4493_v43 = vrot.slane %v12083_v10, 4  ;;  %v4435_v57 = vrot.slane %v4434_v12, 2  ;;  %v4463_v2 = vrot.slane %v12084_v40, 4 }
 0x51d   :  { %6674 = vrcp.f32 %v4384_v45  ;;  %v4443_v30 = vrot.slane %v4442_v53, 1  ;;  %v4413_v48 = vrot.slane %v4412_v18, 1  ;;  %v4477_v45 = vrot.slane %v4476_v3, 2 }
 0x51e   :  { %6676 = vrcp.f32 %v4426_v61  ;;  %v10484_v21 = vpop.xlane.xlu2 %5271  ;;  %v4461_v55 = vrot.slane %v4460_v63, 1  ;;  %v4436_v8 = vadd.f32 %v4435_v57, %v4434_v12  ;;  %v4420_v57 = vadd.f32 %v4419_v26, %v4418_v15 }
 0x51f   :  { %v10461_v25 = vpop.xlane.xlu1 %5274  ;;  %v10486_v0 = vpop.eup %6666  ;;  %6678 = vrcp.f32 %v4396_v31  ;;  %v4444_v29 = vadd.f32 %v4443_v30, %v4442_v53  ;;  %v4494_v31 = vadd.f32 %v4493_v43, %v12083_v10  ;;  %v4464_v53 = vadd.f32 %v4463_v2, %v12084_v40  ;;  %v12092_v43 = vld [vmem:[#allocation103_spill] sm:$0xff] }
 0x520   :  { %v10490_v56 = vpop.eup %6668  ;;  %6680 = vrcp.f32 %v4402_v60  ;;  %v4447_v60 = vrot.slane %v4446_v39, 2  ;;  %v4512_v10 = vadd.f32 %v4511_v51, %v12087_v34  ;;  %v4529_v52 = vrot.slane %v12092_v43, 4  ;;  %v12095_v34 = vld [vmem:[#allocation104_spill] sm:$0xff] }
 0x521   :  { %v10493_v61 = vpop.eup %6670  ;;  %6682 = vrcp.f32 %v4444_v29  ;;  %v4431_v40 = vrot.slane %v4430_v41, 1  ;;  %v4495_v2 = vrot.slane %v4494_v31, 2  ;;  %v4499_v51 = vrot.slane %v12095_v34, 4 }
 0x522   :  { %12086 = vst [vmem:[#allocation16_spill] sm:$0xff] %v10493_v61  ;;  %v10499_v14 = vpop.eup %6672  ;;  %v12091_v61 = vld [vmem:[#allocation102_spill] sm:$0xff]  ;;  %v4513_v26 = vrot.slane %v4512_v10, 2 }
 0x523   :  { %v10503_v35 = vpop.eup %6674  ;;  %v4487_v58 = vrot.slane %v12091_v61, 4 }
 0x524   :  { %v10470_v46 = vpop.xlane.xlu0 %5295  ;;  %v10506_v30 = vpop.eup %6676 }
 0x525   :  { %12090 = vst [vmem:[#allocation81_spill] sm:$0xff] %v10506_v30  ;;  %v10514_v12 = vpop.eup %6678  ;;  %v4488_v1 = vadd.f32 %v4487_v58, %v12091_v61 }
 0x526   :  { %12093 = vst [vmem:[#allocation82_spill] sm:$0xff] %v10514_v12  ;;  %v10521_v19 = vpop.xlane.xlu2 %5280  ;;  %v4530_v12 = vadd.f32 %v4529_v52, %v12092_v43  ;;  %v12097_v43 = vld [vmem:[#allocation105_spill] sm:$0xff] }
 0x527   :  { %v10478_v38 = vpop.xlane.xlu1 %5283  ;;  %12096 = vst [vmem:[#allocation13_spill] sm:$0xff] %v10521_v19  ;;  %v4489_v19 = vrot.slane %v4488_v1, 2  ;;  %v4505_v49 = vrot.slane %v12097_v43, 4 }
 0x528   :  { %12080 = vst [vmem:[#allocation76_spill] sm:$0xff] %v10478_v38  ;;  %v4452_v38 = vadd.f32 %v4451_v44, %v12082_v23  ;;  %v4414_v23 = vadd.f32 %v4413_v48, %v4412_v18  ;;  %v4478_v44 = vadd.f32 %v4477_v45, %v4476_v3  ;;  %v4482_v18 = vadd.f32 %v4481_v36, %v12089_v28  ;;  %v10517_v3 = vpop.eup %6680 }
 0x529   :  { %12094 = vst [vmem:[#allocation44_spill] sm:$0xff] %v10517_v3  ;;  %v4462_v48 = vadd.f32 %v4461_v55, %v4460_v63  ;;  %v4437_v45 = vrot.slane %v4436_v8, 1  ;;  %v4432_v55 = vadd.f32 %v4431_v40, %v4430_v41  ;;  %v4496_v28 = vadd.f32 %v4495_v2, %v4494_v31  ;;  %v12099_v40 = vld [vmem:[#allocation106_spill] sm:$0xff] }
 0x52a   :  { %v4453_v17 = vrot.slane %v4452_v38, 2  ;;  %v4479_v30 = vrot.slane %v4478_v44, 1  ;;  %6684 = vrcp.f32 %v4414_v23  ;;  %v4483_v63 = vrot.slane %v4482_v18, 2 }
 0x52b   :  { %6686 = vrcp.f32 %v4420_v57  ;;  %v4531_v52 = vrot.slane %v4530_v12, 2  ;;  %v4497_v41 = vrot.slane %v4496_v28, 1  ;;  %v4547_v2 = vrot.slane %v12099_v40, 4 }
 0x52c   :  { %v10497_v16 = vpop.xlane.xlu0 %5304  ;;  %v4454_v15 = vadd.f32 %v4453_v17, %v4452_v38  ;;  %6688 = vrcp.f32 %v4462_v48  ;;  %v4480_v3 = vadd.f32 %v4479_v30, %v4478_v44  ;;  %v4500_v38 = vadd.f32 %v4499_v51, %v12095_v34 }
 0x52d   :  { %12088 = vst [vmem:[#allocation79_spill] sm:$0xff] %v10497_v16  ;;  %v4470_v16 = vadd.f32 %v4469_v5, %v12085_v32  ;;  %v4448_v32 = vadd.f32 %v4447_v60, %v4446_v39  ;;  %v4465_v5 = vrot.slane %v4464_v53, 2  ;;  %v10526_v39 = vpop.eup %6682  ;;  %v4438_v60 = vadd.f32 %v4437_v45, %v4436_v8 }
 0x52e   :  { %v4455_v23 = vrot.slane %v4454_v15, 1  ;;  %v4514_v17 = vadd.f32 %v4513_v26, %v4512_v10  ;;  %6690 = vrcp.f32 %v4432_v55  ;;  %v4484_v31 = vadd.f32 %v4483_v63, %v4482_v18  ;;  %v12100_v63 = vld [vmem:[#allocation107_spill] sm:$0xff] }
 0x52f   :  { %v10510_v11 = vpop.xlane.xlu1 %5292  ;;  %v4471_v29 = vrot.slane %v4470_v16, 2  ;;  %v4449_v58 = vrot.slane %v4448_v32, 1  ;;  %v4466_v61 = vadd.f32 %v4465_v5, %v4464_v53  ;;  %6692 = vrcp.f32 %v4438_v60 }
 0x530   :  { %v10533_v8 = vpop.eup %6684  ;;  %6694 = vrcp.f32 %v4480_v3  ;;  %v4490_v10 = vadd.f32 %v4489_v19, %v4488_v1  ;;  %v4501_v48 = vrot.slane %v4500_v38, 2  ;;  %v4456_v5 = vadd.f32 %v4455_v23, %v4454_v15  ;;  %v12101_v23 = vld [vmem:[#allocation108_spill] sm:$0xff] }
 0x531   :  { %v4472_v6 = vadd.f32 %v4471_v29, %v4470_v16  ;;  %v4450_v53 = vadd.f32 %v4449_v58, %v4448_v32  ;;  %v4467_v16 = vrot.slane %v4466_v61, 1  ;;  %v10535_v30 = vpop.eup %6686  ;;  %v4515_v29 = vrot.slane %v4514_v17, 1  ;;  %v5290_v58 = vpop.xlane.xlu2 %5289 }
 0x532   :  { %v10537_v45 = vpop.eup %6688  ;;  %v4532_v34 = vadd.f32 %v4531_v52, %v4530_v12  ;;  %v4506_v18 = vadd.f32 %v4505_v49, %v12097_v43  ;;  %v4498_v26 = vadd.f32 %v4497_v41, %v4496_v28  ;;  %v4485_v55 = vrot.slane %v4484_v31, 1 }
 0x533   :  { %v4473_v44 = vrot.slane %v4472_v6, 1  ;;  %v4548_v32 = vadd.f32 %v4547_v2, %v12099_v40  ;;  %v4517_v60 = vrot.slane %v12100_v63, 4  ;;  %6696 = vrcp.f32 %v4450_v53 }
 0x534   :  { %v10524_v36 = vpop.xlane.xlu0 %5321  ;;  %v4468_v3 = vadd.f32 %v4467_v16, %v4466_v61  ;;  %v10544_v19 = vpop.eup %6690  ;;  %v4502_v15 = vadd.f32 %v4501_v48, %v4500_v38  ;;  %v4523_v12 = vrot.slane %v12101_v23, 4  ;;  %6698 = vrcp.f32 %v4456_v5 }
 0x535   :  { %v4474_v1 = vadd.f32 %v4473_v44, %v4472_v6  ;;  %v10547_v52 = vpop.eup %6692  ;;  %v4516_v49 = vadd.f32 %v4515_v29, %v4514_v17  ;;  %v4533_v28 = vrot.slane %v4532_v34, 1  ;;  %v4507_v43 = vrot.slane %v4506_v18, 2 }
 0x536   :  { %v10549_v41 = vpop.eup %6694  ;;  %6700 = vrcp.f32 %v4498_v26  ;;  %v4486_v40 = vadd.f32 %v4485_v55, %v4484_v31  ;;  %v4549_v2 = vrot.slane %v4548_v32, 2  ;;  %v4518_v61 = vadd.f32 %v4517_v60, %v12100_v63 }
 0x537   :  { %v10530_v57 = vpop.xlane.xlu1 %5301  ;;  %12102 = vst [vmem:[#allocation48_spill] sm:$0xff] %v10549_v41  ;;  %6702 = vrcp.f32 %v4468_v3  ;;  %v4503_v38 = vrot.slane %v4502_v15, 1  ;;  %v4524_v16 = vadd.f32 %v4523_v12, %v12101_v23  ;;  %v4534_v17 = vadd.f32 %v4533_v28, %v4532_v34  ;;  %v12105_v23 = vld [vmem:[#allocation8_spill] sm:$0xff] }
 0x538   :  { %12098 = vst [vmem:[#allocation85_spill] sm:$0xff] %v10530_v57  ;;  %v4491_v57 = vrot.slane %v4490_v10, 1  ;;  %6704 = vrcp.f32 %v4474_v1  ;;  %v4508_v48 = vadd.f32 %v4507_v43, %v4506_v18  ;;  %v4550_v31 = vadd.f32 %v4549_v2, %v4548_v32  ;;  %v12108_v2 = vld [vmem:[#allocation109_spill] sm:$0xff] }
 0x539   :  { %v10555_v44 = vpop.eup %6696  ;;  %6706 = vrcp.f32 %v4516_v49  ;;  %v4519_v29 = vrot.slane %v4518_v61, 2  ;;  %v4504_v32 = vadd.f32 %v4503_v38, %v4502_v15  ;;  %v4525_v60 = vrot.slane %v4524_v16, 2  ;;  %v5299_v3 = vpop.xlane.xlu2 %5298  ;;  %v12106_v49 = vld [vmem:[#allocation135_spill] sm:$0xff] }
 0x53a   :  { %v4492_v6 = vadd.f32 %v4491_v57, %v4490_v10  ;;  %6708 = vrcp.f32 %v4486_v40  ;;  %v10561_v55 = vpop.eup %6698 }
 0x53c   :  { %v10540_v51 = vpop.xlane.xlu0 %5330  ;;  %v10570_v18 = vpop.eup %6700  ;;  %6710 = vrcp.f32 %v4492_v6  ;;  %v4565_v6 = vrot.slane %v12108_v2, 4 }
 0x53d   :  { %12104 = vst [vmem:[#allocation90_spill] sm:$0xff] %v10570_v18  ;;  %v10574_v1 = vpop.eup %6702  ;;  %6712 = vrcp.f32 %v4534_v17 }
 0x53e   :  { %v10578_v12 = vpop.eup %6704  ;;  %6714 = vrcp.f32 %v4504_v32 }
 0x53f   :  { %v10552_v53 = vpop.xlane.xlu1 %5318  ;;  %v10584_v40 = vpop.eup %6706 }
 0x540   :  { %v5341_v26 = vadd.f32 %v10552_v53, %v10139_v9  ;;  %v5342_v57 = vadd.f32 %v10552_v53, %v10147_v62  ;;  %v4509_v62 = vrot.slane %v4508_v48, 1  ;;  %v5343_v28 = vadd.f32 %v10552_v53, %v12106_v49  ;;  %12107 = vst [vmem:[#allocation92_spill] sm:$0xff] %v10584_v40 }
 0x542   :  { %v5470_v38 = vperm.slane %v5341_v26, %v12105_v23  ;;  %v5471_v17 = vperm.slane %v5342_v57, %v12105_v23  ;;  %v4510_v18 = vadd.f32 %v4509_v62, %v4508_v48  ;;  %v5351_v62 = vadd.f32 %v10524_v36, %v10239_v4 }
 0x544   :  { %v10557_v5 = vpop.xlane.xlu0 %5339  ;;  %6716 = vrcp.f32 %v4510_v18  ;;  %v5480_v32 = vperm.slane %v5351_v62, %v12105_v23 }
 0x545   :  { %12103 = vst [vmem:[#allocation88_spill] sm:$0xff] %v10557_v5  ;;  %v5397_v10 = vadd.f32 %v10557_v5, %v10454_v59  ;;  %v5398_v63 = vadd.f32 %v10557_v5, %v5290_v58  ;;  %v5399_v34 = vadd.f32 %v10557_v5, %v10510_v11  ;;  %v5400_v9 = vadd.f32 %v10557_v5, %v10470_v46 }
 0x546   :  { %v5401_v59 = vadd.f32 %v10557_v5, %v5299_v3  ;;  %v4520_v11 = vadd.f32 %v4519_v29, %v4518_v61  ;;  %v4551_v46 = vrot.slane %v4550_v31, 1  ;;  %v4526_v3 = vadd.f32 %v4525_v60, %v4524_v16  ;;  %v12109_v61 = vld [vmem:[#allocation110_spill] sm:$0xff] }
 0x547   :  { %v5526_v58 = vperm.slane %v5397_v10, %v12105_v23  ;;  %v5527_v15 = vperm.slane %v5398_v63, %v12105_v23  ;;  %v5528_v43 = vperm.slane %v5399_v34, %v12105_v23  ;;  %v10589_v10 = vpop.eup %6708  ;;  %v4535_v29 = vrot.slane %v12109_v61, 4 }
 0x548   :  { %v5529_v49 = vperm.slane %v5400_v9, %v12105_v23  ;;  %v5349_v34 = vadd.f32 %v10524_v36, %v10164_v50  ;;  %v5350_v5 = vadd.f32 %v10524_v36, %v10234_v22  ;;  %v5530_v40 = vperm.slane %v5401_v59, %v12105_v23  ;;  %v10600_v57 = vpop.eup %6710 }
 0x549   :  { %v5583_v63 = vsel %vm3190_vm3, %v5527_v15, %v5526_v58  ;;  %v4521_v16 = vrot.slane %v4520_v11, 1  ;;  %v5472_v60 = vperm.slane %v5343_v28, %v12105_v23  ;;  %v10604_v41 = vpop.eup %6712  ;;  %v4552_v58 = vadd.f32 %v4551_v46, %v4550_v31  ;;  %v12110_v15 = vld [vmem:[#allocation139_spill] sm:$0xff]  ;;  %v10616_v28 = vpop.xlane.xlu1 %5327 }
 0x54a   :  { %v5584_v26 = vsel %vm3192_vm4, %v5528_v43, %v5583_v63  ;;  %v5344_v50 = vadd.f32 %v10552_v53, %v12110_v15  ;;  %v5534_v22 = vsel %vm3190_vm3, %v5471_v17, %v5470_v38  ;;  %v4527_v43 = vrot.slane %v4526_v3, 1 }
 0x54b   :  { %v5585_v9 = vsel %vm3194_vm5, %v5529_v49, %v5584_v26  ;;  %v4566_v63 = vadd.f32 %v4565_v6, %v12108_v2  ;;  %v4536_v48 = vadd.f32 %v4535_v29, %v12109_v61  ;;  %v5478_v31 = vperm.slane %v5349_v34, %v12105_v23  ;;  %v12111_v6 = vld [vmem:[#allocation111_spill] sm:$0xff]  ;;  %v12112_v34 = vld [vmem:[#allocation138_spill] sm:$0xff] }
 0x54c   :  { %v10610_v59 = vsel %vm3196_vm6, %v5530_v40, %v5585_v9  ;;  %v5479_v46 = vperm.slane %v5350_v5, %v12105_v23  ;;  %v5345_v40 = vadd.f32 %v10552_v53, %v10178_v54  ;;  %v5535_v38 = vsel %vm3192_vm4, %v5472_v60, %v5534_v22  ;;  %v12114_v60 = vld [vmem:[#allocation112_spill] sm:$0xff]  ;;  %v12116_v22 = vld [vmem:[#allocation141_spill] sm:$0xff] }
 0x54d   :  { %6718 = vrcp.f32 %v4552_v58  ;;  %v4522_v2 = vadd.f32 %v4521_v16, %v4520_v11  ;;  %v4541_v17 = vrot.slane %v12111_v6, 4  ;;  %v5473_v61 = vperm.slane %v5344_v50, %v12105_v23  ;;  %v12113_v11 = vld [vmem:[#allocation17_spill] sm:$0xff]  ;;  %v12115_v58 = vld [vmem:[#allocation140_spill] sm:$0xff]  ;;  %v10637_v50 = vpop.eup %6714 }
 0x54e   :  { %v4528_v4 = vadd.f32 %v4527_v43, %v4526_v3  ;;  %v4567_v29 = vrot.slane %v4566_v63, 2  ;;  %v4537_v49 = vrot.slane %v4536_v48, 2  ;;  %v5352_v5 = vadd.f32 %v10524_v36, %v10199_v13  ;;  %v10643_v62 = vpop.eup %6716 }
 0x54f   :  { %v5541_v18 = vsel %vm3190_vm3, %v5479_v46, %v5478_v31  ;;  %v5346_v54 = vadd.f32 %v10552_v53, %v12112_v34  ;;  %v5536_v26 = vsel %vm3194_vm5, %v5473_v61, %v5535_v38  ;;  %v4583_v16 = vrot.slane %v12113_v11, 4 }
 0x550   :  { %v4553_v9 = vrot.slane %v12114_v60, 4  ;;  %v5347_v3 = vadd.f32 %v10552_v53, %v12115_v58  ;;  %v5474_v15 = vperm.slane %v5345_v40, %v12105_v23  ;;  %6720 = vrcp.f32 %v4522_v2 }
 0x551   :  { %v5353_v13 = vadd.f32 %v10524_v36, %v10267_v37  ;;  %v5348_v43 = vadd.f32 %v10552_v53, %v12116_v22  ;;  %v10645_v31 = vadd.f32 %v4567_v29, %v4566_v63  ;;  %v10648_v46 = vadd.f32 %v4541_v17, %v12111_v6  ;;  %v10666_v17 = vpop.xlane.xlu2 %5307 }
 0x552   :  { %v5542_v38 = vsel %vm3192_vm4, %v5480_v32, %v5541_v18  ;;  %v5537_v40 = vsel %vm3196_vm6, %v5474_v15, %v5536_v26  ;;  %6722 = vrcp.f32 %v4528_v4  ;;  %v10654_v2 = vadd.f32 %v4537_v49, %v4536_v48  ;;  %v10669_v4 = vpop.xlane.xlu1 %5336  ;;  %v12117_v18 = vld [vmem:[#allocation55_spill] sm:$0xff] }
 0x553   :  { %v10652_v61 = vpop.eup %6718  ;;  %v5481_v37 = vperm.slane %v5352_v5, %v12105_v23  ;;  %v5475_v53 = vperm.slane %v5346_v54, %v12105_v23  ;;  %v10659_v34 = vadd.f32 %v4583_v16, %v12113_v11  ;;  %v10662_v63 = vadd.f32 %v4553_v9, %v12114_v60  ;;  %v12119_v16 = vld [vmem:[#allocation49_spill] sm:$0xff] }
 0x554   :  { %v5354_v6 = vadd.f32 %v10524_v36, %v10276_v24  ;;  %v5476_v29 = vperm.slane %v5347_v3, %v12105_v23  ;;  %v5482_v48 = vperm.slane %v5353_v13, %v12105_v23  ;;  %v5477_v32 = vperm.slane %v5348_v43, %v12105_v23  ;;  %v12118_v24 = vld [vmem:[#allocation51_spill] sm:$0xff]  ;;  %v12120_v13 = vld [vmem:[#allocation142_spill] sm:$0xff] }
 0x555   :  { %v5543_v49 = vsel %vm3194_vm5, %v5481_v37, %v5542_v38  ;;  %v5538_v5 = vsel %vm3198_vm7, %v5475_v53, %v5537_v40  ;;  %v4799_v54 = vmul.f32 %v10490_v56, %v12117_v18  ;;  %v4798_v11 = vmul.f32 %v10486_v0, %v12118_v24 }
 0x556   :  { %v5539_v26 = vsel %vm3200_vm8, %v5476_v29, %v5538_v5  ;;  %v4797_v60 = vmul.f32 %v10468_v33, %v12119_v16  ;;  %v10682_v9 = vpop.eup %6720  ;;  %v5389_v3 = vadd.f32 %v10669_v4, %v10459_v42  ;;  %v5390_v15 = vadd.f32 %v10669_v4, %v10448_v27  ;;  %v12121_v42 = vld [vmem:[#allocation113_spill] sm:$0xff] }
 0x557   :  { %v10685_v58 = vsel %vm3202_vm9, %v5477_v32, %v5539_v26  ;;  %v5391_v56 = vadd.f32 %v10669_v4, %v10425_v47  ;;  %v5355_v0 = vadd.f32 %v10524_v36, %v12120_v13  ;;  %v4543_v40 = vrot.slane %v10648_v46, 2 }
 0x558   :  { %v5600_v22 = vmul.f32 %v10685_v58, %v4799_v54  ;;  %v5599_v33 = vmul.f32 %v10685_v58, %v4798_v11  ;;  %v5598_v43 = vmul.f32 %v10685_v58, %v4797_v60  ;;  %v10698_v38 = vpop.eup %6722  ;;  %v4559_v37 = vrot.slane %v12121_v42, 4  ;;  %v12122_v60 = vld [vmem:[#allocation63_spill] sm:$0xff] }
 0x559   :  { %v5544_v27 = vsel %vm3196_vm6, %v5482_v48, %v5543_v49  ;;  %v5392_v47 = vadd.f32 %v10669_v4, %v10484_v21  ;;  %v5393_v5 = vadd.f32 %v10669_v4, %v10461_v25  ;;  %v4585_v18 = vrot.slane %v10659_v34, 2  ;;  %v10725_v13 = vpop.xlane.xlu2 %5324 }
 0x55a   :  { %v5668_v53 = vsel %vm104_vm2, %v5600_v22, 0.0  ;;  %v5665_v29 = vsel %vm104_vm2, %v5599_v33, 0.0  ;;  %v5662_v32 = vsel %vm104_vm2, %v5598_v43, 0.0  ;;  %v5518_v54 = vperm.slane %v5389_v3, %v12105_v23 }
 0x55b   :  { %5669 = vadd.xlane.f32.xlu0 %v5668_v53  ;;  %5666 = vadd.xlane.f32.xlu1 %v5665_v29  ;;  %v5519_v48 = vperm.slane %v5390_v15, %v12105_v23  ;;  %v5520_v49 = vperm.slane %v5391_v56, %v12105_v23  ;;  %v4555_v21 = vrot.slane %v10662_v63, 2  ;;  %v5356_v26 = vadd.f32 %v10524_v36, %v10301_v7  ;;  %v12123_v15 = vld [vmem:[#allocation62_spill] sm:$0xff]  ;;  %v12124_v36 = vld [vmem:[#allocation47_spill] sm:$0xff] }
 0x55c   :  { %v5483_v24 = vperm.slane %v5354_v6, %v12105_v23  ;;  %v5484_v11 = vperm.slane %v5355_v0, %v12105_v23  ;;  %5663 = vadd.xlane.f32.xlu2 %v5662_v32  ;;  %v5521_v25 = vperm.slane %v5392_v47, %v12105_v23  ;;  %v4802_v3 = vmul.f32 %v10503_v35, %v12122_v60 }
 0x55d   :  { %v5576_v16 = vsel %vm3190_vm3, %v5519_v48, %v5518_v54  ;;  %v4801_v56 = vmul.f32 %v10499_v14, %v12123_v15  ;;  %v5522_v22 = vperm.slane %v5393_v5, %v12105_v23  ;;  %v4800_v6 = vmul.f32 %v10472_v20, %v12124_v36  ;;  %v12126_v5 = vld [vmem:[#allocation143_spill] sm:$0xff] }
 0x55e   :  { %v5577_v7 = vsel %vm3192_vm4, %v5520_v49, %v5576_v16  ;;  %v5545_v0 = vsel %vm3198_vm7, %v5483_v24, %v5544_v27  ;;  %v4560_v33 = vadd.f32 %v4559_v37, %v12121_v42  ;;  %v5603_v35 = vmul.f32 %v10685_v58, %v4802_v3  ;;  %v12125_v42 = vld [vmem:[#allocation145_spill] sm:$0xff]  ;;  %v12127_v15 = vld [vmem:[#allocation147_spill] sm:$0xff] }
 0x55f   :  { %v5578_v43 = vsel %vm3194_vm5, %v5521_v25, %v5577_v7  ;;  %v5602_v47 = vmul.f32 %v10685_v58, %v4801_v56  ;;  %v4569_v14 = vrot.slane %v10645_v31, 1  ;;  %v5601_v29 = vmul.f32 %v10685_v58, %v4800_v6  ;;  %v12130_v56 = vld [vmem:[#allocation65_spill] sm:$0xff]  ;;  %v12132_v6 = vld [vmem:[#allocation50_spill] sm:$0xff] }
 0x560   :  { %v10738_v53 = vsel %vm3196_vm6, %v5522_v22, %v5578_v43  ;;  %v5546_v32 = vsel %vm3200_vm8, %v5484_v11, %v5545_v0  ;;  %v4539_v20 = vrot.slane %v10654_v2, 1  ;;  %v5485_v27 = vperm.slane %v5356_v26, %v12105_v23  ;;  %v12131_v22 = vld [vmem:[#allocation82_spill] sm:$0xff] }
 0x561   :  { %v5357_v37 = vadd.f32 %v10725_v13, %v12125_v42  ;;  %v5358_v54 = vadd.f32 %v10725_v13, %v12126_v5  ;;  %v4544_v48 = vadd.f32 %v4543_v40, %v10648_v46  ;;  %v4586_v49 = vadd.f32 %v4585_v18, %v10659_v34  ;;  %v12128_v34 = vld [vmem:[#allocation66_spill] sm:$0xff]  ;;  %v12129_v40 = vld [vmem:[#allocation44_spill] sm:$0xff] }
 0x562   :  { %v5677_v24 = vsel %vm104_vm2, %v5603_v35, 0.0  ;;  %v5674_v25 = vsel %vm104_vm2, %v5602_v47, 0.0  ;;  %v4556_v11 = vadd.f32 %v4555_v21, %v10662_v63  ;;  %v4561_v16 = vrot.slane %v4560_v33, 2  ;;  %v12133_v0 = vld [vmem:[#allocation78_spill] sm:$0xff] }
 0x563   :  { %5678 = vadd.xlane.f32.xlu0 %v5677_v24  ;;  %5675 = vadd.xlane.f32.xlu1 %v5674_v25  ;;  %v5671_v26 = vsel %vm104_vm2, %v5601_v29, 0.0  ;;  %v10755_v60 = vsel %vm3202_vm9, %v5485_v27, %v5546_v32  ;;  %v4570_v3 = vadd.f32 %v4569_v14, %v10645_v31  ;;  %v5359_v46 = vadd.f32 %v10725_v13, %v12127_v15  ;;  %v12134_v27 = vld [vmem:[#allocation114_spill] sm:$0xff] }
 0x564   :  { %5672 = vadd.xlane.f32.xlu2 %v5671_v26  ;;  %v4805_v18 = vmul.f32 %v12129_v40, %v12128_v34  ;;  %v4804_v63 = vmul.f32 %v12131_v22, %v12130_v56  ;;  %v4540_v21 = vadd.f32 %v4539_v20, %v10654_v2  ;;  %v5486_v7 = vperm.slane %v5357_v37, %v12105_v23  ;;  %v12135_v20 = vld [vmem:[#allocation115_spill] sm:$0xff]  ;;  %v12139_v22 = vld [vmem:[#allocation68_spill] sm:$0xff] }
 0x565   :  { %v5487_v36 = vperm.slane %v5358_v54, %v12105_v23  ;;  %v4803_v43 = vmul.f32 %v12133_v0, %v12132_v6  ;;  %v4545_v31 = vrot.slane %v4544_v48, 1  ;;  %v4587_v35 = vrot.slane %v4586_v49, 1  ;;  %v12136_v54 = vld [vmem:[#allocation148_spill] sm:$0xff]  ;;  %v12141_v6 = vld [vmem:[#allocation61_spill] sm:$0xff] }
 0x566   :  { %v5606_v47 = vmul.f32 %v10755_v60, %v4805_v18  ;;  %v5605_v14 = vmul.f32 %v10685_v58, %v4804_v63  ;;  %v4557_v29 = vrot.slane %v4556_v11, 1  ;;  %v4562_v32 = vadd.f32 %v4561_v16, %v4560_v33  ;;  %v12142_v0 = vld [vmem:[#allocation16_spill] sm:$0xff] }
 0x567   :  { %v4601_v42 = vrot.slane %v12134_v27, 4  ;;  %v5604_v5 = vmul.f32 %v10685_v58, %v4803_v43  ;;  %6724 = vrcp.f32 %v4570_v3  ;;  %v5488_v2 = vperm.slane %v5359_v46, %v12105_v23  ;;  %v12137_v46 = vld [vmem:[#allocation144_spill] sm:$0xff] }
 0x568   :  { %6726 = vrcp.f32 %v4540_v21  ;;  %v4571_v37 = vrot.slane %v12135_v20, 4  ;;  %v5360_v24 = vadd.f32 %v10725_v13, %v12136_v54  ;;  %v5548_v25 = vsel %vm3190_vm3, %v5487_v36, %v5486_v7  ;;  %v12140_v21 = vld [vmem:[#allocation116_spill] sm:$0xff] }
 0x569   :  { %v4546_v26 = vadd.f32 %v4545_v31, %v4544_v48  ;;  %v4588_v15 = vadd.f32 %v4587_v35, %v4586_v49  ;;  %v5686_v34 = vsel %vm104_vm2, %v5606_v47, 0.0  ;;  %v5683_v33 = vsel %vm104_vm2, %v5605_v14, 0.0  ;;  %v12138_v48 = vld [vmem:[#allocation69_spill] sm:$0xff] }
 0x56a   :  { %v4558_v16 = vadd.f32 %v4557_v29, %v4556_v11  ;;  %v4563_v40 = vrot.slane %v4562_v32, 1  ;;  %v4602_v58 = vadd.f32 %v4601_v42, %v12134_v27  ;;  %v5680_v3 = vsel %vm104_vm2, %v5604_v5, 0.0  ;;  %v12144_v5 = vld [vmem:[#allocation155_spill] sm:$0xff] }
 0x56b   :  { %5687 = vadd.xlane.f32.xlu0 %v5686_v34  ;;  %5684 = vadd.xlane.f32.xlu1 %v5683_v33  ;;  %v5361_v18 = vadd.f32 %v10725_v13, %v12137_v46  ;;  %v5549_v56 = vsel %vm3192_vm4, %v5488_v2, %v5548_v25  ;;  %v4808_v49 = vmul.f32 %v10535_v30, %v12138_v48  ;;  %v4577_v7 = vrot.slane %v12140_v21, 4  ;;  %v12146_v34 = vld [vmem:[#allocation151_spill] sm:$0xff] }
 0x56c   :  { %5681 = vadd.xlane.f32.xlu2 %v5680_v3  ;;  %v4807_v63 = vmul.f32 %v10533_v8, %v12139_v22  ;;  %v4572_v11 = vadd.f32 %v4571_v37, %v12135_v20  ;;  %v5489_v36 = vperm.slane %v5360_v24, %v12105_v23  ;;  %v4806_v43 = vmul.f32 %v12142_v0, %v12141_v6  ;;  %v12143_v8 = vld [vmem:[#allocation150_spill] sm:$0xff]  ;;  %v12147_v48 = vld [vmem:[#allocation163_spill] sm:$0xff] }
 0x56d   :  { %v10794_v31 = vpop.eup %6724  ;;  %6728 = vrcp.f32 %v4546_v26  ;;  %v5609_v35 = vmul.f32 %v10755_v60, %v4808_v49  ;;  %v4603_v14 = vrot.slane %v4602_v58, 2  ;;  %v5362_v29 = vadd.f32 %v10725_v13, %v12143_v8  ;;  %v12145_v20 = vld [vmem:[#allocation162_spill] sm:$0xff] }
 0x56e   :  { %v5608_v47 = vmul.f32 %v10755_v60, %v4807_v63  ;;  %v10798_v30 = vpop.eup %6726  ;;  %v5550_v27 = vsel %vm3194_vm5, %v5489_v36, %v5549_v56  ;;  %v5607_v42 = vmul.f32 %v10755_v60, %v4806_v43  ;;  %6730 = vrcp.f32 %v4588_v15  ;;  %v12148_v63 = vld [vmem:[#allocation21_spill] sm:$0xff]  ;;  %v12150_v6 = vld [vmem:[#allocation146_spill] sm:$0xff]  ;;  %v12151_v43 = vld [vmem:[#allocation64_spill] sm:$0xff] }
 0x56f   :  { %v5373_v2 = vadd.f32 %v10540_v51, %v12144_v5  ;;  %v5374_v37 = vadd.f32 %v10540_v51, %v12145_v20  ;;  %v5490_v54 = vperm.slane %v5361_v18, %v12105_v23  ;;  %6732 = vrcp.f32 %v4558_v16 }
 0x570   :  { %v4564_v24 = vadd.f32 %v4563_v40, %v4562_v32  ;;  %v4573_v25 = vrot.slane %v4572_v11, 2  ;;  %v4578_v26 = vadd.f32 %v4577_v7, %v12140_v21  ;;  %v5363_v33 = vadd.f32 %v10725_v13, %v12146_v34 }
 0x571   :  { %v5551_v3 = vsel %vm3196_vm6, %v5490_v54, %v5550_v27  ;;  %v5695_v15 = vsel %vm104_vm2, %v5609_v35, 0.0  ;;  %v5692_v46 = vsel %vm104_vm2, %v5608_v47, 0.0  ;;  %v4604_v56 = vadd.f32 %v4603_v14, %v4602_v58  ;;  %v12149_v58 = vld [vmem:[#allocation57_spill] sm:$0xff] }
 0x572   :  { %v5375_v49 = vadd.f32 %v10540_v51, %v12147_v48  ;;  %v5491_v18 = vperm.slane %v5362_v29, %v12105_v23  ;;  %v5689_v32 = vsel %vm104_vm2, %v5607_v42, 0.0  ;;  %v5502_v40 = vperm.slane %v5373_v2, %v12105_v23  ;;  %v12152_v35 = vld [vmem:[#allocation81_spill] sm:$0xff]  ;;  %v12153_v2 = vld [vmem:[#allocation158_spill] sm:$0xff] }
 0x573   :  { %5696 = vadd.xlane.f32.xlu0 %v5695_v15  ;;  %5693 = vadd.xlane.f32.xlu1 %v5692_v46  ;;  %v10819_v16 = vpop.eup %6728  ;;  %v5503_v22 = vperm.slane %v5374_v37, %v12105_v23  ;;  %v4811_v21 = vmul.f32 %v10547_v52, %v12148_v63  ;;  %v4810_v7 = vmul.f32 %v10544_v19, %v12149_v58  ;;  %v4579_v29 = vrot.slane %v4578_v26, 2 }
 0x574   :  { %5690 = vadd.xlane.f32.xlu2 %v5689_v32  ;;  %v4574_v36 = vadd.f32 %v4573_v25, %v4572_v11  ;;  %v5364_v0 = vadd.f32 %v10725_v13, %v12150_v6  ;;  %v4809_v47 = vmul.f32 %v12152_v35, %v12151_v43  ;;  %v5552_v14 = vsel %vm3198_vm7, %v5491_v18, %v5551_v3  ;;  %v10832_v8 = vpop.eup %6730  ;;  %v12154_v25 = vld [vmem:[#allocation117_spill] sm:$0xff]  ;;  %v12160_v35 = vld [vmem:[#allocation58_spill] sm:$0xff] }
 0x575   :  { %v5492_v27 = vperm.slane %v5363_v33, %v12105_v23  ;;  %v5612_v42 = vmul.f32 %v10755_v60, %v4811_v21  ;;  %v5611_v52 = vmul.f32 %v10755_v60, %v4810_v7  ;;  %v10837_v5 = vpop.eup %6732  ;;  %6734 = vrcp.f32 %v4564_v24  ;;  %v12155_v3 = vld [vmem:[#allocation153_spill] sm:$0xff]  ;;  %v12156_v24 = vld [vmem:[#allocation154_spill] sm:$0xff] }
 0x576   :  { %v5504_v19 = vperm.slane %v5375_v49, %v12105_v23  ;;  %v5610_v13 = vmul.f32 %v10755_v60, %v4809_v47  ;;  %v4605_v11 = vrot.slane %v4604_v56, 1  ;;  %v5376_v20 = vadd.f32 %v10540_v51, %v12153_v2  ;;  %v12163_v2 = vld [vmem:[#allocation166_spill] sm:$0xff] }
 0x577   :  { %v5562_v37 = vsel %vm3190_vm3, %v5503_v22, %v5502_v40  ;;  %v5553_v54 = vsel %vm3200_vm8, %v5492_v27, %v5552_v14  ;;  %v4619_v34 = vrot.slane %v12154_v25, 4  ;;  %v5493_v33 = vperm.slane %v5364_v0, %v12105_v23  ;;  %v12157_v40 = vld [vmem:[#allocation165_spill] sm:$0xff] }
 0x578   :  { %v5365_v15 = vadd.f32 %v10616_v28, %v12155_v3  ;;  %v5366_v46 = vadd.f32 %v10616_v28, %v12156_v24  ;;  %v4575_v48 = vrot.slane %v4574_v36, 1  ;;  %v10851_v49 = vadd.f32 %v4579_v29, %v4578_v26  ;;  %v12158_v26 = vld [vmem:[#allocation149_spill] sm:$0xff]  ;;  %v12161_v29 = vld [vmem:[#allocation22_spill] sm:$0xff] }
 0x579   :  { %v5704_v18 = vsel %vm104_vm2, %v5612_v42, 0.0  ;;  %v5701_v32 = vsel %vm104_vm2, %v5611_v52, 0.0  ;;  %v5377_v22 = vadd.f32 %v10540_v51, %v12157_v40  ;;  %v5563_v63 = vsel %vm3192_vm4, %v5504_v19, %v5562_v37  ;;  %v12159_v0 = vld [vmem:[#allocation53_spill] sm:$0xff]  ;;  %v12162_v19 = vld [vmem:[#allocation67_spill] sm:$0xff] }
 0x57a   :  { %v5698_v21 = vsel %vm104_vm2, %v5610_v13, 0.0  ;;  %v10860_v58 = vsel %vm3202_vm9, %v5493_v33, %v5553_v54  ;;  %v5505_v7 = vperm.slane %v5376_v20, %v12105_v23  ;;  %v5367_v6 = vadd.f32 %v10616_v28, %v12158_v26  ;;  %v12164_v54 = vld [vmem:[#allocation161_spill] sm:$0xff] }
 0x57b   :  { %5705 = vadd.xlane.f32.xlu0 %v5704_v18  ;;  %5702 = vadd.xlane.f32.xlu1 %v5701_v32  ;;  %v4814_v43 = vmul.f32 %v10561_v55, %v12159_v0  ;;  %v4813_v47 = vmul.f32 %v10555_v44, %v12160_v35  ;;  %v10869_v14 = vpop.eup %6734  ;;  %v4589_v27 = vrot.slane %v12161_v29, 4  ;;  %v5494_v42 = vperm.slane %v5365_v15, %v12105_v23  ;;  %v12165_v3 = vld [vmem:[#allocation169_spill] sm:$0xff]  ;;  %v12169_v35 = vld [vmem:[#allocation26_spill] sm:$0xff] }
 0x57c   :  { %5699 = vadd.xlane.f32.xlu2 %v5698_v21  ;;  %v5495_v52 = vperm.slane %v5366_v46, %v12105_v23  ;;  %v4812_v13 = vmul.f32 %v10526_v39, %v12162_v19  ;;  %v5378_v20 = vadd.f32 %v10540_v51, %v12163_v2  ;;  %v5564_v37 = vsel %vm3194_vm5, %v5505_v7, %v5563_v63  ;;  %v12166_v7 = vld [vmem:[#allocation156_spill] sm:$0xff] }
 0x57d   :  { %v5615_v55 = vmul.f32 %v10860_v58, %v4814_v43  ;;  %v5614_v44 = vmul.f32 %v10860_v58, %v4813_v47  ;;  %v5379_v33 = vadd.f32 %v10540_v51, %v12164_v54  ;;  %v5380_v15 = vadd.f32 %v10540_v51, %v12165_v3 }
 0x57e   :  { %v5506_v24 = vperm.slane %v5377_v22, %v12105_v23  ;;  %v5613_v46 = vmul.f32 %v10755_v60, %v4812_v13  ;;  %v4606_v39 = vadd.f32 %v4605_v11, %v4604_v56  ;;  %v10887_v18 = vadd.f32 %v4575_v48, %v4574_v36  ;;  %v12167_v22 = vld [vmem:[#allocation118_spill] sm:$0xff]  ;;  %v12171_v13 = vld [vmem:[#allocation59_spill] sm:$0xff] }
 0x57f   :  { %v4620_v32 = vadd.f32 %v4619_v34, %v12154_v25  ;;  %v5496_v40 = vperm.slane %v5367_v6, %v12105_v23  ;;  %v10892_v63 = vadd.f32 %v4589_v27, %v12161_v29  ;;  %v5368_v26 = vadd.f32 %v10616_v28, %v12166_v7  ;;  %v12168_v34 = vld [vmem:[#allocation157_spill] sm:$0xff]  ;;  %v12170_v29 = vld [vmem:[#allocation60_spill] sm:$0xff] }
 0x580   :  { %v5565_v21 = vsel %vm3196_vm6, %v5506_v24, %v5564_v37  ;;  %v5555_v51 = vsel %vm3190_vm3, %v5495_v52, %v5494_v42  ;;  %v4595_v0 = vrot.slane %v12167_v22, 4  ;;  %v5507_v60 = vperm.slane %v5378_v20, %v12105_v23 }
 0x581   :  { %v5713_v56 = vsel %vm104_vm2, %v5615_v55, 0.0  ;;  %v5710_v36 = vsel %vm104_vm2, %v5614_v44, 0.0  ;;  %v5508_v11 = vperm.slane %v5379_v33, %v12105_v23  ;;  %v5509_v25 = vperm.slane %v5380_v15, %v12105_v23  ;;  %v12173_v33 = vld [vmem:[#allocation152_spill] sm:$0xff] }
 0x582   :  { %v5369_v48 = vadd.f32 %v10616_v28, %v12168_v34  ;;  %v5707_v6 = vsel %vm104_vm2, %v5613_v46, 0.0  ;;  %v5556_v43 = vsel %vm3192_vm4, %v5496_v40, %v5555_v51  ;;  %v4817_v47 = vmul.f32 %v10578_v12, %v12169_v35  ;;  %v12174_v46 = vld [vmem:[#allocation120_spill] sm:$0xff] }
 0x583   :  { %5714 = vadd.xlane.f32.xlu0 %v5713_v56  ;;  %5711 = vadd.xlane.f32.xlu1 %v5710_v36  ;;  %v4816_v27 = vmul.f32 %v10574_v1, %v12170_v29  ;;  %v5566_v42 = vsel %vm3198_vm7, %v5507_v60, %v5565_v21  ;;  %v4621_v52 = vrot.slane %v4620_v32, 2  ;;  %v5497_v19 = vperm.slane %v5368_v26, %v12105_v23  ;;  %v12172_v1 = vld [vmem:[#allocation119_spill] sm:$0xff]  ;;  %v12175_v21 = vld [vmem:[#allocation121_spill] sm:$0xff] }
 0x584   :  { %5708 = vadd.xlane.f32.xlu2 %v5707_v6  ;;  %v4815_v2 = vmul.f32 %v10537_v45, %v12171_v13  ;;  %v5567_v20 = vsel %vm3200_vm8, %v5508_v11, %v5566_v42  ;;  %v4596_v37 = vadd.f32 %v4595_v0, %v12167_v22  ;;  %v5618_v55 = vmul.f32 %v10860_v58, %v4817_v47  ;;  %v12176_v0 = vld [vmem:[#allocation24_spill] sm:$0xff]  ;;  %v12177_v56 = vld [vmem:[#allocation159_spill] sm:$0xff] }
 0x585   :  { %v5617_v44 = vmul.f32 %v10860_v58, %v4816_v27  ;;  %v10921_v12 = vsel %vm3202_vm9, %v5509_v25, %v5567_v20  ;;  %v4637_v54 = vrot.slane %v12172_v1, 4  ;;  %v5370_v3 = vadd.f32 %v10616_v28, %v12173_v33  ;;  %v12178_v47 = vld [vmem:[#allocation35_spill] sm:$0xff]  ;;  %v12181_v13 = vld [vmem:[#allocation160_spill] sm:$0xff] }
 0x586   :  { %v5557_v15 = vsel %vm3194_vm5, %v5497_v19, %v5556_v43  ;;  %v5616_v45 = vmul.f32 %v10860_v58, %v4815_v2  ;;  %v4581_v24 = vrot.slane %v10851_v49, 1  ;;  %v4607_v40 = vrot.slane %v12174_v46, 4  ;;  %v12179_v27 = vld [vmem:[#allocation19_spill] sm:$0xff]  ;;  %v12182_v20 = vld [vmem:[#allocation52_spill] sm:$0xff] }
 0x587   :  { %v4613_v7 = vrot.slane %v12175_v21, 4  ;;  %v5498_v26 = vperm.slane %v5369_v48, %v12105_v23  ;;  %6736 = vrcp.f32 %v4606_v39  ;;  %v4622_v51 = vadd.f32 %v4621_v52, %v4620_v32  ;;  %v12180_v52 = vld [vmem:[#allocation32_spill] sm:$0xff] }
 0x588   :  { %v4591_v22 = vrot.slane %v10892_v63, 2  ;;  %v4655_v60 = vrot.slane %v12176_v0, 4  ;;  %v5371_v36 = vadd.f32 %v10616_v28, %v12177_v56  ;;  %v5722_v25 = vsel %vm104_vm2, %v5618_v55, 0.0  ;;  %v12183_v55 = vld [vmem:[#allocation48_spill] sm:$0xff] }
 0x589   :  { %v5558_v11 = vsel %vm3196_vm6, %v5498_v26, %v5557_v15  ;;  %v5719_v34 = vsel %vm104_vm2, %v5617_v44, 0.0  ;;  %v4597_v6 = vrot.slane %v4596_v37, 2  ;;  %v4638_v43 = vadd.f32 %v4637_v54, %v12172_v1 }
 0x58a   :  { %v5499_v48 = vperm.slane %v5370_v3, %v12105_v23  ;;  %v5716_v39 = vsel %vm104_vm2, %v5616_v45, 0.0  ;;  %v4608_v32 = vadd.f32 %v4607_v40, %v12174_v46  ;;  %v4614_v35 = vadd.f32 %v4613_v7, %v12175_v21 }
 0x58b   :  { %5723 = vadd.xlane.f32.xlu0 %v5722_v25  ;;  %5720 = vadd.xlane.f32.xlu1 %v5719_v34  ;;  %v4820_v29 = vmul.f32 %v10600_v57, %v12178_v47  ;;  %v4819_v42 = vmul.f32 %v10589_v10, %v12179_v27  ;;  %v4625_v19 = vrot.slane %v12180_v52, 4  ;;  %v5372_v2 = vadd.f32 %v10616_v28, %v12181_v13 }
 0x58c   :  { %5717 = vadd.xlane.f32.xlu2 %v5716_v39  ;;  %v4818_v44 = vmul.f32 %v12183_v55, %v12182_v20  ;;  %v5559_v1 = vsel %vm3198_vm7, %v5499_v48, %v5558_v11  ;;  %v4656_v54 = vadd.f32 %v4655_v60, %v12176_v0  ;;  %v5500_v33 = vperm.slane %v5371_v36, %v12105_v23  ;;  %v12184_v11 = vld [vmem:[#allocation122_spill] sm:$0xff]  ;;  %v12186_v39 = vld [vmem:[#allocation28_spill] sm:$0xff] }
 0x58d   :  { %v5621_v3 = vmul.f32 %v10860_v58, %v4820_v29  ;;  %v5620_v57 = vmul.f32 %v10860_v58, %v4819_v42  ;;  %v10958_v15 = vpop.eup %6736  ;;  %6738 = vrcp.f32 %v10887_v18  ;;  %v4592_v10 = vadd.f32 %v4591_v22, %v10892_v63 }
 0x58e   :  { %v4639_v28 = vrot.slane %v4638_v43, 2  ;;  %v5619_v45 = vmul.f32 %v10860_v58, %v4818_v44  ;;  %v4582_v46 = vadd.f32 %v4581_v24, %v10851_v49  ;;  %v4598_v40 = vadd.f32 %v4597_v6, %v4596_v37  ;;  %v12185_v6 = vld [vmem:[#allocation38_spill] sm:$0xff] }
 0x58f   :  { %v4609_v21 = vrot.slane %v4608_v32, 2  ;;  %v5560_v7 = vsel %vm3200_vm8, %v5500_v33, %v5559_v1  ;;  %v4623_v26 = vrot.slane %v4622_v51, 1  ;;  %v4615_v0 = vrot.slane %v4614_v35, 2  ;;  %v12189_v1 = vld [vmem:[#allocation123_spill] sm:$0xff] }
 0x590   :  { %v4626_v60 = vadd.f32 %v4625_v19, %v12180_v52  ;;  %v5501_v56 = vperm.slane %v5372_v2, %v12105_v23  ;;  %v4657_v36 = vrot.slane %v4656_v54, 2  ;;  %v4631_v18 = vrot.slane %v12184_v11, 4  ;;  %v12187_v52 = vld [vmem:[#allocation54_spill] sm:$0xff] }
 0x591   :  { %v5731_v63 = vsel %vm104_vm2, %v5621_v3, 0.0  ;;  %v5728_v22 = vsel %vm104_vm2, %v5620_v57, 0.0  ;;  %v4593_v58 = vrot.slane %v4592_v10, 1  ;;  %v4640_v25 = vadd.f32 %v4639_v28, %v4638_v43  ;;  %v12188_v19 = vld [vmem:[#allocation90_spill] sm:$0xff]  ;;  %v12190_v28 = vld [vmem:[#allocation124_spill] sm:$0xff] }
 0x592   :  { %v5725_v49 = vsel %vm104_vm2, %v5619_v45, 0.0  ;;  %v10972_v37 = vsel %vm3202_vm9, %v5501_v56, %v5560_v7  ;;  %v4599_v24 = vrot.slane %v4598_v40, 1  ;;  %v4610_v34 = vadd.f32 %v4609_v21, %v4608_v32 }
 0x593   :  { %5732 = vadd.xlane.f32.xlu0 %v5731_v63  ;;  %5729 = vadd.xlane.f32.xlu1 %v5728_v22  ;;  %v4823_v48 = vmul.f32 %v10643_v62, %v12185_v6  ;;  %v4822_v47 = vmul.f32 %v10637_v50, %v12186_v39  ;;  %v10978_v29 = vpop.eup %6738  ;;  %v4624_v27 = vadd.f32 %v4623_v26, %v4622_v51  ;;  %v4627_v42 = vrot.slane %v4626_v60, 2 }
 0x594   :  { %5726 = vadd.xlane.f32.xlu2 %v5725_v49  ;;  %v4616_v43 = vadd.f32 %v4615_v0, %v4614_v35  ;;  %v4821_v13 = vmul.f32 %v12188_v19, %v12187_v52  ;;  %v4658_v2 = vadd.f32 %v4657_v36, %v4656_v54  ;;  %v4632_v20 = vadd.f32 %v4631_v18, %v12184_v11  ;;  %v12192_v36 = vld [vmem:[#allocation25_spill] sm:$0xff]  ;;  %v12194_v49 = vld [vmem:[#allocation92_spill] sm:$0xff] }
 0x595   :  { %v5624_v32 = vmul.f32 %v10972_v37, %v4823_v48  ;;  %v5623_v55 = vmul.f32 %v10972_v37, %v4822_v47  ;;  %v4594_v44 = vadd.f32 %v4593_v58, %v4592_v10  ;;  %v4641_v62 = vrot.slane %v4640_v25, 1  ;;  %v10997_v58 = vpop.xlane.xlu2 %5333  ;;  %v12196_v52 = vld [vmem:[#allocation168_spill] sm:$0xff] }
 0x596   :  { %v4673_v33 = vrot.slane %v12189_v1, 4  ;;  %v5622_v50 = vmul.f32 %v10972_v37, %v4821_v13  ;;  %6740 = vrcp.f32 %v4582_v46  ;;  %v4600_v51 = vadd.f32 %v4599_v24, %v4598_v40  ;;  %v12197_v13 = vld [vmem:[#allocation164_spill] sm:$0xff] }
 0x597   :  { %v4611_v35 = vrot.slane %v4610_v34, 1  ;;  %6742 = vrcp.f32 %v4624_v27  ;;  %v4617_v3 = vrot.slane %v4616_v43, 1  ;;  %v4628_v57 = vadd.f32 %v4627_v42, %v4626_v60  ;;  %v12191_v60 = vld [vmem:[#allocation36_spill] sm:$0xff]  ;;  %v12195_v27 = vld [vmem:[#allocation125_spill] sm:$0xff] }
 0x598   :  { %v4643_v54 = vrot.slane %v12190_v28, 4  ;;  %v4659_v45 = vrot.slane %v4658_v2, 1  ;;  %v4633_v21 = vrot.slane %v4632_v20, 2  ;;  %v5740_v7 = vsel %vm104_vm2, %v5624_v32, 0.0 }
 0x599   :  { %v5737_v26 = vsel %vm104_vm2, %v5623_v55, 0.0  ;;  %6744 = vrcp.f32 %v4594_v44  ;;  %v4642_v10 = vadd.f32 %v4641_v62, %v4640_v25  ;;  %v4674_v0 = vadd.f32 %v4673_v33, %v12189_v1  ;;  %v12193_v25 = vld [vmem:[#allocation23_spill] sm:$0xff] }
 0x59a   :  { %v5734_v46 = vsel %vm104_vm2, %v5622_v50, 0.0  ;;  %6746 = vrcp.f32 %v4600_v51  ;;  %v4612_v40 = vadd.f32 %v4611_v35, %v4610_v34  ;;  %v4826_v56 = vmul.f32 %v10698_v38, %v12191_v60  ;;  %v12198_v35 = vld [vmem:[#allocation41_spill] sm:$0xff] }
 0x59b   :  { %5741 = vadd.xlane.f32.xlu0 %v5740_v7  ;;  %5738 = vadd.xlane.f32.xlu1 %v5737_v26  ;;  %v4825_v11 = vmul.f32 %v10682_v9, %v12192_v36  ;;  %v4618_v18 = vadd.f32 %v4617_v3, %v4616_v43  ;;  %v4629_v63 = vrot.slane %v4628_v57, 1  ;;  %v4644_v22 = vadd.f32 %v4643_v54, %v12190_v28  ;;  %v12200_v7 = vld [vmem:[#allocation29_spill] sm:$0xff] }
 0x59c   :  { %5735 = vadd.xlane.f32.xlu2 %v5734_v46  ;;  %v4824_v24 = vmul.f32 %v12194_v49, %v12193_v25  ;;  %v11001_v6 = vpop.eup %6740  ;;  %v4660_v48 = vadd.f32 %v4659_v45, %v4658_v2  ;;  %v4634_v34 = vadd.f32 %v4633_v21, %v4632_v20  ;;  %v5627_v39 = vmul.f32 %v10972_v37, %v4826_v56  ;;  %v12199_v45 = vld [vmem:[#allocation39_spill] sm:$0xff]  ;;  %v12202_v56 = vld [vmem:[#allocation126_spill] sm:$0xff] }
 0x59d   :  { %v5626_v38 = vmul.f32 %v10972_v37, %v4825_v11  ;;  %v11005_v47 = vpop.eup %6742  ;;  %6748 = vrcp.f32 %v4642_v10  ;;  %v4675_v9 = vrot.slane %v4674_v0, 2  ;;  %v4649_v43 = vrot.slane %v12195_v27, 4  ;;  %v12201_v46 = vld [vmem:[#allocation31_spill] sm:$0xff]  ;;  %v12203_v11 = vld [vmem:[#allocation73_spill] sm:$0xff] }
 0x59e   :  { %v5625_v42 = vmul.f32 %v10972_v37, %v4824_v24  ;;  %6750 = vrcp.f32 %v4612_v40  ;;  %v5381_v19 = vadd.f32 %v10997_v58, %v12196_v52  ;;  %v5382_v2 = vadd.f32 %v10997_v58, %v12197_v13  ;;  %v12206_v52 = vld [vmem:[#allocation127_spill] sm:$0xff] }
 0x59f   :  { %v11013_v20 = vpop.eup %6744  ;;  %6752 = vrcp.f32 %v4618_v18  ;;  %v4630_v32 = vadd.f32 %v4629_v63, %v4628_v57  ;;  %v4645_v55 = vrot.slane %v4644_v22, 2  ;;  %v4635_v62 = vrot.slane %v4634_v34, 1 }
 0x5a0   :  { %v11015_v44 = vpop.eup %6746  ;;  %6754 = vrcp.f32 %v4660_v48  ;;  %v5749_v1 = vsel %vm104_vm2, %v5627_v39, 0.0  ;;  %v5746_v33 = vsel %vm104_vm2, %v5626_v38, 0.0  ;;  %v11019_v50 = vadd.f32 %v4675_v9, %v4674_v0 }
 0x5a1   :  { %v4650_v51 = vadd.f32 %v4649_v43, %v12195_v27  ;;  %v5383_v3 = vadd.f32 %v10997_v58, %v12198_v35  ;;  %v5743_v57 = vsel %vm104_vm2, %v5625_v42, 0.0  ;;  %v5510_v28 = vperm.slane %v5381_v19, %v12105_v23  ;;  %v12205_v27 = vld [vmem:[#allocation76_spill] sm:$0xff]  ;;  %v12207_v19 = vld [vmem:[#allocation131_spill] sm:$0xff] }
 0x5a2   :  { %v5511_v54 = vperm.slane %v5382_v2, %v12105_v23  ;;  %v4829_v21 = vmul.f32 %v10819_v16, %v12199_v45  ;;  %v4828_v26 = vmul.f32 %v10798_v30, %v12200_v7  ;;  %6756 = vrcp.f32 %v4630_v32  ;;  %v12208_v2 = vld [vmem:[#allocation37_spill] sm:$0xff]  ;;  %v12209_v35 = vld [vmem:[#allocation167_spill] sm:$0xff]  ;;  %v12210_v45 = vld [vmem:[#allocation42_spill] sm:$0xff] }
 0x5a3   :  { %5750 = vadd.xlane.f32.xlu0 %v5749_v1  ;;  %5747 = vadd.xlane.f32.xlu1 %v5746_v33  ;;  %v11031_v10 = vpop.eup %6748  ;;  %v4646_v0 = vadd.f32 %v4645_v55, %v4644_v22  ;;  %v4827_v40 = vmul.f32 %v10604_v41, %v12201_v46  ;;  %v4691_v36 = vrot.slane %v12202_v56, 4  ;;  %v5394_v18 = vadd.f32 %v10669_v4, %v12203_v11  ;;  %v12204_v22 = vld [vmem:[#allocation13_spill] sm:$0xff]  ;;  %v12211_v7 = vld [vmem:[#allocation18_spill] sm:$0xff] }
 0x5a4   :  { %5744 = vadd.xlane.f32.xlu2 %v5743_v57  ;;  %v11035_v60 = vpop.eup %6750  ;;  %v5630_v63 = vmul.f32 %v10921_v12, %v4829_v21  ;;  %v5629_v16 = vmul.f32 %v10972_v37, %v4828_v26  ;;  %v4636_v30 = vadd.f32 %v4635_v62, %v4634_v34  ;;  %v5512_v49 = vperm.slane %v5383_v3, %v12105_v23 }
 0x5a5   :  { %v11042_v25 = vpop.eup %6752  ;;  %v5395_v24 = vadd.f32 %v10669_v4, %v12204_v22  ;;  %v5628_v41 = vmul.f32 %v10972_v37, %v4827_v40  ;;  %v4677_v39 = vrot.slane %v11019_v50, 1  ;;  %v4651_v38 = vrot.slane %v4650_v51, 2  ;;  %v12214_v22 = vld [vmem:[#allocation43_spill] sm:$0xff] }
 0x5a6   :  { %v11048_v48 = vpop.eup %6754  ;;  %v5569_v9 = vsel %vm3190_vm3, %v5511_v54, %v5510_v28  ;;  %v5396_v43 = vadd.f32 %v10669_v4, %v12205_v27  ;;  %v4647_v42 = vrot.slane %v4646_v0, 1  ;;  %v4661_v34 = vrot.slane %v12206_v52, 4 }
 0x5a7   :  { %v4685_v13 = vrot.slane %v12207_v19, 4  ;;  %v5384_v32 = vadd.f32 %v10997_v58, %v12208_v2  ;;  %v4692_v37 = vadd.f32 %v4691_v36, %v12202_v56  ;;  %v5523_v55 = vperm.slane %v5394_v18, %v12105_v23  ;;  %v12212_v36 = vld [vmem:[#allocation56_spill] sm:$0xff] }
 0x5a8   :  { %v5758_v62 = vsel %vm104_vm2, %v5630_v63, 0.0  ;;  %v5755_v1 = vsel %vm104_vm2, %v5629_v16, 0.0  ;;  %v11062_v33 = vpop.eup %6756  ;;  %v5385_v4 = vadd.f32 %v10997_v58, %v12209_v35  ;;  %v5570_v3 = vsel %vm3192_vm4, %v5512_v49, %v5569_v9  ;;  %v12213_v49 = vld [vmem:[#allocation128_spill] sm:$0xff] }
 0x5a9   :  { %v5524_v57 = vperm.slane %v5395_v24, %v12105_v23  ;;  %v5752_v28 = vsel %vm104_vm2, %v5628_v41, 0.0  ;;  %v5525_v54 = vperm.slane %v5396_v43, %v12105_v23  ;;  %v4832_v21 = vmul.f32 %v10869_v14, %v12210_v45  ;;  %v12220_v45 = vld [vmem:[#allocation170_spill] sm:$0xff] }
 0x5aa   :  { %v4831_v26 = vmul.f32 %v10837_v5, %v12211_v7  ;;  %v5580_v46 = vsel %vm3198_vm7, %v5523_v55, %v10738_v53  ;;  %v4686_v40 = vadd.f32 %v4685_v13, %v12207_v19  ;;  %v5513_v56 = vperm.slane %v5384_v32, %v12105_v23  ;;  %v12215_v19 = vld [vmem:[#allocation129_spill] sm:$0xff]  ;;  %v12216_v32 = vld [vmem:[#allocation40_spill] sm:$0xff]  ;;  %v12221_v7 = vld [vmem:[#allocation27_spill] sm:$0xff] }
 0x5ab   :  { %5759 = vadd.xlane.f32.xlu0 %v5758_v62  ;;  %5756 = vadd.xlane.f32.xlu1 %v5755_v1  ;;  %v4830_v11 = vmul.f32 %v10652_v61, %v12212_v36  ;;  %v5581_v18 = vsel %vm3200_vm8, %v5524_v57, %v5580_v46  ;;  %v4662_v63 = vadd.f32 %v4661_v34, %v12206_v52  ;;  %v4667_v53 = vrot.slane %v12213_v49, 4  ;;  %v12219_v57 = vld [vmem:[#allocation33_spill] sm:$0xff] }
 0x5ac   :  { %5753 = vadd.xlane.f32.xlu2 %v5752_v28  ;;  %v5633_v16 = vmul.f32 %v10921_v12, %v4832_v21  ;;  %v5632_v14 = vmul.f32 %v10921_v12, %v4831_v26  ;;  %v11085_v5 = vsel %vm3202_vm9, %v5525_v54, %v5581_v18  ;;  %v5386_v24 = vadd.f32 %v10997_v58, %v12214_v22 }
 0x5ad   :  { %v5571_v41 = vsel %vm3194_vm5, %v5513_v56, %v5570_v3  ;;  %v5631_v61 = vmul.f32 %v10921_v12, %v4830_v11  ;;  %6758 = vrcp.f32 %v4636_v30  ;;  %v4652_v9 = vadd.f32 %v4651_v38, %v4650_v51 }
 0x5ae   :  { %v4693_v27 = vrot.slane %v4692_v37, 2  ;;  %v5514_v43 = vperm.slane %v5385_v4, %v12105_v23  ;;  %v4678_v52 = vadd.f32 %v4677_v39, %v11019_v50  ;;  %v4648_v34 = vadd.f32 %v4647_v42, %v4646_v0  ;;  %v12217_v39 = vld [vmem:[#allocation130_spill] sm:$0xff]  ;;  %v12218_v4 = vld [vmem:[#allocation45_spill] sm:$0xff] }
 0x5af   :  { %v4709_v13 = vrot.slane %v12215_v19, 4  ;;  %v4687_v2 = vrot.slane %v4686_v40, 2  ;;  %v5387_v55 = vadd.f32 %v10997_v58, %v12216_v32  ;;  %v5767_v1 = vsel %vm104_vm2, %v5633_v16, 0.0  ;;  %v12224_v32 = vld [vmem:[#allocation34_spill] sm:$0xff] }
 0x5b0   :  { %v5572_v62 = vsel %vm3196_vm6, %v5514_v43, %v5571_v41  ;;  %v5764_v35 = vsel %vm104_vm2, %v5632_v14, 0.0  ;;  %v4663_v30 = vrot.slane %v4662_v63, 2  ;;  %v4668_v51 = vadd.f32 %v4667_v53, %v12213_v49  ;;  %v12222_v49 = vld [vmem:[#allocation133_spill] sm:$0xff] }
 0x5b1   :  { %v5515_v38 = vperm.slane %v5386_v24, %v12105_v23  ;;  %v5761_v50 = vsel %vm104_vm2, %v5631_v61, 0.0  ;;  %v4694_v0 = vadd.f32 %v4693_v27, %v4692_v37  ;;  %v4679_v42 = vrot.slane %v12217_v39, 4 }
 0x5b2   :  { %v4835_v3 = vmul.f32 %v11001_v6, %v12218_v4  ;;  %v4834_v28 = vmul.f32 %v10978_v29, %v12219_v57  ;;  %v4688_v54 = vadd.f32 %v4687_v2, %v4686_v40  ;;  %v5388_v21 = vadd.f32 %v10997_v58, %v12220_v45 }
 0x5b3   :  { %5768 = vadd.xlane.f32.xlu0 %v5767_v1  ;;  %5765 = vadd.xlane.f32.xlu1 %v5764_v35  ;;  %v4833_v26 = vmul.f32 %v10794_v31, %v12221_v7  ;;  %v5573_v46 = vsel %vm3198_vm7, %v5515_v38, %v5572_v62  ;;  %v11113_v56 = vpop.eup %6758  ;;  %v4710_v37 = vadd.f32 %v4709_v13, %v12215_v19  ;;  %6760 = vrcp.f32 %v4678_v52  ;;  %v12223_v52 = vld [vmem:[#allocation132_spill] sm:$0xff]  ;;  %v12225_v62 = vld [vmem:[#allocation71_spill] sm:$0xff] }
 0x5b4   :  { %5762 = vadd.xlane.f32.xlu2 %v5761_v50  ;;  %v5516_v36 = vperm.slane %v5387_v55, %v12105_v23  ;;  %v5636_v6 = vmul.f32 %v10921_v12, %v4835_v3  ;;  %v5635_v11 = vmul.f32 %v10921_v12, %v4834_v28  ;;  %v4653_v29 = vrot.slane %v4652_v9, 1  ;;  %v12226_v50 = vld [vmem:[#allocation30_spill] sm:$0xff] }
 0x5b5   :  { %v5634_v40 = vmul.f32 %v10921_v12, %v4833_v26  ;;  %6762 = vrcp.f32 %v4648_v34  ;;  %v4695_v58 = vrot.slane %v4694_v0, 1  ;;  %v4664_v18 = vadd.f32 %v4663_v30, %v4662_v63  ;;  %v12227_v28 = vld [vmem:[#allocation134_spill] sm:$0xff] }
 0x5b6   :  { %v5574_v31 = vsel %vm3200_vm8, %v5516_v36, %v5573_v46  ;;  %v4669_v16 = vrot.slane %v4668_v51, 2  ;;  %v4689_v14 = vrot.slane %v4688_v54, 1  ;;  %v4697_v53 = vrot.slane %v12222_v49, 4 }
 0x5b7   :  { %v5517_v22 = vperm.slane %v5388_v21, %v12105_v23  ;;  %v4711_v24 = vrot.slane %v4710_v37, 2  ;;  %v4680_v41 = vadd.f32 %v4679_v42, %v12217_v39  ;;  %v5776_v61 = vsel %vm104_vm2, %v5636_v6, 0.0 }
 0x5b8   :  { %v5773_v27 = vsel %vm104_vm2, %v5635_v11, 0.0  ;;  %v4654_v43 = vadd.f32 %v4653_v29, %v4652_v9  ;;  %v4727_v34 = vrot.slane %v12223_v52, 4  ;;  %v5770_v63 = vsel %vm104_vm2, %v5634_v40, 0.0  ;;  %v12229_v11 = vld [vmem:[#allocation137_spill] sm:$0xff] }
 0x5b9   :  { %v11129_v19 = vsel %vm3202_vm9, %v5517_v22, %v5574_v31  ;;  %v4696_v13 = vadd.f32 %v4695_v58, %v4694_v0  ;;  %v4665_v2 = vrot.slane %v4664_v18, 1  ;;  %v4838_v55 = vmul.f32 %v11015_v44, %v12224_v32  ;;  %v11135_v35 = vpop.eup %6760  ;;  %v12230_v40 = vld [vmem:[#allocation85_spill] sm:$0xff]  ;;  %v12234_v22 = vld [vmem:[#allocation10_spill] sm:$0xff] }
 0x5ba   :  { %v4837_v1 = vmul.f32 %v11013_v20, %v12225_v62  ;;  %v4670_v9 = vadd.f32 %v4669_v16, %v4668_v51  ;;  %v4690_v30 = vadd.f32 %v4689_v14, %v4688_v54  ;;  %v4698_v38 = vadd.f32 %v4697_v53, %v12222_v49  ;;  %v12232_v16 = vld [vmem:[#allocation79_spill] sm:$0xff]  ;;  %v12233_v49 = vld [vmem:[#allocation12_spill] sm:$0xff] }
 0x5bb   :  { %5777 = vadd.xlane.f32.xlu0 %v5776_v61  ;;  %5774 = vadd.xlane.f32.xlu1 %v5773_v27  ;;  %v4836_v39 = vmul.f32 %v10832_v8, %v12226_v50  ;;  %v6763_v42 = vpop.eup %6762  ;;  %v4712_v4 = vadd.f32 %v4711_v24, %v4710_v37  ;;  %v4681_v0 = vrot.slane %v4680_v41, 2  ;;  %v5639_v3 = vmul.f32 %v11129_v19, %v4838_v55  ;;  %v12228_v8 = vld [vmem:[#allocation136_spill] sm:$0xff] }
 0x5bc   :  { %5771 = vadd.xlane.f32.xlu2 %v5770_v63  ;;  %v5638_v57 = vmul.f32 %v11129_v19, %v4837_v1  ;;  %6764 = vrcp.f32 %v4654_v43  ;;  %v4728_v44 = vadd.f32 %v4727_v34, %v12223_v52  ;;  %v4666_v51 = vadd.f32 %v4665_v2, %v4664_v18  ;;  %v12235_v52 = vld [vmem:[#allocation20_spill] sm:$0xff] }
 0x5bd   :  { %v5637_v20 = vmul.f32 %v10921_v12, %v4836_v39  ;;  %6766 = vrcp.f32 %v4696_v13  ;;  %v4703_v54 = vrot.slane %v12227_v28, 4  ;;  %v4671_v45 = vrot.slane %v4670_v9, 1  ;;  %v12231_v12 = vld [vmem:[#allocation88_spill] sm:$0xff] }
 0x5be   :  { %6768 = vrcp.f32 %v4690_v30  ;;  %v4699_v21 = vrot.slane %v4698_v38, 2  ;;  %v4715_v7 = vrot.slane %v12228_v8, 4  ;;  %v4713_v26 = vrot.slane %v4712_v4, 1 }
 0x5bf   :  { %v4682_v46 = vadd.f32 %v4681_v0, %v4680_v41  ;;  %v5785_v37 = vsel %vm104_vm2, %v5639_v3, 0.0  ;;  %v5782_v36 = vsel %vm104_vm2, %v5638_v57, 0.0  ;;  %v4729_v6 = vrot.slane %v4728_v44, 2 }
 0x5c0   :  { %v4721_v29 = vrot.slane %v12229_v11, 4  ;;  %v5402_v58 = vadd.f32 %v12231_v12, %v12230_v40  ;;  %v5779_v18 = vsel %vm104_vm2, %v5637_v20, 0.0  ;;  %v4704_v31 = vadd.f32 %v4703_v54, %v12227_v28  ;;  %v12236_v20 = vld [vmem:[#allocation86_spill] sm:$0xff] }
 0x5c1   :  { %v5403_v14 = vadd.f32 %v12231_v12, %v12232_v16  ;;  %v4846_v53 = vmul.f32 %v6763_v42, %v12233_v49  ;;  %v4845_v24 = vmul.f32 %v11031_v10, %v12234_v22  ;;  %v4700_v61 = vadd.f32 %v4699_v21, %v4698_v38 }
 0x5c2   :  { %v6765_v41 = vpop.eup %6764  ;;  %v4716_v27 = vadd.f32 %v4715_v7, %v12228_v8  ;;  %v5404_v43 = vadd.f32 %v12231_v12, %v10666_v17  ;;  %v4839_v34 = vmul.f32 %v10958_v15, %v12235_v52  ;;  %6770 = vrcp.f32 %v4666_v51 }
 0x5c3   :  { %5786 = vadd.xlane.f32.xlu0 %v5785_v37  ;;  %5783 = vadd.xlane.f32.xlu1 %v5782_v36  ;;  %v11163_v63 = vpop.eup %6766  ;;  %v4672_v13 = vadd.f32 %v4671_v45, %v4670_v9  ;;  %v5647_v2 = vmul.f32 %v11085_v5, %v4846_v53  ;;  %v5646_v32 = vmul.f32 %v11085_v5, %v4845_v24  ;;  %v4683_v10 = vrot.slane %v4682_v46, 1 }
 0x5c4   :  { %5780 = vadd.xlane.f32.xlu2 %v5779_v18  ;;  %v6769_v55 = vpop.eup %6768  ;;  %v4722_v62 = vadd.f32 %v4721_v29, %v12229_v11  ;;  %v5531_v1 = vperm.slane %v5402_v58, %v12105_v23  ;;  %v5640_v30 = vmul.f32 %v11129_v19, %v4839_v34  ;;  %v4714_v17 = vadd.f32 %v4713_v26, %v4712_v4  ;;  %v12237_v26 = vld [vmem:[#allocation46_spill] sm:$0xff] }
 0x5c5   :  { %v4730_v38 = vadd.f32 %v4729_v6, %v4728_v44  ;;  %v4705_v50 = vrot.slane %v4704_v31, 2  ;;  %v5532_v15 = vperm.slane %v5403_v14, %v12105_v23  ;;  %v4701_v39 = vrot.slane %v4700_v61, 1  ;;  %v12238_v6 = vld [vmem:[#allocation9_spill] sm:$0xff] }
 0x5c6   :  { %v4717_v42 = vrot.slane %v4716_v27, 2  ;;  %v5533_v9 = vperm.slane %v5404_v43, %v12105_v23  ;;  %v5587_v0 = vsel %vm3198_vm7, %v5531_v1, %v10610_v59  ;;  %v5809_v3 = vsel %vm104_vm2, %v5647_v2, 0.0  ;;  %v12239_v1 = vld [vmem:[#allocation80_spill] sm:$0xff] }
 0x5c7   :  { %v5806_v57 = vsel %vm104_vm2, %v5646_v32, 0.0  ;;  %v4853_v51 = vmul.f32 %v6769_v55, %v12236_v20  ;;  %v5588_v28 = vsel %vm3200_vm8, %v5532_v15, %v5587_v0  ;;  %v4684_v4 = vadd.f32 %v4683_v10, %v4682_v46 }
 0x5c8   :  { %v4723_v44 = vrot.slane %v4722_v62, 2  ;;  %v5788_v54 = vsel %vm104_vm2, %v5640_v30, 0.0  ;;  %v11180_v45 = vsel %vm3202_vm9, %v5533_v9, %v5588_v28  ;;  %v11182_v21 = vpop.eup %6770  ;;  %v4731_v59 = vrot.slane %v4730_v38, 1 }
 0x5c9   :  { %v11187_v8 = vstv %s11533_s6  ;;  %v5654_v7 = vmul.f32 %v11180_v45, %v4853_v51  ;;  %v4847_v46 = vmul.f32 %v6765_v41, %v12237_v26  ;;  %6772 = vrcp.f32 %v4672_v13 }
 0x5ca   :  { %v4706_v37 = vadd.f32 %v4705_v50, %v4704_v31  ;;  %v4718_v36 = vadd.f32 %v4717_v42, %v4716_v27  ;;  %v4840_v11 = vmul.f32 %v11035_v60, %v12238_v6  ;;  %6774 = vrcp.f32 %v4714_v17  ;;  %v12240_v17 = vld [vmem:[#allocation72_spill] sm:$0xff]  ;;  %v12241_v50 = vld [vmem:[#allocation11_spill] sm:$0xff] }
 0x5cb   :  { %5810 = vadd.xlane.f32.xlu0 %v5809_v3  ;;  %5807 = vadd.xlane.f32.xlu1 %v5806_v57  ;;  %v4702_v29 = vadd.f32 %v4701_v39, %v4700_v61  ;;  %v5648_v58 = vmul.f32 %v11085_v5, %v4847_v46  ;;  %v4724_v18 = vadd.f32 %v4723_v44, %v4722_v62  ;;  %6776 = vrcp.f32 %v4684_v4 }
 0x5cc   :  { %5789 = vadd.xlane.f32.xlu2 %v5788_v54  ;;  %v5641_v53 = vmul.f32 %v11129_v19, %v4840_v11  ;;  %v4732_v31 = vadd.f32 %v4731_v59, %v4730_v38  ;;  %v4707_v24 = vrot.slane %v4706_v37, 1  ;;  %v4719_v60 = vrot.slane %v4718_v36, 1  ;;  %v12242_v11 = vld [vmem:[#allocation89_spill] sm:$0xff] }
 0x5cd   :  { %6778 = vrcp.f32 %v4702_v29  ;;  %v5830_v43 = vsel %vm104_vm2, %v5654_v7, 0.0  ;;  %v5812_v52 = vsel %vm104_vm2, %v5648_v58, 0.0  ;;  %v4725_v13 = vrot.slane %v4724_v18, 1 }
 0x5ce   :  { %v5670_v40 = vpop.xlane.xlu0 %5669  ;;  %v5667_v12 = vpop.xlane.xlu1 %5666  ;;  %v5791_v55 = vsel %vm104_vm2, %v5641_v53, 0.0  ;;  %v4854_v30 = vmul.f32 %v11163_v63, %v12239_v1  ;;  %v4848_v38 = vmul.f32 %v11048_v48, %v12240_v17  ;;  %v4841_v15 = vmul.f32 %v11042_v25, %v12241_v50 }
 0x5cf   :  { %v5857_v16 = vadd.f32 %v11187_v8, %v5670_v40  ;;  %v5664_v14 = vpop.xlane.xlu2 %5663  ;;  %v5856_v49 = vadd.f32 %v11187_v8, %v5667_v12  ;;  %v11200_v34 = vpop.eup %6772  ;;  %v4708_v39 = vadd.f32 %v4707_v24, %v4706_v37  ;;  %v4720_v42 = vadd.f32 %v4719_v60, %v4718_v36 }
 0x5d0   :  { %v5855_v22 = vadd.f32 %v11187_v8, %v5664_v14  ;;  %v11203_v10 = vpop.eup %6774  ;;  %v5655_v57 = vmul.f32 %v11180_v45, %v4854_v30  ;;  %v5649_v20 = vmul.f32 %v11085_v5, %v4848_v38  ;;  %v5642_v63 = vmul.f32 %v11129_v19, %v4841_v15  ;;  %v12244_v14 = vld [vmem:[#allocation70_spill] sm:$0xff] }
 0x5d1   :  { %v5921_v41 = vsub.f32 0.0, %v5857_v16  ;;  %v5920_v61 = vsub.f32 0.0, %v5856_v49  ;;  %v11211_v9 = vpop.eup %6776  ;;  %v4726_v51 = vadd.f32 %v4725_v13, %v4724_v18  ;;  %v12243_v18 = vld [vmem:[#allocation15_spill] sm:$0xff]  ;;  %v4842_v49 = vmul.f32 %v11005_v47, %v12244_v14 }
 0x5d2   :  { %v5919_v27 = vsub.f32 0.0, %v5855_v22  ;;  %v5815_v26 = vsel %vm104_vm2, %v5649_v20, 0.0  ;;  %v5794_v46 = vsel %vm104_vm2, %v5642_v63, 0.0  ;;  %v5833_v6 = vsel %vm104_vm2, %v5655_v57, 0.0 }
 0x5d3   :  { %v5987_v2 = vmul.f32 1.442695, %v5921_v41  ;;  %v5985_v32 = vmul.f32 1.442695, %v5920_v61  ;;  %5831 = vadd.xlane.f32.xlu0 %v5830_v43  ;;  %5813 = vadd.xlane.f32.xlu1 %v5812_v52  ;;  %v6779_v4 = vpop.eup %6778  ;;  %v4849_v16 = vmul.f32 %v11182_v21, %v12243_v18  ;;  %v5643_v52 = vmul.f32 %v11129_v19, %v4842_v49  ;;  %v12248_v18 = vld [vmem:[#allocation77_spill] sm:$0xff] }
 0x5d4   :  { %v5983_v62 = vmul.f32 1.442695, %v5919_v27  ;;  %5792 = vadd.xlane.f32.xlu2 %v5791_v55  ;;  %v4855_v29 = vmul.f32 %v6779_v4, %v12242_v11 }
 0x5d5   :  { %6780 = vpow2.f32 %v5987_v2  ;;  %v5650_v43 = vmul.f32 %v11085_v5, %v4849_v16  ;;  %v5797_v50 = vsel %vm104_vm2, %v5643_v52, 0.0  ;;  %v4851_v16 = vmul.f32 %v11135_v35, %v12248_v18 }
 0x5d6   :  { %6782 = vpow2.f32 %v5983_v62  ;;  %v5679_v0 = vpop.xlane.xlu0 %5678  ;;  %v5676_v3 = vpop.xlane.xlu1 %5675  ;;  %v5656_v24 = vmul.f32 %v11180_v45, %v4855_v29 }
 0x5d7   :  { %6784 = vpow2.f32 %v5985_v32  ;;  %v5860_v48 = vadd.f32 %v11187_v8, %v5679_v0  ;;  %v5673_v28 = vpop.xlane.xlu2 %5672  ;;  %v5859_v25 = vadd.f32 %v11187_v8, %v5676_v3  ;;  %v5818_v38 = vsel %vm104_vm2, %v5650_v43, 0.0  ;;  %v12245_v3 = vld [vmem:[#allocation74_spill] sm:$0xff] }
 0x5d8   :  { %6786 = vrcp.f32 %v4732_v31  ;;  %v5858_v44 = vadd.f32 %v11187_v8, %v5673_v28  ;;  %v5836_v0 = vsel %vm104_vm2, %v5656_v24, 0.0  ;;  %v4843_v57 = vmul.f32 %v11062_v33, %v12245_v3 }
 0x5d9   :  { %6788 = vrcp.f32 %v4708_v39  ;;  %v5924_v54 = vsub.f32 0.0, %v5860_v48  ;;  %v5923_v59 = vsub.f32 0.0, %v5859_v25  ;;  %v12246_v48 = vld [vmem:[#allocation91_spill] sm:$0xff] }
 0x5da   :  { %6790 = vrcp.f32 %v4720_v42  ;;  %v5922_v7 = vsub.f32 0.0, %v5858_v44  ;;  %v12247_v25 = vld [vmem:[#allocation83_spill] sm:$0xff] }
 0x5db   :  { %v6781_v37 = vpop.eup %6780  ;;  %6792 = vrcp.f32 %v4726_v51  ;;  %v5993_v36 = vmul.f32 1.442695, %v5924_v54  ;;  %5816 = vadd.xlane.f32.xlu0 %v5815_v26  ;;  %5795 = vadd.xlane.f32.xlu1 %v5794_v46  ;;  %v5991_v58 = vmul.f32 1.442695, %v5923_v59  ;;  %v4850_v4 = vmul.f32 %v11200_v34, %v12247_v25 }
 0x5dc   :  { %v6783_v40 = vpop.eup %6782  ;;  %v6113_v12 = vadd.f32 1.0, %v6781_v37  ;;  %5834 = vadd.xlane.f32.xlu2 %v5833_v6  ;;  %v5989_v22 = vmul.f32 1.442695, %v5922_v7  ;;  %v5644_v54 = vmul.f32 %v11129_v19, %v4843_v57 }
 0x5dd   :  { %v6785_v53 = vpop.eup %6784  ;;  %v6111_v31 = vadd.f32 1.0, %v6783_v40  ;;  %6794 = vpow2.f32 %v5993_v36  ;;  %v5651_v37 = vmul.f32 %v11085_v5, %v4850_v4 }
 0x5de   :  { %v11228_v60 = vpop.eup %6786  ;;  %6796 = vrcp.f32 %v6113_v12  ;;  %v6112_v41 = vadd.f32 1.0, %v6785_v53  ;;  %v5688_v61 = vpop.xlane.xlu0 %5687  ;;  %v5800_v52 = vsel %vm104_vm2, %v5644_v54, 0.0 }
 0x5df   :  { %v5685_v27 = vpop.xlane.xlu1 %5684  ;;  %v6789_v21 = vpop.eup %6788  ;;  %6798 = vrcp.f32 %v6111_v31  ;;  %v5863_v47 = vadd.f32 %v11187_v8, %v5688_v61 }
 0x5e0   :  { %v5682_v13 = vpop.xlane.xlu2 %5681  ;;  %v5862_v2 = vadd.f32 %v11187_v8, %v5685_v27  ;;  %v11234_v32 = vpop.eup %6790  ;;  %6800 = vrcp.f32 %v6112_v41  ;;  %v4856_v28 = vmul.f32 %v6789_v21, %v12246_v48  ;;  %v5821_v41 = vsel %vm104_vm2, %v5651_v37, 0.0 }
 0x5e1   :  { %v5861_v55 = vadd.f32 %v11187_v8, %v5682_v13  ;;  %v11237_v62 = vpop.eup %6792  ;;  %6802 = vpow2.f32 %v5989_v22  ;;  %v5927_v1 = vsub.f32 0.0, %v5863_v47  ;;  %v12249_v47 = vld [vmem:[#allocation14_spill] sm:$0xff] }
 0x5e2   :  { %v5926_v30 = vsub.f32 0.0, %v5862_v2  ;;  %6804 = vpow2.f32 %v5991_v58  ;;  %v5657_v33 = vmul.f32 %v11180_v45, %v4856_v28  ;;  %v4857_v13 = vmul.f32 %v11203_v10, %v12249_v47 }
 0x5e3   :  { %v5925_v17 = vsub.f32 0.0, %v5861_v55  ;;  %v6795_v15 = vpop.eup %6794  ;;  %v5999_v39 = vmul.f32 1.442695, %v5927_v1  ;;  %5819 = vadd.xlane.f32.xlu0 %v5818_v38  ;;  %5798 = vadd.xlane.f32.xlu1 %v5797_v50  ;;  %v5652_v2 = vmul.f32 %v11085_v5, %v4851_v16  ;;  %v12250_v55 = vld [vmem:[#allocation75_spill] sm:$0xff] }
 0x5e4   :  { %v5997_v42 = vmul.f32 1.442695, %v5926_v30  ;;  %v6797_v20 = vpop.eup %6796  ;;  %v6116_v63 = vadd.f32 1.0, %v6795_v15  ;;  %5837 = vadd.xlane.f32.xlu2 %v5836_v0  ;;  %v5839_v43 = vsel %vm104_vm2, %v5657_v33, 0.0  ;;  %v4844_v1 = vmul.f32 %v11113_v56, %v12250_v55 }
 0x5e5   :  { %v5995_v51 = vmul.f32 1.442695, %v5925_v17  ;;  %v6799_v44 = vpop.eup %6798  ;;  %6806 = vpow2.f32 %v5999_v39  ;;  %v6249_v14 = vperm.slane %v6797_v20, %v12105_v23  ;;  %v5658_v3 = vmul.f32 %v11180_v45, %v4857_v13 }
 0x5e6   :  { %v6801_v59 = vpop.eup %6800  ;;  %v6247_v7 = vperm.slane %v6799_v44, %v12105_v23  ;;  %6808 = vrcp.f32 %v6116_v63  ;;  %v5697_v26 = vpop.xlane.xlu0 %5696  ;;  %v5645_v57 = vmul.f32 %v11129_v19, %v4844_v1  ;;  %v5824_v25 = vsel %vm104_vm2, %v5652_v2, 0.0 }
 0x5e7   :  { %v5694_v46 = vpop.xlane.xlu1 %5693  ;;  %v6803_v36 = vpop.eup %6802  ;;  %v6248_v6 = vperm.slane %v6801_v59, %v12105_v23  ;;  %6810 = vpow2.f32 %v5995_v51  ;;  %v5866_v34 = vadd.f32 %v11187_v8, %v5697_v26  ;;  %v5842_v26 = vsel %vm104_vm2, %v5658_v3, 0.0  ;;  %v12254_v3 = vld [vmem:[#allocation87_spill] sm:$0xff] }
 0x5e8   :  { %v5691_v11 = vpop.xlane.xlu2 %5690  ;;  %v5865_v29 = vadd.f32 %v11187_v8, %v5694_v46  ;;  %v6805_v40 = vpop.eup %6804  ;;  %v6114_v12 = vadd.f32 1.0, %v6803_v36  ;;  %6812 = vpow2.f32 %v5997_v42  ;;  %v5803_v36 = vsel %vm104_vm2, %v5645_v57, 0.0 }
 0x5e9   :  { %v5864_v58 = vadd.f32 %v11187_v8, %v5691_v11  ;;  %v6115_v49 = vadd.f32 1.0, %v6805_v40  ;;  %v5930_v53 = vsub.f32 0.0, %v5866_v34  ;;  %v6255_v22 = vsel %vm3190_vm3, %v6248_v6, %v6247_v7  ;;  %v12251_v6 = vld [vmem:[#allocation94_spill] sm:$0xff]  ;;  %v12252_v40 = vld [vmem:[#allocation96_spill] sm:$0xff] }
 0x5ea   :  { %v5929_v31 = vsub.f32 0.0, %v5865_v29  ;;  %6814 = vrcp.f32 %v6114_v12  ;;  %v6256_v17 = vsel %vm3192_vm4, %v6249_v14, %v6255_v22  ;;  %v4858_v34 = vmul.f32 %v11234_v32, %v12251_v6 }
 0x5eb   :  { %v5928_v24 = vsub.f32 0.0, %v5864_v58  ;;  %v6807_v61 = vpop.eup %6806  ;;  %6816 = vrcp.f32 %v6115_v49  ;;  %v6005_v27 = vmul.f32 1.442695, %v5930_v53  ;;  %5822 = vadd.xlane.f32.xlu0 %v5821_v41  ;;  %5801 = vadd.xlane.f32.xlu1 %v5800_v52  ;;  %v4859_v12 = vmul.f32 %v11237_v62, %v12252_v40  ;;  %v12253_v41 = vld [vmem:[#allocation84_spill] sm:$0xff] }
 0x5ec   :  { %v6809_v35 = vpop.eup %6808  ;;  %5840 = vadd.xlane.f32.xlu2 %v5839_v43  ;;  %v6003_v38 = vmul.f32 1.442695, %v5929_v31  ;;  %v6119_v15 = vadd.f32 1.0, %v6807_v61  ;;  %v5659_v14 = vmul.f32 %v11180_v45, %v4858_v34  ;;  %v4852_v61 = vmul.f32 %v11211_v9, %v12253_v41 }
 0x5ed   :  { %v6001_v21 = vmul.f32 1.442695, %v5928_v24  ;;  %v6811_v30 = vpop.eup %6810  ;;  %6818 = vpow2.f32 %v6005_v27  ;;  %v6252_v48 = vperm.slane %v6809_v35, %v12105_v23  ;;  %v5660_v24 = vmul.f32 %v11180_v45, %v4859_v12 }
 0x5ee   :  { %v6813_v50 = vpop.eup %6812  ;;  %v6117_v39 = vadd.f32 1.0, %v6811_v30  ;;  %v5706_v42 = vpop.xlane.xlu0 %5705  ;;  %v5845_v2 = vsel %vm104_vm2, %v5659_v14, 0.0  ;;  %v4860_v57 = vmul.f32 %v11228_v60, %v12254_v3 }
 0x5ef   :  { %v5703_v0 = vpop.xlane.xlu1 %5702  ;;  %v6118_v10 = vadd.f32 1.0, %v6813_v50  ;;  %6820 = vpow2.f32 %v6001_v21  ;;  %v5869_v20 = vadd.f32 %v11187_v8, %v5706_v42 }
 0x5f0   :  { %v5700_v63 = vpop.xlane.xlu2 %5699  ;;  %v5868_v56 = vadd.f32 %v11187_v8, %v5703_v0  ;;  %v6815_v51 = vpop.eup %6814  ;;  %6822 = vrcp.f32 %v6117_v39  ;;  %v5653_v0 = vmul.f32 %v11085_v5, %v4852_v61 }
 0x5f1   :  { %v5867_v28 = vadd.f32 %v11187_v8, %v5700_v63  ;;  %v6817_v4 = vpop.eup %6816  ;;  %v6250_v44 = vperm.slane %v6815_v51, %v12105_v23  ;;  %6824 = vrcp.f32 %v6118_v10  ;;  %v5933_v19 = vsub.f32 0.0, %v5869_v20 }
 0x5f2   :  { %v5932_v54 = vsub.f32 0.0, %v5868_v56  ;;  %v6251_v59 = vperm.slane %v6817_v4, %v12105_v23  ;;  %6826 = vpow2.f32 %v6003_v38  ;;  %v11307_v10 = vadd.s32 4294967288, %v12105_v23 }
 0x5f3   :  { %v5931_v7 = vsub.f32 0.0, %v5867_v28  ;;  %v6819_v46 = vpop.eup %6818  ;;  %v6257_v33 = vsel %vm3194_vm5, %v6250_v44, %v6256_v17  ;;  %v6011_v37 = vmul.f32 1.442695, %v5933_v19  ;;  %5825 = vadd.xlane.f32.xlu0 %v5824_v25  ;;  %6828 = vrcp.f32 %v6119_v15  ;;  %5804 = vadd.xlane.f32.xlu1 %v5803_v36 }
 0x5f4   :  { %v6258_v11 = vsel %vm3196_vm6, %v6251_v59, %v6257_v33  ;;  %5843 = vadd.xlane.f32.xlu2 %v5842_v26  ;;  %v6122_v18 = vadd.f32 1.0, %v6819_v46  ;;  %v6009_v16 = vmul.f32 1.442695, %v5932_v54  ;;  %v5848_v15 = vsel %vm104_vm2, %v5660_v24, 0.0 }
 0x5f5   :  { %v6007_v29 = vmul.f32 1.442695, %v5931_v7  ;;  %v6821_v58 = vpop.eup %6820  ;;  %6830 = vpow2.f32 %v6011_v37  ;;  %v6259_v53 = vsel %vm3198_vm7, %v6252_v48, %v6258_v11  ;;  %v5827_v51 = vsel %vm104_vm2, %v5653_v0, 0.0 }
 0x5f6   :  { %v6823_v49 = vpop.eup %6822  ;;  %v6120_v31 = vadd.f32 1.0, %v6821_v58  ;;  %v5715_v32 = vpop.xlane.xlu0 %5714  ;;  %v5661_v48 = vmul.f32 %v11180_v45, %v4860_v57 }
 0x5f7   :  { %v5712_v22 = vpop.xlane.xlu1 %5711  ;;  %v6825_v27 = vpop.eup %6824  ;;  %v6253_v62 = vperm.slane %v6823_v49, %v12105_v23  ;;  %6832 = vpow2.f32 %v6007_v29  ;;  %v5872_v43 = vadd.f32 %v11187_v8, %v5715_v32 }
 0x5f8   :  { %v5709_v52 = vpop.xlane.xlu2 %5708  ;;  %v5871_v35 = vadd.f32 %v11187_v8, %v5712_v22  ;;  %v6827_v21 = vpop.eup %6826  ;;  %v6254_v47 = vperm.slane %v6825_v27, %v12105_v23  ;;  %6834 = vrcp.f32 %v6120_v31  ;;  %v5851_v58 = vsel %vm104_vm2, %v5661_v48, 0.0 }
 0x5f9   :  { %v5870_v13 = vadd.f32 %v11187_v8, %v5709_v52  ;;  %v6260_v55 = vsel %vm3200_vm8, %v6253_v62, %v6259_v53  ;;  %v6121_v9 = vadd.f32 1.0, %v6827_v21  ;;  %6836 = vpow2.f32 %v6009_v16  ;;  %v6829_v30 = vpop.eup %6828 }
 0x5fa   :  { %v5936_v1 = vsub.f32 0.0, %v5872_v43  ;;  %v6261_v17 = vsel %vm3202_vm9, %v6254_v47, %v6260_v55  ;;  %v5935_v50 = vsub.f32 0.0, %v5871_v35  ;;  %v6273_v26 = vperm.slane %v6829_v30, %v11307_v10 }
 0x5fb   :  { %v5934_v38 = vsub.f32 0.0, %v5870_v13  ;;  %v6831_v39 = vpop.eup %6830  ;;  %6263 = vst.msk [vmem:[%s11534_s7] sm:$0xff] %vm104_vm2, %v6261_v17  ;;  %6838 = vrcp.f32 %v6121_v9  ;;  %5849 = vadd.xlane.f32.xlu0 %v5848_v15  ;;  %5828 = vadd.xlane.f32.xlu1 %v5827_v51 }
 0x5fc   :  { %v6017_v42 = vmul.f32 1.442695, %v5936_v1  ;;  %6840 = vrcp.f32 %v6122_v18  ;;  %5846 = vadd.xlane.f32.xlu2 %v5845_v2  ;;  %v6015_v56 = vmul.f32 1.442695, %v5935_v50  ;;  %v6125_v25 = vadd.f32 1.0, %v6831_v39 }
 0x5fd   :  { %v6013_v20 = vmul.f32 1.442695, %v5934_v38  ;;  %v6833_v63 = vpop.eup %6832 }
 0x5fe   :  { %6842 = vpow2.f32 %v6017_v42  ;;  %v6835_v28 = vpop.eup %6834  ;;  %v6123_v4 = vadd.f32 1.0, %v6833_v63  ;;  %v5724_v5 = vpop.xlane.xlu0 %5723 }
 0x5ff   :  { %v5721_v44 = vpop.xlane.xlu1 %5720  ;;  %v6837_v60 = vpop.eup %6836  ;;  %v6274_v19 = vperm.slane %v6835_v28, %v11307_v10  ;;  %6844 = vpow2.f32 %v6013_v20  ;;  %v5875_v54 = vadd.f32 %v11187_v8, %v5724_v5 }
 0x600   :  { %v5718_v59 = vpop.xlane.xlu2 %5717  ;;  %v5874_v7 = vadd.f32 %v11187_v8, %v5721_v44  ;;  %6846 = vrcp.f32 %v6123_v4  ;;  %v6124_v46 = vadd.f32 1.0, %v6837_v60 }
 0x601   :  { %v5873_v45 = vadd.f32 %v11187_v8, %v5718_v59  ;;  %v6839_v33 = vpop.eup %6838  ;;  %6848 = vpow2.f32 %v6015_v56  ;;  %v5939_v37 = vsub.f32 0.0, %v5875_v54  ;;  %v6281_v34 = vsel %vm3190_vm3, %v6274_v19, %v6273_v26 }
 0x602   :  { %v5938_v36 = vsub.f32 0.0, %v5874_v7  ;;  %v6841_v6 = vpop.eup %6840  ;;  %v6275_v11 = vperm.slane %v6839_v33, %v11307_v10  ;;  %6850 = vrcp.f32 %v6124_v46  ;;  %v11336_v59 = vadd.s32 4294967280, %v12105_v23 }
 0x603   :  { %v5937_v29 = vsub.f32 0.0, %v5873_v45  ;;  %6852 = vrcp.f32 %v6125_v25  ;;  %v6023_v12 = vmul.f32 1.442695, %v5939_v37  ;;  %v6276_v31 = vperm.slane %v6841_v6, %v11307_v10 }
 0x604   :  { %v6843_v40 = vpop.eup %6842  ;;  %5852 = vadd.xlane.f32.xlu2 %v5851_v58  ;;  %v6282_v14 = vsel %vm3192_vm4, %v6275_v11, %v6281_v34  ;;  %v6021_v49 = vmul.f32 1.442695, %v5938_v36 }
 0x605   :  { %v6019_v18 = vmul.f32 1.442695, %v5937_v29  ;;  %v6845_v16 = vpop.eup %6844  ;;  %v6128_v32 = vadd.f32 1.0, %v6843_v40  ;;  %6854 = vpow2.f32 %v6023_v12  ;;  %v6283_v21 = vsel %vm3194_vm5, %v6276_v31, %v6282_v14 }
 0x606   :  { %v6847_v53 = vpop.eup %6846  ;;  %v6126_v22 = vadd.f32 1.0, %v6845_v16  ;;  %v5733_v24 = vpop.xlane.xlu0 %5732 }
 0x607   :  { %v5730_v41 = vpop.xlane.xlu1 %5729  ;;  %v6849_v61 = vpop.eup %6848  ;;  %v6277_v27 = vperm.slane %v6847_v53, %v11307_v10  ;;  %6856 = vpow2.f32 %v6019_v18  ;;  %v5878_v62 = vadd.f32 %v11187_v8, %v5733_v24 }
 0x608   :  { %v5727_v43 = vpop.xlane.xlu2 %5726  ;;  %v5877_v52 = vadd.f32 %v11187_v8, %v5730_v41  ;;  %v6851_v35 = vpop.eup %6850  ;;  %6858 = vrcp.f32 %v6126_v22  ;;  %v6127_v47 = vadd.f32 1.0, %v6849_v61 }
 0x609   :  { %v5876_v13 = vadd.f32 %v11187_v8, %v5727_v43  ;;  %v6853_v2 = vpop.eup %6852  ;;  %v6284_v55 = vsel %vm3196_vm6, %v6277_v27, %v6283_v21  ;;  %v6278_v9 = vperm.slane %v6851_v35, %v11307_v10  ;;  %6860 = vpow2.f32 %v6021_v49 }
 0x60a   :  { %v5942_v1 = vsub.f32 0.0, %v5878_v62  ;;  %v5941_v17 = vsub.f32 0.0, %v5877_v52  ;;  %6862 = vrcp.f32 %v6128_v32  ;;  %v6279_v39 = vperm.slane %v6853_v2, %v11307_v10 }
 0x60b   :  { %v5940_v30 = vsub.f32 0.0, %v5876_v13  ;;  %v6285_v38 = vsel %vm3198_vm7, %v6278_v9, %v6284_v55  ;;  %v6855_v15 = vpop.eup %6854  ;;  %6864 = vrcp.f32 %v6127_v47 }
 0x60c   :  { %v6029_v50 = vmul.f32 1.442695, %v5942_v1  ;;  %v6027_v3 = vmul.f32 1.442695, %v5941_v17  ;;  %v6286_v20 = vsel %vm3200_vm8, %v6279_v39, %v6285_v38  ;;  %v6131_v44 = vadd.f32 1.0, %v6855_v15 }
 0x60d   :  { %v6025_v42 = vmul.f32 1.442695, %v5940_v30  ;;  %v6857_v0 = vpop.eup %6856 }
 0x60e   :  { %6866 = vpow2.f32 %v6029_v50  ;;  %v6859_v57 = vpop.eup %6858  ;;  %v6129_v63 = vadd.f32 1.0, %v6857_v0  ;;  %v5742_v56 = vpop.xlane.xlu0 %5741 }
 0x60f   :  { %v5739_v51 = vpop.xlane.xlu1 %5738  ;;  %v6861_v48 = vpop.eup %6860  ;;  %v6280_v28 = vperm.slane %v6859_v57, %v11307_v10  ;;  %6868 = vpow2.f32 %v6025_v42  ;;  %v5881_v25 = vadd.f32 %v11187_v8, %v5742_v56 }
 0x610   :  { %v5736_v4 = vpop.xlane.xlu2 %5735  ;;  %v5880_v5 = vadd.f32 %v11187_v8, %v5739_v51  ;;  %6870 = vrcp.f32 %v6129_v63  ;;  %v6130_v60 = vadd.f32 1.0, %v6861_v48  ;;  %v6863_v54 = vpop.eup %6862 }
 0x611   :  { %v5879_v19 = vadd.f32 %v11187_v8, %v5736_v4  ;;  %v6287_v7 = vsel %vm3202_vm9, %v6280_v28, %v6286_v20  ;;  %6872 = vpow2.f32 %v6027_v3  ;;  %v5945_v26 = vsub.f32 0.0, %v5881_v25  ;;  %v6865_v10 = vpop.eup %6864 }
 0x612   :  { %6290 = vst.msk [vmem:[%s11534_s7] sm:$0xff] %vm6289_vm10, %v6287_v7  ;;  %6874 = vrcp.f32 %v6130_v60  ;;  %v5944_v45 = vsub.f32 0.0, %v5880_v5  ;;  %v6301_v11 = vperm.slane %v6863_v54, %v11336_v59  ;;  %v6300_v29 = vperm.slane %v6865_v10, %v11336_v59 }
 0x613   :  { %v5943_v46 = vsub.f32 0.0, %v5879_v19  ;;  %v6035_v37 = vmul.f32 1.442695, %v5945_v26  ;;  %6876 = vrcp.f32 %v6131_v44 }
 0x614   :  { %v6867_v33 = vpop.eup %6866  ;;  %v6033_v40 = vmul.f32 1.442695, %v5944_v45  ;;  %v6308_v61 = vsel %vm3190_vm3, %v6301_v11, %v6300_v29 }
 0x615   :  { %v6134_v36 = vadd.f32 1.0, %v6867_v33  ;;  %v6031_v6 = vmul.f32 1.442695, %v5943_v46  ;;  %v6869_v34 = vpop.eup %6868  ;;  %6878 = vpow2.f32 %v6035_v37  ;;  %v11365_v46 = vadd.s32 4294967272, %v12105_v23 }
 0x616   :  { %v6871_v12 = vpop.eup %6870  ;;  %v6132_v58 = vadd.f32 1.0, %v6869_v34  ;;  %v5751_v18 = vpop.xlane.xlu0 %5750 }
 0x617   :  { %6880 = vrcp.f32 %v6134_v36  ;;  %v5748_v16 = vpop.xlane.xlu1 %5747  ;;  %v6873_v14 = vpop.eup %6872  ;;  %v6302_v49 = vperm.slane %v6871_v12, %v11336_v59  ;;  %v5884_v53 = vadd.f32 %v11187_v8, %v5751_v18 }
 0x618   :  { %6882 = vpow2.f32 %v6031_v6  ;;  %v5745_v31 = vpop.xlane.xlu2 %5744  ;;  %v5883_v32 = vadd.f32 %v11187_v8, %v5748_v16  ;;  %v6875_v22 = vpop.eup %6874  ;;  %v6133_v24 = vadd.f32 1.0, %v6873_v14 }
 0x619   :  { %6884 = vrcp.f32 %v6132_v58  ;;  %v5882_v41 = vadd.f32 %v11187_v8, %v5745_v31  ;;  %v6303_v27 = vperm.slane %v6875_v22, %v11336_v59  ;;  %v5948_v62 = vsub.f32 0.0, %v5884_v53  ;;  %v6877_v43 = vpop.eup %6876 }
 0x61a   :  { %6886 = vpow2.f32 %v6033_v40  ;;  %v6309_v52 = vsel %vm3192_vm4, %v6302_v49, %v6308_v61  ;;  %v5947_v21 = vsub.f32 0.0, %v5883_v32  ;;  %v6304_v38 = vperm.slane %v6877_v43, %v11336_v59 }
 0x61b   :  { %6888 = vrcp.f32 %v6133_v24  ;;  %v5946_v35 = vsub.f32 0.0, %v5882_v41  ;;  %v6879_v47 = vpop.eup %6878  ;;  %v6041_v13 = vmul.f32 1.442695, %v5948_v62  ;;  %v6310_v1 = vsel %vm3194_vm5, %v6303_v27, %v6309_v52 }
 0x61c   :  { %v6039_v30 = vmul.f32 1.442695, %v5947_v21  ;;  %v6137_v50 = vadd.f32 1.0, %v6879_v47  ;;  %v6311_v51 = vsel %vm3196_vm6, %v6304_v38, %v6310_v1 }
 0x61d   :  { %v6881_v2 = vpop.eup %6880  ;;  %v6037_v55 = vmul.f32 1.442695, %v5946_v35  ;;  %6890 = vpow2.f32 %v6041_v13 }
 0x61e   :  { %v6883_v9 = vpop.eup %6882  ;;  %v5760_v39 = vpop.xlane.xlu0 %5759  ;;  %v6307_v44 = vperm.slane %v6881_v2, %v11336_v59 }
 0x61f   :  { %v6885_v17 = vpop.eup %6884  ;;  %v6135_v15 = vadd.f32 1.0, %v6883_v9  ;;  %v5757_v42 = vpop.xlane.xlu1 %5756  ;;  %6892 = vpow2.f32 %v6037_v55  ;;  %v5887_v57 = vadd.f32 %v11187_v8, %v5760_v39 }
 0x620   :  { %v6887_v0 = vpop.eup %6886  ;;  %v6305_v3 = vperm.slane %v6885_v17, %v11336_v59  ;;  %v5754_v20 = vpop.xlane.xlu2 %5753  ;;  %v5886_v63 = vadd.f32 %v11187_v8, %v5757_v42 }
 0x621   :  { %v6889_v56 = vpop.eup %6888  ;;  %6894 = vrcp.f32 %v6135_v15  ;;  %v6136_v48 = vadd.f32 1.0, %v6887_v0  ;;  %v5885_v28 = vadd.f32 %v11187_v8, %v5754_v20  ;;  %v5951_v5 = vsub.f32 0.0, %v5887_v57 }
 0x622   :  { %v6312_v25 = vsel %vm3198_vm7, %v6305_v3, %v6311_v51  ;;  %v6306_v4 = vperm.slane %v6889_v56, %v11336_v59  ;;  %6896 = vpow2.f32 %v6039_v30  ;;  %v5950_v19 = vsub.f32 0.0, %v5886_v63 }
 0x623   :  { %6898 = vrcp.f32 %v6136_v48  ;;  %v5949_v60 = vsub.f32 0.0, %v5885_v28  ;;  %v6047_v7 = vmul.f32 1.442695, %v5951_v5  ;;  %v6891_v26 = vpop.eup %6890 }
 0x624   :  { %v6313_v54 = vsel %vm3200_vm8, %v6306_v4, %v6312_v25  ;;  %6900 = vrcp.f32 %v6137_v50  ;;  %v6045_v59 = vmul.f32 1.442695, %v5950_v19  ;;  %v6140_v29 = vadd.f32 1.0, %v6891_v26 }
 0x625   :  { %v6314_v10 = vsel %vm3202_vm9, %v6307_v44, %v6313_v54  ;;  %v6043_v45 = vmul.f32 1.442695, %v5949_v60  ;;  %v6893_v33 = vpop.eup %6892  ;;  %6902 = vpow2.f32 %v6047_v7 }
 0x626   :  { %6317 = vst.msk [vmem:[%s11534_s7] sm:$0xff] %vm6316_vm11, %v6314_v10  ;;  %v6138_v36 = vadd.f32 1.0, %v6893_v33  ;;  %v5769_v6 = vpop.xlane.xlu0 %5768 }
 0x627   :  { %v6895_v37 = vpop.eup %6894  ;;  %v5766_v34 = vpop.xlane.xlu1 %5765  ;;  %6904 = vpow2.f32 %v6043_v45  ;;  %v5890_v40 = vadd.f32 %v11187_v8, %v5769_v6 }
 0x628   :  { %v6897_v11 = vpop.eup %6896  ;;  %v5763_v12 = vpop.xlane.xlu2 %5762  ;;  %v5889_v58 = vadd.f32 %v11187_v8, %v5766_v34  ;;  %v6327_v16 = vperm.slane %v6895_v37, %v11365_v46  ;;  %6906 = vrcp.f32 %v6138_v36 }
 0x629   :  { %v6899_v18 = vpop.eup %6898  ;;  %v6139_v14 = vadd.f32 1.0, %v6897_v11  ;;  %v5888_v49 = vadd.f32 %v11187_v8, %v5763_v12  ;;  %6908 = vpow2.f32 %v6045_v59  ;;  %v5954_v32 = vsub.f32 0.0, %v5890_v40 }
 0x62a   :  { %v6901_v53 = vpop.eup %6900  ;;  %v6328_v31 = vperm.slane %v6899_v18, %v11365_v46  ;;  %v5953_v22 = vsub.f32 0.0, %v5889_v58 }
 0x62b   :  { %6910 = vrcp.f32 %v6139_v14  ;;  %v5952_v24 = vsub.f32 0.0, %v5888_v49  ;;  %v6053_v41 = vmul.f32 1.442695, %v5954_v32  ;;  %v6903_v61 = vpop.eup %6902  ;;  %v6329_v27 = vperm.slane %v6901_v53, %v11365_v46 }
 0x62c   :  { %v6335_v52 = vsel %vm3190_vm3, %v6328_v31, %v6327_v16  ;;  %6912 = vrcp.f32 %v6140_v29  ;;  %v6051_v35 = vmul.f32 1.442695, %v5953_v22  ;;  %v6143_v0 = vadd.f32 1.0, %v6903_v61 }
 0x62d   :  { %v6049_v62 = vmul.f32 1.442695, %v5952_v24  ;;  %v6905_v43 = vpop.eup %6904  ;;  %6914 = vpow2.f32 %v6053_v41  ;;  %v6336_v50 = vsel %vm3192_vm4, %v6329_v27, %v6335_v52  ;;  %v11397_v14 = vadd.s32 4294967264, %v12105_v23 }
 0x62e   :  { %v6907_v21 = vpop.eup %6906  ;;  %v6141_v47 = vadd.f32 1.0, %v6905_v43  ;;  %v5778_v13 = vpop.xlane.xlu0 %5777 }
 0x62f   :  { %v5775_v2 = vpop.xlane.xlu1 %5774  ;;  %v6909_v55 = vpop.eup %6908  ;;  %v6330_v9 = vperm.slane %v6907_v21, %v11365_v46  ;;  %6916 = vpow2.f32 %v6049_v62  ;;  %v5893_v1 = vadd.f32 %v11187_v8, %v5778_v13 }
 0x630   :  { %v5772_v30 = vpop.xlane.xlu2 %5771  ;;  %v5892_v17 = vadd.f32 %v11187_v8, %v5775_v2  ;;  %6918 = vrcp.f32 %v6141_v47  ;;  %v6142_v15 = vadd.f32 1.0, %v6909_v55 }
 0x631   :  { %v6911_v38 = vpop.eup %6910  ;;  %v5891_v39 = vadd.f32 %v11187_v8, %v5772_v30  ;;  %6920 = vpow2.f32 %v6051_v35  ;;  %v5957_v3 = vsub.f32 0.0, %v5893_v1  ;;  %v6337_v57 = vsel %vm3194_vm5, %v6330_v9, %v6336_v50 }
 0x632   :  { %v6331_v42 = vperm.slane %v6911_v38, %v11365_v46  ;;  %6922 = vrcp.f32 %v6142_v15  ;;  %v5956_v63 = vsub.f32 0.0, %v5892_v17  ;;  %v6913_v56 = vpop.eup %6912 }
 0x633   :  { %v5955_v20 = vsub.f32 0.0, %v5891_v39  ;;  %v6059_v51 = vmul.f32 1.442695, %v5957_v3  ;;  %v6915_v48 = vpop.eup %6914  ;;  %6924 = vrcp.f32 %v6143_v0  ;;  %v6332_v60 = vperm.slane %v6913_v56, %v11365_v46 }
 0x634   :  { %v6338_v4 = vsel %vm3196_vm6, %v6331_v42, %v6337_v57  ;;  %v6057_v5 = vmul.f32 1.442695, %v5956_v63  ;;  %v6146_v11 = vadd.f32 1.0, %v6915_v48 }
 0x635   :  { %v6055_v28 = vmul.f32 1.442695, %v5955_v20  ;;  %v6917_v25 = vpop.eup %6916  ;;  %6926 = vpow2.f32 %v6059_v51  ;;  %v6339_v59 = vsel %vm3198_vm7, %v6332_v60, %v6338_v4 }
 0x636   :  { %v6919_v44 = vpop.eup %6918  ;;  %v6144_v19 = vadd.f32 1.0, %v6917_v25  ;;  %v5787_v54 = vpop.xlane.xlu0 %5786 }
 0x637   :  { %v5784_v7 = vpop.xlane.xlu1 %5783  ;;  %v6921_v26 = vpop.eup %6920  ;;  %v6333_v10 = vperm.slane %v6919_v44, %v11365_v46  ;;  %6928 = vpow2.f32 %v6055_v28  ;;  %v5896_v52 = vadd.f32 %v11187_v8, %v5787_v54 }
 0x638   :  { %v5781_v45 = vpop.xlane.xlu2 %5780  ;;  %v6923_v33 = vpop.eup %6922  ;;  %6930 = vrcp.f32 %v6144_v19  ;;  %v6145_v37 = vadd.f32 1.0, %v6921_v26  ;;  %v5895_v13 = vadd.f32 %v11187_v8, %v5784_v7 }
 0x639   :  { %v5894_v36 = vadd.f32 %v11187_v8, %v5781_v45  ;;  %v6340_v6 = vsel %vm3200_vm8, %v6333_v10, %v6339_v59  ;;  %v6334_v34 = vperm.slane %v6923_v33, %v11365_v46  ;;  %6932 = vpow2.f32 %v6057_v5  ;;  %v6925_v40 = vpop.eup %6924 }
 0x63a   :  { %6934 = vrcp.f32 %v6145_v37  ;;  %v6354_v27 = vperm.slane %v6925_v40, %v11397_v14  ;;  %v5960_v9 = vsub.f32 0.0, %v5896_v52  ;;  %v5959_v20 = vsub.f32 0.0, %v5895_v13 }
 0x63b   :  { %v5958_v29 = vsub.f32 0.0, %v5894_v36  ;;  %v6341_v12 = vsel %vm3202_vm9, %v6334_v34, %v6340_v6  ;;  %v6927_v58 = vpop.eup %6926  ;;  %6936 = vrcp.f32 %v6146_v11 }
 0x63c   :  { %6344 = vst.msk [vmem:[%s11534_s7] sm:$0xff] %vm6343_vm12, %v6341_v12  ;;  %v6149_v62 = vadd.f32 1.0, %v6927_v58  ;;  %v6065_v51 = vmul.f32 1.442695, %v5960_v9  ;;  %v6063_v60 = vmul.f32 1.442695, %v5959_v20 }
 0x63d   :  { %v6061_v18 = vmul.f32 1.442695, %v5958_v29  ;;  %v6929_v16 = vpop.eup %6928 }
 0x63e   :  { %v6931_v49 = vpop.eup %6930  ;;  %v6147_v46 = vadd.f32 1.0, %v6929_v16  ;;  %v5811_v53 = vpop.xlane.xlu0 %5810 }
 0x63f   :  { %v5808_v31 = vpop.xlane.xlu1 %5807  ;;  %v6933_v32 = vpop.eup %6932  ;;  %v6355_v22 = vperm.slane %v6931_v49, %v11397_v14  ;;  %6938 = vpow2.f32 %v6061_v18  ;;  %v5904_v15 = vadd.f32 %v11187_v8, %v5811_v53 }
 0x640   :  { %v5790_v24 = vpop.xlane.xlu2 %5789  ;;  %v6935_v41 = vpop.eup %6934  ;;  %6940 = vrcp.f32 %v6147_v46  ;;  %v6148_v61 = vadd.f32 1.0, %v6933_v32  ;;  %v5903_v63 = vadd.f32 %v11187_v8, %v5808_v31 }
 0x641   :  { %v6356_v43 = vperm.slane %v6935_v41, %v11397_v14  ;;  %v6362_v35 = vsel %vm3190_vm3, %v6355_v22, %v6354_v27  ;;  %v6937_v21 = vpop.eup %6936  ;;  %v5897_v0 = vadd.f32 %v11187_v8, %v5790_v24  ;;  %v5968_v25 = vsub.f32 0.0, %v5904_v15 }
 0x642   :  { %6942 = vrcp.f32 %v6148_v61  ;;  %v6357_v38 = vperm.slane %v6937_v21, %v11397_v14  ;;  %v5967_v19 = vsub.f32 0.0, %v5903_v63 }
 0x643   :  { %6944 = vrcp.f32 %v6149_v62  ;;  %v6363_v55 = vsel %vm3192_vm4, %v6356_v43, %v6362_v35  ;;  %v5961_v5 = vsub.f32 0.0, %v5897_v0  ;;  %v6081_v59 = vmul.f32 1.442695, %v5968_v25 }
 0x644   :  { %v6364_v3 = vsel %vm3194_vm5, %v6357_v38, %v6363_v55  ;;  %v6079_v40 = vmul.f32 1.442695, %v5967_v19 }
 0x645   :  { %v6939_v47 = vpop.eup %6938  ;;  %v6067_v11 = vmul.f32 1.442695, %v5961_v5 }
 0x646   :  { %v6941_v2 = vpop.eup %6940  ;;  %v6150_v1 = vadd.f32 1.0, %v6939_v47  ;;  %v5832_v30 = vpop.xlane.xlu0 %5831 }
 0x647   :  { %v5814_v17 = vpop.xlane.xlu1 %5813  ;;  %v6358_v50 = vperm.slane %v6941_v2, %v11397_v14  ;;  %v5911_v48 = vadd.f32 %v11187_v8, %v5832_v30 }
 0x648   :  { %v5793_v39 = vpop.xlane.xlu2 %5792  ;;  %v6943_v42 = vpop.eup %6942  ;;  %6946 = vrcp.f32 %v6150_v1  ;;  %v5905_v36 = vadd.f32 %v11187_v8, %v5814_v17 }
 0x649   :  { %v6359_v57 = vperm.slane %v6943_v42, %v11397_v14  ;;  %v6365_v56 = vsel %vm3196_vm6, %v6358_v50, %v6364_v3  ;;  %v6945_v28 = vpop.eup %6944  ;;  %v5898_v4 = vadd.f32 %v11187_v8, %v5793_v39  ;;  %6948 = vpow2.f32 %v6065_v51 }
 0x64a   :  { %v6360_v7 = vperm.slane %v6945_v28, %v11397_v14  ;;  %v5975_v26 = vsub.f32 0.0, %v5911_v48  ;;  %6950 = vpow2.f32 %v6063_v60  ;;  %v5969_v16 = vsub.f32 0.0, %v5905_v36 }
 0x64b   :  { %v6366_v44 = vsel %vm3198_vm7, %v6359_v57, %v6365_v56  ;;  %v5962_v37 = vsub.f32 0.0, %v5898_v4  ;;  %6952 = vpow2.f32 %v6081_v59 }
 0x64c   :  { %v6367_v34 = vsel %vm3200_vm8, %v6360_v7, %v6366_v44  ;;  %v6095_v58 = vmul.f32 1.442695, %v5975_v26  ;;  %6954 = vpow2.f32 %v6067_v11  ;;  %v6083_v22 = vmul.f32 1.442695, %v5969_v16 }
 0x64d   :  { %v6069_v18 = vmul.f32 1.442695, %v5962_v37  ;;  %6956 = vpow2.f32 %v6079_v40 }
 0x64e   :  { %v6947_v54 = vpop.eup %6946  ;;  %v5817_v10 = vpop.xlane.xlu0 %5816  ;;  %6958 = vpow2.f32 %v6095_v58 }
 0x64f   :  { %v5796_v45 = vpop.xlane.xlu1 %5795  ;;  %v6361_v33 = vperm.slane %v6947_v54, %v11397_v14  ;;  %v5906_v12 = vadd.f32 %v11187_v8, %v5817_v10  ;;  %v6949_v49 = vpop.eup %6948  ;;  %6960 = vpow2.f32 %v6069_v18 }
 0x650   :  { %v5835_v6 = vpop.xlane.xlu2 %5834  ;;  %v6951_v32 = vpop.eup %6950  ;;  %v6152_v61 = vadd.f32 1.0, %v6949_v49  ;;  %v5899_v43 = vadd.f32 %v11187_v8, %v5796_v45  ;;  %6962 = vpow2.f32 %v6083_v22 }
 0x651   :  { %v6368_v29 = vsel %vm3202_vm9, %v6361_v33, %v6367_v34  ;;  %v5912_v14 = vadd.f32 %v11187_v8, %v5835_v6  ;;  %v5970_v46 = vsub.f32 0.0, %v5906_v12  ;;  %v6953_v27 = vpop.eup %6952  ;;  %v6151_v35 = vadd.f32 1.0, %v6951_v32 }
 0x652   :  { %6371 = vst.msk [vmem:[%s11534_s7] sm:$0xff] %vm6370_vm13, %v6368_v29  ;;  %v6955_v52 = vpop.eup %6954  ;;  %6964 = vrcp.f32 %v6152_v61  ;;  %v6160_v9 = vadd.f32 1.0, %v6953_v27  ;;  %v5963_v17 = vsub.f32 0.0, %v5899_v43 }
 0x653   :  { %v5976_v24 = vsub.f32 0.0, %v5912_v14  ;;  %v6085_v62 = vmul.f32 1.442695, %v5970_v46  ;;  %v6957_v47 = vpop.eup %6956  ;;  %v6153_v30 = vadd.f32 1.0, %v6955_v52 }
 0x654   :  { %v6959_v55 = vpop.eup %6958  ;;  %v6159_v38 = vadd.f32 1.0, %v6957_v47  ;;  %v6071_v51 = vmul.f32 1.442695, %v5963_v17 }
 0x655   :  { %v6097_v13 = vmul.f32 1.442695, %v5976_v24  ;;  %v6961_v1 = vpop.eup %6960  ;;  %6966 = vpow2.f32 %v6085_v62  ;;  %v6167_v39 = vadd.f32 1.0, %v6959_v55 }
 0x656   :  { %v5820_v53 = vpop.xlane.xlu0 %5819  ;;  %6968 = vrcp.f32 %v6151_v35  ;;  %v6154_v20 = vadd.f32 1.0, %v6961_v1  ;;  %v6963_v56 = vpop.eup %6962 }
 0x657   :  { %v5799_v31 = vpop.xlane.xlu1 %5798  ;;  %v5907_v21 = vadd.f32 %v11187_v8, %v5820_v53  ;;  %6970 = vpow2.f32 %v6097_v13  ;;  %v6161_v7 = vadd.f32 1.0, %v6963_v56 }
 0x658   :  { %v5838_v41 = vpop.xlane.xlu2 %5837  ;;  %v5900_v2 = vadd.f32 %v11187_v8, %v5799_v31  ;;  %6972 = vrcp.f32 %v6160_v9  ;;  %v11433_v28 = vpop.eup %6964 }
 0x659   :  { %v5971_v50 = vsub.f32 0.0, %v5907_v21  ;;  %v5913_v42 = vadd.f32 %v11187_v8, %v5838_v41  ;;  %6974 = vrcp.f32 %v6153_v30 }
 0x65a   :  { %v5964_v0 = vsub.f32 0.0, %v5900_v2  ;;  %6976 = vrcp.f32 %v6159_v38 }
 0x65b   :  { %v6087_v25 = vmul.f32 1.442695, %v5971_v50  ;;  %v6967_v44 = vpop.eup %6966  ;;  %6978 = vrcp.f32 %v6167_v39  ;;  %v5977_v60 = vsub.f32 0.0, %v5913_v42 }
 0x65c   :  { %v6073_v19 = vmul.f32 1.442695, %v5964_v0  ;;  %v11436_v54 = vpop.eup %6968  ;;  %6980 = vrcp.f32 %v6154_v20  ;;  %v6162_v59 = vadd.f32 1.0, %v6967_v44 }
 0x65d   :  { %v6971_v26 = vpop.eup %6970  ;;  %6982 = vpow2.f32 %v6071_v51  ;;  %v6099_v34 = vmul.f32 1.442695, %v5977_v60 }
 0x65e   :  { %v5823_v15 = vpop.xlane.xlu0 %5822  ;;  %v11438_v33 = vpop.eup %6972  ;;  %6984 = vpow2.f32 %v6087_v25  ;;  %v6168_v58 = vadd.f32 1.0, %v6971_v26  ;;  %v11461_v25 = vadd.s32 4294967256, %v12105_v23 }
 0x65f   :  { %v5802_v57 = vpop.xlane.xlu1 %5801  ;;  %v5908_v48 = vadd.f32 %v11187_v8, %v5823_v15  ;;  %v11440_v6 = vpop.eup %6974  ;;  %6986 = vpow2.f32 %v6073_v19 }
 0x660   :  { %v5841_v3 = vpop.xlane.xlu2 %5840  ;;  %v5901_v63 = vadd.f32 %v11187_v8, %v5802_v57  ;;  %v11443_v12 = vpop.eup %6976  ;;  %6988 = vrcp.f32 %v6161_v7 }
 0x661   :  { %v5914_v4 = vadd.f32 %v11187_v8, %v5841_v3  ;;  %v5972_v10 = vsub.f32 0.0, %v5908_v48  ;;  %v11447_v14 = vpop.eup %6978 }
 0x662   :  { %v5965_v5 = vsub.f32 0.0, %v5901_v63  ;;  %v11449_v53 = vpop.eup %6980 }
 0x663   :  { %v5978_v37 = vsub.f32 0.0, %v5914_v4  ;;  %v6089_v49 = vmul.f32 1.442695, %v5972_v10  ;;  %v6983_v24 = vpop.eup %6982 }
 0x664   :  { %v6075_v45 = vmul.f32 1.442695, %v5965_v5  ;;  %v6985_v61 = vpop.eup %6984  ;;  %v6155_v35 = vadd.f32 1.0, %v6983_v24 }
 0x665   :  { %v6101_v31 = vmul.f32 1.442695, %v5978_v37  ;;  %v6987_v62 = vpop.eup %6986  ;;  %v6163_v13 = vadd.f32 1.0, %v6985_v61  ;;  %v6382_v37 = vperm.slane %v11433_v28, %v11461_v25  ;;  %v11475_v28 = vadd.s32 4294967248, %v12105_v23 }
 0x666   :  { %v5826_v36 = vpop.xlane.xlu0 %5825  ;;  %6990 = vpow2.f32 %v6075_v45  ;;  %v11451_v52 = vpop.eup %6988  ;;  %v6156_v1 = vadd.f32 1.0, %v6987_v62 }
 0x667   :  { %v5909_v29 = vadd.f32 %v11187_v8, %v5826_v36  ;;  %v5805_v40 = vpop.xlane.xlu1 %5804  ;;  %6992 = vrcp.f32 %v6162_v59  ;;  %v6381_v36 = vperm.slane %v11436_v54, %v11461_v25 }
 0x668   :  { %v5844_v11 = vpop.xlane.xlu2 %5843  ;;  %v5902_v16 = vadd.f32 %v11187_v8, %v5805_v40  ;;  %6994 = vpow2.f32 %v6099_v34 }
 0x669   :  { %v5915_v18 = vadd.f32 %v11187_v8, %v5844_v11  ;;  %v5973_v46 = vsub.f32 0.0, %v5909_v29  ;;  %6996 = vrcp.f32 %v6168_v58  ;;  %v6383_v29 = vperm.slane %v11440_v6, %v11461_v25 }
 0x66a   :  { %v5966_v22 = vsub.f32 0.0, %v5902_v16  ;;  %6998 = vpow2.f32 %v6089_v49 }
 0x66b   :  { %v5979_v32 = vsub.f32 0.0, %v5915_v18  ;;  %v6091_v41 = vmul.f32 1.442695, %v5973_v46  ;;  %7000 = vpow2.f32 %v6101_v31  ;;  %v6389_v31 = vsel %vm3190_vm3, %v6382_v37, %v6381_v36 }
 0x66c   :  { %v6077_v43 = vmul.f32 1.442695, %v5966_v22  ;;  %v6991_v47 = vpop.eup %6990  ;;  %v6390_v22 = vsel %vm3192_vm4, %v6383_v29, %v6389_v31 }
 0x66d   :  { %v6103_v27 = vmul.f32 1.442695, %v5979_v32  ;;  %7002 = vpow2.f32 %v6091_v41  ;;  %v11454_v9 = vpop.eup %6992  ;;  %v6157_v38 = vadd.f32 1.0, %v6991_v47 }
 0x66e   :  { %v5850_v21 = vpop.xlane.xlu0 %5849  ;;  %v6995_v17 = vpop.eup %6994 }
 0x66f   :  { %v5917_v55 = vadd.f32 %v11187_v8, %v5850_v21  ;;  %7004 = vpow2.f32 %v6103_v27  ;;  %v5829_v15 = vpop.xlane.xlu1 %5828  ;;  %v11457_v39 = vpop.eup %6996  ;;  %v6169_v63 = vadd.f32 1.0, %v6995_v17  ;;  %v6434_v27 = vadd.s32 4294967240, %v12105_v23 }
 0x670   :  { %v5847_v2 = vpop.xlane.xlu2 %5846  ;;  %7006 = vpow2.f32 %v6077_v43  ;;  %v5910_v0 = vadd.f32 %v11187_v8, %v5829_v15  ;;  %v6999_v3 = vpop.eup %6998 }
 0x671   :  { %v5916_v30 = vadd.f32 %v11187_v8, %v5847_v2  ;;  %v5981_v50 = vsub.f32 0.0, %v5917_v55  ;;  %7008 = vrcp.f32 %v6155_v35  ;;  %v7001_v20 = vpop.eup %7000  ;;  %v6164_v60 = vadd.f32 1.0, %v6999_v3 }
 0x672   :  { %7010 = vrcp.f32 %v6163_v13  ;;  %v5974_v51 = vsub.f32 0.0, %v5910_v0  ;;  %v6170_v26 = vadd.f32 1.0, %v7001_v20  ;;  %v6409_v35 = vperm.slane %v11438_v33, %v11475_v28 }
 0x673   :  { %v5980_v42 = vsub.f32 0.0, %v5916_v30  ;;  %v6107_v57 = vmul.f32 1.442695, %v5981_v50  ;;  %7012 = vrcp.f32 %v6156_v1  ;;  %v7003_v48 = vpop.eup %7002  ;;  %v6408_v2 = vperm.slane %v11443_v12, %v11475_v28 }
 0x674   :  { %7014 = vrcp.f32 %v6157_v38  ;;  %v6093_v5 = vmul.f32 1.442695, %v5974_v51  ;;  %v6165_v34 = vadd.f32 1.0, %v7003_v48  ;;  %v6410_v30 = vperm.slane %v11451_v52, %v11475_v28 }
 0x675   :  { %v6105_v56 = vmul.f32 1.442695, %v5980_v42  ;;  %v7005_v4 = vpop.eup %7004  ;;  %7016 = vpow2.f32 %v6107_v57  ;;  %v6411_v38 = vperm.slane %v11454_v9, %v11475_v28  ;;  %v6436_v15 = vperm.slane %v11457_v39, %v6434_v27 }
 0x676   :  { %v7007_v44 = vpop.eup %7006  ;;  %v6171_v40 = vadd.f32 1.0, %v7005_v4  ;;  %v6416_v0 = vsel %vm3190_vm3, %v6409_v35, %v6408_v2  ;;  %v6435_v3 = vperm.slane %v11447_v14, %v6434_v27 }
 0x677   :  { %7018 = vpow2.f32 %v6105_v56  ;;  %v7009_v7 = vpop.eup %7008  ;;  %v6158_v10 = vadd.f32 1.0, %v7007_v44  ;;  %v6417_v20 = vsel %vm3192_vm4, %v6410_v30, %v6416_v0 }
 0x678   :  { %v5853_v19 = vpop.xlane.xlu2 %5852  ;;  %7020 = vrcp.f32 %v6169_v63  ;;  %v11464_v59 = vpop.eup %7010  ;;  %v6385_v54 = vperm.slane %v7009_v7, %v11461_v25  ;;  %v6418_v51 = vsel %vm3194_vm5, %v6411_v38, %v6417_v20  ;;  %v6443_v4 = vsel %vm3190_vm3, %v6436_v15, %v6435_v3 }
 0x679   :  { %v5918_v45 = vadd.f32 %v11187_v8, %v5853_v19  ;;  %7022 = vpow2.f32 %v6093_v5  ;;  %v7013_v11 = vpop.eup %7012  ;;  %v6384_v8 = vperm.slane %v11449_v53, %v11461_v25  ;;  %v6412_v42 = vperm.slane %v11464_v59, %v11475_v28 }
 0x67a   :  { %7024 = vrcp.f32 %v6158_v10  ;;  %v7015_v18 = vpop.eup %7014  ;;  %v6386_v6 = vperm.slane %v7013_v11, %v11461_v25 }
 0x67b   :  { %v5982_v58 = vsub.f32 0.0, %v5918_v45  ;;  %7026 = vrcp.f32 %v6164_v60  ;;  %v7017_v16 = vpop.eup %7016  ;;  %v6387_v53 = vperm.slane %v7015_v18, %v11461_v25  ;;  %v6391_v61 = vsel %vm3194_vm5, %v6384_v8, %v6390_v22 }
 0x67c   :  { %7028 = vrcp.f32 %v6170_v26  ;;  %v6173_v62 = vadd.f32 1.0, %v7017_v16  ;;  %v6392_v21 = vsel %vm3196_vm6, %v6385_v54, %v6391_v61  ;;  %v6419_v5 = vsel %vm3196_vm6, %v6412_v42, %v6418_v51 }
 0x67d   :  { %v6109_v49 = vmul.f32 1.442695, %v5982_v58  ;;  %v7019_v46 = vpop.eup %7018  ;;  %7030 = vrcp.f32 %v6165_v34  ;;  %v6393_v55 = vsel %vm3198_vm7, %v6386_v6, %v6392_v21 }
 0x67e   :  { %v7021_v32 = vpop.eup %7020  ;;  %7032 = vrcp.f32 %v6171_v40  ;;  %v6172_v24 = vadd.f32 1.0, %v7019_v46  ;;  %v6394_v17 = vsel %vm3200_vm8, %v6387_v53, %v6393_v55 }
 0x67f   :  { %v7023_v41 = vpop.eup %7022  ;;  %7034 = vpow2.f32 %v6109_v49  ;;  %v6437_v63 = vperm.slane %v7021_v32, %v6434_v27 }
 0x680   :  { %v7025_v43 = vpop.eup %7024  ;;  %7036 = vrcp.f32 %v6172_v24  ;;  %v6166_v47 = vadd.f32 1.0, %v7023_v41 }
 0x681   :  { %v7027_v13 = vpop.eup %7026  ;;  %v6388_v1 = vperm.slane %v7025_v43, %v11461_v25  ;;  %v6444_v26 = vsel %vm3192_vm4, %v6437_v63, %v6443_v4 }
 0x682   :  { %v7029_v23 = vpop.eup %7028  ;;  %7038 = vrcp.f32 %v6166_v47  ;;  %v6413_v9 = vperm.slane %v7027_v13, %v11475_v28 }
 0x683   :  { %v7031_v33 = vpop.eup %7030  ;;  %v6395_v50 = vsel %vm3202_vm9, %v6388_v1, %v6394_v17  ;;  %7040 = vrcp.f32 %v6173_v62  ;;  %v6438_v48 = vperm.slane %v7029_v23, %v6434_v27 }
 0x684   :  { %v7033_v12 = vpop.eup %7032  ;;  %6398 = vst.msk [vmem:[%s11534_s7] sm:$0xff] %vm6397_vm14, %v6395_v50  ;;  %v6414_v39 = vperm.slane %v7031_v33, %v11475_v28  ;;  %v6420_v60 = vsel %vm3198_vm7, %v6413_v9, %v6419_v5 }
 0x685   :  { %v7035_v52 = vpop.eup %7034  ;;  %v6439_v44 = vperm.slane %v7033_v12, %v6434_v27  ;;  %v6445_v45 = vsel %vm3194_vm5, %v6438_v48, %v6444_v26 }
 0x686   :  { %v7037_v57 = vpop.eup %7036  ;;  %v6174_v56 = vadd.f32 1.0, %v7035_v52  ;;  %v6421_v10 = vsel %vm3200_vm8, %v6414_v39, %v6420_v60 }
 0x687   :  { %v6440_v19 = vperm.slane %v7037_v57, %v6434_v27  ;;  %v6446_v37 = vsel %vm3196_vm6, %v6439_v44, %v6445_v45 }
 0x688   :  { %v7039_v25 = vpop.eup %7038  ;;  %7042 = vrcp.f32 %v6174_v56 }
 0x689   :  { %v7041_v14 = vpop.eup %7040  ;;  %v6415_v7 = vperm.slane %v7039_v25, %v11475_v28  ;;  %v6447_v34 = vsel %vm3198_vm7, %v6440_v19, %v6446_v37 }
 0x68a   :  { %v6441_v36 = vperm.slane %v7041_v14, %v6434_v27 }
 0x68b   :  { %v6422_v59 = vsel %vm3202_vm9, %v6415_v7, %v6421_v10 }
 0x68c   :  { %6425 = vst.msk [vmem:[%s11534_s7] sm:$0xff] %vm6424_vm15, %v6422_v59  ;;  %v6448_v40 = vsel %vm3200_vm8, %v6441_v36, %v6447_v34 }
 0x68e   :  { %v7043_v11 = vpop.eup %7042 }
 0x68f   :  { %v6442_v29 = vperm.slane %v7043_v11, %v6434_v27 }
 0x691   :  { %v6449_v58 = vsel %vm3202_vm9, %v6442_v29, %v6448_v40 }
 0x692   :  { %6452 = vst.msk [vmem:[%s11534_s7] sm:$0xff] %vm6451_vm0, %v6449_v58 }

</bundles_post_ra>
